<compile_context>
chip_gen: v7x
topology: tpu7x:2x2x1
jax: 0.10.0
libtpu: 0.0.40
codegen_flags: <defaults>
</compile_context>

<pallas_src>
import functools

import numpy as np
import jax
import jax.numpy as jnp
from jax.experimental import pallas as pl
from jax.experimental.pallas import tpu as pltpu

_K, _PAD, _STRIDE = 5, 2, 2
_KK = _K * _K


# ----------------------------------------------------------------------------
# One-time parameter preparation (hoisted off the forward path)
# ----------------------------------------------------------------------------
def _selection_matrix(h_in, w_in, h_out, w_out):
    """0/1 gather matrix for a 5x5 / stride-2 / pad-2 conv (per sample).

    Row index = t * (h_out*w_out) + (oi*w_out + oj) with t = dy*5 + dx.
    Col index = ii*w_in + jj (input spatial position); rows hitting zero
    padding are all-zero.
    """
    m_out, m_in = h_out * w_out, h_in * w_in
    s = np.zeros((_KK * m_out, m_in), np.float32)
    for dy in range(_K):
        for dx in range(_K):
            t = dy * _K + dx
            for oi in range(h_out):
                ii = _STRIDE * oi + dy - _PAD
                if not (0 <= ii < h_in):
                    continue
                for oj in range(w_out):
                    jj = _STRIDE * oj + dx - _PAD
                    if not (0 <= jj < w_in):
                        continue
                    s[t * m_out + oi * w_out + oj, ii * w_in + jj] = 1.0
    return s


def _out_hw(h):
    return (h + 2 * _PAD - _K) // _STRIDE + 1


def prepare_params(w1, w2, w3, dense_w, dense_b, input_hw=16):
    """Precompute kernel-layout params from the PyTorch tensors (OIHW / (out,in))."""
    def col(w):  # (O, I, 5, 5) -> (25*I, O), row = (dy*5+dx)*I + i
        return jnp.transpose(w, (2, 3, 1, 0)).reshape(_KK * w.shape[1], w.shape[0])

    c3 = w3.shape[0]
    h1 = _out_hw(input_hw)
    h2 = _out_hw(h1)
    h3 = _out_hw(h2)

    return {
        "w1": col(w1).astype(jnp.bfloat16),                              # (25*Cin, 32)
        "w2": col(w2).astype(jnp.bfloat16),                              # (800, 64)
        "w3": col(w3).astype(jnp.bfloat16),                              # (1600, 128)
        "s2": jnp.asarray(_selection_matrix(h1, h1, h2, h2), jnp.bfloat16),  # (400, 64)
        "s3": jnp.asarray(_selection_matrix(h2, h2, h3, h3), jnp.bfloat16),  # (100, 16)
        # torch flattens NCHW (feature = c*h3*w3 + p) -> pre-permute to (spatial, channel)
        "wd": jnp.asarray(dense_w.reshape(c3, h3 * h3).T, jnp.float32),  # (4, 128)
        "b": jnp.asarray(dense_b, jnp.float32).reshape(1, 1),
    }


# ----------------------------------------------------------------------------
# Fused Pallas kernel (B batch samples per grid step)
# ----------------------------------------------------------------------------
def _fused_disc_kernel(slab_ref, w1_ref, s2_ref, w2_ref, s3_ref, w3_ref,
                       wd_ref, asel_ref, b_ref, o_ref,
                       y1_ref, y1cat, z2cat, slab2, y2_ref, y2cat, z3cat, slab3,
                       *, bsz, neg_slope):
    f32, bf16 = jnp.float32, jnp.bfloat16
    m1 = s2_ref.shape[1]            # 64   (8x8)
    m2 = s2_ref.shape[0] // _KK     # 16   (4x4)
    m3 = s3_ref.shape[0] // _KK     # 4    (2x2)
    c1 = w1_ref.shape[1]            # 32
    c2 = w2_ref.shape[1]            # 64

    def act(v):
        # nn.LeakyReLU(True): negative_slope == float(True) == 1.0 -> identity,
        # elided at compile time (a real slope still works).
        if neg_slope == 1.0:
            return v
        return jnp.where(v >= 0, v, neg_slope * v)

    # ---- layer 1: single batched im2col matmul, M = B*64, K = 100, N = 32 ----
    y1_ref[...] = act(jnp.dot(slab_ref[...], w1_ref[...],
                              preferred_element_type=f32)).astype(bf16)
    # batch -> lanes so the layer-2 gather matmul runs with B*32 (>=256) lanes
    for b in range(bsz):
        y1cat[:, b * c1:(b + 1) * c1] = y1_ref[b * m1:(b + 1) * m1, :]

    # ---- layer 2 -------------------------------------------------------------
    # gather (5x5 / s2 / p2 incl. zero padding) as ONE wide matmul: (400,64)@(64,B*32)
    z2cat[...] = jnp.dot(s2_ref[...], y1cat[...],
                         preferred_element_type=f32).astype(bf16)
    # tap-major rows / (batch,chan) lanes -> position-major im2col slab (B*16, 800)
    for t in range(_KK):
        zt = z2cat[t * m2:(t + 1) * m2, :]                      # (16, B*32)
        for b in range(bsz):
            slab2[b * m2:(b + 1) * m2, t * c1:(t + 1) * c1] = zt[:, b * c1:(b + 1) * c1]
    # conv2 as ONE matmul with contraction K = 25*32 = 800
    y2_ref[...] = act(jnp.dot(slab2[...], w2_ref[...],
                              preferred_element_type=f32)).astype(bf16)
    for b in range(bsz):
        y2cat[:, b * c2:(b + 1) * c2] = y2_ref[b * m2:(b + 1) * m2, :]

    # ---- layer 3 -------------------------------------------------------------
    z3cat[...] = jnp.dot(s3_ref[...], y2cat[...],
                         preferred_element_type=f32).astype(bf16)
    for t in range(_KK):
        zt = z3cat[t * m3:(t + 1) * m3, :]                      # (4, B*64)
        for b in range(bsz):
            slab3[b * m3:(b + 1) * m3, t * c2:(t + 1) * c2] = zt[:, b * c2:(b + 1) * c2]
    # conv3 as ONE matmul with contraction K = 25*64 = 1600
    y3 = act(jnp.dot(slab3[...], w3_ref[...], preferred_element_type=f32))  # (B*4, 128) f32

    # ---- dense (128*2*2 -> 1); torch NCHW flatten folded into wd ------------
    prod = y3 * wd_ref[...]                                     # (B*4, 128) f32
    g = jnp.dot(asel_ref[...], prod, preferred_element_type=f32)  # (B, 128) per-sample sums over p
    o_ref[...] = jnp.sum(g, axis=1, keepdims=True) + b_ref[...]   # (B, 1), one store per step


# ----------------------------------------------------------------------------
# Forward wrapper
# ----------------------------------------------------------------------------
@functools.partial(jax.jit, static_argnames=("neg_slope", "batch_block"))
def feature_discriminator_forward(x_nchw, params, neg_slope=1.0, batch_block=8):
    """Pallas version of Feature_Discriminator.forward (base_model_name != 'resnet')."""
    N, C, H, W = x_nchw.shape
    Ho, Wo = _out_hw(H), _out_hw(W)
    m1 = Ho * Wo
    B = int(batch_block)
    Npad = -(-N // B) * B
    G = Npad // B

    # Layer-1 im2col slab (tiny XLA glue on the raw input only; fused by XLA).
    x = jnp.transpose(x_nchw, (0, 2, 3, 1))                       # NCHW -> NHWC
    xp = jnp.pad(x, ((0, 0), (_PAD, _PAD), (_PAD, _PAD), (0, 0)))
    patches = [xp[:, dy:dy + _STRIDE * Ho:_STRIDE, dx:dx + _STRIDE * Wo:_STRIDE, :]
               for dy in range(_K) for dx in range(_K)]           # 25 x (N, Ho, Wo, C)
    slab = jnp.stack(patches, axis=3).reshape(N, m1, _KK * C).astype(jnp.bfloat16)
    if Npad != N:
        slab = jnp.pad(slab, ((0, Npad - N), (0, 0), (0, 0)))
    slab = slab.reshape(Npad * m1, _KK * C)                       # (Npad*64, 100)

    w1, s2, w2 = params["w1"], params["s2"], params["w2"]
    s3, w3, wd, bias = params["s3"], params["w3"], params["wd"], params["b"]
    m2 = s2.shape[0] // _KK
    m3 = s3.shape[0] // _KK
    c1, c2, c3 = w1.shape[1], w2.shape[1], w3.shape[1]

    # Resident helpers for the in-kernel dense reduction (built once per trace).
    wd_tiled = jnp.tile(wd, (B, 1))                               # (B*4, 128) f32
    asel = jnp.kron(jnp.eye(B, dtype=jnp.float32),
                    jnp.ones((1, m3), jnp.float32))               # (B, B*4) 0/1

    def _res(a):  # whole array resident across the batch grid
        nd = a.ndim
        return pl.BlockSpec(a.shape, lambda n, _nd=nd: (0,) * _nd)

    kernel = functools.partial(_fused_disc_kernel, bsz=B, neg_slope=neg_slope)
    out = pl.pallas_call(
        kernel,
        out_shape=jax.ShapeDtypeStruct((Npad, 1), jnp.float32),
        grid=(G,),
        in_specs=[
            pl.BlockSpec((B * m1, _KK * C), lambda n: (n, 0)),    # per-step slab of B samples
            _res(w1), _res(s2), _res(w2), _res(s3), _res(w3),
            _res(wd_tiled), _res(asel), _res(bias),
        ],
        out_specs=pl.BlockSpec((B, 1), lambda n: (n, 0)),         # one store per B samples
        scratch_shapes=[
            pltpu.VMEM((B * m1, c1), jnp.bfloat16),               # y1     (B*64, 32)
            pltpu.VMEM((m1, B * c1), jnp.bfloat16),               # y1cat  (64, B*32)
            pltpu.VMEM((_KK * m2, B * c1), jnp.bfloat16),         # z2cat  (400, B*32)
            pltpu.VMEM((B * m2, _KK * c1), jnp.bfloat16),         # slab2  (B*16, 800)
            pltpu.VMEM((B * m2, c2), jnp.bfloat16),               # y2     (B*16, 64)
            pltpu.VMEM((m2, B * c2), jnp.bfloat16),               # y2cat  (16, B*64)
            pltpu.VMEM((_KK * m3, B * c2), jnp.bfloat16),         # z3cat  (100, B*64)
            pltpu.VMEM((B * m3, _KK * c2), jnp.bfloat16),         # slab3  (B*4, 1600)
        ],
        # Grid steps shard across TensorCores on v7x; harmless elsewhere.
        compiler_params=pltpu.CompilerParams(dimension_semantics=("parallel",)),
    )(slab, w1, s2, w2, s3, w3, wd_tiled, asel, bias)
    return out[:N]


# ----------------------------------------------------------------------------
# Pure-JAX reference (verification only)
# ----------------------------------------------------------------------------
def ref_forward(x_nchw, conv_weights, dense_w, dense_b, neg_slope=1.0):
    y = x_nchw
    for w in conv_weights:
        y = jax.lax.conv_general_dilated(
            y, w, window_strides=(2, 2), padding=((2, 2), (2, 2)),
            dimension_numbers=("NCHW", "OIHW", "NCHW"))
        y = jnp.where(y >= 0, y, neg_slope * y)     # LeakyReLU(slope=1.0) == identity
    y = y.reshape(y.shape[0], -1)
    return y @ dense_w.T + dense_b


# ----------------------------------------------------------------------------
if __name__ == "__main__":
    key = jax.random.PRNGKey(0)
    k1, k2, k3, k4, k5, kx = jax.random.split(key, 6)

    in_channels = 4
    # (batch=16, in_channels=4, 16, 16): spatial 16 -> 8 -> 4 -> 2, dense sees 128*2*2.
    x = jax.random.normal(kx, (16, in_channels, 16, 16), jnp.float32)

    w1 = 0.05 * jax.random.normal(k1, (32, in_channels, 5, 5), jnp.float32)
    w2 = 0.05 * jax.random.normal(k2, (64, 32, 5, 5), jnp.float32)
    w3 = 0.05 * jax.random.normal(k3, (128, 64, 5, 5), jnp.float32)
    dense_w = 0.05 * jax.random.normal(k4, (1, 128 * 2 * 2), jnp.float32)  # torch (out, in)
    dense_b = 0.05 * jax.random.normal(k5, (1,), jnp.float32)

    params = prepare_params(w1, w2, w3, dense_w, dense_b, input_hw=16)
    ref = ref_forward(x, [w1, w2, w3], dense_w, dense_b)

    # Full batch: grid = 16/8 = 2 steps (even -> both v7x TensorCores busy).
    out = jax.block_until_ready(feature_discriminator_forward(x, params, batch_block=8))
    assert out.shape == (16, 1), out.shape
    # bf16 matmul operands (f32 accumulation) vs. an f32 XLA reference.
    assert jnp.allclose(out, ref, rtol=5e-2, atol=1e-1), (out, ref)

    # Ragged batch (N=2 < batch_block): exercises the zero-padding path.
    out2 = jax.block_until_ready(feature_discriminator_forward(x[:2], params, batch_block=8))
    assert out2.shape == (2, 1), out2.shape
    assert jnp.allclose(out2, ref[:2], rtol=5e-2, atol=1e-1), (out2, ref[:2])

    print("KERNEL_OK")
</pallas_src>

<mosaic_0001>
module attributes {stable_mosaic.version = 11 : i64} {
  func.func @_fused_disc_kernel(%arg0: i32, %arg1: memref<512x100xbf16, #tpu.memory_space<vmem>>, %arg2: memref<100x32xbf16, #tpu.memory_space<vmem>>, %arg3: memref<400x64xbf16, #tpu.memory_space<vmem>>, %arg4: memref<800x64xbf16, #tpu.memory_space<vmem>>, %arg5: memref<100x16xbf16, #tpu.memory_space<vmem>>, %arg6: memref<1600x128xbf16, #tpu.memory_space<vmem>>, %arg7: memref<32x128xf32, #tpu.memory_space<vmem>>, %arg8: memref<8x32xf32, #tpu.memory_space<vmem>>, %arg9: memref<1x1xf32, #tpu.memory_space<vmem>>, %arg10: memref<8x1xf32, #tpu.memory_space<vmem>>, %arg11: memref<512x32xbf16, #tpu.memory_space<vmem>>, %arg12: memref<64x256xbf16, #tpu.memory_space<vmem>>, %arg13: memref<400x256xbf16, #tpu.memory_space<vmem>>, %arg14: memref<128x800xbf16, #tpu.memory_space<vmem>>, %arg15: memref<128x64xbf16, #tpu.memory_space<vmem>>, %arg16: memref<16x512xbf16, #tpu.memory_space<vmem>>, %arg17: memref<100x512xbf16, #tpu.memory_space<vmem>>, %arg18: memref<32x1600xbf16, #tpu.memory_space<vmem>>) attributes {dimension_semantics = [#tpu.dimension_semantics<parallel>], iteration_bounds = array<i64: 2>, scalar_prefetch = 0 : i64, scratch_operands = 8 : i64, tpu.core_type = #tpu.core_type<tc>, window_params = [{transform_indices = @transform_0, window_bounds = array<i64: 512, 100>}, {pipeline_mode = #tpu.pipeline_mode<synchronous>, transform_indices = @transform_1, window_bounds = array<i64: 100, 32>}, {pipeline_mode = #tpu.pipeline_mode<synchronous>, transform_indices = @transform_2, window_bounds = array<i64: 400, 64>}, {pipeline_mode = #tpu.pipeline_mode<synchronous>, transform_indices = @transform_3, window_bounds = array<i64: 800, 64>}, {pipeline_mode = #tpu.pipeline_mode<synchronous>, transform_indices = @transform_4, window_bounds = array<i64: 100, 16>}, {pipeline_mode = #tpu.pipeline_mode<synchronous>, transform_indices = @transform_5, window_bounds = array<i64: 1600, 128>}, {pipeline_mode = #tpu.pipeline_mode<synchronous>, transform_indices = @transform_6, window_bounds = array<i64: 32, 128>}, {pipeline_mode = #tpu.pipeline_mode<synchronous>, transform_indices = @transform_7, window_bounds = array<i64: 8, 32>}, {pipeline_mode = #tpu.pipeline_mode<synchronous>, transform_indices = @transform_8, window_bounds = array<i64: 1, 1>}, {transform_indices = @transform_9, window_bounds = array<i64: 8, 1>}]} {
    %c0 = arith.constant 0 : index
    %c0_0 = arith.constant 0 : index
    %0 = vector.load %arg1[%c0, %c0_0] : memref<512x100xbf16, #tpu.memory_space<vmem>>, vector<512x100xbf16>
    %c0_1 = arith.constant 0 : index
    %c0_2 = arith.constant 0 : index
    %1 = vector.load %arg2[%c0_1, %c0_2] : memref<100x32xbf16, #tpu.memory_space<vmem>>, vector<100x32xbf16>
    %cst = arith.constant dense<0.000000e+00> : vector<512x32xf32>
    %2 = tpu.matmul %0, %1, %cst {dimension_numbers = #tpu.dot_dimension_numbers<[1], [0], [0], [1], [0, 0, 1, 1], [], []>} : vector<512x100xbf16>, vector<100x32xbf16>, vector<512x32xf32> -> vector<512x32xf32>
    %3 = arith.truncf %2 : vector<512x32xf32> to vector<512x32xbf16>
    %c0_3 = arith.constant 0 : index
    %c0_4 = arith.constant 0 : index
    %4 = vector.load %arg11[%c0_3, %c0_4] : memref<512x32xbf16, #tpu.memory_space<vmem>>, vector<512x32xbf16>
    tpu.vector_store %arg11[%c0_3, %c0_4], %3 {strides = array<i32>} : memref<512x32xbf16, #tpu.memory_space<vmem>>, vector<512x32xbf16>,
    %c0_5 = arith.constant 0 : index
    %c0_6 = arith.constant 0 : index
    %5 = vector.load %arg11[%c0_5, %c0_6] : memref<512x32xbf16, #tpu.memory_space<vmem>>, vector<64x32xbf16>
    %c0_7 = arith.constant 0 : index
    %c0_8 = arith.constant 0 : index
    %6 = vector.load %arg12[%c0_7, %c0_8] : memref<64x256xbf16, #tpu.memory_space<vmem>>, vector<64x32xbf16>
    tpu.vector_store %arg12[%c0_7, %c0_8], %5 {strides = array<i32>} : memref<64x256xbf16, #tpu.memory_space<vmem>>, vector<64x32xbf16>,
    %c64 = arith.constant 64 : index
    %c0_9 = arith.constant 0 : index
    %7 = vector.load %arg11[%c64, %c0_9] : memref<512x32xbf16, #tpu.memory_space<vmem>>, vector<64x32xbf16>
    %c0_10 = arith.constant 0 : index
    %c32 = arith.constant 32 : index
    %8 = vector.load %arg12[%c0_10, %c32] : memref<64x256xbf16, #tpu.memory_space<vmem>>, vector<64x32xbf16>
    tpu.vector_store %arg12[%c0_10, %c32], %7 {strides = array<i32>} : memref<64x256xbf16, #tpu.memory_space<vmem>>, vector<64x32xbf16>,
    %c128 = arith.constant 128 : index
    %c0_11 = arith.constant 0 : index
    %9 = vector.load %arg11[%c128, %c0_11] : memref<512x32xbf16, #tpu.memory_space<vmem>>, vector<64x32xbf16>
    %c0_12 = arith.constant 0 : index
    %c64_13 = arith.constant 64 : index
    %10 = vector.load %arg12[%c0_12, %c64_13] : memref<64x256xbf16, #tpu.memory_space<vmem>>, vector<64x32xbf16>
    tpu.vector_store %arg12[%c0_12, %c64_13], %9 {strides = array<i32>} : memref<64x256xbf16, #tpu.memory_space<vmem>>, vector<64x32xbf16>,
    %c192 = arith.constant 192 : index
    %c0_14 = arith.constant 0 : index
    %11 = vector.load %arg11[%c192, %c0_14] : memref<512x32xbf16, #tpu.memory_space<vmem>>, vector<64x32xbf16>
    %c0_15 = arith.constant 0 : index
    %c96 = arith.constant 96 : index
    %12 = vector.load %arg12[%c0_15, %c96] : memref<64x256xbf16, #tpu.memory_space<vmem>>, vector<64x32xbf16>
    tpu.vector_store %arg12[%c0_15, %c96], %11 {strides = array<i32>} : memref<64x256xbf16, #tpu.memory_space<vmem>>, vector<64x32xbf16>,
    %c256 = arith.constant 256 : index
    %c0_16 = arith.constant 0 : index
    %13 = vector.load %arg11[%c256, %c0_16] : memref<512x32xbf16, #tpu.memory_space<vmem>>, vector<64x32xbf16>
    %c0_17 = arith.constant 0 : index
    %c128_18 = arith.constant 128 : index
    %14 = vector.load %arg12[%c0_17, %c128_18] : memref<64x256xbf16, #tpu.memory_space<vmem>>, vector<64x32xbf16>
    tpu.vector_store %arg12[%c0_17, %c128_18], %13 {strides = array<i32>} : memref<64x256xbf16, #tpu.memory_space<vmem>>, vector<64x32xbf16>,
    %c320 = arith.constant 320 : index
    %c0_19 = arith.constant 0 : index
    %15 = vector.load %arg11[%c320, %c0_19] : memref<512x32xbf16, #tpu.memory_space<vmem>>, vector<64x32xbf16>
    %c0_20 = arith.constant 0 : index
    %c160 = arith.constant 160 : index
    %16 = vector.load %arg12[%c0_20, %c160] : memref<64x256xbf16, #tpu.memory_space<vmem>>, vector<64x32xbf16>
    tpu.vector_store %arg12[%c0_20, %c160], %15 {strides = array<i32>} : memref<64x256xbf16, #tpu.memory_space<vmem>>, vector<64x32xbf16>,
    %c384 = arith.constant 384 : index
    %c0_21 = arith.constant 0 : index
    %17 = vector.load %arg11[%c384, %c0_21] : memref<512x32xbf16, #tpu.memory_space<vmem>>, vector<64x32xbf16>
    %c0_22 = arith.constant 0 : index
    %c192_23 = arith.constant 192 : index
    %18 = vector.load %arg12[%c0_22, %c192_23] : memref<64x256xbf16, #tpu.memory_space<vmem>>, vector<64x32xbf16>
    tpu.vector_store %arg12[%c0_22, %c192_23], %17 {strides = array<i32>} : memref<64x256xbf16, #tpu.memory_space<vmem>>, vector<64x32xbf16>,
    %c448 = arith.constant 448 : index
    %c0_24 = arith.constant 0 : index
    %19 = vector.load %arg11[%c448, %c0_24] : memref<512x32xbf16, #tpu.memory_space<vmem>>, vector<64x32xbf16>
    %c0_25 = arith.constant 0 : index
    %c224 = arith.constant 224 : index
    %20 = vector.load %arg12[%c0_25, %c224] : memref<64x256xbf16, #tpu.memory_space<vmem>>, vector<64x32xbf16>
    tpu.vector_store %arg12[%c0_25, %c224], %19 {strides = array<i32>} : memref<64x256xbf16, #tpu.memory_space<vmem>>, vector<64x32xbf16>,
    %c0_26 = arith.constant 0 : index
    %c0_27 = arith.constant 0 : index
    %21 = vector.load %arg3[%c0_26, %c0_27] : memref<400x64xbf16, #tpu.memory_space<vmem>>, vector<400x64xbf16>
    %c0_28 = arith.constant 0 : index
    %c0_29 = arith.constant 0 : index
    %22 = vector.load %arg12[%c0_28, %c0_29] : memref<64x256xbf16, #tpu.memory_space<vmem>>, vector<64x256xbf16>
    %cst_30 = arith.constant dense<0.000000e+00> : vector<400x256xf32>
    %23 = tpu.matmul %21, %22, %cst_30 {dimension_numbers = #tpu.dot_dimension_numbers<[1], [0], [0], [1], [0, 0, 1, 1], [], []>} : vector<400x64xbf16>, vector<64x256xbf16>, vector<400x256xf32> -> vector<400x256xf32>
    %24 = arith.truncf %23 : vector<400x256xf32> to vector<400x256xbf16>
    %c0_31 = arith.constant 0 : index
    %c0_32 = arith.constant 0 : index
    %25 = vector.load %arg13[%c0_31, %c0_32] : memref<400x256xbf16, #tpu.memory_space<vmem>>, vector<400x256xbf16>
    tpu.vector_store %arg13[%c0_31, %c0_32], %24 {strides = array<i32>} : memref<400x256xbf16, #tpu.memory_space<vmem>>, vector<400x256xbf16>,
    %c0_33 = arith.constant 0 : index
    %c0_34 = arith.constant 0 : index
    %26 = vector.load %arg13[%c0_33, %c0_34] : memref<400x256xbf16, #tpu.memory_space<vmem>>, vector<16x256xbf16>
    %27 = vector.extract_strided_slice %26 {offsets = [0, 0], sizes = [16, 32], strides = [1, 1]} : vector<16x256xbf16> to vector<16x32xbf16>
    %c0_35 = arith.constant 0 : index
    %c0_36 = arith.constant 0 : index
    %28 = vector.load %arg14[%c0_35, %c0_36] : memref<128x800xbf16, #tpu.memory_space<vmem>>, vector<16x32xbf16>
    tpu.vector_store %arg14[%c0_35, %c0_36], %27 {strides = array<i32>} : memref<128x800xbf16, #tpu.memory_space<vmem>>, vector<16x32xbf16>,
    %29 = vector.extract_strided_slice %26 {offsets = [0, 32], sizes = [16, 32], strides = [1, 1]} : vector<16x256xbf16> to vector<16x32xbf16>
    %c16 = arith.constant 16 : index
    %c0_37 = arith.constant 0 : index
    %30 = vector.load %arg14[%c16, %c0_37] : memref<128x800xbf16, #tpu.memory_space<vmem>>, vector<16x32xbf16>
    tpu.vector_store %arg14[%c16, %c0_37], %29 {strides = array<i32>} : memref<128x800xbf16, #tpu.memory_space<vmem>>, vector<16x32xbf16>,
    %31 = vector.extract_strided_slice %26 {offsets = [0, 64], sizes = [16, 32], strides = [1, 1]} : vector<16x256xbf16> to vector<16x32xbf16>
    %c32_38 = arith.constant 32 : index
    %c0_39 = arith.constant 0 : index
    %32 = vector.load %arg14[%c32_38, %c0_39] : memref<128x800xbf16, #tpu.memory_space<vmem>>, vector<16x32xbf16>
    tpu.vector_store %arg14[%c32_38, %c0_39], %31 {strides = array<i32>} : memref<128x800xbf16, #tpu.memory_space<vmem>>, vector<16x32xbf16>,
    %33 = vector.extract_strided_slice %26 {offsets = [0, 96], sizes = [16, 32], strides = [1, 1]} : vector<16x256xbf16> to vector<16x32xbf16>
    %c48 = arith.constant 48 : index
    %c0_40 = arith.constant 0 : index
    %34 = vector.load %arg14[%c48, %c0_40] : memref<128x800xbf16, #tpu.memory_space<vmem>>, vector<16x32xbf16>
    tpu.vector_store %arg14[%c48, %c0_40], %33 {strides = array<i32>} : memref<128x800xbf16, #tpu.memory_space<vmem>>, vector<16x32xbf16>,
    %35 = vector.extract_strided_slice %26 {offsets = [0, 128], sizes = [16, 32], strides = [1, 1]} : vector<16x256xbf16> to vector<16x32xbf16>
    %c64_41 = arith.constant 64 : index
    %c0_42 = arith.constant 0 : index
    %36 = vector.load %arg14[%c64_41, %c0_42] : memref<128x800xbf16, #tpu.memory_space<vmem>>, vector<16x32xbf16>
    tpu.vector_store %arg14[%c64_41, %c0_42], %35 {strides = array<i32>} : memref<128x800xbf16, #tpu.memory_space<vmem>>, vector<16x32xbf16>,
    %37 = vector.extract_strided_slice %26 {offsets = [0, 160], sizes = [16, 32], strides = [1, 1]} : vector<16x256xbf16> to vector<16x32xbf16>
    %c80 = arith.constant 80 : index
    %c0_43 = arith.constant 0 : index
    %38 = vector.load %arg14[%c80, %c0_43] : memref<128x800xbf16, #tpu.memory_space<vmem>>, vector<16x32xbf16>
    tpu.vector_store %arg14[%c80, %c0_43], %37 {strides = array<i32>} : memref<128x800xbf16, #tpu.memory_space<vmem>>, vector<16x32xbf16>,
    %39 = vector.extract_strided_slice %26 {offsets = [0, 192], sizes = [16, 32], strides = [1, 1]} : vector<16x256xbf16> to vector<16x32xbf16>
    %c96_44 = arith.constant 96 : index
    %c0_45 = arith.constant 0 : index
    %40 = vector.load %arg14[%c96_44, %c0_45] : memref<128x800xbf16, #tpu.memory_space<vmem>>, vector<16x32xbf16>
    tpu.vector_store %arg14[%c96_44, %c0_45], %39 {strides = array<i32>} : memref<128x800xbf16, #tpu.memory_space<vmem>>, vector<16x32xbf16>,
    %41 = vector.extract_strided_slice %26 {offsets = [0, 224], sizes = [16, 32], strides = [1, 1]} : vector<16x256xbf16> to vector<16x32xbf16>
    %c112 = arith.constant 112 : index
    %c0_46 = arith.constant 0 : index
    %42 = vector.load %arg14[%c112, %c0_46] : memref<128x800xbf16, #tpu.memory_space<vmem>>, vector<16x32xbf16>
    tpu.vector_store %arg14[%c112, %c0_46], %41 {strides = array<i32>} : memref<128x800xbf16, #tpu.memory_space<vmem>>, vector<16x32xbf16>,
    %c16_47 = arith.constant 16 : index
    %c0_48 = arith.constant 0 : index
    %43 = vector.load %arg13[%c16_47, %c0_48] : memref<400x256xbf16, #tpu.memory_space<vmem>>, vector<16x256xbf16>
    %44 = vector.extract_strided_slice %43 {offsets = [0, 0], sizes = [16, 32], strides = [1, 1]} : vector<16x256xbf16> to vector<16x32xbf16>
    %c0_49 = arith.constant 0 : index
    %c32_50 = arith.constant 32 : index
    %45 = vector.load %arg14[%c0_49, %c32_50] : memref<128x800xbf16, #tpu.memory_space<vmem>>, vector<16x32xbf16>
    tpu.vector_store %arg14[%c0_49, %c32_50], %44 {strides = array<i32>} : memref<128x800xbf16, #tpu.memory_space<vmem>>, vector<16x32xbf16>,
    %46 = vector.extract_strided_slice %43 {offsets = [0, 32], sizes = [16, 32], strides = [1, 1]} : vector<16x256xbf16> to vector<16x32xbf16>
    %c16_51 = arith.constant 16 : index
    %c32_52 = arith.constant 32 : index
    %47 = vector.load %arg14[%c16_51, %c32_52] : memref<128x800xbf16, #tpu.memory_space<vmem>>, vector<16x32xbf16>
    tpu.vector_store %arg14[%c16_51, %c32_52], %46 {strides = array<i32>} : memref<128x800xbf16, #tpu.memory_space<vmem>>, vector<16x32xbf16>,
    %48 = vector.extract_strided_slice %43 {offsets = [0, 64], sizes = [16, 32], strides = [1, 1]} : vector<16x256xbf16> to vector<16x32xbf16>
    %c32_53 = arith.constant 32 : index
    %c32_54 = arith.constant 32 : index
    %49 = vector.load %arg14[%c32_53, %c32_54] : memref<128x800xbf16, #tpu.memory_space<vmem>>, vector<16x32xbf16>
    tpu.vector_store %arg14[%c32_53, %c32_54], %48 {strides = array<i32>} : memref<128x800xbf16, #tpu.memory_space<vmem>>, vector<16x32xbf16>,
    %50 = vector.extract_strided_slice %43 {offsets = [0, 96], sizes = [16, 32], strides = [1, 1]} : vector<16x256xbf16> to vector<16x32xbf16>
    %c48_55 = arith.constant 48 : index
    %c32_56 = arith.constant 32 : index
    %51 = vector.load %arg14[%c48_55, %c32_56] : memref<128x800xbf16, #tpu.memory_space<vmem>>, vector<16x32xbf16>
    tpu.vector_store %arg14[%c48_55, %c32_56], %50 {strides = array<i32>} : memref<128x800xbf16, #tpu.memory_space<vmem>>, vector<16x32xbf16>,
    %52 = vector.extract_strided_slice %43 {offsets = [0, 128], sizes = [16, 32], strides = [1, 1]} : vector<16x256xbf16> to vector<16x32xbf16>
    %c64_57 = arith.constant 64 : index
    %c32_58 = arith.constant 32 : index
    %53 = vector.load %arg14[%c64_57, %c32_58] : memref<128x800xbf16, #tpu.memory_space<vmem>>, vector<16x32xbf16>
    tpu.vector_store %arg14[%c64_57, %c32_58], %52 {strides = array<i32>} : memref<128x800xbf16, #tpu.memory_space<vmem>>, vector<16x32xbf16>,
    %54 = vector.extract_strided_slice %43 {offsets = [0, 160], sizes = [16, 32], strides = [1, 1]} : vector<16x256xbf16> to vector<16x32xbf16>
    %c80_59 = arith.constant 80 : index
    %c32_60 = arith.constant 32 : index
    %55 = vector.load %arg14[%c80_59, %c32_60] : memref<128x800xbf16, #tpu.memory_space<vmem>>, vector<16x32xbf16>
    tpu.vector_store %arg14[%c80_59, %c32_60], %54 {strides = array<i32>} : memref<128x800xbf16, #tpu.memory_space<vmem>>, vector<16x32xbf16>,
    %56 = vector.extract_strided_slice %43 {offsets = [0, 192], sizes = [16, 32], strides = [1, 1]} : vector<16x256xbf16> to vector<16x32xbf16>
    %c96_61 = arith.constant 96 : index
    %c32_62 = arith.constant 32 : index
    %57 = vector.load %arg14[%c96_61, %c32_62] : memref<128x800xbf16, #tpu.memory_space<vmem>>, vector<16x32xbf16>
    tpu.vector_store %arg14[%c96_61, %c32_62], %56 {strides = array<i32>} : memref<128x800xbf16, #tpu.memory_space<vmem>>, vector<16x32xbf16>,
    %58 = vector.extract_strided_slice %43 {offsets = [0, 224], sizes = [16, 32], strides = [1, 1]} : vector<16x256xbf16> to vector<16x32xbf16>
    %c112_63 = arith.constant 112 : index
    %c32_64 = arith.constant 32 : index
    %59 = vector.load %arg14[%c112_63, %c32_64] : memref<128x800xbf16, #tpu.memory_space<vmem>>, vector<16x32xbf16>
    tpu.vector_store %arg14[%c112_63, %c32_64], %58 {strides = array<i32>} : memref<128x800xbf16, #tpu.memory_space<vmem>>, vector<16x32xbf16>,
    %c32_65 = arith.constant 32 : index
    %c0_66 = arith.constant 0 : index
    %60 = vector.load %arg13[%c32_65, %c0_66] : memref<400x256xbf16, #tpu.memory_space<vmem>>, vector<16x256xbf16>
    %61 = vector.extract_strided_slice %60 {offsets = [0, 0], sizes = [16, 32], strides = [1, 1]} : vector<16x256xbf16> to vector<16x32xbf16>
    %c0_67 = arith.constant 0 : index
    %c64_68 = arith.constant 64 : index
    %62 = vector.load %arg14[%c0_67, %c64_68] : memref<128x800xbf16, #tpu.memory_space<vmem>>, vector<16x32xbf16>
    tpu.vector_store %arg14[%c0_67, %c64_68], %61 {strides = array<i32>} : memref<128x800xbf16, #tpu.memory_space<vmem>>, vector<16x32xbf16>,
    %63 = vector.extract_strided_slice %60 {offsets = [0, 32], sizes = [16, 32], strides = [1, 1]} : vector<16x256xbf16> to vector<16x32xbf16>
    %c16_69 = arith.constant 16 : index
    %c64_70 = arith.constant 64 : index
    %64 = vector.load %arg14[%c16_69, %c64_70] : memref<128x800xbf16, #tpu.memory_space<vmem>>, vector<16x32xbf16>
    tpu.vector_store %arg14[%c16_69, %c64_70], %63 {strides = array<i32>} : memref<128x800xbf16, #tpu.memory_space<vmem>>, vector<16x32xbf16>,
    %65 = vector.extract_strided_slice %60 {offsets = [0, 64], sizes = [16, 32], strides = [1, 1]} : vector<16x256xbf16> to vector<16x32xbf16>
    %c32_71 = arith.constant 32 : index
    %c64_72 = arith.constant 64 : index
    %66 = vector.load %arg14[%c32_71, %c64_72] : memref<128x800xbf16, #tpu.memory_space<vmem>>, vector<16x32xbf16>
    tpu.vector_store %arg14[%c32_71, %c64_72], %65 {strides = array<i32>} : memref<128x800xbf16, #tpu.memory_space<vmem>>, vector<16x32xbf16>,
    %67 = vector.extract_strided_slice %60 {offsets = [0, 96], sizes = [16, 32], strides = [1, 1]} : vector<16x256xbf16> to vector<16x32xbf16>
    %c48_73 = arith.constant 48 : index
    %c64_74 = arith.constant 64 : index
    %68 = vector.load %arg14[%c48_73, %c64_74] : memref<128x800xbf16, #tpu.memory_space<vmem>>, vector<16x32xbf16>
    tpu.vector_store %arg14[%c48_73, %c64_74], %67 {strides = array<i32>} : memref<128x800xbf16, #tpu.memory_space<vmem>>, vector<16x32xbf16>,
    %69 = vector.extract_strided_slice %60 {offsets = [0, 128], sizes = [16, 32], strides = [1, 1]} : vector<16x256xbf16> to vector<16x32xbf16>
    %c64_75 = arith.constant 64 : index
    %c64_76 = arith.constant 64 : index
    %70 = vector.load %arg14[%c64_75, %c64_76] : memref<128x800xbf16, #tpu.memory_space<vmem>>, vector<16x32xbf16>
    tpu.vector_store %arg14[%c64_75, %c64_76], %69 {strides = array<i32>} : memref<128x800xbf16, #tpu.memory_space<vmem>>, vector<16x32xbf16>,
    %71 = vector.extract_strided_slice %60 {offsets = [0, 160], sizes = [16, 32], strides = [1, 1]} : vector<16x256xbf16> to vector<16x32xbf16>
    %c80_77 = arith.constant 80 : index
    %c64_78 = arith.constant 64 : index
    %72 = vector.load %arg14[%c80_77, %c64_78] : memref<128x800xbf16, #tpu.memory_space<vmem>>, vector<16x32xbf16>
    tpu.vector_store %arg14[%c80_77, %c64_78], %71 {strides = array<i32>} : memref<128x800xbf16, #tpu.memory_space<vmem>>, vector<16x32xbf16>,
    %73 = vector.extract_strided_slice %60 {offsets = [0, 192], sizes = [16, 32], strides = [1, 1]} : vector<16x256xbf16> to vector<16x32xbf16>
    %c96_79 = arith.constant 96 : index
    %c64_80 = arith.constant 64 : index
    %74 = vector.load %arg14[%c96_79, %c64_80] : memref<128x800xbf16, #tpu.memory_space<vmem>>, vector<16x32xbf16>
    tpu.vector_store %arg14[%c96_79, %c64_80], %73 {strides = array<i32>} : memref<128x800xbf16, #tpu.memory_space<vmem>>, vector<16x32xbf16>,
    %75 = vector.extract_strided_slice %60 {offsets = [0, 224], sizes = [16, 32], strides = [1, 1]} : vector<16x256xbf16> to vector<16x32xbf16>
    %c112_81 = arith.constant 112 : index
    %c64_82 = arith.constant 64 : index
    %76 = vector.load %arg14[%c112_81, %c64_82] : memref<128x800xbf16, #tpu.memory_space<vmem>>, vector<16x32xbf16>
    tpu.vector_store %arg14[%c112_81, %c64_82], %75 {strides = array<i32>} : memref<128x800xbf16, #tpu.memory_space<vmem>>, vector<16x32xbf16>,
    %c48_83 = arith.constant 48 : index
    %c0_84 = arith.constant 0 : index
    %77 = vector.load %arg13[%c48_83, %c0_84] : memref<400x256xbf16, #tpu.memory_space<vmem>>, vector<16x256xbf16>
    %78 = vector.extract_strided_slice %77 {offsets = [0, 0], sizes = [16, 32], strides = [1, 1]} : vector<16x256xbf16> to vector<16x32xbf16>
    %c0_85 = arith.constant 0 : index
    %c96_86 = arith.constant 96 : index
    %79 = vector.load %arg14[%c0_85, %c96_86] : memref<128x800xbf16, #tpu.memory_space<vmem>>, vector<16x32xbf16>
    tpu.vector_store %arg14[%c0_85, %c96_86], %78 {strides = array<i32>} : memref<128x800xbf16, #tpu.memory_space<vmem>>, vector<16x32xbf16>,
    %80 = vector.extract_strided_slice %77 {offsets = [0, 32], sizes = [16, 32], strides = [1, 1]} : vector<16x256xbf16> to vector<16x32xbf16>
    %c16_87 = arith.constant 16 : index
    %c96_88 = arith.constant 96 : index
    %81 = vector.load %arg14[%c16_87, %c96_88] : memref<128x800xbf16, #tpu.memory_space<vmem>>, vector<16x32xbf16>
    tpu.vector_store %arg14[%c16_87, %c96_88], %80 {strides = array<i32>} : memref<128x800xbf16, #tpu.memory_space<vmem>>, vector<16x32xbf16>,
    %82 = vector.extract_strided_slice %77 {offsets = [0, 64], sizes = [16, 32], strides = [1, 1]} : vector<16x256xbf16> to vector<16x32xbf16>
    %c32_89 = arith.constant 32 : index
    %c96_90 = arith.constant 96 : index
    %83 = vector.load %arg14[%c32_89, %c96_90] : memref<128x800xbf16, #tpu.memory_space<vmem>>, vector<16x32xbf16>
    tpu.vector_store %arg14[%c32_89, %c96_90], %82 {strides = array<i32>} : memref<128x800xbf16, #tpu.memory_space<vmem>>, vector<16x32xbf16>,
    %84 = vector.extract_strided_slice %77 {offsets = [0, 96], sizes = [16, 32], strides = [1, 1]} : vector<16x256xbf16> to vector<16x32xbf16>
    %c48_91 = arith.constant 48 : index
    %c96_92 = arith.constant 96 : index
    %85 = vector.load %arg14[%c48_91, %c96_92] : memref<128x800xbf16, #tpu.memory_space<vmem>>, vector<16x32xbf16>
    tpu.vector_store %arg14[%c48_91, %c96_92], %84 {strides = array<i32>} : memref<128x800xbf16, #tpu.memory_space<vmem>>, vector<16x32xbf16>,
    %86 = vector.extract_strided_slice %77 {offsets = [0, 128], sizes = [16, 32], strides = [1, 1]} : vector<16x256xbf16> to vector<16x32xbf16>
    %c64_93 = arith.constant 64 : index
    %c96_94 = arith.constant 96 : index
    %87 = vector.load %arg14[%c64_93, %c96_94] : memref<128x800xbf16, #tpu.memory_space<vmem>>, vector<16x32xbf16>
    tpu.vector_store %arg14[%c64_93, %c96_94], %86 {strides = array<i32>} : memref<128x800xbf16, #tpu.memory_space<vmem>>, vector<16x32xbf16>,
    %88 = vector.extract_strided_slice %77 {offsets = [0, 160], sizes = [16, 32], strides = [1, 1]} : vector<16x256xbf16> to vector<16x32xbf16>
    %c80_95 = arith.constant 80 : index
    %c96_96 = arith.constant 96 : index
    %89 = vector.load %arg14[%c80_95, %c96_96] : memref<128x800xbf16, #tpu.memory_space<vmem>>, vector<16x32xbf16>
    tpu.vector_store %arg14[%c80_95, %c96_96], %88 {strides = array<i32>} : memref<128x800xbf16, #tpu.memory_space<vmem>>, vector<16x32xbf16>,
    %90 = vector.extract_strided_slice %77 {offsets = [0, 192], sizes = [16, 32], strides = [1, 1]} : vector<16x256xbf16> to vector<16x32xbf16>
    %c96_97 = arith.constant 96 : index
    %c96_98 = arith.constant 96 : index
    %91 = vector.load %arg14[%c96_97, %c96_98] : memref<128x800xbf16, #tpu.memory_space<vmem>>, vector<16x32xbf16>
    tpu.vector_store %arg14[%c96_97, %c96_98], %90 {strides = array<i32>} : memref<128x800xbf16, #tpu.memory_space<vmem>>, vector<16x32xbf16>,
    %92 = vector.extract_strided_slice %77 {offsets = [0, 224], sizes = [16, 32], strides = [1, 1]} : vector<16x256xbf16> to vector<16x32xbf16>
    %c112_99 = arith.constant 112 : index
    %c96_100 = arith.constant 96 : index
    %93 = vector.load %arg14[%c112_99, %c96_100] : memref<128x800xbf16, #tpu.memory_space<vmem>>, vector<16x32xbf16>
    tpu.vector_store %arg14[%c112_99, %c96_100], %92 {strides = array<i32>} : memref<128x800xbf16, #tpu.memory_space<vmem>>, vector<16x32xbf16>,
    %c64_101 = arith.constant 64 : index
    %c0_102 = arith.constant 0 : index
    %94 = vector.load %arg13[%c64_101, %c0_102] : memref<400x256xbf16, #tpu.memory_space<vmem>>, vector<16x256xbf16>
    %95 = vector.extract_strided_slice %94 {offsets = [0, 0], sizes = [16, 32], strides = [1, 1]} : vector<16x256xbf16> to vector<16x32xbf16>
    %c0_103 = arith.constant 0 : index
    %c128_104 = arith.constant 128 : index
    %96 = vector.load %arg14[%c0_103, %c128_104] : memref<128x800xbf16, #tpu.memory_space<vmem>>, vector<16x32xbf16>
    tpu.vector_store %arg14[%c0_103, %c128_104], %95 {strides = array<i32>} : memref<128x800xbf16, #tpu.memory_space<vmem>>, vector<16x32xbf16>,
    %97 = vector.extract_strided_slice %94 {offsets = [0, 32], sizes = [16, 32], strides = [1, 1]} : vector<16x256xbf16> to vector<16x32xbf16>
    %c16_105 = arith.constant 16 : index
    %c128_106 = arith.constant 128 : index
    %98 = vector.load %arg14[%c16_105, %c128_106] : memref<128x800xbf16, #tpu.memory_space<vmem>>, vector<16x32xbf16>
    tpu.vector_store %arg14[%c16_105, %c128_106], %97 {strides = array<i32>} : memref<128x800xbf16, #tpu.memory_space<vmem>>, vector<16x32xbf16>,
    %99 = vector.extract_strided_slice %94 {offsets = [0, 64], sizes = [16, 32], strides = [1, 1]} : vector<16x256xbf16> to vector<16x32xbf16>
    %c32_107 = arith.constant 32 : index
    %c128_108 = arith.constant 128 : index
    %100 = vector.load %arg14[%c32_107, %c128_108] : memref<128x800xbf16, #tpu.memory_space<vmem>>, vector<16x32xbf16>
    tpu.vector_store %arg14[%c32_107, %c128_108], %99 {strides = array<i32>} : memref<128x800xbf16, #tpu.memory_space<vmem>>, vector<16x32xbf16>,
    %101 = vector.extract_strided_slice %94 {offsets = [0, 96], sizes = [16, 32], strides = [1, 1]} : vector<16x256xbf16> to vector<16x32xbf16>
    %c48_109 = arith.constant 48 : index
    %c128_110 = arith.constant 128 : index
    %102 = vector.load %arg14[%c48_109, %c128_110] : memref<128x800xbf16, #tpu.memory_space<vmem>>, vector<16x32xbf16>
    tpu.vector_store %arg14[%c48_109, %c128_110], %101 {strides = array<i32>} : memref<128x800xbf16, #tpu.memory_space<vmem>>, vector<16x32xbf16>,
    %103 = vector.extract_strided_slice %94 {offsets = [0, 128], sizes = [16, 32], strides = [1, 1]} : vector<16x256xbf16> to vector<16x32xbf16>
    %c64_111 = arith.constant 64 : index
    %c128_112 = arith.constant 128 : index
    %104 = vector.load %arg14[%c64_111, %c128_112] : memref<128x800xbf16, #tpu.memory_space<vmem>>, vector<16x32xbf16>
    tpu.vector_store %arg14[%c64_111, %c128_112], %103 {strides = array<i32>} : memref<128x800xbf16, #tpu.memory_space<vmem>>, vector<16x32xbf16>,
    %105 = vector.extract_strided_slice %94 {offsets = [0, 160], sizes = [16, 32], strides = [1, 1]} : vector<16x256xbf16> to vector<16x32xbf16>
    %c80_113 = arith.constant 80 : index
    %c128_114 = arith.constant 128 : index
    %106 = vector.load %arg14[%c80_113, %c128_114] : memref<128x800xbf16, #tpu.memory_space<vmem>>, vector<16x32xbf16>
    tpu.vector_store %arg14[%c80_113, %c128_114], %105 {strides = array<i32>} : memref<128x800xbf16, #tpu.memory_space<vmem>>, vector<16x32xbf16>,
    %107 = vector.extract_strided_slice %94 {offsets = [0, 192], sizes = [16, 32], strides = [1, 1]} : vector<16x256xbf16> to vector<16x32xbf16>
    %c96_115 = arith.constant 96 : index
    %c128_116 = arith.constant 128 : index
    %108 = vector.load %arg14[%c96_115, %c128_116] : memref<128x800xbf16, #tpu.memory_space<vmem>>, vector<16x32xbf16>
    tpu.vector_store %arg14[%c96_115, %c128_116], %107 {strides = array<i32>} : memref<128x800xbf16, #tpu.memory_space<vmem>>, vector<16x32xbf16>,
    %109 = vector.extract_strided_slice %94 {offsets = [0, 224], sizes = [16, 32], strides = [1, 1]} : vector<16x256xbf16> to vector<16x32xbf16>
    %c112_117 = arith.constant 112 : index
    %c128_118 = arith.constant 128 : index
    %110 = vector.load %arg14[%c112_117, %c128_118] : memref<128x800xbf16, #tpu.memory_space<vmem>>, vector<16x32xbf16>
    tpu.vector_store %arg14[%c112_117, %c128_118], %109 {strides = array<i32>} : memref<128x800xbf16, #tpu.memory_space<vmem>>, vector<16x32xbf16>,
    %c80_119 = arith.constant 80 : index
    %c0_120 = arith.constant 0 : index
    %111 = vector.load %arg13[%c80_119, %c0_120] : memref<400x256xbf16, #tpu.memory_space<vmem>>, vector<16x256xbf16>
    %112 = vector.extract_strided_slice %111 {offsets = [0, 0], sizes = [16, 32], strides = [1, 1]} : vector<16x256xbf16> to vector<16x32xbf16>
    %c0_121 = arith.constant 0 : index
    %c160_122 = arith.constant 160 : index
    %113 = vector.load %arg14[%c0_121, %c160_122] : memref<128x800xbf16, #tpu.memory_space<vmem>>, vector<16x32xbf16>
    tpu.vector_store %arg14[%c0_121, %c160_122], %112 {strides = array<i32>} : memref<128x800xbf16, #tpu.memory_space<vmem>>, vector<16x32xbf16>,
    %114 = vector.extract_strided_slice %111 {offsets = [0, 32], sizes = [16, 32], strides = [1, 1]} : vector<16x256xbf16> to vector<16x32xbf16>
    %c16_123 = arith.constant 16 : index
    %c160_124 = arith.constant 160 : index
    %115 = vector.load %arg14[%c16_123, %c160_124] : memref<128x800xbf16, #tpu.memory_space<vmem>>, vector<16x32xbf16>
    tpu.vector_store %arg14[%c16_123, %c160_124], %114 {strides = array<i32>} : memref<128x800xbf16, #tpu.memory_space<vmem>>, vector<16x32xbf16>,
    %116 = vector.extract_strided_slice %111 {offsets = [0, 64], sizes = [16, 32], strides = [1, 1]} : vector<16x256xbf16> to vector<16x32xbf16>
    %c32_125 = arith.constant 32 : index
    %c160_126 = arith.constant 160 : index
    %117 = vector.load %arg14[%c32_125, %c160_126] : memref<128x800xbf16, #tpu.memory_space<vmem>>, vector<16x32xbf16>
    tpu.vector_store %arg14[%c32_125, %c160_126], %116 {strides = array<i32>} : memref<128x800xbf16, #tpu.memory_space<vmem>>, vector<16x32xbf16>,
    %118 = vector.extract_strided_slice %111 {offsets = [0, 96], sizes = [16, 32], strides = [1, 1]} : vector<16x256xbf16> to vector<16x32xbf16>
    %c48_127 = arith.constant 48 : index
    %c160_128 = arith.constant 160 : index
    %119 = vector.load %arg14[%c48_127, %c160_128] : memref<128x800xbf16, #tpu.memory_space<vmem>>, vector<16x32xbf16>
    tpu.vector_store %arg14[%c48_127, %c160_128], %118 {strides = array<i32>} : memref<128x800xbf16, #tpu.memory_space<vmem>>, vector<16x32xbf16>,
    %120 = vector.extract_strided_slice %111 {offsets = [0, 128], sizes = [16, 32], strides = [1, 1]} : vector<16x256xbf16> to vector<16x32xbf16>
    %c64_129 = arith.constant 64 : index
    %c160_130 = arith.constant 160 : index
    %121 = vector.load %arg14[%c64_129, %c160_130] : memref<128x800xbf16, #tpu.memory_space<vmem>>, vector<16x32xbf16>
    tpu.vector_store %arg14[%c64_129, %c160_130], %120 {strides = array<i32>} : memref<128x800xbf16, #tpu.memory_space<vmem>>, vector<16x32xbf16>,
    %122 = vector.extract_strided_slice %111 {offsets = [0, 160], sizes = [16, 32], strides = [1, 1]} : vector<16x256xbf16> to vector<16x32xbf16>
    %c80_131 = arith.constant 80 : index
    %c160_132 = arith.constant 160 : index
    %123 = vector.load %arg14[%c80_131, %c160_132] : memref<128x800xbf16, #tpu.memory_space<vmem>>, vector<16x32xbf16>
    tpu.vector_store %arg14[%c80_131, %c160_132], %122 {strides = array<i32>} : memref<128x800xbf16, #tpu.memory_space<vmem>>, vector<16x32xbf16>,
    %124 = vector.extract_strided_slice %111 {offsets = [0, 192], sizes = [16, 32], strides = [1, 1]} : vector<16x256xbf16> to vector<16x32xbf16>
    %c96_133 = arith.constant 96 : index
    %c160_134 = arith.constant 160 : index
    %125 = vector.load %arg14[%c96_133, %c160_134] : memref<128x800xbf16, #tpu.memory_space<vmem>>, vector<16x32xbf16>
    tpu.vector_store %arg14[%c96_133, %c160_134], %124 {strides = array<i32>} : memref<128x800xbf16, #tpu.memory_space<vmem>>, vector<16x32xbf16>,
    %126 = vector.extract_strided_slice %111 {offsets = [0, 224], sizes = [16, 32], strides = [1, 1]} : vector<16x256xbf16> to vector<16x32xbf16>
    %c112_135 = arith.constant 112 : index
    %c160_136 = arith.constant 160 : index
    %127 = vector.load %arg14[%c112_135, %c160_136] : memref<128x800xbf16, #tpu.memory_space<vmem>>, vector<16x32xbf16>
    tpu.vector_store %arg14[%c112_135, %c160_136], %126 {strides = array<i32>} : memref<128x800xbf16, #tpu.memory_space<vmem>>, vector<16x32xbf16>,
    %c96_137 = arith.constant 96 : index
    %c0_138 = arith.constant 0 : index
    %128 = vector.load %arg13[%c96_137, %c0_138] : memref<400x256xbf16, #tpu.memory_space<vmem>>, vector<16x256xbf16>
    %129 = vector.extract_strided_slice %128 {offsets = [0, 0], sizes = [16, 32], strides = [1, 1]} : vector<16x256xbf16> to vector<16x32xbf16>
    %c0_139 = arith.constant 0 : index
    %c192_140 = arith.constant 192 : index
    %130 = vector.load %arg14[%c0_139, %c192_140] : memref<128x800xbf16, #tpu.memory_space<vmem>>, vector<16x32xbf16>
    tpu.vector_store %arg14[%c0_139, %c192_140], %129 {strides = array<i32>} : memref<128x800xbf16, #tpu.memory_space<vmem>>, vector<16x32xbf16>,
    %131 = vector.extract_strided_slice %128 {offsets = [0, 32], sizes = [16, 32], strides = [1, 1]} : vector<16x256xbf16> to vector<16x32xbf16>
    %c16_141 = arith.constant 16 : index
    %c192_142 = arith.constant 192 : index
    %132 = vector.load %arg14[%c16_141, %c192_142] : memref<128x800xbf16, #tpu.memory_space<vmem>>, vector<16x32xbf16>
    tpu.vector_store %arg14[%c16_141, %c192_142], %131 {strides = array<i32>} : memref<128x800xbf16, #tpu.memory_space<vmem>>, vector<16x32xbf16>,
    %133 = vector.extract_strided_slice %128 {offsets = [0, 64], sizes = [16, 32], strides = [1, 1]} : vector<16x256xbf16> to vector<16x32xbf16>
    %c32_143 = arith.constant 32 : index
    %c192_144 = arith.constant 192 : index
    %134 = vector.load %arg14[%c32_143, %c192_144] : memref<128x800xbf16, #tpu.memory_space<vmem>>, vector<16x32xbf16>
    tpu.vector_store %arg14[%c32_143, %c192_144], %133 {strides = array<i32>} : memref<128x800xbf16, #tpu.memory_space<vmem>>, vector<16x32xbf16>,
    %135 = vector.extract_strided_slice %128 {offsets = [0, 96], sizes = [16, 32], strides = [1, 1]} : vector<16x256xbf16> to vector<16x32xbf16>
    %c48_145 = arith.constant 48 : index
    %c192_146 = arith.constant 192 : index
    %136 = vector.load %arg14[%c48_145, %c192_146] : memref<128x800xbf16, #tpu.memory_space<vmem>>, vector<16x32xbf16>
    tpu.vector_store %arg14[%c48_145, %c192_146], %135 {strides = array<i32>} : memref<128x800xbf16, #tpu.memory_space<vmem>>, vector<16x32xbf16>,
    %137 = vector.extract_strided_slice %128 {offsets = [0, 128], sizes = [16, 32], strides = [1, 1]} : vector<16x256xbf16> to vector<16x32xbf16>
    %c64_147 = arith.constant 64 : index
    %c192_148 = arith.constant 192 : index
    %138 = vector.load %arg14[%c64_147, %c192_148] : memref<128x800xbf16, #tpu.memory_space<vmem>>, vector<16x32xbf16>
    tpu.vector_store %arg14[%c64_147, %c192_148], %137 {strides = array<i32>} : memref<128x800xbf16, #tpu.memory_space<vmem>>, vector<16x32xbf16>,
    %139 = vector.extract_strided_slice %128 {offsets = [0, 160], sizes = [16, 32], strides = [1, 1]} : vector<16x256xbf16> to vector<16x32xbf16>
    %c80_149 = arith.constant 80 : index
    %c192_150 = arith.constant 192 : index
    %140 = vector.load %arg14[%c80_149, %c192_150] : memref<128x800xbf16, #tpu.memory_space<vmem>>, vector<16x32xbf16>
    tpu.vector_store %arg14[%c80_149, %c192_150], %139 {strides = array<i32>} : memref<128x800xbf16, #tpu.memory_space<vmem>>, vector<16x32xbf16>,
    %141 = vector.extract_strided_slice %128 {offsets = [0, 192], sizes = [16, 32], strides = [1, 1]} : vector<16x256xbf16> to vector<16x32xbf16>
    %c96_151 = arith.constant 96 : index
    %c192_152 = arith.constant 192 : index
    %142 = vector.load %arg14[%c96_151, %c192_152] : memref<128x800xbf16, #tpu.memory_space<vmem>>, vector<16x32xbf16>
    tpu.vector_store %arg14[%c96_151, %c192_152], %141 {strides = array<i32>} : memref<128x800xbf16, #tpu.memory_space<vmem>>, vector<16x32xbf16>,
    %143 = vector.extract_strided_slice %128 {offsets = [0, 224], sizes = [16, 32], strides = [1, 1]} : vector<16x256xbf16> to vector<16x32xbf16>
    %c112_153 = arith.constant 112 : index
    %c192_154 = arith.constant 192 : index
    %144 = vector.load %arg14[%c112_153, %c192_154] : memref<128x800xbf16, #tpu.memory_space<vmem>>, vector<16x32xbf16>
    tpu.vector_store %arg14[%c112_153, %c192_154], %143 {strides = array<i32>} : memref<128x800xbf16, #tpu.memory_space<vmem>>, vector<16x32xbf16>,
    %c112_155 = arith.constant 112 : index
    %c0_156 = arith.constant 0 : index
    %145 = vector.load %arg13[%c112_155, %c0_156] : memref<400x256xbf16, #tpu.memory_space<vmem>>, vector<16x256xbf16>
    %146 = vector.extract_strided_slice %145 {offsets = [0, 0], sizes = [16, 32], strides = [1, 1]} : vector<16x256xbf16> to vector<16x32xbf16>
    %c0_157 = arith.constant 0 : index
    %c224_158 = arith.constant 224 : index
    %147 = vector.load %arg14[%c0_157, %c224_158] : memref<128x800xbf16, #tpu.memory_space<vmem>>, vector<16x32xbf16>
    tpu.vector_store %arg14[%c0_157, %c224_158], %146 {strides = array<i32>} : memref<128x800xbf16, #tpu.memory_space<vmem>>, vector<16x32xbf16>,
    %148 = vector.extract_strided_slice %145 {offsets = [0, 32], sizes = [16, 32], strides = [1, 1]} : vector<16x256xbf16> to vector<16x32xbf16>
    %c16_159 = arith.constant 16 : index
    %c224_160 = arith.constant 224 : index
    %149 = vector.load %arg14[%c16_159, %c224_160] : memref<128x800xbf16, #tpu.memory_space<vmem>>, vector<16x32xbf16>
    tpu.vector_store %arg14[%c16_159, %c224_160], %148 {strides = array<i32>} : memref<128x800xbf16, #tpu.memory_space<vmem>>, vector<16x32xbf16>,
    %150 = vector.extract_strided_slice %145 {offsets = [0, 64], sizes = [16, 32], strides = [1, 1]} : vector<16x256xbf16> to vector<16x32xbf16>
    %c32_161 = arith.constant 32 : index
    %c224_162 = arith.constant 224 : index
    %151 = vector.load %arg14[%c32_161, %c224_162] : memref<128x800xbf16, #tpu.memory_space<vmem>>, vector<16x32xbf16>
    tpu.vector_store %arg14[%c32_161, %c224_162], %150 {strides = array<i32>} : memref<128x800xbf16, #tpu.memory_space<vmem>>, vector<16x32xbf16>,
    %152 = vector.extract_strided_slice %145 {offsets = [0, 96], sizes = [16, 32], strides = [1, 1]} : vector<16x256xbf16> to vector<16x32xbf16>
    %c48_163 = arith.constant 48 : index
    %c224_164 = arith.constant 224 : index
    %153 = vector.load %arg14[%c48_163, %c224_164] : memref<128x800xbf16, #tpu.memory_space<vmem>>, vector<16x32xbf16>
    tpu.vector_store %arg14[%c48_163, %c224_164], %152 {strides = array<i32>} : memref<128x800xbf16, #tpu.memory_space<vmem>>, vector<16x32xbf16>,
    %154 = vector.extract_strided_slice %145 {offsets = [0, 128], sizes = [16, 32], strides = [1, 1]} : vector<16x256xbf16> to vector<16x32xbf16>
    %c64_165 = arith.constant 64 : index
    %c224_166 = arith.constant 224 : index
    %155 = vector.load %arg14[%c64_165, %c224_166] : memref<128x800xbf16, #tpu.memory_space<vmem>>, vector<16x32xbf16>
    tpu.vector_store %arg14[%c64_165, %c224_166], %154 {strides = array<i32>} : memref<128x800xbf16, #tpu.memory_space<vmem>>, vector<16x32xbf16>,
    %156 = vector.extract_strided_slice %145 {offsets = [0, 160], sizes = [16, 32], strides = [1, 1]} : vector<16x256xbf16> to vector<16x32xbf16>
    %c80_167 = arith.constant 80 : index
    %c224_168 = arith.constant 224 : index
    %157 = vector.load %arg14[%c80_167, %c224_168] : memref<128x800xbf16, #tpu.memory_space<vmem>>, vector<16x32xbf16>
    tpu.vector_store %arg14[%c80_167, %c224_168], %156 {strides = array<i32>} : memref<128x800xbf16, #tpu.memory_space<vmem>>, vector<16x32xbf16>,
    %158 = vector.extract_strided_slice %145 {offsets = [0, 192], sizes = [16, 32], strides = [1, 1]} : vector<16x256xbf16> to vector<16x32xbf16>
    %c96_169 = arith.constant 96 : index
    %c224_170 = arith.constant 224 : index
    %159 = vector.load %arg14[%c96_169, %c224_170] : memref<128x800xbf16, #tpu.memory_space<vmem>>, vector<16x32xbf16>
    tpu.vector_store %arg14[%c96_169, %c224_170], %158 {strides = array<i32>} : memref<128x800xbf16, #tpu.memory_space<vmem>>, vector<16x32xbf16>,
    %160 = vector.extract_strided_slice %145 {offsets = [0, 224], sizes = [16, 32], strides = [1, 1]} : vector<16x256xbf16> to vector<16x32xbf16>
    %c112_171 = arith.constant 112 : index
    %c224_172 = arith.constant 224 : index
    %161 = vector.load %arg14[%c112_171, %c224_172] : memref<128x800xbf16, #tpu.memory_space<vmem>>, vector<16x32xbf16>
    tpu.vector_store %arg14[%c112_171, %c224_172], %160 {strides = array<i32>} : memref<128x800xbf16, #tpu.memory_space<vmem>>, vector<16x32xbf16>,
    %c128_173 = arith.constant 128 : index
    %c0_174 = arith.constant 0 : index
    %162 = vector.load %arg13[%c128_173, %c0_174] : memref<400x256xbf16, #tpu.memory_space<vmem>>, vector<16x256xbf16>
    %163 = vector.extract_strided_slice %162 {offsets = [0, 0], sizes = [16, 32], strides = [1, 1]} : vector<16x256xbf16> to vector<16x32xbf16>
    %c0_175 = arith.constant 0 : index
    %c256_176 = arith.constant 256 : index
    %164 = vector.load %arg14[%c0_175, %c256_176] : memref<128x800xbf16, #tpu.memory_space<vmem>>, vector<16x32xbf16>
    tpu.vector_store %arg14[%c0_175, %c256_176], %163 {strides = array<i32>} : memref<128x800xbf16, #tpu.memory_space<vmem>>, vector<16x32xbf16>,
    %165 = vector.extract_strided_slice %162 {offsets = [0, 32], sizes = [16, 32], strides = [1, 1]} : vector<16x256xbf16> to vector<16x32xbf16>
    %c16_177 = arith.constant 16 : index
    %c256_178 = arith.constant 256 : index
    %166 = vector.load %arg14[%c16_177, %c256_178] : memref<128x800xbf16, #tpu.memory_space<vmem>>, vector<16x32xbf16>
    tpu.vector_store %arg14[%c16_177, %c256_178], %165 {strides = array<i32>} : memref<128x800xbf16, #tpu.memory_space<vmem>>, vector<16x32xbf16>,
    %167 = vector.extract_strided_slice %162 {offsets = [0, 64], sizes = [16, 32], strides = [1, 1]} : vector<16x256xbf16> to vector<16x32xbf16>
    %c32_179 = arith.constant 32 : index
    %c256_180 = arith.constant 256 : index
    %168 = vector.load %arg14[%c32_179, %c256_180] : memref<128x800xbf16, #tpu.memory_space<vmem>>, vector<16x32xbf16>
    tpu.vector_store %arg14[%c32_179, %c256_180], %167 {strides = array<i32>} : memref<128x800xbf16, #tpu.memory_space<vmem>>, vector<16x32xbf16>,
    %169 = vector.extract_strided_slice %162 {offsets = [0, 96], sizes = [16, 32], strides = [1, 1]} : vector<16x256xbf16> to vector<16x32xbf16>
    %c48_181 = arith.constant 48 : index
    %c256_182 = arith.constant 256 : index
    %170 = vector.load %arg14[%c48_181, %c256_182] : memref<128x800xbf16, #tpu.memory_space<vmem>>, vector<16x32xbf16>
    tpu.vector_store %arg14[%c48_181, %c256_182], %169 {strides = array<i32>} : memref<128x800xbf16, #tpu.memory_space<vmem>>, vector<16x32xbf16>,
    %171 = vector.extract_strided_slice %162 {offsets = [0, 128], sizes = [16, 32], strides = [1, 1]} : vector<16x256xbf16> to vector<16x32xbf16>
    %c64_183 = arith.constant 64 : index
    %c256_184 = arith.constant 256 : index
    %172 = vector.load %arg14[%c64_183, %c256_184] : memref<128x800xbf16, #tpu.memory_space<vmem>>, vector<16x32xbf16>
    tpu.vector_store %arg14[%c64_183, %c256_184], %171 {strides = array<i32>} : memref<128x800xbf16, #tpu.memory_space<vmem>>, vector<16x32xbf16>,
    %173 = vector.extract_strided_slice %162 {offsets = [0, 160], sizes = [16, 32], strides = [1, 1]} : vector<16x256xbf16> to vector<16x32xbf16>
    %c80_185 = arith.constant 80 : index
    %c256_186 = arith.constant 256 : index
    %174 = vector.load %arg14[%c80_185, %c256_186] : memref<128x800xbf16, #tpu.memory_space<vmem>>, vector<16x32xbf16>
    tpu.vector_store %arg14[%c80_185, %c256_186], %173 {strides = array<i32>} : memref<128x800xbf16, #tpu.memory_space<vmem>>, vector<16x32xbf16>,
    %175 = vector.extract_strided_slice %162 {offsets = [0, 192], sizes = [16, 32], strides = [1, 1]} : vector<16x256xbf16> to vector<16x32xbf16>
    %c96_187 = arith.constant 96 : index
    %c256_188 = arith.constant 256 : index
    %176 = vector.load %arg14[%c96_187, %c256_188] : memref<128x800xbf16, #tpu.memory_space<vmem>>, vector<16x32xbf16>
    tpu.vector_store %arg14[%c96_187, %c256_188], %175 {strides = array<i32>} : memref<128x800xbf16, #tpu.memory_space<vmem>>, vector<16x32xbf16>,
    %177 = vector.extract_strided_slice %162 {offsets = [0, 224], sizes = [16, 32], strides = [1, 1]} : vector<16x256xbf16> to vector<16x32xbf16>
    %c112_189 = arith.constant 112 : index
    %c256_190 = arith.constant 256 : index
    %178 = vector.load %arg14[%c112_189, %c256_190] : memref<128x800xbf16, #tpu.memory_space<vmem>>, vector<16x32xbf16>
    tpu.vector_store %arg14[%c112_189, %c256_190], %177 {strides = array<i32>} : memref<128x800xbf16, #tpu.memory_space<vmem>>, vector<16x32xbf16>,
    %c144 = arith.constant 144 : index
    %c0_191 = arith.constant 0 : index
    %179 = vector.load %arg13[%c144, %c0_191] : memref<400x256xbf16, #tpu.memory_space<vmem>>, vector<16x256xbf16>
    %180 = vector.extract_strided_slice %179 {offsets = [0, 0], sizes = [16, 32], strides = [1, 1]} : vector<16x256xbf16> to vector<16x32xbf16>
    %c0_192 = arith.constant 0 : index
    %c288 = arith.constant 288 : index
    %181 = vector.load %arg14[%c0_192, %c288] : memref<128x800xbf16, #tpu.memory_space<vmem>>, vector<16x32xbf16>
    tpu.vector_store %arg14[%c0_192, %c288], %180 {strides = array<i32>} : memref<128x800xbf16, #tpu.memory_space<vmem>>, vector<16x32xbf16>,
    %182 = vector.extract_strided_slice %179 {offsets = [0, 32], sizes = [16, 32], strides = [1, 1]} : vector<16x256xbf16> to vector<16x32xbf16>
    %c16_193 = arith.constant 16 : index
    %c288_194 = arith.constant 288 : index
    %183 = vector.load %arg14[%c16_193, %c288_194] : memref<128x800xbf16, #tpu.memory_space<vmem>>, vector<16x32xbf16>
    tpu.vector_store %arg14[%c16_193, %c288_194], %182 {strides = array<i32>} : memref<128x800xbf16, #tpu.memory_space<vmem>>, vector<16x32xbf16>,
    %184 = vector.extract_strided_slice %179 {offsets = [0, 64], sizes = [16, 32], strides = [1, 1]} : vector<16x256xbf16> to vector<16x32xbf16>
    %c32_195 = arith.constant 32 : index
    %c288_196 = arith.constant 288 : index
    %185 = vector.load %arg14[%c32_195, %c288_196] : memref<128x800xbf16, #tpu.memory_space<vmem>>, vector<16x32xbf16>
    tpu.vector_store %arg14[%c32_195, %c288_196], %184 {strides = array<i32>} : memref<128x800xbf16, #tpu.memory_space<vmem>>, vector<16x32xbf16>,
    %186 = vector.extract_strided_slice %179 {offsets = [0, 96], sizes = [16, 32], strides = [1, 1]} : vector<16x256xbf16> to vector<16x32xbf16>
    %c48_197 = arith.constant 48 : index
    %c288_198 = arith.constant 288 : index
    %187 = vector.load %arg14[%c48_197, %c288_198] : memref<128x800xbf16, #tpu.memory_space<vmem>>, vector<16x32xbf16>
    tpu.vector_store %arg14[%c48_197, %c288_198], %186 {strides = array<i32>} : memref<128x800xbf16, #tpu.memory_space<vmem>>, vector<16x32xbf16>,
    %188 = vector.extract_strided_slice %179 {offsets = [0, 128], sizes = [16, 32], strides = [1, 1]} : vector<16x256xbf16> to vector<16x32xbf16>
    %c64_199 = arith.constant 64 : index
    %c288_200 = arith.constant 288 : index
    %189 = vector.load %arg14[%c64_199, %c288_200] : memref<128x800xbf16, #tpu.memory_space<vmem>>, vector<16x32xbf16>
    tpu.vector_store %arg14[%c64_199, %c288_200], %188 {strides = array<i32>} : memref<128x800xbf16, #tpu.memory_space<vmem>>, vector<16x32xbf16>,
    %190 = vector.extract_strided_slice %179 {offsets = [0, 160], sizes = [16, 32], strides = [1, 1]} : vector<16x256xbf16> to vector<16x32xbf16>
    %c80_201 = arith.constant 80 : index
    %c288_202 = arith.constant 288 : index
    %191 = vector.load %arg14[%c80_201, %c288_202] : memref<128x800xbf16, #tpu.memory_space<vmem>>, vector<16x32xbf16>
    tpu.vector_store %arg14[%c80_201, %c288_202], %190 {strides = array<i32>} : memref<128x800xbf16, #tpu.memory_space<vmem>>, vector<16x32xbf16>,
    %192 = vector.extract_strided_slice %179 {offsets = [0, 192], sizes = [16, 32], strides = [1, 1]} : vector<16x256xbf16> to vector<16x32xbf16>
    %c96_203 = arith.constant 96 : index
    %c288_204 = arith.constant 288 : index
    %193 = vector.load %arg14[%c96_203, %c288_204] : memref<128x800xbf16, #tpu.memory_space<vmem>>, vector<16x32xbf16>
    tpu.vector_store %arg14[%c96_203, %c288_204], %192 {strides = array<i32>} : memref<128x800xbf16, #tpu.memory_space<vmem>>, vector<16x32xbf16>,
    %194 = vector.extract_strided_slice %179 {offsets = [0, 224], sizes = [16, 32], strides = [1, 1]} : vector<16x256xbf16> to vector<16x32xbf16>
    %c112_205 = arith.constant 112 : index
    %c288_206 = arith.constant 288 : index
    %195 = vector.load %arg14[%c112_205, %c288_206] : memref<128x800xbf16, #tpu.memory_space<vmem>>, vector<16x32xbf16>
    tpu.vector_store %arg14[%c112_205, %c288_206], %194 {strides = array<i32>} : memref<128x800xbf16, #tpu.memory_space<vmem>>, vector<16x32xbf16>,
    %c160_207 = arith.constant 160 : index
    %c0_208 = arith.constant 0 : index
    %196 = vector.load %arg13[%c160_207, %c0_208] : memref<400x256xbf16, #tpu.memory_space<vmem>>, vector<16x256xbf16>
    %197 = vector.extract_strided_slice %196 {offsets = [0, 0], sizes = [16, 32], strides = [1, 1]} : vector<16x256xbf16> to vector<16x32xbf16>
    %c0_209 = arith.constant 0 : index
    %c320_210 = arith.constant 320 : index
    %198 = vector.load %arg14[%c0_209, %c320_210] : memref<128x800xbf16, #tpu.memory_space<vmem>>, vector<16x32xbf16>
    tpu.vector_store %arg14[%c0_209, %c320_210], %197 {strides = array<i32>} : memref<128x800xbf16, #tpu.memory_space<vmem>>, vector<16x32xbf16>,
    %199 = vector.extract_strided_slice %196 {offsets = [0, 32], sizes = [16, 32], strides = [1, 1]} : vector<16x256xbf16> to vector<16x32xbf16>
    %c16_211 = arith.constant 16 : index
    %c320_212 = arith.constant 320 : index
    %200 = vector.load %arg14[%c16_211, %c320_212] : memref<128x800xbf16, #tpu.memory_space<vmem>>, vector<16x32xbf16>
    tpu.vector_store %arg14[%c16_211, %c320_212], %199 {strides = array<i32>} : memref<128x800xbf16, #tpu.memory_space<vmem>>, vector<16x32xbf16>,
    %201 = vector.extract_strided_slice %196 {offsets = [0, 64], sizes = [16, 32], strides = [1, 1]} : vector<16x256xbf16> to vector<16x32xbf16>
    %c32_213 = arith.constant 32 : index
    %c320_214 = arith.constant 320 : index
    %202 = vector.load %arg14[%c32_213, %c320_214] : memref<128x800xbf16, #tpu.memory_space<vmem>>, vector<16x32xbf16>
    tpu.vector_store %arg14[%c32_213, %c320_214], %201 {strides = array<i32>} : memref<128x800xbf16, #tpu.memory_space<vmem>>, vector<16x32xbf16>,
    %203 = vector.extract_strided_slice %196 {offsets = [0, 96], sizes = [16, 32], strides = [1, 1]} : vector<16x256xbf16> to vector<16x32xbf16>
    %c48_215 = arith.constant 48 : index
    %c320_216 = arith.constant 320 : index
    %204 = vector.load %arg14[%c48_215, %c320_216] : memref<128x800xbf16, #tpu.memory_space<vmem>>, vector<16x32xbf16>
    tpu.vector_store %arg14[%c48_215, %c320_216], %203 {strides = array<i32>} : memref<128x800xbf16, #tpu.memory_space<vmem>>, vector<16x32xbf16>,
    %205 = vector.extract_strided_slice %196 {offsets = [0, 128], sizes = [16, 32], strides = [1, 1]} : vector<16x256xbf16> to vector<16x32xbf16>
    %c64_217 = arith.constant 64 : index
    %c320_218 = arith.constant 320 : index
    %206 = vector.load %arg14[%c64_217, %c320_218] : memref<128x800xbf16, #tpu.memory_space<vmem>>, vector<16x32xbf16>
    tpu.vector_store %arg14[%c64_217, %c320_218], %205 {strides = array<i32>} : memref<128x800xbf16, #tpu.memory_space<vmem>>, vector<16x32xbf16>,
    %207 = vector.extract_strided_slice %196 {offsets = [0, 160], sizes = [16, 32], strides = [1, 1]} : vector<16x256xbf16> to vector<16x32xbf16>
    %c80_219 = arith.constant 80 : index
    %c320_220 = arith.constant 320 : index
    %208 = vector.load %arg14[%c80_219, %c320_220] : memref<128x800xbf16, #tpu.memory_space<vmem>>, vector<16x32xbf16>
    tpu.vector_store %arg14[%c80_219, %c320_220], %207 {strides = array<i32>} : memref<128x800xbf16, #tpu.memory_space<vmem>>, vector<16x32xbf16>,
    %209 = vector.extract_strided_slice %196 {offsets = [0, 192], sizes = [16, 32], strides = [1, 1]} : vector<16x256xbf16> to vector<16x32xbf16>
    %c96_221 = arith.constant 96 : index
    %c320_222 = arith.constant 320 : index
    %210 = vector.load %arg14[%c96_221, %c320_222] : memref<128x800xbf16, #tpu.memory_space<vmem>>, vector<16x32xbf16>
    tpu.vector_store %arg14[%c96_221, %c320_222], %209 {strides = array<i32>} : memref<128x800xbf16, #tpu.memory_space<vmem>>, vector<16x32xbf16>,
    %211 = vector.extract_strided_slice %196 {offsets = [0, 224], sizes = [16, 32], strides = [1, 1]} : vector<16x256xbf16> to vector<16x32xbf16>
    %c112_223 = arith.constant 112 : index
    %c320_224 = arith.constant 320 : index
    %212 = vector.load %arg14[%c112_223, %c320_224] : memref<128x800xbf16, #tpu.memory_space<vmem>>, vector<16x32xbf16>
    tpu.vector_store %arg14[%c112_223, %c320_224], %211 {strides = array<i32>} : memref<128x800xbf16, #tpu.memory_space<vmem>>, vector<16x32xbf16>,
    %c176 = arith.constant 176 : index
    %c0_225 = arith.constant 0 : index
    %213 = vector.load %arg13[%c176, %c0_225] : memref<400x256xbf16, #tpu.memory_space<vmem>>, vector<16x256xbf16>
    %214 = vector.extract_strided_slice %213 {offsets = [0, 0], sizes = [16, 32], strides = [1, 1]} : vector<16x256xbf16> to vector<16x32xbf16>
    %c0_226 = arith.constant 0 : index
    %c352 = arith.constant 352 : index
    %215 = vector.load %arg14[%c0_226, %c352] : memref<128x800xbf16, #tpu.memory_space<vmem>>, vector<16x32xbf16>
    tpu.vector_store %arg14[%c0_226, %c352], %214 {strides = array<i32>} : memref<128x800xbf16, #tpu.memory_space<vmem>>, vector<16x32xbf16>,
    %216 = vector.extract_strided_slice %213 {offsets = [0, 32], sizes = [16, 32], strides = [1, 1]} : vector<16x256xbf16> to vector<16x32xbf16>
    %c16_227 = arith.constant 16 : index
    %c352_228 = arith.constant 352 : index
    %217 = vector.load %arg14[%c16_227, %c352_228] : memref<128x800xbf16, #tpu.memory_space<vmem>>, vector<16x32xbf16>
    tpu.vector_store %arg14[%c16_227, %c352_228], %216 {strides = array<i32>} : memref<128x800xbf16, #tpu.memory_space<vmem>>, vector<16x32xbf16>,
    %218 = vector.extract_strided_slice %213 {offsets = [0, 64], sizes = [16, 32], strides = [1, 1]} : vector<16x256xbf16> to vector<16x32xbf16>
    %c32_229 = arith.constant 32 : index
    %c352_230 = arith.constant 352 : index
    %219 = vector.load %arg14[%c32_229, %c352_230] : memref<128x800xbf16, #tpu.memory_space<vmem>>, vector<16x32xbf16>
    tpu.vector_store %arg14[%c32_229, %c352_230], %218 {strides = array<i32>} : memref<128x800xbf16, #tpu.memory_space<vmem>>, vector<16x32xbf16>,
    %220 = vector.extract_strided_slice %213 {offsets = [0, 96], sizes = [16, 32], strides = [1, 1]} : vector<16x256xbf16> to vector<16x32xbf16>
    %c48_231 = arith.constant 48 : index
    %c352_232 = arith.constant 352 : index
    %221 = vector.load %arg14[%c48_231, %c352_232] : memref<128x800xbf16, #tpu.memory_space<vmem>>, vector<16x32xbf16>
    tpu.vector_store %arg14[%c48_231, %c352_232], %220 {strides = array<i32>} : memref<128x800xbf16, #tpu.memory_space<vmem>>, vector<16x32xbf16>,
    %222 = vector.extract_strided_slice %213 {offsets = [0, 128], sizes = [16, 32], strides = [1, 1]} : vector<16x256xbf16> to vector<16x32xbf16>
    %c64_233 = arith.constant 64 : index
    %c352_234 = arith.constant 352 : index
    %223 = vector.load %arg14[%c64_233, %c352_234] : memref<128x800xbf16, #tpu.memory_space<vmem>>, vector<16x32xbf16>
    tpu.vector_store %arg14[%c64_233, %c352_234], %222 {strides = array<i32>} : memref<128x800xbf16, #tpu.memory_space<vmem>>, vector<16x32xbf16>,
    %224 = vector.extract_strided_slice %213 {offsets = [0, 160], sizes = [16, 32], strides = [1, 1]} : vector<16x256xbf16> to vector<16x32xbf16>
    %c80_235 = arith.constant 80 : index
    %c352_236 = arith.constant 352 : index
    %225 = vector.load %arg14[%c80_235, %c352_236] : memref<128x800xbf16, #tpu.memory_space<vmem>>, vector<16x32xbf16>
    tpu.vector_store %arg14[%c80_235, %c352_236], %224 {strides = array<i32>} : memref<128x800xbf16, #tpu.memory_space<vmem>>, vector<16x32xbf16>,
    %226 = vector.extract_strided_slice %213 {offsets = [0, 192], sizes = [16, 32], strides = [1, 1]} : vector<16x256xbf16> to vector<16x32xbf16>
    %c96_237 = arith.constant 96 : index
    %c352_238 = arith.constant 352 : index
    %227 = vector.load %arg14[%c96_237, %c352_238] : memref<128x800xbf16, #tpu.memory_space<vmem>>, vector<16x32xbf16>
    tpu.vector_store %arg14[%c96_237, %c352_238], %226 {strides = array<i32>} : memref<128x800xbf16, #tpu.memory_space<vmem>>, vector<16x32xbf16>,
    %228 = vector.extract_strided_slice %213 {offsets = [0, 224], sizes = [16, 32], strides = [1, 1]} : vector<16x256xbf16> to vector<16x32xbf16>
    %c112_239 = arith.constant 112 : index
    %c352_240 = arith.constant 352 : index
    %229 = vector.load %arg14[%c112_239, %c352_240] : memref<128x800xbf16, #tpu.memory_space<vmem>>, vector<16x32xbf16>
    tpu.vector_store %arg14[%c112_239, %c352_240], %228 {strides = array<i32>} : memref<128x800xbf16, #tpu.memory_space<vmem>>, vector<16x32xbf16>,
    %c192_241 = arith.constant 192 : index
    %c0_242 = arith.constant 0 : index
    %230 = vector.load %arg13[%c192_241, %c0_242] : memref<400x256xbf16, #tpu.memory_space<vmem>>, vector<16x256xbf16>
    %231 = vector.extract_strided_slice %230 {offsets = [0, 0], sizes = [16, 32], strides = [1, 1]} : vector<16x256xbf16> to vector<16x32xbf16>
    %c0_243 = arith.constant 0 : index
    %c384_244 = arith.constant 384 : index
    %232 = vector.load %arg14[%c0_243, %c384_244] : memref<128x800xbf16, #tpu.memory_space<vmem>>, vector<16x32xbf16>
    tpu.vector_store %arg14[%c0_243, %c384_244], %231 {strides = array<i32>} : memref<128x800xbf16, #tpu.memory_space<vmem>>, vector<16x32xbf16>,
    %233 = vector.extract_strided_slice %230 {offsets = [0, 32], sizes = [16, 32], strides = [1, 1]} : vector<16x256xbf16> to vector<16x32xbf16>
    %c16_245 = arith.constant 16 : index
    %c384_246 = arith.constant 384 : index
    %234 = vector.load %arg14[%c16_245, %c384_246] : memref<128x800xbf16, #tpu.memory_space<vmem>>, vector<16x32xbf16>
    tpu.vector_store %arg14[%c16_245, %c384_246], %233 {strides = array<i32>} : memref<128x800xbf16, #tpu.memory_space<vmem>>, vector<16x32xbf16>,
    %235 = vector.extract_strided_slice %230 {offsets = [0, 64], sizes = [16, 32], strides = [1, 1]} : vector<16x256xbf16> to vector<16x32xbf16>
    %c32_247 = arith.constant 32 : index
    %c384_248 = arith.constant 384 : index
    %236 = vector.load %arg14[%c32_247, %c384_248] : memref<128x800xbf16, #tpu.memory_space<vmem>>, vector<16x32xbf16>
    tpu.vector_store %arg14[%c32_247, %c384_248], %235 {strides = array<i32>} : memref<128x800xbf16, #tpu.memory_space<vmem>>, vector<16x32xbf16>,
    %237 = vector.extract_strided_slice %230 {offsets = [0, 96], sizes = [16, 32], strides = [1, 1]} : vector<16x256xbf16> to vector<16x32xbf16>
    %c48_249 = arith.constant 48 : index
    %c384_250 = arith.constant 384 : index
    %238 = vector.load %arg14[%c48_249, %c384_250] : memref<128x800xbf16, #tpu.memory_space<vmem>>, vector<16x32xbf16>
    tpu.vector_store %arg14[%c48_249, %c384_250], %237 {strides = array<i32>} : memref<128x800xbf16, #tpu.memory_space<vmem>>, vector<16x32xbf16>,
    %239 = vector.extract_strided_slice %230 {offsets = [0, 128], sizes = [16, 32], strides = [1, 1]} : vector<16x256xbf16> to vector<16x32xbf16>
    %c64_251 = arith.constant 64 : index
    %c384_252 = arith.constant 384 : index
    %240 = vector.load %arg14[%c64_251, %c384_252] : memref<128x800xbf16, #tpu.memory_space<vmem>>, vector<16x32xbf16>
    tpu.vector_store %arg14[%c64_251, %c384_252], %239 {strides = array<i32>} : memref<128x800xbf16, #tpu.memory_space<vmem>>, vector<16x32xbf16>,
    %241 = vector.extract_strided_slice %230 {offsets = [0, 160], sizes = [16, 32], strides = [1, 1]} : vector<16x256xbf16> to vector<16x32xbf16>
    %c80_253 = arith.constant 80 : index
    %c384_254 = arith.constant 384 : index
    %242 = vector.load %arg14[%c80_253, %c384_254] : memref<128x800xbf16, #tpu.memory_space<vmem>>, vector<16x32xbf16>
    tpu.vector_store %arg14[%c80_253, %c384_254], %241 {strides = array<i32>} : memref<128x800xbf16, #tpu.memory_space<vmem>>, vector<16x32xbf16>,
    %243 = vector.extract_strided_slice %230 {offsets = [0, 192], sizes = [16, 32], strides = [1, 1]} : vector<16x256xbf16> to vector<16x32xbf16>
    %c96_255 = arith.constant 96 : index
    %c384_256 = arith.constant 384 : index
    %244 = vector.load %arg14[%c96_255, %c384_256] : memref<128x800xbf16, #tpu.memory_space<vmem>>, vector<16x32xbf16>
    tpu.vector_store %arg14[%c96_255, %c384_256], %243 {strides = array<i32>} : memref<128x800xbf16, #tpu.memory_space<vmem>>, vector<16x32xbf16>,
    %245 = vector.extract_strided_slice %230 {offsets = [0, 224], sizes = [16, 32], strides = [1, 1]} : vector<16x256xbf16> to vector<16x32xbf16>
    %c112_257 = arith.constant 112 : index
    %c384_258 = arith.constant 384 : index
    %246 = vector.load %arg14[%c112_257, %c384_258] : memref<128x800xbf16, #tpu.memory_space<vmem>>, vector<16x32xbf16>
    tpu.vector_store %arg14[%c112_257, %c384_258], %245 {strides = array<i32>} : memref<128x800xbf16, #tpu.memory_space<vmem>>, vector<16x32xbf16>,
    %c208 = arith.constant 208 : index
    %c0_259 = arith.constant 0 : index
    %247 = vector.load %arg13[%c208, %c0_259] : memref<400x256xbf16, #tpu.memory_space<vmem>>, vector<16x256xbf16>
    %248 = vector.extract_strided_slice %247 {offsets = [0, 0], sizes = [16, 32], strides = [1, 1]} : vector<16x256xbf16> to vector<16x32xbf16>
    %c0_260 = arith.constant 0 : index
    %c416 = arith.constant 416 : index
    %249 = vector.load %arg14[%c0_260, %c416] : memref<128x800xbf16, #tpu.memory_space<vmem>>, vector<16x32xbf16>
    tpu.vector_store %arg14[%c0_260, %c416], %248 {strides = array<i32>} : memref<128x800xbf16, #tpu.memory_space<vmem>>, vector<16x32xbf16>,
    %250 = vector.extract_strided_slice %247 {offsets = [0, 32], sizes = [16, 32], strides = [1, 1]} : vector<16x256xbf16> to vector<16x32xbf16>
    %c16_261 = arith.constant 16 : index
    %c416_262 = arith.constant 416 : index
    %251 = vector.load %arg14[%c16_261, %c416_262] : memref<128x800xbf16, #tpu.memory_space<vmem>>, vector<16x32xbf16>
    tpu.vector_store %arg14[%c16_261, %c416_262], %250 {strides = array<i32>} : memref<128x800xbf16, #tpu.memory_space<vmem>>, vector<16x32xbf16>,
    %252 = vector.extract_strided_slice %247 {offsets = [0, 64], sizes = [16, 32], strides = [1, 1]} : vector<16x256xbf16> to vector<16x32xbf16>
    %c32_263 = arith.constant 32 : index
    %c416_264 = arith.constant 416 : index
    %253 = vector.load %arg14[%c32_263, %c416_264] : memref<128x800xbf16, #tpu.memory_space<vmem>>, vector<16x32xbf16>
    tpu.vector_store %arg14[%c32_263, %c416_264], %252 {strides = array<i32>} : memref<128x800xbf16, #tpu.memory_space<vmem>>, vector<16x32xbf16>,
    %254 = vector.extract_strided_slice %247 {offsets = [0, 96], sizes = [16, 32], strides = [1, 1]} : vector<16x256xbf16> to vector<16x32xbf16>
    %c48_265 = arith.constant 48 : index
    %c416_266 = arith.constant 416 : index
    %255 = vector.load %arg14[%c48_265, %c416_266] : memref<128x800xbf16, #tpu.memory_space<vmem>>, vector<16x32xbf16>
    tpu.vector_store %arg14[%c48_265, %c416_266], %254 {strides = array<i32>} : memref<128x800xbf16, #tpu.memory_space<vmem>>, vector<16x32xbf16>,
    %256 = vector.extract_strided_slice %247 {offsets = [0, 128], sizes = [16, 32], strides = [1, 1]} : vector<16x256xbf16> to vector<16x32xbf16>
    %c64_267 = arith.constant 64 : index
    %c416_268 = arith.constant 416 : index
    %257 = vector.load %arg14[%c64_267, %c416_268] : memref<128x800xbf16, #tpu.memory_space<vmem>>, vector<16x32xbf16>
    tpu.vector_store %arg14[%c64_267, %c416_268], %256 {strides = array<i32>} : memref<128x800xbf16, #tpu.memory_space<vmem>>, vector<16x32xbf16>,
    %258 = vector.extract_strided_slice %247 {offsets = [0, 160], sizes = [16, 32], strides = [1, 1]} : vector<16x256xbf16> to vector<16x32xbf16>
    %c80_269 = arith.constant 80 : index
    %c416_270 = arith.constant 416 : index
    %259 = vector.load %arg14[%c80_269, %c416_270] : memref<128x800xbf16, #tpu.memory_space<vmem>>, vector<16x32xbf16>
    tpu.vector_store %arg14[%c80_269, %c416_270], %258 {strides = array<i32>} : memref<128x800xbf16, #tpu.memory_space<vmem>>, vector<16x32xbf16>,
    %260 = vector.extract_strided_slice %247 {offsets = [0, 192], sizes = [16, 32], strides = [1, 1]} : vector<16x256xbf16> to vector<16x32xbf16>
    %c96_271 = arith.constant 96 : index
    %c416_272 = arith.constant 416 : index
    %261 = vector.load %arg14[%c96_271, %c416_272] : memref<128x800xbf16, #tpu.memory_space<vmem>>, vector<16x32xbf16>
    tpu.vector_store %arg14[%c96_271, %c416_272], %260 {strides = array<i32>} : memref<128x800xbf16, #tpu.memory_space<vmem>>, vector<16x32xbf16>,
    %262 = vector.extract_strided_slice %247 {offsets = [0, 224], sizes = [16, 32], strides = [1, 1]} : vector<16x256xbf16> to vector<16x32xbf16>
    %c112_273 = arith.constant 112 : index
    %c416_274 = arith.constant 416 : index
    %263 = vector.load %arg14[%c112_273, %c416_274] : memref<128x800xbf16, #tpu.memory_space<vmem>>, vector<16x32xbf16>
    tpu.vector_store %arg14[%c112_273, %c416_274], %262 {strides = array<i32>} : memref<128x800xbf16, #tpu.memory_space<vmem>>, vector<16x32xbf16>,
    %c224_275 = arith.constant 224 : index
    %c0_276 = arith.constant 0 : index
    %264 = vector.load %arg13[%c224_275, %c0_276] : memref<400x256xbf16, #tpu.memory_space<vmem>>, vector<16x256xbf16>
    %265 = vector.extract_strided_slice %264 {offsets = [0, 0], sizes = [16, 32], strides = [1, 1]} : vector<16x256xbf16> to vector<16x32xbf16>
    %c0_277 = arith.constant 0 : index
    %c448_278 = arith.constant 448 : index
    %266 = vector.load %arg14[%c0_277, %c448_278] : memref<128x800xbf16, #tpu.memory_space<vmem>>, vector<16x32xbf16>
    tpu.vector_store %arg14[%c0_277, %c448_278], %265 {strides = array<i32>} : memref<128x800xbf16, #tpu.memory_space<vmem>>, vector<16x32xbf16>,
    %267 = vector.extract_strided_slice %264 {offsets = [0, 32], sizes = [16, 32], strides = [1, 1]} : vector<16x256xbf16> to vector<16x32xbf16>
    %c16_279 = arith.constant 16 : index
    %c448_280 = arith.constant 448 : index
    %268 = vector.load %arg14[%c16_279, %c448_280] : memref<128x800xbf16, #tpu.memory_space<vmem>>, vector<16x32xbf16>
    tpu.vector_store %arg14[%c16_279, %c448_280], %267 {strides = array<i32>} : memref<128x800xbf16, #tpu.memory_space<vmem>>, vector<16x32xbf16>,
    %269 = vector.extract_strided_slice %264 {offsets = [0, 64], sizes = [16, 32], strides = [1, 1]} : vector<16x256xbf16> to vector<16x32xbf16>
    %c32_281 = arith.constant 32 : index
    %c448_282 = arith.constant 448 : index
    %270 = vector.load %arg14[%c32_281, %c448_282] : memref<128x800xbf16, #tpu.memory_space<vmem>>, vector<16x32xbf16>
    tpu.vector_store %arg14[%c32_281, %c448_282], %269 {strides = array<i32>} : memref<128x800xbf16, #tpu.memory_space<vmem>>, vector<16x32xbf16>,
    %271 = vector.extract_strided_slice %264 {offsets = [0, 96], sizes = [16, 32], strides = [1, 1]} : vector<16x256xbf16> to vector<16x32xbf16>
    %c48_283 = arith.constant 48 : index
    %c448_284 = arith.constant 448 : index
    %272 = vector.load %arg14[%c48_283, %c448_284] : memref<128x800xbf16, #tpu.memory_space<vmem>>, vector<16x32xbf16>
    tpu.vector_store %arg14[%c48_283, %c448_284], %271 {strides = array<i32>} : memref<128x800xbf16, #tpu.memory_space<vmem>>, vector<16x32xbf16>,
    %273 = vector.extract_strided_slice %264 {offsets = [0, 128], sizes = [16, 32], strides = [1, 1]} : vector<16x256xbf16> to vector<16x32xbf16>
    %c64_285 = arith.constant 64 : index
    %c448_286 = arith.constant 448 : index
    %274 = vector.load %arg14[%c64_285, %c448_286] : memref<128x800xbf16, #tpu.memory_space<vmem>>, vector<16x32xbf16>
    tpu.vector_store %arg14[%c64_285, %c448_286], %273 {strides = array<i32>} : memref<128x800xbf16, #tpu.memory_space<vmem>>, vector<16x32xbf16>,
    %275 = vector.extract_strided_slice %264 {offsets = [0, 160], sizes = [16, 32], strides = [1, 1]} : vector<16x256xbf16> to vector<16x32xbf16>
    %c80_287 = arith.constant 80 : index
    %c448_288 = arith.constant 448 : index
    %276 = vector.load %arg14[%c80_287, %c448_288] : memref<128x800xbf16, #tpu.memory_space<vmem>>, vector<16x32xbf16>
    tpu.vector_store %arg14[%c80_287, %c448_288], %275 {strides = array<i32>} : memref<128x800xbf16, #tpu.memory_space<vmem>>, vector<16x32xbf16>,
    %277 = vector.extract_strided_slice %264 {offsets = [0, 192], sizes = [16, 32], strides = [1, 1]} : vector<16x256xbf16> to vector<16x32xbf16>
    %c96_289 = arith.constant 96 : index
    %c448_290 = arith.constant 448 : index
    %278 = vector.load %arg14[%c96_289, %c448_290] : memref<128x800xbf16, #tpu.memory_space<vmem>>, vector<16x32xbf16>
    tpu.vector_store %arg14[%c96_289, %c448_290], %277 {strides = array<i32>} : memref<128x800xbf16, #tpu.memory_space<vmem>>, vector<16x32xbf16>,
    %279 = vector.extract_strided_slice %264 {offsets = [0, 224], sizes = [16, 32], strides = [1, 1]} : vector<16x256xbf16> to vector<16x32xbf16>
    %c112_291 = arith.constant 112 : index
    %c448_292 = arith.constant 448 : index
    %280 = vector.load %arg14[%c112_291, %c448_292] : memref<128x800xbf16, #tpu.memory_space<vmem>>, vector<16x32xbf16>
    tpu.vector_store %arg14[%c112_291, %c448_292], %279 {strides = array<i32>} : memref<128x800xbf16, #tpu.memory_space<vmem>>, vector<16x32xbf16>,
    %c240 = arith.constant 240 : index
    %c0_293 = arith.constant 0 : index
    %281 = vector.load %arg13[%c240, %c0_293] : memref<400x256xbf16, #tpu.memory_space<vmem>>, vector<16x256xbf16>
    %282 = vector.extract_strided_slice %281 {offsets = [0, 0], sizes = [16, 32], strides = [1, 1]} : vector<16x256xbf16> to vector<16x32xbf16>
    %c0_294 = arith.constant 0 : index
    %c480 = arith.constant 480 : index
    %283 = vector.load %arg14[%c0_294, %c480] : memref<128x800xbf16, #tpu.memory_space<vmem>>, vector<16x32xbf16>
    tpu.vector_store %arg14[%c0_294, %c480], %282 {strides = array<i32>} : memref<128x800xbf16, #tpu.memory_space<vmem>>, vector<16x32xbf16>,
    %284 = vector.extract_strided_slice %281 {offsets = [0, 32], sizes = [16, 32], strides = [1, 1]} : vector<16x256xbf16> to vector<16x32xbf16>
    %c16_295 = arith.constant 16 : index
    %c480_296 = arith.constant 480 : index
    %285 = vector.load %arg14[%c16_295, %c480_296] : memref<128x800xbf16, #tpu.memory_space<vmem>>, vector<16x32xbf16>
    tpu.vector_store %arg14[%c16_295, %c480_296], %284 {strides = array<i32>} : memref<128x800xbf16, #tpu.memory_space<vmem>>, vector<16x32xbf16>,
    %286 = vector.extract_strided_slice %281 {offsets = [0, 64], sizes = [16, 32], strides = [1, 1]} : vector<16x256xbf16> to vector<16x32xbf16>
    %c32_297 = arith.constant 32 : index
    %c480_298 = arith.constant 480 : index
    %287 = vector.load %arg14[%c32_297, %c480_298] : memref<128x800xbf16, #tpu.memory_space<vmem>>, vector<16x32xbf16>
    tpu.vector_store %arg14[%c32_297, %c480_298], %286 {strides = array<i32>} : memref<128x800xbf16, #tpu.memory_space<vmem>>, vector<16x32xbf16>,
    %288 = vector.extract_strided_slice %281 {offsets = [0, 96], sizes = [16, 32], strides = [1, 1]} : vector<16x256xbf16> to vector<16x32xbf16>
    %c48_299 = arith.constant 48 : index
    %c480_300 = arith.constant 480 : index
    %289 = vector.load %arg14[%c48_299, %c480_300] : memref<128x800xbf16, #tpu.memory_space<vmem>>, vector<16x32xbf16>
    tpu.vector_store %arg14[%c48_299, %c480_300], %288 {strides = array<i32>} : memref<128x800xbf16, #tpu.memory_space<vmem>>, vector<16x32xbf16>,
    %290 = vector.extract_strided_slice %281 {offsets = [0, 128], sizes = [16, 32], strides = [1, 1]} : vector<16x256xbf16> to vector<16x32xbf16>
    %c64_301 = arith.constant 64 : index
    %c480_302 = arith.constant 480 : index
    %291 = vector.load %arg14[%c64_301, %c480_302] : memref<128x800xbf16, #tpu.memory_space<vmem>>, vector<16x32xbf16>
    tpu.vector_store %arg14[%c64_301, %c480_302], %290 {strides = array<i32>} : memref<128x800xbf16, #tpu.memory_space<vmem>>, vector<16x32xbf16>,
    %292 = vector.extract_strided_slice %281 {offsets = [0, 160], sizes = [16, 32], strides = [1, 1]} : vector<16x256xbf16> to vector<16x32xbf16>
    %c80_303 = arith.constant 80 : index
    %c480_304 = arith.constant 480 : index
    %293 = vector.load %arg14[%c80_303, %c480_304] : memref<128x800xbf16, #tpu.memory_space<vmem>>, vector<16x32xbf16>
    tpu.vector_store %arg14[%c80_303, %c480_304], %292 {strides = array<i32>} : memref<128x800xbf16, #tpu.memory_space<vmem>>, vector<16x32xbf16>,
    %294 = vector.extract_strided_slice %281 {offsets = [0, 192], sizes = [16, 32], strides = [1, 1]} : vector<16x256xbf16> to vector<16x32xbf16>
    %c96_305 = arith.constant 96 : index
    %c480_306 = arith.constant 480 : index
    %295 = vector.load %arg14[%c96_305, %c480_306] : memref<128x800xbf16, #tpu.memory_space<vmem>>, vector<16x32xbf16>
    tpu.vector_store %arg14[%c96_305, %c480_306], %294 {strides = array<i32>} : memref<128x800xbf16, #tpu.memory_space<vmem>>, vector<16x32xbf16>,
    %296 = vector.extract_strided_slice %281 {offsets = [0, 224], sizes = [16, 32], strides = [1, 1]} : vector<16x256xbf16> to vector<16x32xbf16>
    %c112_307 = arith.constant 112 : index
    %c480_308 = arith.constant 480 : index
    %297 = vector.load %arg14[%c112_307, %c480_308] : memref<128x800xbf16, #tpu.memory_space<vmem>>, vector<16x32xbf16>
    tpu.vector_store %arg14[%c112_307, %c480_308], %296 {strides = array<i32>} : memref<128x800xbf16, #tpu.memory_space<vmem>>, vector<16x32xbf16>,
    %c256_309 = arith.constant 256 : index
    %c0_310 = arith.constant 0 : index
    %298 = vector.load %arg13[%c256_309, %c0_310] : memref<400x256xbf16, #tpu.memory_space<vmem>>, vector<16x256xbf16>
    %299 = vector.extract_strided_slice %298 {offsets = [0, 0], sizes = [16, 32], strides = [1, 1]} : vector<16x256xbf16> to vector<16x32xbf16>
    %c0_311 = arith.constant 0 : index
    %c512 = arith.constant 512 : index
    %300 = vector.load %arg14[%c0_311, %c512] : memref<128x800xbf16, #tpu.memory_space<vmem>>, vector<16x32xbf16>
    tpu.vector_store %arg14[%c0_311, %c512], %299 {strides = array<i32>} : memref<128x800xbf16, #tpu.memory_space<vmem>>, vector<16x32xbf16>,
    %301 = vector.extract_strided_slice %298 {offsets = [0, 32], sizes = [16, 32], strides = [1, 1]} : vector<16x256xbf16> to vector<16x32xbf16>
    %c16_312 = arith.constant 16 : index
    %c512_313 = arith.constant 512 : index
    %302 = vector.load %arg14[%c16_312, %c512_313] : memref<128x800xbf16, #tpu.memory_space<vmem>>, vector<16x32xbf16>
    tpu.vector_store %arg14[%c16_312, %c512_313], %301 {strides = array<i32>} : memref<128x800xbf16, #tpu.memory_space<vmem>>, vector<16x32xbf16>,
    %303 = vector.extract_strided_slice %298 {offsets = [0, 64], sizes = [16, 32], strides = [1, 1]} : vector<16x256xbf16> to vector<16x32xbf16>
    %c32_314 = arith.constant 32 : index
    %c512_315 = arith.constant 512 : index
    %304 = vector.load %arg14[%c32_314, %c512_315] : memref<128x800xbf16, #tpu.memory_space<vmem>>, vector<16x32xbf16>
    tpu.vector_store %arg14[%c32_314, %c512_315], %303 {strides = array<i32>} : memref<128x800xbf16, #tpu.memory_space<vmem>>, vector<16x32xbf16>,
    %305 = vector.extract_strided_slice %298 {offsets = [0, 96], sizes = [16, 32], strides = [1, 1]} : vector<16x256xbf16> to vector<16x32xbf16>
    %c48_316 = arith.constant 48 : index
    %c512_317 = arith.constant 512 : index
    %306 = vector.load %arg14[%c48_316, %c512_317] : memref<128x800xbf16, #tpu.memory_space<vmem>>, vector<16x32xbf16>
    tpu.vector_store %arg14[%c48_316, %c512_317], %305 {strides = array<i32>} : memref<128x800xbf16, #tpu.memory_space<vmem>>, vector<16x32xbf16>,
    %307 = vector.extract_strided_slice %298 {offsets = [0, 128], sizes = [16, 32], strides = [1, 1]} : vector<16x256xbf16> to vector<16x32xbf16>
    %c64_318 = arith.constant 64 : index
    %c512_319 = arith.constant 512 : index
    %308 = vector.load %arg14[%c64_318, %c512_319] : memref<128x800xbf16, #tpu.memory_space<vmem>>, vector<16x32xbf16>
    tpu.vector_store %arg14[%c64_318, %c512_319], %307 {strides = array<i32>} : memref<128x800xbf16, #tpu.memory_space<vmem>>, vector<16x32xbf16>,
    %309 = vector.extract_strided_slice %298 {offsets = [0, 160], sizes = [16, 32], strides = [1, 1]} : vector<16x256xbf16> to vector<16x32xbf16>
    %c80_320 = arith.constant 80 : index
    %c512_321 = arith.constant 512 : index
    %310 = vector.load %arg14[%c80_320, %c512_321] : memref<128x800xbf16, #tpu.memory_space<vmem>>, vector<16x32xbf16>
    tpu.vector_store %arg14[%c80_320, %c512_321], %309 {strides = array<i32>} : memref<128x800xbf16, #tpu.memory_space<vmem>>, vector<16x32xbf16>,
    %311 = vector.extract_strided_slice %298 {offsets = [0, 192], sizes = [16, 32], strides = [1, 1]} : vector<16x256xbf16> to vector<16x32xbf16>
    %c96_322 = arith.constant 96 : index
    %c512_323 = arith.constant 512 : index
    %312 = vector.load %arg14[%c96_322, %c512_323] : memref<128x800xbf16, #tpu.memory_space<vmem>>, vector<16x32xbf16>
    tpu.vector_store %arg14[%c96_322, %c512_323], %311 {strides = array<i32>} : memref<128x800xbf16, #tpu.memory_space<vmem>>, vector<16x32xbf16>,
    %313 = vector.extract_strided_slice %298 {offsets = [0, 224], sizes = [16, 32], strides = [1, 1]} : vector<16x256xbf16> to vector<16x32xbf16>
    %c112_324 = arith.constant 112 : index
    %c512_325 = arith.constant 512 : index
    %314 = vector.load %arg14[%c112_324, %c512_325] : memref<128x800xbf16, #tpu.memory_space<vmem>>, vector<16x32xbf16>
    tpu.vector_store %arg14[%c112_324, %c512_325], %313 {strides = array<i32>} : memref<128x800xbf16, #tpu.memory_space<vmem>>, vector<16x32xbf16>,
    %c272 = arith.constant 272 : index
    %c0_326 = arith.constant 0 : index
    %315 = vector.load %arg13[%c272, %c0_326] : memref<400x256xbf16, #tpu.memory_space<vmem>>, vector<16x256xbf16>
    %316 = vector.extract_strided_slice %315 {offsets = [0, 0], sizes = [16, 32], strides = [1, 1]} : vector<16x256xbf16> to vector<16x32xbf16>
    %c0_327 = arith.constant 0 : index
    %c544 = arith.constant 544 : index
    %317 = vector.load %arg14[%c0_327, %c544] : memref<128x800xbf16, #tpu.memory_space<vmem>>, vector<16x32xbf16>
    tpu.vector_store %arg14[%c0_327, %c544], %316 {strides = array<i32>} : memref<128x800xbf16, #tpu.memory_space<vmem>>, vector<16x32xbf16>,
    %318 = vector.extract_strided_slice %315 {offsets = [0, 32], sizes = [16, 32], strides = [1, 1]} : vector<16x256xbf16> to vector<16x32xbf16>
    %c16_328 = arith.constant 16 : index
    %c544_329 = arith.constant 544 : index
    %319 = vector.load %arg14[%c16_328, %c544_329] : memref<128x800xbf16, #tpu.memory_space<vmem>>, vector<16x32xbf16>
    tpu.vector_store %arg14[%c16_328, %c544_329], %318 {strides = array<i32>} : memref<128x800xbf16, #tpu.memory_space<vmem>>, vector<16x32xbf16>,
    %320 = vector.extract_strided_slice %315 {offsets = [0, 64], sizes = [16, 32], strides = [1, 1]} : vector<16x256xbf16> to vector<16x32xbf16>
    %c32_330 = arith.constant 32 : index
    %c544_331 = arith.constant 544 : index
    %321 = vector.load %arg14[%c32_330, %c544_331] : memref<128x800xbf16, #tpu.memory_space<vmem>>, vector<16x32xbf16>
    tpu.vector_store %arg14[%c32_330, %c544_331], %320 {strides = array<i32>} : memref<128x800xbf16, #tpu.memory_space<vmem>>, vector<16x32xbf16>,
    %322 = vector.extract_strided_slice %315 {offsets = [0, 96], sizes = [16, 32], strides = [1, 1]} : vector<16x256xbf16> to vector<16x32xbf16>
    %c48_332 = arith.constant 48 : index
    %c544_333 = arith.constant 544 : index
    %323 = vector.load %arg14[%c48_332, %c544_333] : memref<128x800xbf16, #tpu.memory_space<vmem>>, vector<16x32xbf16>
    tpu.vector_store %arg14[%c48_332, %c544_333], %322 {strides = array<i32>} : memref<128x800xbf16, #tpu.memory_space<vmem>>, vector<16x32xbf16>,
    %324 = vector.extract_strided_slice %315 {offsets = [0, 128], sizes = [16, 32], strides = [1, 1]} : vector<16x256xbf16> to vector<16x32xbf16>
    %c64_334 = arith.constant 64 : index
    %c544_335 = arith.constant 544 : index
    %325 = vector.load %arg14[%c64_334, %c544_335] : memref<128x800xbf16, #tpu.memory_space<vmem>>, vector<16x32xbf16>
    tpu.vector_store %arg14[%c64_334, %c544_335], %324 {strides = array<i32>} : memref<128x800xbf16, #tpu.memory_space<vmem>>, vector<16x32xbf16>,
    %326 = vector.extract_strided_slice %315 {offsets = [0, 160], sizes = [16, 32], strides = [1, 1]} : vector<16x256xbf16> to vector<16x32xbf16>
    %c80_336 = arith.constant 80 : index
    %c544_337 = arith.constant 544 : index
    %327 = vector.load %arg14[%c80_336, %c544_337] : memref<128x800xbf16, #tpu.memory_space<vmem>>, vector<16x32xbf16>
    tpu.vector_store %arg14[%c80_336, %c544_337], %326 {strides = array<i32>} : memref<128x800xbf16, #tpu.memory_space<vmem>>, vector<16x32xbf16>,
    %328 = vector.extract_strided_slice %315 {offsets = [0, 192], sizes = [16, 32], strides = [1, 1]} : vector<16x256xbf16> to vector<16x32xbf16>
    %c96_338 = arith.constant 96 : index
    %c544_339 = arith.constant 544 : index
    %329 = vector.load %arg14[%c96_338, %c544_339] : memref<128x800xbf16, #tpu.memory_space<vmem>>, vector<16x32xbf16>
    tpu.vector_store %arg14[%c96_338, %c544_339], %328 {strides = array<i32>} : memref<128x800xbf16, #tpu.memory_space<vmem>>, vector<16x32xbf16>,
    %330 = vector.extract_strided_slice %315 {offsets = [0, 224], sizes = [16, 32], strides = [1, 1]} : vector<16x256xbf16> to vector<16x32xbf16>
    %c112_340 = arith.constant 112 : index
    %c544_341 = arith.constant 544 : index
    %331 = vector.load %arg14[%c112_340, %c544_341] : memref<128x800xbf16, #tpu.memory_space<vmem>>, vector<16x32xbf16>
    tpu.vector_store %arg14[%c112_340, %c544_341], %330 {strides = array<i32>} : memref<128x800xbf16, #tpu.memory_space<vmem>>, vector<16x32xbf16>,
    %c288_342 = arith.constant 288 : index
    %c0_343 = arith.constant 0 : index
    %332 = vector.load %arg13[%c288_342, %c0_343] : memref<400x256xbf16, #tpu.memory_space<vmem>>, vector<16x256xbf16>
    %333 = vector.extract_strided_slice %332 {offsets = [0, 0], sizes = [16, 32], strides = [1, 1]} : vector<16x256xbf16> to vector<16x32xbf16>
    %c0_344 = arith.constant 0 : index
    %c576 = arith.constant 576 : index
    %334 = vector.load %arg14[%c0_344, %c576] : memref<128x800xbf16, #tpu.memory_space<vmem>>, vector<16x32xbf16>
    tpu.vector_store %arg14[%c0_344, %c576], %333 {strides = array<i32>} : memref<128x800xbf16, #tpu.memory_space<vmem>>, vector<16x32xbf16>,
    %335 = vector.extract_strided_slice %332 {offsets = [0, 32], sizes = [16, 32], strides = [1, 1]} : vector<16x256xbf16> to vector<16x32xbf16>
    %c16_345 = arith.constant 16 : index
    %c576_346 = arith.constant 576 : index
    %336 = vector.load %arg14[%c16_345, %c576_346] : memref<128x800xbf16, #tpu.memory_space<vmem>>, vector<16x32xbf16>
    tpu.vector_store %arg14[%c16_345, %c576_346], %335 {strides = array<i32>} : memref<128x800xbf16, #tpu.memory_space<vmem>>, vector<16x32xbf16>,
    %337 = vector.extract_strided_slice %332 {offsets = [0, 64], sizes = [16, 32], strides = [1, 1]} : vector<16x256xbf16> to vector<16x32xbf16>
    %c32_347 = arith.constant 32 : index
    %c576_348 = arith.constant 576 : index
    %338 = vector.load %arg14[%c32_347, %c576_348] : memref<128x800xbf16, #tpu.memory_space<vmem>>, vector<16x32xbf16>
    tpu.vector_store %arg14[%c32_347, %c576_348], %337 {strides = array<i32>} : memref<128x800xbf16, #tpu.memory_space<vmem>>, vector<16x32xbf16>,
    %339 = vector.extract_strided_slice %332 {offsets = [0, 96], sizes = [16, 32], strides = [1, 1]} : vector<16x256xbf16> to vector<16x32xbf16>
    %c48_349 = arith.constant 48 : index
    %c576_350 = arith.constant 576 : index
    %340 = vector.load %arg14[%c48_349, %c576_350] : memref<128x800xbf16, #tpu.memory_space<vmem>>, vector<16x32xbf16>
    tpu.vector_store %arg14[%c48_349, %c576_350], %339 {strides = array<i32>} : memref<128x800xbf16, #tpu.memory_space<vmem>>, vector<16x32xbf16>,
    %341 = vector.extract_strided_slice %332 {offsets = [0, 128], sizes = [16, 32], strides = [1, 1]} : vector<16x256xbf16> to vector<16x32xbf16>
    %c64_351 = arith.constant 64 : index
    %c576_352 = arith.constant 576 : index
    %342 = vector.load %arg14[%c64_351, %c576_352] : memref<128x800xbf16, #tpu.memory_space<vmem>>, vector<16x32xbf16>
    tpu.vector_store %arg14[%c64_351, %c576_352], %341 {strides = array<i32>} : memref<128x800xbf16, #tpu.memory_space<vmem>>, vector<16x32xbf16>,
    %343 = vector.extract_strided_slice %332 {offsets = [0, 160], sizes = [16, 32], strides = [1, 1]} : vector<16x256xbf16> to vector<16x32xbf16>
    %c80_353 = arith.constant 80 : index
    %c576_354 = arith.constant 576 : index
    %344 = vector.load %arg14[%c80_353, %c576_354] : memref<128x800xbf16, #tpu.memory_space<vmem>>, vector<16x32xbf16>
    tpu.vector_store %arg14[%c80_353, %c576_354], %343 {strides = array<i32>} : memref<128x800xbf16, #tpu.memory_space<vmem>>, vector<16x32xbf16>,
    %345 = vector.extract_strided_slice %332 {offsets = [0, 192], sizes = [16, 32], strides = [1, 1]} : vector<16x256xbf16> to vector<16x32xbf16>
    %c96_355 = arith.constant 96 : index
    %c576_356 = arith.constant 576 : index
    %346 = vector.load %arg14[%c96_355, %c576_356] : memref<128x800xbf16, #tpu.memory_space<vmem>>, vector<16x32xbf16>
    tpu.vector_store %arg14[%c96_355, %c576_356], %345 {strides = array<i32>} : memref<128x800xbf16, #tpu.memory_space<vmem>>, vector<16x32xbf16>,
    %347 = vector.extract_strided_slice %332 {offsets = [0, 224], sizes = [16, 32], strides = [1, 1]} : vector<16x256xbf16> to vector<16x32xbf16>
    %c112_357 = arith.constant 112 : index
    %c576_358 = arith.constant 576 : index
    %348 = vector.load %arg14[%c112_357, %c576_358] : memref<128x800xbf16, #tpu.memory_space<vmem>>, vector<16x32xbf16>
    tpu.vector_store %arg14[%c112_357, %c576_358], %347 {strides = array<i32>} : memref<128x800xbf16, #tpu.memory_space<vmem>>, vector<16x32xbf16>,
    %c304 = arith.constant 304 : index
    %c0_359 = arith.constant 0 : index
    %349 = vector.load %arg13[%c304, %c0_359] : memref<400x256xbf16, #tpu.memory_space<vmem>>, vector<16x256xbf16>
    %350 = vector.extract_strided_slice %349 {offsets = [0, 0], sizes = [16, 32], strides = [1, 1]} : vector<16x256xbf16> to vector<16x32xbf16>
    %c0_360 = arith.constant 0 : index
    %c608 = arith.constant 608 : index
    %351 = vector.load %arg14[%c0_360, %c608] : memref<128x800xbf16, #tpu.memory_space<vmem>>, vector<16x32xbf16>
    tpu.vector_store %arg14[%c0_360, %c608], %350 {strides = array<i32>} : memref<128x800xbf16, #tpu.memory_space<vmem>>, vector<16x32xbf16>,
    %352 = vector.extract_strided_slice %349 {offsets = [0, 32], sizes = [16, 32], strides = [1, 1]} : vector<16x256xbf16> to vector<16x32xbf16>
    %c16_361 = arith.constant 16 : index
    %c608_362 = arith.constant 608 : index
    %353 = vector.load %arg14[%c16_361, %c608_362] : memref<128x800xbf16, #tpu.memory_space<vmem>>, vector<16x32xbf16>
    tpu.vector_store %arg14[%c16_361, %c608_362], %352 {strides = array<i32>} : memref<128x800xbf16, #tpu.memory_space<vmem>>, vector<16x32xbf16>,
    %354 = vector.extract_strided_slice %349 {offsets = [0, 64], sizes = [16, 32], strides = [1, 1]} : vector<16x256xbf16> to vector<16x32xbf16>
    %c32_363 = arith.constant 32 : index
    %c608_364 = arith.constant 608 : index
    %355 = vector.load %arg14[%c32_363, %c608_364] : memref<128x800xbf16, #tpu.memory_space<vmem>>, vector<16x32xbf16>
    tpu.vector_store %arg14[%c32_363, %c608_364], %354 {strides = array<i32>} : memref<128x800xbf16, #tpu.memory_space<vmem>>, vector<16x32xbf16>,
    %356 = vector.extract_strided_slice %349 {offsets = [0, 96], sizes = [16, 32], strides = [1, 1]} : vector<16x256xbf16> to vector<16x32xbf16>
    %c48_365 = arith.constant 48 : index
    %c608_366 = arith.constant 608 : index
    %357 = vector.load %arg14[%c48_365, %c608_366] : memref<128x800xbf16, #tpu.memory_space<vmem>>, vector<16x32xbf16>
    tpu.vector_store %arg14[%c48_365, %c608_366], %356 {strides = array<i32>} : memref<128x800xbf16, #tpu.memory_space<vmem>>, vector<16x32xbf16>,
    %358 = vector.extract_strided_slice %349 {offsets = [0, 128], sizes = [16, 32], strides = [1, 1]} : vector<16x256xbf16> to vector<16x32xbf16>
    %c64_367 = arith.constant 64 : index
    %c608_368 = arith.constant 608 : index
    %359 = vector.load %arg14[%c64_367, %c608_368] : memref<128x800xbf16, #tpu.memory_space<vmem>>, vector<16x32xbf16>
    tpu.vector_store %arg14[%c64_367, %c608_368], %358 {strides = array<i32>} : memref<128x800xbf16, #tpu.memory_space<vmem>>, vector<16x32xbf16>,
    %360 = vector.extract_strided_slice %349 {offsets = [0, 160], sizes = [16, 32], strides = [1, 1]} : vector<16x256xbf16> to vector<16x32xbf16>
    %c80_369 = arith.constant 80 : index
    %c608_370 = arith.constant 608 : index
    %361 = vector.load %arg14[%c80_369, %c608_370] : memref<128x800xbf16, #tpu.memory_space<vmem>>, vector<16x32xbf16>
    tpu.vector_store %arg14[%c80_369, %c608_370], %360 {strides = array<i32>} : memref<128x800xbf16, #tpu.memory_space<vmem>>, vector<16x32xbf16>,
    %362 = vector.extract_strided_slice %349 {offsets = [0, 192], sizes = [16, 32], strides = [1, 1]} : vector<16x256xbf16> to vector<16x32xbf16>
    %c96_371 = arith.constant 96 : index
    %c608_372 = arith.constant 608 : index
    %363 = vector.load %arg14[%c96_371, %c608_372] : memref<128x800xbf16, #tpu.memory_space<vmem>>, vector<16x32xbf16>
    tpu.vector_store %arg14[%c96_371, %c608_372], %362 {strides = array<i32>} : memref<128x800xbf16, #tpu.memory_space<vmem>>, vector<16x32xbf16>,
    %364 = vector.extract_strided_slice %349 {offsets = [0, 224], sizes = [16, 32], strides = [1, 1]} : vector<16x256xbf16> to vector<16x32xbf16>
    %c112_373 = arith.constant 112 : index
    %c608_374 = arith.constant 608 : index
    %365 = vector.load %arg14[%c112_373, %c608_374] : memref<128x800xbf16, #tpu.memory_space<vmem>>, vector<16x32xbf16>
    tpu.vector_store %arg14[%c112_373, %c608_374], %364 {strides = array<i32>} : memref<128x800xbf16, #tpu.memory_space<vmem>>, vector<16x32xbf16>,
    %c320_375 = arith.constant 320 : index
    %c0_376 = arith.constant 0 : index
    %366 = vector.load %arg13[%c320_375, %c0_376] : memref<400x256xbf16, #tpu.memory_space<vmem>>, vector<16x256xbf16>
    %367 = vector.extract_strided_slice %366 {offsets = [0, 0], sizes = [16, 32], strides = [1, 1]} : vector<16x256xbf16> to vector<16x32xbf16>
    %c0_377 = arith.constant 0 : index
    %c640 = arith.constant 640 : index
    %368 = vector.load %arg14[%c0_377, %c640] : memref<128x800xbf16, #tpu.memory_space<vmem>>, vector<16x32xbf16>
    tpu.vector_store %arg14[%c0_377, %c640], %367 {strides = array<i32>} : memref<128x800xbf16, #tpu.memory_space<vmem>>, vector<16x32xbf16>,
    %369 = vector.extract_strided_slice %366 {offsets = [0, 32], sizes = [16, 32], strides = [1, 1]} : vector<16x256xbf16> to vector<16x32xbf16>
    %c16_378 = arith.constant 16 : index
    %c640_379 = arith.constant 640 : index
    %370 = vector.load %arg14[%c16_378, %c640_379] : memref<128x800xbf16, #tpu.memory_space<vmem>>, vector<16x32xbf16>
    tpu.vector_store %arg14[%c16_378, %c640_379], %369 {strides = array<i32>} : memref<128x800xbf16, #tpu.memory_space<vmem>>, vector<16x32xbf16>,
    %371 = vector.extract_strided_slice %366 {offsets = [0, 64], sizes = [16, 32], strides = [1, 1]} : vector<16x256xbf16> to vector<16x32xbf16>
    %c32_380 = arith.constant 32 : index
    %c640_381 = arith.constant 640 : index
    %372 = vector.load %arg14[%c32_380, %c640_381] : memref<128x800xbf16, #tpu.memory_space<vmem>>, vector<16x32xbf16>
    tpu.vector_store %arg14[%c32_380, %c640_381], %371 {strides = array<i32>} : memref<128x800xbf16, #tpu.memory_space<vmem>>, vector<16x32xbf16>,
    %373 = vector.extract_strided_slice %366 {offsets = [0, 96], sizes = [16, 32], strides = [1, 1]} : vector<16x256xbf16> to vector<16x32xbf16>
    %c48_382 = arith.constant 48 : index
    %c640_383 = arith.constant 640 : index
    %374 = vector.load %arg14[%c48_382, %c640_383] : memref<128x800xbf16, #tpu.memory_space<vmem>>, vector<16x32xbf16>
    tpu.vector_store %arg14[%c48_382, %c640_383], %373 {strides = array<i32>} : memref<128x800xbf16, #tpu.memory_space<vmem>>, vector<16x32xbf16>,
    %375 = vector.extract_strided_slice %366 {offsets = [0, 128], sizes = [16, 32], strides = [1, 1]} : vector<16x256xbf16> to vector<16x32xbf16>
    %c64_384 = arith.constant 64 : index
    %c640_385 = arith.constant 640 : index
    %376 = vector.load %arg14[%c64_384, %c640_385] : memref<128x800xbf16, #tpu.memory_space<vmem>>, vector<16x32xbf16>
    tpu.vector_store %arg14[%c64_384, %c640_385], %375 {strides = array<i32>} : memref<128x800xbf16, #tpu.memory_space<vmem>>, vector<16x32xbf16>,
    %377 = vector.extract_strided_slice %366 {offsets = [0, 160], sizes = [16, 32], strides = [1, 1]} : vector<16x256xbf16> to vector<16x32xbf16>
    %c80_386 = arith.constant 80 : index
    %c640_387 = arith.constant 640 : index
    %378 = vector.load %arg14[%c80_386, %c640_387] : memref<128x800xbf16, #tpu.memory_space<vmem>>, vector<16x32xbf16>
    tpu.vector_store %arg14[%c80_386, %c640_387], %377 {strides = array<i32>} : memref<128x800xbf16, #tpu.memory_space<vmem>>, vector<16x32xbf16>,
    %379 = vector.extract_strided_slice %366 {offsets = [0, 192], sizes = [16, 32], strides = [1, 1]} : vector<16x256xbf16> to vector<16x32xbf16>
    %c96_388 = arith.constant 96 : index
    %c640_389 = arith.constant 640 : index
    %380 = vector.load %arg14[%c96_388, %c640_389] : memref<128x800xbf16, #tpu.memory_space<vmem>>, vector<16x32xbf16>
    tpu.vector_store %arg14[%c96_388, %c640_389], %379 {strides = array<i32>} : memref<128x800xbf16, #tpu.memory_space<vmem>>, vector<16x32xbf16>,
    %381 = vector.extract_strided_slice %366 {offsets = [0, 224], sizes = [16, 32], strides = [1, 1]} : vector<16x256xbf16> to vector<16x32xbf16>
    %c112_390 = arith.constant 112 : index
    %c640_391 = arith.constant 640 : index
    %382 = vector.load %arg14[%c112_390, %c640_391] : memref<128x800xbf16, #tpu.memory_space<vmem>>, vector<16x32xbf16>
    tpu.vector_store %arg14[%c112_390, %c640_391], %381 {strides = array<i32>} : memref<128x800xbf16, #tpu.memory_space<vmem>>, vector<16x32xbf16>,
    %c336 = arith.constant 336 : index
    %c0_392 = arith.constant 0 : index
    %383 = vector.load %arg13[%c336, %c0_392] : memref<400x256xbf16, #tpu.memory_space<vmem>>, vector<16x256xbf16>
    %384 = vector.extract_strided_slice %383 {offsets = [0, 0], sizes = [16, 32], strides = [1, 1]} : vector<16x256xbf16> to vector<16x32xbf16>
    %c0_393 = arith.constant 0 : index
    %c672 = arith.constant 672 : index
    %385 = vector.load %arg14[%c0_393, %c672] : memref<128x800xbf16, #tpu.memory_space<vmem>>, vector<16x32xbf16>
    tpu.vector_store %arg14[%c0_393, %c672], %384 {strides = array<i32>} : memref<128x800xbf16, #tpu.memory_space<vmem>>, vector<16x32xbf16>,
    %386 = vector.extract_strided_slice %383 {offsets = [0, 32], sizes = [16, 32], strides = [1, 1]} : vector<16x256xbf16> to vector<16x32xbf16>
    %c16_394 = arith.constant 16 : index
    %c672_395 = arith.constant 672 : index
    %387 = vector.load %arg14[%c16_394, %c672_395] : memref<128x800xbf16, #tpu.memory_space<vmem>>, vector<16x32xbf16>
    tpu.vector_store %arg14[%c16_394, %c672_395], %386 {strides = array<i32>} : memref<128x800xbf16, #tpu.memory_space<vmem>>, vector<16x32xbf16>,
    %388 = vector.extract_strided_slice %383 {offsets = [0, 64], sizes = [16, 32], strides = [1, 1]} : vector<16x256xbf16> to vector<16x32xbf16>
    %c32_396 = arith.constant 32 : index
    %c672_397 = arith.constant 672 : index
    %389 = vector.load %arg14[%c32_396, %c672_397] : memref<128x800xbf16, #tpu.memory_space<vmem>>, vector<16x32xbf16>
    tpu.vector_store %arg14[%c32_396, %c672_397], %388 {strides = array<i32>} : memref<128x800xbf16, #tpu.memory_space<vmem>>, vector<16x32xbf16>,
    %390 = vector.extract_strided_slice %383 {offsets = [0, 96], sizes = [16, 32], strides = [1, 1]} : vector<16x256xbf16> to vector<16x32xbf16>
    %c48_398 = arith.constant 48 : index
    %c672_399 = arith.constant 672 : index
    %391 = vector.load %arg14[%c48_398, %c672_399] : memref<128x800xbf16, #tpu.memory_space<vmem>>, vector<16x32xbf16>
    tpu.vector_store %arg14[%c48_398, %c672_399], %390 {strides = array<i32>} : memref<128x800xbf16, #tpu.memory_space<vmem>>, vector<16x32xbf16>,
    %392 = vector.extract_strided_slice %383 {offsets = [0, 128], sizes = [16, 32], strides = [1, 1]} : vector<16x256xbf16> to vector<16x32xbf16>
    %c64_400 = arith.constant 64 : index
    %c672_401 = arith.constant 672 : index
    %393 = vector.load %arg14[%c64_400, %c672_401] : memref<128x800xbf16, #tpu.memory_space<vmem>>, vector<16x32xbf16>
    tpu.vector_store %arg14[%c64_400, %c672_401], %392 {strides = array<i32>} : memref<128x800xbf16, #tpu.memory_space<vmem>>, vector<16x32xbf16>,
    %394 = vector.extract_strided_slice %383 {offsets = [0, 160], sizes = [16, 32], strides = [1, 1]} : vector<16x256xbf16> to vector<16x32xbf16>
    %c80_402 = arith.constant 80 : index
    %c672_403 = arith.constant 672 : index
    %395 = vector.load %arg14[%c80_402, %c672_403] : memref<128x800xbf16, #tpu.memory_space<vmem>>, vector<16x32xbf16>
    tpu.vector_store %arg14[%c80_402, %c672_403], %394 {strides = array<i32>} : memref<128x800xbf16, #tpu.memory_space<vmem>>, vector<16x32xbf16>,
    %396 = vector.extract_strided_slice %383 {offsets = [0, 192], sizes = [16, 32], strides = [1, 1]} : vector<16x256xbf16> to vector<16x32xbf16>
    %c96_404 = arith.constant 96 : index
    %c672_405 = arith.constant 672 : index
    %397 = vector.load %arg14[%c96_404, %c672_405] : memref<128x800xbf16, #tpu.memory_space<vmem>>, vector<16x32xbf16>
    tpu.vector_store %arg14[%c96_404, %c672_405], %396 {strides = array<i32>} : memref<128x800xbf16, #tpu.memory_space<vmem>>, vector<16x32xbf16>,
    %398 = vector.extract_strided_slice %383 {offsets = [0, 224], sizes = [16, 32], strides = [1, 1]} : vector<16x256xbf16> to vector<16x32xbf16>
    %c112_406 = arith.constant 112 : index
    %c672_407 = arith.constant 672 : index
    %399 = vector.load %arg14[%c112_406, %c672_407] : memref<128x800xbf16, #tpu.memory_space<vmem>>, vector<16x32xbf16>
    tpu.vector_store %arg14[%c112_406, %c672_407], %398 {strides = array<i32>} : memref<128x800xbf16, #tpu.memory_space<vmem>>, vector<16x32xbf16>,
    %c352_408 = arith.constant 352 : index
    %c0_409 = arith.constant 0 : index
    %400 = vector.load %arg13[%c352_408, %c0_409] : memref<400x256xbf16, #tpu.memory_space<vmem>>, vector<16x256xbf16>
    %401 = vector.extract_strided_slice %400 {offsets = [0, 0], sizes = [16, 32], strides = [1, 1]} : vector<16x256xbf16> to vector<16x32xbf16>
    %c0_410 = arith.constant 0 : index
    %c704 = arith.constant 704 : index
    %402 = vector.load %arg14[%c0_410, %c704] : memref<128x800xbf16, #tpu.memory_space<vmem>>, vector<16x32xbf16>
    tpu.vector_store %arg14[%c0_410, %c704], %401 {strides = array<i32>} : memref<128x800xbf16, #tpu.memory_space<vmem>>, vector<16x32xbf16>,
    %403 = vector.extract_strided_slice %400 {offsets = [0, 32], sizes = [16, 32], strides = [1, 1]} : vector<16x256xbf16> to vector<16x32xbf16>
    %c16_411 = arith.constant 16 : index
    %c704_412 = arith.constant 704 : index
    %404 = vector.load %arg14[%c16_411, %c704_412] : memref<128x800xbf16, #tpu.memory_space<vmem>>, vector<16x32xbf16>
    tpu.vector_store %arg14[%c16_411, %c704_412], %403 {strides = array<i32>} : memref<128x800xbf16, #tpu.memory_space<vmem>>, vector<16x32xbf16>,
    %405 = vector.extract_strided_slice %400 {offsets = [0, 64], sizes = [16, 32], strides = [1, 1]} : vector<16x256xbf16> to vector<16x32xbf16>
    %c32_413 = arith.constant 32 : index
    %c704_414 = arith.constant 704 : index
    %406 = vector.load %arg14[%c32_413, %c704_414] : memref<128x800xbf16, #tpu.memory_space<vmem>>, vector<16x32xbf16>
    tpu.vector_store %arg14[%c32_413, %c704_414], %405 {strides = array<i32>} : memref<128x800xbf16, #tpu.memory_space<vmem>>, vector<16x32xbf16>,
    %407 = vector.extract_strided_slice %400 {offsets = [0, 96], sizes = [16, 32], strides = [1, 1]} : vector<16x256xbf16> to vector<16x32xbf16>
    %c48_415 = arith.constant 48 : index
    %c704_416 = arith.constant 704 : index
    %408 = vector.load %arg14[%c48_415, %c704_416] : memref<128x800xbf16, #tpu.memory_space<vmem>>, vector<16x32xbf16>
    tpu.vector_store %arg14[%c48_415, %c704_416], %407 {strides = array<i32>} : memref<128x800xbf16, #tpu.memory_space<vmem>>, vector<16x32xbf16>,
    %409 = vector.extract_strided_slice %400 {offsets = [0, 128], sizes = [16, 32], strides = [1, 1]} : vector<16x256xbf16> to vector<16x32xbf16>
    %c64_417 = arith.constant 64 : index
    %c704_418 = arith.constant 704 : index
    %410 = vector.load %arg14[%c64_417, %c704_418] : memref<128x800xbf16, #tpu.memory_space<vmem>>, vector<16x32xbf16>
    tpu.vector_store %arg14[%c64_417, %c704_418], %409 {strides = array<i32>} : memref<128x800xbf16, #tpu.memory_space<vmem>>, vector<16x32xbf16>,
    %411 = vector.extract_strided_slice %400 {offsets = [0, 160], sizes = [16, 32], strides = [1, 1]} : vector<16x256xbf16> to vector<16x32xbf16>
    %c80_419 = arith.constant 80 : index
    %c704_420 = arith.constant 704 : index
    %412 = vector.load %arg14[%c80_419, %c704_420] : memref<128x800xbf16, #tpu.memory_space<vmem>>, vector<16x32xbf16>
    tpu.vector_store %arg14[%c80_419, %c704_420], %411 {strides = array<i32>} : memref<128x800xbf16, #tpu.memory_space<vmem>>, vector<16x32xbf16>,
    %413 = vector.extract_strided_slice %400 {offsets = [0, 192], sizes = [16, 32], strides = [1, 1]} : vector<16x256xbf16> to vector<16x32xbf16>
    %c96_421 = arith.constant 96 : index
    %c704_422 = arith.constant 704 : index
    %414 = vector.load %arg14[%c96_421, %c704_422] : memref<128x800xbf16, #tpu.memory_space<vmem>>, vector<16x32xbf16>
    tpu.vector_store %arg14[%c96_421, %c704_422], %413 {strides = array<i32>} : memref<128x800xbf16, #tpu.memory_space<vmem>>, vector<16x32xbf16>,
    %415 = vector.extract_strided_slice %400 {offsets = [0, 224], sizes = [16, 32], strides = [1, 1]} : vector<16x256xbf16> to vector<16x32xbf16>
    %c112_423 = arith.constant 112 : index
    %c704_424 = arith.constant 704 : index
    %416 = vector.load %arg14[%c112_423, %c704_424] : memref<128x800xbf16, #tpu.memory_space<vmem>>, vector<16x32xbf16>
    tpu.vector_store %arg14[%c112_423, %c704_424], %415 {strides = array<i32>} : memref<128x800xbf16, #tpu.memory_space<vmem>>, vector<16x32xbf16>,
    %c368 = arith.constant 368 : index
    %c0_425 = arith.constant 0 : index
    %417 = vector.load %arg13[%c368, %c0_425] : memref<400x256xbf16, #tpu.memory_space<vmem>>, vector<16x256xbf16>
    %418 = vector.extract_strided_slice %417 {offsets = [0, 0], sizes = [16, 32], strides = [1, 1]} : vector<16x256xbf16> to vector<16x32xbf16>
    %c0_426 = arith.constant 0 : index
    %c736 = arith.constant 736 : index
    %419 = vector.load %arg14[%c0_426, %c736] : memref<128x800xbf16, #tpu.memory_space<vmem>>, vector<16x32xbf16>
    tpu.vector_store %arg14[%c0_426, %c736], %418 {strides = array<i32>} : memref<128x800xbf16, #tpu.memory_space<vmem>>, vector<16x32xbf16>,
    %420 = vector.extract_strided_slice %417 {offsets = [0, 32], sizes = [16, 32], strides = [1, 1]} : vector<16x256xbf16> to vector<16x32xbf16>
    %c16_427 = arith.constant 16 : index
    %c736_428 = arith.constant 736 : index
    %421 = vector.load %arg14[%c16_427, %c736_428] : memref<128x800xbf16, #tpu.memory_space<vmem>>, vector<16x32xbf16>
    tpu.vector_store %arg14[%c16_427, %c736_428], %420 {strides = array<i32>} : memref<128x800xbf16, #tpu.memory_space<vmem>>, vector<16x32xbf16>,
    %422 = vector.extract_strided_slice %417 {offsets = [0, 64], sizes = [16, 32], strides = [1, 1]} : vector<16x256xbf16> to vector<16x32xbf16>
    %c32_429 = arith.constant 32 : index
    %c736_430 = arith.constant 736 : index
    %423 = vector.load %arg14[%c32_429, %c736_430] : memref<128x800xbf16, #tpu.memory_space<vmem>>, vector<16x32xbf16>
    tpu.vector_store %arg14[%c32_429, %c736_430], %422 {strides = array<i32>} : memref<128x800xbf16, #tpu.memory_space<vmem>>, vector<16x32xbf16>,
    %424 = vector.extract_strided_slice %417 {offsets = [0, 96], sizes = [16, 32], strides = [1, 1]} : vector<16x256xbf16> to vector<16x32xbf16>
    %c48_431 = arith.constant 48 : index
    %c736_432 = arith.constant 736 : index
    %425 = vector.load %arg14[%c48_431, %c736_432] : memref<128x800xbf16, #tpu.memory_space<vmem>>, vector<16x32xbf16>
    tpu.vector_store %arg14[%c48_431, %c736_432], %424 {strides = array<i32>} : memref<128x800xbf16, #tpu.memory_space<vmem>>, vector<16x32xbf16>,
    %426 = vector.extract_strided_slice %417 {offsets = [0, 128], sizes = [16, 32], strides = [1, 1]} : vector<16x256xbf16> to vector<16x32xbf16>
    %c64_433 = arith.constant 64 : index
    %c736_434 = arith.constant 736 : index
    %427 = vector.load %arg14[%c64_433, %c736_434] : memref<128x800xbf16, #tpu.memory_space<vmem>>, vector<16x32xbf16>
    tpu.vector_store %arg14[%c64_433, %c736_434], %426 {strides = array<i32>} : memref<128x800xbf16, #tpu.memory_space<vmem>>, vector<16x32xbf16>,
    %428 = vector.extract_strided_slice %417 {offsets = [0, 160], sizes = [16, 32], strides = [1, 1]} : vector<16x256xbf16> to vector<16x32xbf16>
    %c80_435 = arith.constant 80 : index
    %c736_436 = arith.constant 736 : index
    %429 = vector.load %arg14[%c80_435, %c736_436] : memref<128x800xbf16, #tpu.memory_space<vmem>>, vector<16x32xbf16>
    tpu.vector_store %arg14[%c80_435, %c736_436], %428 {strides = array<i32>} : memref<128x800xbf16, #tpu.memory_space<vmem>>, vector<16x32xbf16>,
    %430 = vector.extract_strided_slice %417 {offsets = [0, 192], sizes = [16, 32], strides = [1, 1]} : vector<16x256xbf16> to vector<16x32xbf16>
    %c96_437 = arith.constant 96 : index
    %c736_438 = arith.constant 736 : index
    %431 = vector.load %arg14[%c96_437, %c736_438] : memref<128x800xbf16, #tpu.memory_space<vmem>>, vector<16x32xbf16>
    tpu.vector_store %arg14[%c96_437, %c736_438], %430 {strides = array<i32>} : memref<128x800xbf16, #tpu.memory_space<vmem>>, vector<16x32xbf16>,
    %432 = vector.extract_strided_slice %417 {offsets = [0, 224], sizes = [16, 32], strides = [1, 1]} : vector<16x256xbf16> to vector<16x32xbf16>
    %c112_439 = arith.constant 112 : index
    %c736_440 = arith.constant 736 : index
    %433 = vector.load %arg14[%c112_439, %c736_440] : memref<128x800xbf16, #tpu.memory_space<vmem>>, vector<16x32xbf16>
    tpu.vector_store %arg14[%c112_439, %c736_440], %432 {strides = array<i32>} : memref<128x800xbf16, #tpu.memory_space<vmem>>, vector<16x32xbf16>,
    %c384_441 = arith.constant 384 : index
    %c0_442 = arith.constant 0 : index
    %434 = vector.load %arg13[%c384_441, %c0_442] : memref<400x256xbf16, #tpu.memory_space<vmem>>, vector<16x256xbf16>
    %435 = vector.extract_strided_slice %434 {offsets = [0, 0], sizes = [16, 32], strides = [1, 1]} : vector<16x256xbf16> to vector<16x32xbf16>
    %c0_443 = arith.constant 0 : index
    %c768 = arith.constant 768 : index
    %436 = vector.load %arg14[%c0_443, %c768] : memref<128x800xbf16, #tpu.memory_space<vmem>>, vector<16x32xbf16>
    tpu.vector_store %arg14[%c0_443, %c768], %435 {strides = array<i32>} : memref<128x800xbf16, #tpu.memory_space<vmem>>, vector<16x32xbf16>,
    %437 = vector.extract_strided_slice %434 {offsets = [0, 32], sizes = [16, 32], strides = [1, 1]} : vector<16x256xbf16> to vector<16x32xbf16>
    %c16_444 = arith.constant 16 : index
    %c768_445 = arith.constant 768 : index
    %438 = vector.load %arg14[%c16_444, %c768_445] : memref<128x800xbf16, #tpu.memory_space<vmem>>, vector<16x32xbf16>
    tpu.vector_store %arg14[%c16_444, %c768_445], %437 {strides = array<i32>} : memref<128x800xbf16, #tpu.memory_space<vmem>>, vector<16x32xbf16>,
    %439 = vector.extract_strided_slice %434 {offsets = [0, 64], sizes = [16, 32], strides = [1, 1]} : vector<16x256xbf16> to vector<16x32xbf16>
    %c32_446 = arith.constant 32 : index
    %c768_447 = arith.constant 768 : index
    %440 = vector.load %arg14[%c32_446, %c768_447] : memref<128x800xbf16, #tpu.memory_space<vmem>>, vector<16x32xbf16>
    tpu.vector_store %arg14[%c32_446, %c768_447], %439 {strides = array<i32>} : memref<128x800xbf16, #tpu.memory_space<vmem>>, vector<16x32xbf16>,
    %441 = vector.extract_strided_slice %434 {offsets = [0, 96], sizes = [16, 32], strides = [1, 1]} : vector<16x256xbf16> to vector<16x32xbf16>
    %c48_448 = arith.constant 48 : index
    %c768_449 = arith.constant 768 : index
    %442 = vector.load %arg14[%c48_448, %c768_449] : memref<128x800xbf16, #tpu.memory_space<vmem>>, vector<16x32xbf16>
    tpu.vector_store %arg14[%c48_448, %c768_449], %441 {strides = array<i32>} : memref<128x800xbf16, #tpu.memory_space<vmem>>, vector<16x32xbf16>,
    %443 = vector.extract_strided_slice %434 {offsets = [0, 128], sizes = [16, 32], strides = [1, 1]} : vector<16x256xbf16> to vector<16x32xbf16>
    %c64_450 = arith.constant 64 : index
    %c768_451 = arith.constant 768 : index
    %444 = vector.load %arg14[%c64_450, %c768_451] : memref<128x800xbf16, #tpu.memory_space<vmem>>, vector<16x32xbf16>
    tpu.vector_store %arg14[%c64_450, %c768_451], %443 {strides = array<i32>} : memref<128x800xbf16, #tpu.memory_space<vmem>>, vector<16x32xbf16>,
    %445 = vector.extract_strided_slice %434 {offsets = [0, 160], sizes = [16, 32], strides = [1, 1]} : vector<16x256xbf16> to vector<16x32xbf16>
    %c80_452 = arith.constant 80 : index
    %c768_453 = arith.constant 768 : index
    %446 = vector.load %arg14[%c80_452, %c768_453] : memref<128x800xbf16, #tpu.memory_space<vmem>>, vector<16x32xbf16>
    tpu.vector_store %arg14[%c80_452, %c768_453], %445 {strides = array<i32>} : memref<128x800xbf16, #tpu.memory_space<vmem>>, vector<16x32xbf16>,
    %447 = vector.extract_strided_slice %434 {offsets = [0, 192], sizes = [16, 32], strides = [1, 1]} : vector<16x256xbf16> to vector<16x32xbf16>
    %c96_454 = arith.constant 96 : index
    %c768_455 = arith.constant 768 : index
    %448 = vector.load %arg14[%c96_454, %c768_455] : memref<128x800xbf16, #tpu.memory_space<vmem>>, vector<16x32xbf16>
    tpu.vector_store %arg14[%c96_454, %c768_455], %447 {strides = array<i32>} : memref<128x800xbf16, #tpu.memory_space<vmem>>, vector<16x32xbf16>,
    %449 = vector.extract_strided_slice %434 {offsets = [0, 224], sizes = [16, 32], strides = [1, 1]} : vector<16x256xbf16> to vector<16x32xbf16>
    %c112_456 = arith.constant 112 : index
    %c768_457 = arith.constant 768 : index
    %450 = vector.load %arg14[%c112_456, %c768_457] : memref<128x800xbf16, #tpu.memory_space<vmem>>, vector<16x32xbf16>
    tpu.vector_store %arg14[%c112_456, %c768_457], %449 {strides = array<i32>} : memref<128x800xbf16, #tpu.memory_space<vmem>>, vector<16x32xbf16>,
    %c0_458 = arith.constant 0 : index
    %c0_459 = arith.constant 0 : index
    %451 = vector.load %arg14[%c0_458, %c0_459] : memref<128x800xbf16, #tpu.memory_space<vmem>>, vector<128x800xbf16>
    %c0_460 = arith.constant 0 : index
    %c0_461 = arith.constant 0 : index
    %452 = vector.load %arg4[%c0_460, %c0_461] : memref<800x64xbf16, #tpu.memory_space<vmem>>, vector<800x64xbf16>
    %cst_462 = arith.constant dense<0.000000e+00> : vector<128x64xf32>
    %453 = tpu.matmul %451, %452, %cst_462 {dimension_numbers = #tpu.dot_dimension_numbers<[1], [0], [0], [1], [0, 0, 1, 1], [], []>} : vector<128x800xbf16>, vector<800x64xbf16>, vector<128x64xf32> -> vector<128x64xf32>
    %454 = arith.truncf %453 : vector<128x64xf32> to vector<128x64xbf16>
    %c0_463 = arith.constant 0 : index
    %c0_464 = arith.constant 0 : index
    %455 = vector.load %arg15[%c0_463, %c0_464] : memref<128x64xbf16, #tpu.memory_space<vmem>>, vector<128x64xbf16>
    tpu.vector_store %arg15[%c0_463, %c0_464], %454 {strides = array<i32>} : memref<128x64xbf16, #tpu.memory_space<vmem>>, vector<128x64xbf16>,
    %c0_465 = arith.constant 0 : index
    %c0_466 = arith.constant 0 : index
    %456 = vector.load %arg15[%c0_465, %c0_466] : memref<128x64xbf16, #tpu.memory_space<vmem>>, vector<16x64xbf16>
    %c0_467 = arith.constant 0 : index
    %c0_468 = arith.constant 0 : index
    %457 = vector.load %arg16[%c0_467, %c0_468] : memref<16x512xbf16, #tpu.memory_space<vmem>>, vector<16x64xbf16>
    tpu.vector_store %arg16[%c0_467, %c0_468], %456 {strides = array<i32>} : memref<16x512xbf16, #tpu.memory_space<vmem>>, vector<16x64xbf16>,
    %c16_469 = arith.constant 16 : index
    %c0_470 = arith.constant 0 : index
    %458 = vector.load %arg15[%c16_469, %c0_470] : memref<128x64xbf16, #tpu.memory_space<vmem>>, vector<16x64xbf16>
    %c0_471 = arith.constant 0 : index
    %c64_472 = arith.constant 64 : index
    %459 = vector.load %arg16[%c0_471, %c64_472] : memref<16x512xbf16, #tpu.memory_space<vmem>>, vector<16x64xbf16>
    tpu.vector_store %arg16[%c0_471, %c64_472], %458 {strides = array<i32>} : memref<16x512xbf16, #tpu.memory_space<vmem>>, vector<16x64xbf16>,
    %c32_473 = arith.constant 32 : index
    %c0_474 = arith.constant 0 : index
    %460 = vector.load %arg15[%c32_473, %c0_474] : memref<128x64xbf16, #tpu.memory_space<vmem>>, vector<16x64xbf16>
    %c0_475 = arith.constant 0 : index
    %c128_476 = arith.constant 128 : index
    %461 = vector.load %arg16[%c0_475, %c128_476] : memref<16x512xbf16, #tpu.memory_space<vmem>>, vector<16x64xbf16>
    tpu.vector_store %arg16[%c0_475, %c128_476], %460 {strides = array<i32>} : memref<16x512xbf16, #tpu.memory_space<vmem>>, vector<16x64xbf16>,
    %c48_477 = arith.constant 48 : index
    %c0_478 = arith.constant 0 : index
    %462 = vector.load %arg15[%c48_477, %c0_478] : memref<128x64xbf16, #tpu.memory_space<vmem>>, vector<16x64xbf16>
    %c0_479 = arith.constant 0 : index
    %c192_480 = arith.constant 192 : index
    %463 = vector.load %arg16[%c0_479, %c192_480] : memref<16x512xbf16, #tpu.memory_space<vmem>>, vector<16x64xbf16>
    tpu.vector_store %arg16[%c0_479, %c192_480], %462 {strides = array<i32>} : memref<16x512xbf16, #tpu.memory_space<vmem>>, vector<16x64xbf16>,
    %c64_481 = arith.constant 64 : index
    %c0_482 = arith.constant 0 : index
    %464 = vector.load %arg15[%c64_481, %c0_482] : memref<128x64xbf16, #tpu.memory_space<vmem>>, vector<16x64xbf16>
    %c0_483 = arith.constant 0 : index
    %c256_484 = arith.constant 256 : index
    %465 = vector.load %arg16[%c0_483, %c256_484] : memref<16x512xbf16, #tpu.memory_space<vmem>>, vector<16x64xbf16>
    tpu.vector_store %arg16[%c0_483, %c256_484], %464 {strides = array<i32>} : memref<16x512xbf16, #tpu.memory_space<vmem>>, vector<16x64xbf16>,
    %c80_485 = arith.constant 80 : index
    %c0_486 = arith.constant 0 : index
    %466 = vector.load %arg15[%c80_485, %c0_486] : memref<128x64xbf16, #tpu.memory_space<vmem>>, vector<16x64xbf16>
    %c0_487 = arith.constant 0 : index
    %c320_488 = arith.constant 320 : index
    %467 = vector.load %arg16[%c0_487, %c320_488] : memref<16x512xbf16, #tpu.memory_space<vmem>>, vector<16x64xbf16>
    tpu.vector_store %arg16[%c0_487, %c320_488], %466 {strides = array<i32>} : memref<16x512xbf16, #tpu.memory_space<vmem>>, vector<16x64xbf16>,
    %c96_489 = arith.constant 96 : index
    %c0_490 = arith.constant 0 : index
    %468 = vector.load %arg15[%c96_489, %c0_490] : memref<128x64xbf16, #tpu.memory_space<vmem>>, vector<16x64xbf16>
    %c0_491 = arith.constant 0 : index
    %c384_492 = arith.constant 384 : index
    %469 = vector.load %arg16[%c0_491, %c384_492] : memref<16x512xbf16, #tpu.memory_space<vmem>>, vector<16x64xbf16>
    tpu.vector_store %arg16[%c0_491, %c384_492], %468 {strides = array<i32>} : memref<16x512xbf16, #tpu.memory_space<vmem>>, vector<16x64xbf16>,
    %c112_493 = arith.constant 112 : index
    %c0_494 = arith.constant 0 : index
    %470 = vector.load %arg15[%c112_493, %c0_494] : memref<128x64xbf16, #tpu.memory_space<vmem>>, vector<16x64xbf16>
    %c0_495 = arith.constant 0 : index
    %c448_496 = arith.constant 448 : index
    %471 = vector.load %arg16[%c0_495, %c448_496] : memref<16x512xbf16, #tpu.memory_space<vmem>>, vector<16x64xbf16>
    tpu.vector_store %arg16[%c0_495, %c448_496], %470 {strides = array<i32>} : memref<16x512xbf16, #tpu.memory_space<vmem>>, vector<16x64xbf16>,
    %c0_497 = arith.constant 0 : index
    %c0_498 = arith.constant 0 : index
    %472 = vector.load %arg5[%c0_497, %c0_498] : memref<100x16xbf16, #tpu.memory_space<vmem>>, vector<100x16xbf16>
    %c0_499 = arith.constant 0 : index
    %c0_500 = arith.constant 0 : index
    %473 = vector.load %arg16[%c0_499, %c0_500] : memref<16x512xbf16, #tpu.memory_space<vmem>>, vector<16x512xbf16>
    %cst_501 = arith.constant dense<0.000000e+00> : vector<100x512xf32>
    %474 = tpu.matmul %472, %473, %cst_501 {dimension_numbers = #tpu.dot_dimension_numbers<[1], [0], [0], [1], [0, 0, 1, 1], [], []>} : vector<100x16xbf16>, vector<16x512xbf16>, vector<100x512xf32> -> vector<100x512xf32>
    %475 = arith.truncf %474 : vector<100x512xf32> to vector<100x512xbf16>
    %c0_502 = arith.constant 0 : index
    %c0_503 = arith.constant 0 : index
    %476 = vector.load %arg17[%c0_502, %c0_503] : memref<100x512xbf16, #tpu.memory_space<vmem>>, vector<100x512xbf16>
    tpu.vector_store %arg17[%c0_502, %c0_503], %475 {strides = array<i32>} : memref<100x512xbf16, #tpu.memory_space<vmem>>, vector<100x512xbf16>,
    %c0_504 = arith.constant 0 : index
    %c0_505 = arith.constant 0 : index
    %477 = vector.load %arg17[%c0_504, %c0_505] : memref<100x512xbf16, #tpu.memory_space<vmem>>, vector<4x512xbf16>
    %478 = vector.extract_strided_slice %477 {offsets = [0, 0], sizes = [4, 64], strides = [1, 1]} : vector<4x512xbf16> to vector<4x64xbf16>
    %c0_506 = arith.constant 0 : index
    %c0_507 = arith.constant 0 : index
    %479 = vector.load %arg18[%c0_506, %c0_507] : memref<32x1600xbf16, #tpu.memory_space<vmem>>, vector<4x64xbf16>
    tpu.vector_store %arg18[%c0_506, %c0_507], %478 {strides = array<i32>} : memref<32x1600xbf16, #tpu.memory_space<vmem>>, vector<4x64xbf16>,
    %480 = vector.extract_strided_slice %477 {offsets = [0, 64], sizes = [4, 64], strides = [1, 1]} : vector<4x512xbf16> to vector<4x64xbf16>
    %c4 = arith.constant 4 : index
    %c0_508 = arith.constant 0 : index
    %481 = vector.load %arg18[%c4, %c0_508] : memref<32x1600xbf16, #tpu.memory_space<vmem>>, vector<4x64xbf16>
    tpu.vector_store %arg18[%c4, %c0_508], %480 {strides = array<i32>} : memref<32x1600xbf16, #tpu.memory_space<vmem>>, vector<4x64xbf16>,
    %482 = vector.extract_strided_slice %477 {offsets = [0, 128], sizes = [4, 64], strides = [1, 1]} : vector<4x512xbf16> to vector<4x64xbf16>
    %c8 = arith.constant 8 : index
    %c0_509 = arith.constant 0 : index
    %483 = vector.load %arg18[%c8, %c0_509] : memref<32x1600xbf16, #tpu.memory_space<vmem>>, vector<4x64xbf16>
    tpu.vector_store %arg18[%c8, %c0_509], %482 {strides = array<i32>} : memref<32x1600xbf16, #tpu.memory_space<vmem>>, vector<4x64xbf16>,
    %484 = vector.extract_strided_slice %477 {offsets = [0, 192], sizes = [4, 64], strides = [1, 1]} : vector<4x512xbf16> to vector<4x64xbf16>
    %c12 = arith.constant 12 : index
    %c0_510 = arith.constant 0 : index
    %485 = vector.load %arg18[%c12, %c0_510] : memref<32x1600xbf16, #tpu.memory_space<vmem>>, vector<4x64xbf16>
    tpu.vector_store %arg18[%c12, %c0_510], %484 {strides = array<i32>} : memref<32x1600xbf16, #tpu.memory_space<vmem>>, vector<4x64xbf16>,
    %486 = vector.extract_strided_slice %477 {offsets = [0, 256], sizes = [4, 64], strides = [1, 1]} : vector<4x512xbf16> to vector<4x64xbf16>
    %c16_511 = arith.constant 16 : index
    %c0_512 = arith.constant 0 : index
    %487 = vector.load %arg18[%c16_511, %c0_512] : memref<32x1600xbf16, #tpu.memory_space<vmem>>, vector<4x64xbf16>
    tpu.vector_store %arg18[%c16_511, %c0_512], %486 {strides = array<i32>} : memref<32x1600xbf16, #tpu.memory_space<vmem>>, vector<4x64xbf16>,
    %488 = vector.extract_strided_slice %477 {offsets = [0, 320], sizes = [4, 64], strides = [1, 1]} : vector<4x512xbf16> to vector<4x64xbf16>
    %c20 = arith.constant 20 : index
    %c0_513 = arith.constant 0 : index
    %489 = vector.load %arg18[%c20, %c0_513] : memref<32x1600xbf16, #tpu.memory_space<vmem>>, vector<4x64xbf16>
    tpu.vector_store %arg18[%c20, %c0_513], %488 {strides = array<i32>} : memref<32x1600xbf16, #tpu.memory_space<vmem>>, vector<4x64xbf16>,
    %490 = vector.extract_strided_slice %477 {offsets = [0, 384], sizes = [4, 64], strides = [1, 1]} : vector<4x512xbf16> to vector<4x64xbf16>
    %c24 = arith.constant 24 : index
    %c0_514 = arith.constant 0 : index
    %491 = vector.load %arg18[%c24, %c0_514] : memref<32x1600xbf16, #tpu.memory_space<vmem>>, vector<4x64xbf16>
    tpu.vector_store %arg18[%c24, %c0_514], %490 {strides = array<i32>} : memref<32x1600xbf16, #tpu.memory_space<vmem>>, vector<4x64xbf16>,
    %492 = vector.extract_strided_slice %477 {offsets = [0, 448], sizes = [4, 64], strides = [1, 1]} : vector<4x512xbf16> to vector<4x64xbf16>
    %c28 = arith.constant 28 : index
    %c0_515 = arith.constant 0 : index
    %493 = vector.load %arg18[%c28, %c0_515] : memref<32x1600xbf16, #tpu.memory_space<vmem>>, vector<4x64xbf16>
    tpu.vector_store %arg18[%c28, %c0_515], %492 {strides = array<i32>} : memref<32x1600xbf16, #tpu.memory_space<vmem>>, vector<4x64xbf16>,
    %c4_516 = arith.constant 4 : index
    %c0_517 = arith.constant 0 : index
    %494 = vector.load %arg17[%c4_516, %c0_517] : memref<100x512xbf16, #tpu.memory_space<vmem>>, vector<4x512xbf16>
    %495 = vector.extract_strided_slice %494 {offsets = [0, 0], sizes = [4, 64], strides = [1, 1]} : vector<4x512xbf16> to vector<4x64xbf16>
    %c0_518 = arith.constant 0 : index
    %c64_519 = arith.constant 64 : index
    %496 = vector.load %arg18[%c0_518, %c64_519] : memref<32x1600xbf16, #tpu.memory_space<vmem>>, vector<4x64xbf16>
    tpu.vector_store %arg18[%c0_518, %c64_519], %495 {strides = array<i32>} : memref<32x1600xbf16, #tpu.memory_space<vmem>>, vector<4x64xbf16>,
    %497 = vector.extract_strided_slice %494 {offsets = [0, 64], sizes = [4, 64], strides = [1, 1]} : vector<4x512xbf16> to vector<4x64xbf16>
    %c4_520 = arith.constant 4 : index
    %c64_521 = arith.constant 64 : index
    %498 = vector.load %arg18[%c4_520, %c64_521] : memref<32x1600xbf16, #tpu.memory_space<vmem>>, vector<4x64xbf16>
    tpu.vector_store %arg18[%c4_520, %c64_521], %497 {strides = array<i32>} : memref<32x1600xbf16, #tpu.memory_space<vmem>>, vector<4x64xbf16>,
    %499 = vector.extract_strided_slice %494 {offsets = [0, 128], sizes = [4, 64], strides = [1, 1]} : vector<4x512xbf16> to vector<4x64xbf16>
    %c8_522 = arith.constant 8 : index
    %c64_523 = arith.constant 64 : index
    %500 = vector.load %arg18[%c8_522, %c64_523] : memref<32x1600xbf16, #tpu.memory_space<vmem>>, vector<4x64xbf16>
    tpu.vector_store %arg18[%c8_522, %c64_523], %499 {strides = array<i32>} : memref<32x1600xbf16, #tpu.memory_space<vmem>>, vector<4x64xbf16>,
    %501 = vector.extract_strided_slice %494 {offsets = [0, 192], sizes = [4, 64], strides = [1, 1]} : vector<4x512xbf16> to vector<4x64xbf16>
    %c12_524 = arith.constant 12 : index
    %c64_525 = arith.constant 64 : index
    %502 = vector.load %arg18[%c12_524, %c64_525] : memref<32x1600xbf16, #tpu.memory_space<vmem>>, vector<4x64xbf16>
    tpu.vector_store %arg18[%c12_524, %c64_525], %501 {strides = array<i32>} : memref<32x1600xbf16, #tpu.memory_space<vmem>>, vector<4x64xbf16>,
    %503 = vector.extract_strided_slice %494 {offsets = [0, 256], sizes = [4, 64], strides = [1, 1]} : vector<4x512xbf16> to vector<4x64xbf16>
    %c16_526 = arith.constant 16 : index
    %c64_527 = arith.constant 64 : index
    %504 = vector.load %arg18[%c16_526, %c64_527] : memref<32x1600xbf16, #tpu.memory_space<vmem>>, vector<4x64xbf16>
    tpu.vector_store %arg18[%c16_526, %c64_527], %503 {strides = array<i32>} : memref<32x1600xbf16, #tpu.memory_space<vmem>>, vector<4x64xbf16>,
    %505 = vector.extract_strided_slice %494 {offsets = [0, 320], sizes = [4, 64], strides = [1, 1]} : vector<4x512xbf16> to vector<4x64xbf16>
    %c20_528 = arith.constant 20 : index
    %c64_529 = arith.constant 64 : index
    %506 = vector.load %arg18[%c20_528, %c64_529] : memref<32x1600xbf16, #tpu.memory_space<vmem>>, vector<4x64xbf16>
    tpu.vector_store %arg18[%c20_528, %c64_529], %505 {strides = array<i32>} : memref<32x1600xbf16, #tpu.memory_space<vmem>>, vector<4x64xbf16>,
    %507 = vector.extract_strided_slice %494 {offsets = [0, 384], sizes = [4, 64], strides = [1, 1]} : vector<4x512xbf16> to vector<4x64xbf16>
    %c24_530 = arith.constant 24 : index
    %c64_531 = arith.constant 64 : index
    %508 = vector.load %arg18[%c24_530, %c64_531] : memref<32x1600xbf16, #tpu.memory_space<vmem>>, vector<4x64xbf16>
    tpu.vector_store %arg18[%c24_530, %c64_531], %507 {strides = array<i32>} : memref<32x1600xbf16, #tpu.memory_space<vmem>>, vector<4x64xbf16>,
    %509 = vector.extract_strided_slice %494 {offsets = [0, 448], sizes = [4, 64], strides = [1, 1]} : vector<4x512xbf16> to vector<4x64xbf16>
    %c28_532 = arith.constant 28 : index
    %c64_533 = arith.constant 64 : index
    %510 = vector.load %arg18[%c28_532, %c64_533] : memref<32x1600xbf16, #tpu.memory_space<vmem>>, vector<4x64xbf16>
    tpu.vector_store %arg18[%c28_532, %c64_533], %509 {strides = array<i32>} : memref<32x1600xbf16, #tpu.memory_space<vmem>>, vector<4x64xbf16>,
    %c8_534 = arith.constant 8 : index
    %c0_535 = arith.constant 0 : index
    %511 = vector.load %arg17[%c8_534, %c0_535] : memref<100x512xbf16, #tpu.memory_space<vmem>>, vector<4x512xbf16>
    %512 = vector.extract_strided_slice %511 {offsets = [0, 0], sizes = [4, 64], strides = [1, 1]} : vector<4x512xbf16> to vector<4x64xbf16>
    %c0_536 = arith.constant 0 : index
    %c128_537 = arith.constant 128 : index
    %513 = vector.load %arg18[%c0_536, %c128_537] : memref<32x1600xbf16, #tpu.memory_space<vmem>>, vector<4x64xbf16>
    tpu.vector_store %arg18[%c0_536, %c128_537], %512 {strides = array<i32>} : memref<32x1600xbf16, #tpu.memory_space<vmem>>, vector<4x64xbf16>,
    %514 = vector.extract_strided_slice %511 {offsets = [0, 64], sizes = [4, 64], strides = [1, 1]} : vector<4x512xbf16> to vector<4x64xbf16>
    %c4_538 = arith.constant 4 : index
    %c128_539 = arith.constant 128 : index
    %515 = vector.load %arg18[%c4_538, %c128_539] : memref<32x1600xbf16, #tpu.memory_space<vmem>>, vector<4x64xbf16>
    tpu.vector_store %arg18[%c4_538, %c128_539], %514 {strides = array<i32>} : memref<32x1600xbf16, #tpu.memory_space<vmem>>, vector<4x64xbf16>,
    %516 = vector.extract_strided_slice %511 {offsets = [0, 128], sizes = [4, 64], strides = [1, 1]} : vector<4x512xbf16> to vector<4x64xbf16>
    %c8_540 = arith.constant 8 : index
    %c128_541 = arith.constant 128 : index
    %517 = vector.load %arg18[%c8_540, %c128_541] : memref<32x1600xbf16, #tpu.memory_space<vmem>>, vector<4x64xbf16>
    tpu.vector_store %arg18[%c8_540, %c128_541], %516 {strides = array<i32>} : memref<32x1600xbf16, #tpu.memory_space<vmem>>, vector<4x64xbf16>,
    %518 = vector.extract_strided_slice %511 {offsets = [0, 192], sizes = [4, 64], strides = [1, 1]} : vector<4x512xbf16> to vector<4x64xbf16>
    %c12_542 = arith.constant 12 : index
    %c128_543 = arith.constant 128 : index
    %519 = vector.load %arg18[%c12_542, %c128_543] : memref<32x1600xbf16, #tpu.memory_space<vmem>>, vector<4x64xbf16>
    tpu.vector_store %arg18[%c12_542, %c128_543], %518 {strides = array<i32>} : memref<32x1600xbf16, #tpu.memory_space<vmem>>, vector<4x64xbf16>,
    %520 = vector.extract_strided_slice %511 {offsets = [0, 256], sizes = [4, 64], strides = [1, 1]} : vector<4x512xbf16> to vector<4x64xbf16>
    %c16_544 = arith.constant 16 : index
    %c128_545 = arith.constant 128 : index
    %521 = vector.load %arg18[%c16_544, %c128_545] : memref<32x1600xbf16, #tpu.memory_space<vmem>>, vector<4x64xbf16>
    tpu.vector_store %arg18[%c16_544, %c128_545], %520 {strides = array<i32>} : memref<32x1600xbf16, #tpu.memory_space<vmem>>, vector<4x64xbf16>,
    %522 = vector.extract_strided_slice %511 {offsets = [0, 320], sizes = [4, 64], strides = [1, 1]} : vector<4x512xbf16> to vector<4x64xbf16>
    %c20_546 = arith.constant 20 : index
    %c128_547 = arith.constant 128 : index
    %523 = vector.load %arg18[%c20_546, %c128_547] : memref<32x1600xbf16, #tpu.memory_space<vmem>>, vector<4x64xbf16>
    tpu.vector_store %arg18[%c20_546, %c128_547], %522 {strides = array<i32>} : memref<32x1600xbf16, #tpu.memory_space<vmem>>, vector<4x64xbf16>,
    %524 = vector.extract_strided_slice %511 {offsets = [0, 384], sizes = [4, 64], strides = [1, 1]} : vector<4x512xbf16> to vector<4x64xbf16>
    %c24_548 = arith.constant 24 : index
    %c128_549 = arith.constant 128 : index
    %525 = vector.load %arg18[%c24_548, %c128_549] : memref<32x1600xbf16, #tpu.memory_space<vmem>>, vector<4x64xbf16>
    tpu.vector_store %arg18[%c24_548, %c128_549], %524 {strides = array<i32>} : memref<32x1600xbf16, #tpu.memory_space<vmem>>, vector<4x64xbf16>,
    %526 = vector.extract_strided_slice %511 {offsets = [0, 448], sizes = [4, 64], strides = [1, 1]} : vector<4x512xbf16> to vector<4x64xbf16>
    %c28_550 = arith.constant 28 : index
    %c128_551 = arith.constant 128 : index
    %527 = vector.load %arg18[%c28_550, %c128_551] : memref<32x1600xbf16, #tpu.memory_space<vmem>>, vector<4x64xbf16>
    tpu.vector_store %arg18[%c28_550, %c128_551], %526 {strides = array<i32>} : memref<32x1600xbf16, #tpu.memory_space<vmem>>, vector<4x64xbf16>,
    %c12_552 = arith.constant 12 : index
    %c0_553 = arith.constant 0 : index
    %528 = vector.load %arg17[%c12_552, %c0_553] : memref<100x512xbf16, #tpu.memory_space<vmem>>, vector<4x512xbf16>
    %529 = vector.extract_strided_slice %528 {offsets = [0, 0], sizes = [4, 64], strides = [1, 1]} : vector<4x512xbf16> to vector<4x64xbf16>
    %c0_554 = arith.constant 0 : index
    %c192_555 = arith.constant 192 : index
    %530 = vector.load %arg18[%c0_554, %c192_555] : memref<32x1600xbf16, #tpu.memory_space<vmem>>, vector<4x64xbf16>
    tpu.vector_store %arg18[%c0_554, %c192_555], %529 {strides = array<i32>} : memref<32x1600xbf16, #tpu.memory_space<vmem>>, vector<4x64xbf16>,
    %531 = vector.extract_strided_slice %528 {offsets = [0, 64], sizes = [4, 64], strides = [1, 1]} : vector<4x512xbf16> to vector<4x64xbf16>
    %c4_556 = arith.constant 4 : index
    %c192_557 = arith.constant 192 : index
    %532 = vector.load %arg18[%c4_556, %c192_557] : memref<32x1600xbf16, #tpu.memory_space<vmem>>, vector<4x64xbf16>
    tpu.vector_store %arg18[%c4_556, %c192_557], %531 {strides = array<i32>} : memref<32x1600xbf16, #tpu.memory_space<vmem>>, vector<4x64xbf16>,
    %533 = vector.extract_strided_slice %528 {offsets = [0, 128], sizes = [4, 64], strides = [1, 1]} : vector<4x512xbf16> to vector<4x64xbf16>
    %c8_558 = arith.constant 8 : index
    %c192_559 = arith.constant 192 : index
    %534 = vector.load %arg18[%c8_558, %c192_559] : memref<32x1600xbf16, #tpu.memory_space<vmem>>, vector<4x64xbf16>
    tpu.vector_store %arg18[%c8_558, %c192_559], %533 {strides = array<i32>} : memref<32x1600xbf16, #tpu.memory_space<vmem>>, vector<4x64xbf16>,
    %535 = vector.extract_strided_slice %528 {offsets = [0, 192], sizes = [4, 64], strides = [1, 1]} : vector<4x512xbf16> to vector<4x64xbf16>
    %c12_560 = arith.constant 12 : index
    %c192_561 = arith.constant 192 : index
    %536 = vector.load %arg18[%c12_560, %c192_561] : memref<32x1600xbf16, #tpu.memory_space<vmem>>, vector<4x64xbf16>
    tpu.vector_store %arg18[%c12_560, %c192_561], %535 {strides = array<i32>} : memref<32x1600xbf16, #tpu.memory_space<vmem>>, vector<4x64xbf16>,
    %537 = vector.extract_strided_slice %528 {offsets = [0, 256], sizes = [4, 64], strides = [1, 1]} : vector<4x512xbf16> to vector<4x64xbf16>
    %c16_562 = arith.constant 16 : index
    %c192_563 = arith.constant 192 : index
    %538 = vector.load %arg18[%c16_562, %c192_563] : memref<32x1600xbf16, #tpu.memory_space<vmem>>, vector<4x64xbf16>
    tpu.vector_store %arg18[%c16_562, %c192_563], %537 {strides = array<i32>} : memref<32x1600xbf16, #tpu.memory_space<vmem>>, vector<4x64xbf16>,
    %539 = vector.extract_strided_slice %528 {offsets = [0, 320], sizes = [4, 64], strides = [1, 1]} : vector<4x512xbf16> to vector<4x64xbf16>
    %c20_564 = arith.constant 20 : index
    %c192_565 = arith.constant 192 : index
    %540 = vector.load %arg18[%c20_564, %c192_565] : memref<32x1600xbf16, #tpu.memory_space<vmem>>, vector<4x64xbf16>
    tpu.vector_store %arg18[%c20_564, %c192_565], %539 {strides = array<i32>} : memref<32x1600xbf16, #tpu.memory_space<vmem>>, vector<4x64xbf16>,
    %541 = vector.extract_strided_slice %528 {offsets = [0, 384], sizes = [4, 64], strides = [1, 1]} : vector<4x512xbf16> to vector<4x64xbf16>
    %c24_566 = arith.constant 24 : index
    %c192_567 = arith.constant 192 : index
    %542 = vector.load %arg18[%c24_566, %c192_567] : memref<32x1600xbf16, #tpu.memory_space<vmem>>, vector<4x64xbf16>
    tpu.vector_store %arg18[%c24_566, %c192_567], %541 {strides = array<i32>} : memref<32x1600xbf16, #tpu.memory_space<vmem>>, vector<4x64xbf16>,
    %543 = vector.extract_strided_slice %528 {offsets = [0, 448], sizes = [4, 64], strides = [1, 1]} : vector<4x512xbf16> to vector<4x64xbf16>
    %c28_568 = arith.constant 28 : index
    %c192_569 = arith.constant 192 : index
    %544 = vector.load %arg18[%c28_568, %c192_569] : memref<32x1600xbf16, #tpu.memory_space<vmem>>, vector<4x64xbf16>
    tpu.vector_store %arg18[%c28_568, %c192_569], %543 {strides = array<i32>} : memref<32x1600xbf16, #tpu.memory_space<vmem>>, vector<4x64xbf16>,
    %c16_570 = arith.constant 16 : index
    %c0_571 = arith.constant 0 : index
    %545 = vector.load %arg17[%c16_570, %c0_571] : memref<100x512xbf16, #tpu.memory_space<vmem>>, vector<4x512xbf16>
    %546 = vector.extract_strided_slice %545 {offsets = [0, 0], sizes = [4, 64], strides = [1, 1]} : vector<4x512xbf16> to vector<4x64xbf16>
    %c0_572 = arith.constant 0 : index
    %c256_573 = arith.constant 256 : index
    %547 = vector.load %arg18[%c0_572, %c256_573] : memref<32x1600xbf16, #tpu.memory_space<vmem>>, vector<4x64xbf16>
    tpu.vector_store %arg18[%c0_572, %c256_573], %546 {strides = array<i32>} : memref<32x1600xbf16, #tpu.memory_space<vmem>>, vector<4x64xbf16>,
    %548 = vector.extract_strided_slice %545 {offsets = [0, 64], sizes = [4, 64], strides = [1, 1]} : vector<4x512xbf16> to vector<4x64xbf16>
    %c4_574 = arith.constant 4 : index
    %c256_575 = arith.constant 256 : index
    %549 = vector.load %arg18[%c4_574, %c256_575] : memref<32x1600xbf16, #tpu.memory_space<vmem>>, vector<4x64xbf16>
    tpu.vector_store %arg18[%c4_574, %c256_575], %548 {strides = array<i32>} : memref<32x1600xbf16, #tpu.memory_space<vmem>>, vector<4x64xbf16>,
    %550 = vector.extract_strided_slice %545 {offsets = [0, 128], sizes = [4, 64], strides = [1, 1]} : vector<4x512xbf16> to vector<4x64xbf16>
    %c8_576 = arith.constant 8 : index
    %c256_577 = arith.constant 256 : index
    %551 = vector.load %arg18[%c8_576, %c256_577] : memref<32x1600xbf16, #tpu.memory_space<vmem>>, vector<4x64xbf16>
    tpu.vector_store %arg18[%c8_576, %c256_577], %550 {strides = array<i32>} : memref<32x1600xbf16, #tpu.memory_space<vmem>>, vector<4x64xbf16>,
    %552 = vector.extract_strided_slice %545 {offsets = [0, 192], sizes = [4, 64], strides = [1, 1]} : vector<4x512xbf16> to vector<4x64xbf16>
    %c12_578 = arith.constant 12 : index
    %c256_579 = arith.constant 256 : index
    %553 = vector.load %arg18[%c12_578, %c256_579] : memref<32x1600xbf16, #tpu.memory_space<vmem>>, vector<4x64xbf16>
    tpu.vector_store %arg18[%c12_578, %c256_579], %552 {strides = array<i32>} : memref<32x1600xbf16, #tpu.memory_space<vmem>>, vector<4x64xbf16>,
    %554 = vector.extract_strided_slice %545 {offsets = [0, 256], sizes = [4, 64], strides = [1, 1]} : vector<4x512xbf16> to vector<4x64xbf16>
    %c16_580 = arith.constant 16 : index
    %c256_581 = arith.constant 256 : index
    %555 = vector.load %arg18[%c16_580, %c256_581] : memref<32x1600xbf16, #tpu.memory_space<vmem>>, vector<4x64xbf16>
    tpu.vector_store %arg18[%c16_580, %c256_581], %554 {strides = array<i32>} : memref<32x1600xbf16, #tpu.memory_space<vmem>>, vector<4x64xbf16>,
    %556 = vector.extract_strided_slice %545 {offsets = [0, 320], sizes = [4, 64], strides = [1, 1]} : vector<4x512xbf16> to vector<4x64xbf16>
    %c20_582 = arith.constant 20 : index
    %c256_583 = arith.constant 256 : index
    %557 = vector.load %arg18[%c20_582, %c256_583] : memref<32x1600xbf16, #tpu.memory_space<vmem>>, vector<4x64xbf16>
    tpu.vector_store %arg18[%c20_582, %c256_583], %556 {strides = array<i32>} : memref<32x1600xbf16, #tpu.memory_space<vmem>>, vector<4x64xbf16>,
    %558 = vector.extract_strided_slice %545 {offsets = [0, 384], sizes = [4, 64], strides = [1, 1]} : vector<4x512xbf16> to vector<4x64xbf16>
    %c24_584 = arith.constant 24 : index
    %c256_585 = arith.constant 256 : index
    %559 = vector.load %arg18[%c24_584, %c256_585] : memref<32x1600xbf16, #tpu.memory_space<vmem>>, vector<4x64xbf16>
    tpu.vector_store %arg18[%c24_584, %c256_585], %558 {strides = array<i32>} : memref<32x1600xbf16, #tpu.memory_space<vmem>>, vector<4x64xbf16>,
    %560 = vector.extract_strided_slice %545 {offsets = [0, 448], sizes = [4, 64], strides = [1, 1]} : vector<4x512xbf16> to vector<4x64xbf16>
    %c28_586 = arith.constant 28 : index
    %c256_587 = arith.constant 256 : index
    %561 = vector.load %arg18[%c28_586, %c256_587] : memref<32x1600xbf16, #tpu.memory_space<vmem>>, vector<4x64xbf16>
    tpu.vector_store %arg18[%c28_586, %c256_587], %560 {strides = array<i32>} : memref<32x1600xbf16, #tpu.memory_space<vmem>>, vector<4x64xbf16>,
    %c20_588 = arith.constant 20 : index
    %c0_589 = arith.constant 0 : index
    %562 = vector.load %arg17[%c20_588, %c0_589] : memref<100x512xbf16, #tpu.memory_space<vmem>>, vector<4x512xbf16>
    %563 = vector.extract_strided_slice %562 {offsets = [0, 0], sizes = [4, 64], strides = [1, 1]} : vector<4x512xbf16> to vector<4x64xbf16>
    %c0_590 = arith.constant 0 : index
    %c320_591 = arith.constant 320 : index
    %564 = vector.load %arg18[%c0_590, %c320_591] : memref<32x1600xbf16, #tpu.memory_space<vmem>>, vector<4x64xbf16>
    tpu.vector_store %arg18[%c0_590, %c320_591], %563 {strides = array<i32>} : memref<32x1600xbf16, #tpu.memory_space<vmem>>, vector<4x64xbf16>,
    %565 = vector.extract_strided_slice %562 {offsets = [0, 64], sizes = [4, 64], strides = [1, 1]} : vector<4x512xbf16> to vector<4x64xbf16>
    %c4_592 = arith.constant 4 : index
    %c320_593 = arith.constant 320 : index
    %566 = vector.load %arg18[%c4_592, %c320_593] : memref<32x1600xbf16, #tpu.memory_space<vmem>>, vector<4x64xbf16>
    tpu.vector_store %arg18[%c4_592, %c320_593], %565 {strides = array<i32>} : memref<32x1600xbf16, #tpu.memory_space<vmem>>, vector<4x64xbf16>,
    %567 = vector.extract_strided_slice %562 {offsets = [0, 128], sizes = [4, 64], strides = [1, 1]} : vector<4x512xbf16> to vector<4x64xbf16>
    %c8_594 = arith.constant 8 : index
    %c320_595 = arith.constant 320 : index
    %568 = vector.load %arg18[%c8_594, %c320_595] : memref<32x1600xbf16, #tpu.memory_space<vmem>>, vector<4x64xbf16>
    tpu.vector_store %arg18[%c8_594, %c320_595], %567 {strides = array<i32>} : memref<32x1600xbf16, #tpu.memory_space<vmem>>, vector<4x64xbf16>,
    %569 = vector.extract_strided_slice %562 {offsets = [0, 192], sizes = [4, 64], strides = [1, 1]} : vector<4x512xbf16> to vector<4x64xbf16>
    %c12_596 = arith.constant 12 : index
    %c320_597 = arith.constant 320 : index
    %570 = vector.load %arg18[%c12_596, %c320_597] : memref<32x1600xbf16, #tpu.memory_space<vmem>>, vector<4x64xbf16>
    tpu.vector_store %arg18[%c12_596, %c320_597], %569 {strides = array<i32>} : memref<32x1600xbf16, #tpu.memory_space<vmem>>, vector<4x64xbf16>,
    %571 = vector.extract_strided_slice %562 {offsets = [0, 256], sizes = [4, 64], strides = [1, 1]} : vector<4x512xbf16> to vector<4x64xbf16>
    %c16_598 = arith.constant 16 : index
    %c320_599 = arith.constant 320 : index
    %572 = vector.load %arg18[%c16_598, %c320_599] : memref<32x1600xbf16, #tpu.memory_space<vmem>>, vector<4x64xbf16>
    tpu.vector_store %arg18[%c16_598, %c320_599], %571 {strides = array<i32>} : memref<32x1600xbf16, #tpu.memory_space<vmem>>, vector<4x64xbf16>,
    %573 = vector.extract_strided_slice %562 {offsets = [0, 320], sizes = [4, 64], strides = [1, 1]} : vector<4x512xbf16> to vector<4x64xbf16>
    %c20_600 = arith.constant 20 : index
    %c320_601 = arith.constant 320 : index
    %574 = vector.load %arg18[%c20_600, %c320_601] : memref<32x1600xbf16, #tpu.memory_space<vmem>>, vector<4x64xbf16>
    tpu.vector_store %arg18[%c20_600, %c320_601], %573 {strides = array<i32>} : memref<32x1600xbf16, #tpu.memory_space<vmem>>, vector<4x64xbf16>,
    %575 = vector.extract_strided_slice %562 {offsets = [0, 384], sizes = [4, 64], strides = [1, 1]} : vector<4x512xbf16> to vector<4x64xbf16>
    %c24_602 = arith.constant 24 : index
    %c320_603 = arith.constant 320 : index
    %576 = vector.load %arg18[%c24_602, %c320_603] : memref<32x1600xbf16, #tpu.memory_space<vmem>>, vector<4x64xbf16>
    tpu.vector_store %arg18[%c24_602, %c320_603], %575 {strides = array<i32>} : memref<32x1600xbf16, #tpu.memory_space<vmem>>, vector<4x64xbf16>,
    %577 = vector.extract_strided_slice %562 {offsets = [0, 448], sizes = [4, 64], strides = [1, 1]} : vector<4x512xbf16> to vector<4x64xbf16>
    %c28_604 = arith.constant 28 : index
    %c320_605 = arith.constant 320 : index
    %578 = vector.load %arg18[%c28_604, %c320_605] : memref<32x1600xbf16, #tpu.memory_space<vmem>>, vector<4x64xbf16>
    tpu.vector_store %arg18[%c28_604, %c320_605], %577 {strides = array<i32>} : memref<32x1600xbf16, #tpu.memory_space<vmem>>, vector<4x64xbf16>,
    %c24_606 = arith.constant 24 : index
    %c0_607 = arith.constant 0 : index
    %579 = vector.load %arg17[%c24_606, %c0_607] : memref<100x512xbf16, #tpu.memory_space<vmem>>, vector<4x512xbf16>
    %580 = vector.extract_strided_slice %579 {offsets = [0, 0], sizes = [4, 64], strides = [1, 1]} : vector<4x512xbf16> to vector<4x64xbf16>
    %c0_608 = arith.constant 0 : index
    %c384_609 = arith.constant 384 : index
    %581 = vector.load %arg18[%c0_608, %c384_609] : memref<32x1600xbf16, #tpu.memory_space<vmem>>, vector<4x64xbf16>
    tpu.vector_store %arg18[%c0_608, %c384_609], %580 {strides = array<i32>} : memref<32x1600xbf16, #tpu.memory_space<vmem>>, vector<4x64xbf16>,
    %582 = vector.extract_strided_slice %579 {offsets = [0, 64], sizes = [4, 64], strides = [1, 1]} : vector<4x512xbf16> to vector<4x64xbf16>
    %c4_610 = arith.constant 4 : index
    %c384_611 = arith.constant 384 : index
    %583 = vector.load %arg18[%c4_610, %c384_611] : memref<32x1600xbf16, #tpu.memory_space<vmem>>, vector<4x64xbf16>
    tpu.vector_store %arg18[%c4_610, %c384_611], %582 {strides = array<i32>} : memref<32x1600xbf16, #tpu.memory_space<vmem>>, vector<4x64xbf16>,
    %584 = vector.extract_strided_slice %579 {offsets = [0, 128], sizes = [4, 64], strides = [1, 1]} : vector<4x512xbf16> to vector<4x64xbf16>
    %c8_612 = arith.constant 8 : index
    %c384_613 = arith.constant 384 : index
    %585 = vector.load %arg18[%c8_612, %c384_613] : memref<32x1600xbf16, #tpu.memory_space<vmem>>, vector<4x64xbf16>
    tpu.vector_store %arg18[%c8_612, %c384_613], %584 {strides = array<i32>} : memref<32x1600xbf16, #tpu.memory_space<vmem>>, vector<4x64xbf16>,
    %586 = vector.extract_strided_slice %579 {offsets = [0, 192], sizes = [4, 64], strides = [1, 1]} : vector<4x512xbf16> to vector<4x64xbf16>
    %c12_614 = arith.constant 12 : index
    %c384_615 = arith.constant 384 : index
    %587 = vector.load %arg18[%c12_614, %c384_615] : memref<32x1600xbf16, #tpu.memory_space<vmem>>, vector<4x64xbf16>
    tpu.vector_store %arg18[%c12_614, %c384_615], %586 {strides = array<i32>} : memref<32x1600xbf16, #tpu.memory_space<vmem>>, vector<4x64xbf16>,
    %588 = vector.extract_strided_slice %579 {offsets = [0, 256], sizes = [4, 64], strides = [1, 1]} : vector<4x512xbf16> to vector<4x64xbf16>
    %c16_616 = arith.constant 16 : index
    %c384_617 = arith.constant 384 : index
    %589 = vector.load %arg18[%c16_616, %c384_617] : memref<32x1600xbf16, #tpu.memory_space<vmem>>, vector<4x64xbf16>
    tpu.vector_store %arg18[%c16_616, %c384_617], %588 {strides = array<i32>} : memref<32x1600xbf16, #tpu.memory_space<vmem>>, vector<4x64xbf16>,
    %590 = vector.extract_strided_slice %579 {offsets = [0, 320], sizes = [4, 64], strides = [1, 1]} : vector<4x512xbf16> to vector<4x64xbf16>
    %c20_618 = arith.constant 20 : index
    %c384_619 = arith.constant 384 : index
    %591 = vector.load %arg18[%c20_618, %c384_619] : memref<32x1600xbf16, #tpu.memory_space<vmem>>, vector<4x64xbf16>
    tpu.vector_store %arg18[%c20_618, %c384_619], %590 {strides = array<i32>} : memref<32x1600xbf16, #tpu.memory_space<vmem>>, vector<4x64xbf16>,
    %592 = vector.extract_strided_slice %579 {offsets = [0, 384], sizes = [4, 64], strides = [1, 1]} : vector<4x512xbf16> to vector<4x64xbf16>
    %c24_620 = arith.constant 24 : index
    %c384_621 = arith.constant 384 : index
    %593 = vector.load %arg18[%c24_620, %c384_621] : memref<32x1600xbf16, #tpu.memory_space<vmem>>, vector<4x64xbf16>
    tpu.vector_store %arg18[%c24_620, %c384_621], %592 {strides = array<i32>} : memref<32x1600xbf16, #tpu.memory_space<vmem>>, vector<4x64xbf16>,
    %594 = vector.extract_strided_slice %579 {offsets = [0, 448], sizes = [4, 64], strides = [1, 1]} : vector<4x512xbf16> to vector<4x64xbf16>
    %c28_622 = arith.constant 28 : index
    %c384_623 = arith.constant 384 : index
    %595 = vector.load %arg18[%c28_622, %c384_623] : memref<32x1600xbf16, #tpu.memory_space<vmem>>, vector<4x64xbf16>
    tpu.vector_store %arg18[%c28_622, %c384_623], %594 {strides = array<i32>} : memref<32x1600xbf16, #tpu.memory_space<vmem>>, vector<4x64xbf16>,
    %c28_624 = arith.constant 28 : index
    %c0_625 = arith.constant 0 : index
    %596 = vector.load %arg17[%c28_624, %c0_625] : memref<100x512xbf16, #tpu.memory_space<vmem>>, vector<4x512xbf16>
    %597 = vector.extract_strided_slice %596 {offsets = [0, 0], sizes = [4, 64], strides = [1, 1]} : vector<4x512xbf16> to vector<4x64xbf16>
    %c0_626 = arith.constant 0 : index
    %c448_627 = arith.constant 448 : index
    %598 = vector.load %arg18[%c0_626, %c448_627] : memref<32x1600xbf16, #tpu.memory_space<vmem>>, vector<4x64xbf16>
    tpu.vector_store %arg18[%c0_626, %c448_627], %597 {strides = array<i32>} : memref<32x1600xbf16, #tpu.memory_space<vmem>>, vector<4x64xbf16>,
    %599 = vector.extract_strided_slice %596 {offsets = [0, 64], sizes = [4, 64], strides = [1, 1]} : vector<4x512xbf16> to vector<4x64xbf16>
    %c4_628 = arith.constant 4 : index
    %c448_629 = arith.constant 448 : index
    %600 = vector.load %arg18[%c4_628, %c448_629] : memref<32x1600xbf16, #tpu.memory_space<vmem>>, vector<4x64xbf16>
    tpu.vector_store %arg18[%c4_628, %c448_629], %599 {strides = array<i32>} : memref<32x1600xbf16, #tpu.memory_space<vmem>>, vector<4x64xbf16>,
    %601 = vector.extract_strided_slice %596 {offsets = [0, 128], sizes = [4, 64], strides = [1, 1]} : vector<4x512xbf16> to vector<4x64xbf16>
    %c8_630 = arith.constant 8 : index
    %c448_631 = arith.constant 448 : index
    %602 = vector.load %arg18[%c8_630, %c448_631] : memref<32x1600xbf16, #tpu.memory_space<vmem>>, vector<4x64xbf16>
    tpu.vector_store %arg18[%c8_630, %c448_631], %601 {strides = array<i32>} : memref<32x1600xbf16, #tpu.memory_space<vmem>>, vector<4x64xbf16>,
    %603 = vector.extract_strided_slice %596 {offsets = [0, 192], sizes = [4, 64], strides = [1, 1]} : vector<4x512xbf16> to vector<4x64xbf16>
    %c12_632 = arith.constant 12 : index
    %c448_633 = arith.constant 448 : index
    %604 = vector.load %arg18[%c12_632, %c448_633] : memref<32x1600xbf16, #tpu.memory_space<vmem>>, vector<4x64xbf16>
    tpu.vector_store %arg18[%c12_632, %c448_633], %603 {strides = array<i32>} : memref<32x1600xbf16, #tpu.memory_space<vmem>>, vector<4x64xbf16>,
    %605 = vector.extract_strided_slice %596 {offsets = [0, 256], sizes = [4, 64], strides = [1, 1]} : vector<4x512xbf16> to vector<4x64xbf16>
    %c16_634 = arith.constant 16 : index
    %c448_635 = arith.constant 448 : index
    %606 = vector.load %arg18[%c16_634, %c448_635] : memref<32x1600xbf16, #tpu.memory_space<vmem>>, vector<4x64xbf16>
    tpu.vector_store %arg18[%c16_634, %c448_635], %605 {strides = array<i32>} : memref<32x1600xbf16, #tpu.memory_space<vmem>>, vector<4x64xbf16>,
    %607 = vector.extract_strided_slice %596 {offsets = [0, 320], sizes = [4, 64], strides = [1, 1]} : vector<4x512xbf16> to vector<4x64xbf16>
    %c20_636 = arith.constant 20 : index
    %c448_637 = arith.constant 448 : index
    %608 = vector.load %arg18[%c20_636, %c448_637] : memref<32x1600xbf16, #tpu.memory_space<vmem>>, vector<4x64xbf16>
    tpu.vector_store %arg18[%c20_636, %c448_637], %607 {strides = array<i32>} : memref<32x1600xbf16, #tpu.memory_space<vmem>>, vector<4x64xbf16>,
    %609 = vector.extract_strided_slice %596 {offsets = [0, 384], sizes = [4, 64], strides = [1, 1]} : vector<4x512xbf16> to vector<4x64xbf16>
    %c24_638 = arith.constant 24 : index
    %c448_639 = arith.constant 448 : index
    %610 = vector.load %arg18[%c24_638, %c448_639] : memref<32x1600xbf16, #tpu.memory_space<vmem>>, vector<4x64xbf16>
    tpu.vector_store %arg18[%c24_638, %c448_639], %609 {strides = array<i32>} : memref<32x1600xbf16, #tpu.memory_space<vmem>>, vector<4x64xbf16>,
    %611 = vector.extract_strided_slice %596 {offsets = [0, 448], sizes = [4, 64], strides = [1, 1]} : vector<4x512xbf16> to vector<4x64xbf16>
    %c28_640 = arith.constant 28 : index
    %c448_641 = arith.constant 448 : index
    %612 = vector.load %arg18[%c28_640, %c448_641] : memref<32x1600xbf16, #tpu.memory_space<vmem>>, vector<4x64xbf16>
    tpu.vector_store %arg18[%c28_640, %c448_641], %611 {strides = array<i32>} : memref<32x1600xbf16, #tpu.memory_space<vmem>>, vector<4x64xbf16>,
    %c32_642 = arith.constant 32 : index
    %c0_643 = arith.constant 0 : index
    %613 = vector.load %arg17[%c32_642, %c0_643] : memref<100x512xbf16, #tpu.memory_space<vmem>>, vector<4x512xbf16>
    %614 = vector.extract_strided_slice %613 {offsets = [0, 0], sizes = [4, 64], strides = [1, 1]} : vector<4x512xbf16> to vector<4x64xbf16>
    %c0_644 = arith.constant 0 : index
    %c512_645 = arith.constant 512 : index
    %615 = vector.load %arg18[%c0_644, %c512_645] : memref<32x1600xbf16, #tpu.memory_space<vmem>>, vector<4x64xbf16>
    tpu.vector_store %arg18[%c0_644, %c512_645], %614 {strides = array<i32>} : memref<32x1600xbf16, #tpu.memory_space<vmem>>, vector<4x64xbf16>,
    %616 = vector.extract_strided_slice %613 {offsets = [0, 64], sizes = [4, 64], strides = [1, 1]} : vector<4x512xbf16> to vector<4x64xbf16>
    %c4_646 = arith.constant 4 : index
    %c512_647 = arith.constant 512 : index
    %617 = vector.load %arg18[%c4_646, %c512_647] : memref<32x1600xbf16, #tpu.memory_space<vmem>>, vector<4x64xbf16>
    tpu.vector_store %arg18[%c4_646, %c512_647], %616 {strides = array<i32>} : memref<32x1600xbf16, #tpu.memory_space<vmem>>, vector<4x64xbf16>,
    %618 = vector.extract_strided_slice %613 {offsets = [0, 128], sizes = [4, 64], strides = [1, 1]} : vector<4x512xbf16> to vector<4x64xbf16>
    %c8_648 = arith.constant 8 : index
    %c512_649 = arith.constant 512 : index
    %619 = vector.load %arg18[%c8_648, %c512_649] : memref<32x1600xbf16, #tpu.memory_space<vmem>>, vector<4x64xbf16>
    tpu.vector_store %arg18[%c8_648, %c512_649], %618 {strides = array<i32>} : memref<32x1600xbf16, #tpu.memory_space<vmem>>, vector<4x64xbf16>,
    %620 = vector.extract_strided_slice %613 {offsets = [0, 192], sizes = [4, 64], strides = [1, 1]} : vector<4x512xbf16> to vector<4x64xbf16>
    %c12_650 = arith.constant 12 : index
    %c512_651 = arith.constant 512 : index
    %621 = vector.load %arg18[%c12_650, %c512_651] : memref<32x1600xbf16, #tpu.memory_space<vmem>>, vector<4x64xbf16>
    tpu.vector_store %arg18[%c12_650, %c512_651], %620 {strides = array<i32>} : memref<32x1600xbf16, #tpu.memory_space<vmem>>, vector<4x64xbf16>,
    %622 = vector.extract_strided_slice %613 {offsets = [0, 256], sizes = [4, 64], strides = [1, 1]} : vector<4x512xbf16> to vector<4x64xbf16>
    %c16_652 = arith.constant 16 : index
    %c512_653 = arith.constant 512 : index
    %623 = vector.load %arg18[%c16_652, %c512_653] : memref<32x1600xbf16, #tpu.memory_space<vmem>>, vector<4x64xbf16>
    tpu.vector_store %arg18[%c16_652, %c512_653], %622 {strides = array<i32>} : memref<32x1600xbf16, #tpu.memory_space<vmem>>, vector<4x64xbf16>,
    %624 = vector.extract_strided_slice %613 {offsets = [0, 320], sizes = [4, 64], strides = [1, 1]} : vector<4x512xbf16> to vector<4x64xbf16>
    %c20_654 = arith.constant 20 : index
    %c512_655 = arith.constant 512 : index
    %625 = vector.load %arg18[%c20_654, %c512_655] : memref<32x1600xbf16, #tpu.memory_space<vmem>>, vector<4x64xbf16>
    tpu.vector_store %arg18[%c20_654, %c512_655], %624 {strides = array<i32>} : memref<32x1600xbf16, #tpu.memory_space<vmem>>, vector<4x64xbf16>,
    %626 = vector.extract_strided_slice %613 {offsets = [0, 384], sizes = [4, 64], strides = [1, 1]} : vector<4x512xbf16> to vector<4x64xbf16>
    %c24_656 = arith.constant 24 : index
    %c512_657 = arith.constant 512 : index
    %627 = vector.load %arg18[%c24_656, %c512_657] : memref<32x1600xbf16, #tpu.memory_space<vmem>>, vector<4x64xbf16>
    tpu.vector_store %arg18[%c24_656, %c512_657], %626 {strides = array<i32>} : memref<32x1600xbf16, #tpu.memory_space<vmem>>, vector<4x64xbf16>,
    %628 = vector.extract_strided_slice %613 {offsets = [0, 448], sizes = [4, 64], strides = [1, 1]} : vector<4x512xbf16> to vector<4x64xbf16>
    %c28_658 = arith.constant 28 : index
    %c512_659 = arith.constant 512 : index
    %629 = vector.load %arg18[%c28_658, %c512_659] : memref<32x1600xbf16, #tpu.memory_space<vmem>>, vector<4x64xbf16>
    tpu.vector_store %arg18[%c28_658, %c512_659], %628 {strides = array<i32>} : memref<32x1600xbf16, #tpu.memory_space<vmem>>, vector<4x64xbf16>,
    %c36 = arith.constant 36 : index
    %c0_660 = arith.constant 0 : index
    %630 = vector.load %arg17[%c36, %c0_660] : memref<100x512xbf16, #tpu.memory_space<vmem>>, vector<4x512xbf16>
    %631 = vector.extract_strided_slice %630 {offsets = [0, 0], sizes = [4, 64], strides = [1, 1]} : vector<4x512xbf16> to vector<4x64xbf16>
    %c0_661 = arith.constant 0 : index
    %c576_662 = arith.constant 576 : index
    %632 = vector.load %arg18[%c0_661, %c576_662] : memref<32x1600xbf16, #tpu.memory_space<vmem>>, vector<4x64xbf16>
    tpu.vector_store %arg18[%c0_661, %c576_662], %631 {strides = array<i32>} : memref<32x1600xbf16, #tpu.memory_space<vmem>>, vector<4x64xbf16>,
    %633 = vector.extract_strided_slice %630 {offsets = [0, 64], sizes = [4, 64], strides = [1, 1]} : vector<4x512xbf16> to vector<4x64xbf16>
    %c4_663 = arith.constant 4 : index
    %c576_664 = arith.constant 576 : index
    %634 = vector.load %arg18[%c4_663, %c576_664] : memref<32x1600xbf16, #tpu.memory_space<vmem>>, vector<4x64xbf16>
    tpu.vector_store %arg18[%c4_663, %c576_664], %633 {strides = array<i32>} : memref<32x1600xbf16, #tpu.memory_space<vmem>>, vector<4x64xbf16>,
    %635 = vector.extract_strided_slice %630 {offsets = [0, 128], sizes = [4, 64], strides = [1, 1]} : vector<4x512xbf16> to vector<4x64xbf16>
    %c8_665 = arith.constant 8 : index
    %c576_666 = arith.constant 576 : index
    %636 = vector.load %arg18[%c8_665, %c576_666] : memref<32x1600xbf16, #tpu.memory_space<vmem>>, vector<4x64xbf16>
    tpu.vector_store %arg18[%c8_665, %c576_666], %635 {strides = array<i32>} : memref<32x1600xbf16, #tpu.memory_space<vmem>>, vector<4x64xbf16>,
    %637 = vector.extract_strided_slice %630 {offsets = [0, 192], sizes = [4, 64], strides = [1, 1]} : vector<4x512xbf16> to vector<4x64xbf16>
    %c12_667 = arith.constant 12 : index
    %c576_668 = arith.constant 576 : index
    %638 = vector.load %arg18[%c12_667, %c576_668] : memref<32x1600xbf16, #tpu.memory_space<vmem>>, vector<4x64xbf16>
    tpu.vector_store %arg18[%c12_667, %c576_668], %637 {strides = array<i32>} : memref<32x1600xbf16, #tpu.memory_space<vmem>>, vector<4x64xbf16>,
    %639 = vector.extract_strided_slice %630 {offsets = [0, 256], sizes = [4, 64], strides = [1, 1]} : vector<4x512xbf16> to vector<4x64xbf16>
    %c16_669 = arith.constant 16 : index
    %c576_670 = arith.constant 576 : index
    %640 = vector.load %arg18[%c16_669, %c576_670] : memref<32x1600xbf16, #tpu.memory_space<vmem>>, vector<4x64xbf16>
    tpu.vector_store %arg18[%c16_669, %c576_670], %639 {strides = array<i32>} : memref<32x1600xbf16, #tpu.memory_space<vmem>>, vector<4x64xbf16>,
    %641 = vector.extract_strided_slice %630 {offsets = [0, 320], sizes = [4, 64], strides = [1, 1]} : vector<4x512xbf16> to vector<4x64xbf16>
    %c20_671 = arith.constant 20 : index
    %c576_672 = arith.constant 576 : index
    %642 = vector.load %arg18[%c20_671, %c576_672] : memref<32x1600xbf16, #tpu.memory_space<vmem>>, vector<4x64xbf16>
    tpu.vector_store %arg18[%c20_671, %c576_672], %641 {strides = array<i32>} : memref<32x1600xbf16, #tpu.memory_space<vmem>>, vector<4x64xbf16>,
    %643 = vector.extract_strided_slice %630 {offsets = [0, 384], sizes = [4, 64], strides = [1, 1]} : vector<4x512xbf16> to vector<4x64xbf16>
    %c24_673 = arith.constant 24 : index
    %c576_674 = arith.constant 576 : index
    %644 = vector.load %arg18[%c24_673, %c576_674] : memref<32x1600xbf16, #tpu.memory_space<vmem>>, vector<4x64xbf16>
    tpu.vector_store %arg18[%c24_673, %c576_674], %643 {strides = array<i32>} : memref<32x1600xbf16, #tpu.memory_space<vmem>>, vector<4x64xbf16>,
    %645 = vector.extract_strided_slice %630 {offsets = [0, 448], sizes = [4, 64], strides = [1, 1]} : vector<4x512xbf16> to vector<4x64xbf16>
    %c28_675 = arith.constant 28 : index
    %c576_676 = arith.constant 576 : index
    %646 = vector.load %arg18[%c28_675, %c576_676] : memref<32x1600xbf16, #tpu.memory_space<vmem>>, vector<4x64xbf16>
    tpu.vector_store %arg18[%c28_675, %c576_676], %645 {strides = array<i32>} : memref<32x1600xbf16, #tpu.memory_space<vmem>>, vector<4x64xbf16>,
    %c40 = arith.constant 40 : index
    %c0_677 = arith.constant 0 : index
    %647 = vector.load %arg17[%c40, %c0_677] : memref<100x512xbf16, #tpu.memory_space<vmem>>, vector<4x512xbf16>
    %648 = vector.extract_strided_slice %647 {offsets = [0, 0], sizes = [4, 64], strides = [1, 1]} : vector<4x512xbf16> to vector<4x64xbf16>
    %c0_678 = arith.constant 0 : index
    %c640_679 = arith.constant 640 : index
    %649 = vector.load %arg18[%c0_678, %c640_679] : memref<32x1600xbf16, #tpu.memory_space<vmem>>, vector<4x64xbf16>
    tpu.vector_store %arg18[%c0_678, %c640_679], %648 {strides = array<i32>} : memref<32x1600xbf16, #tpu.memory_space<vmem>>, vector<4x64xbf16>,
    %650 = vector.extract_strided_slice %647 {offsets = [0, 64], sizes = [4, 64], strides = [1, 1]} : vector<4x512xbf16> to vector<4x64xbf16>
    %c4_680 = arith.constant 4 : index
    %c640_681 = arith.constant 640 : index
    %651 = vector.load %arg18[%c4_680, %c640_681] : memref<32x1600xbf16, #tpu.memory_space<vmem>>, vector<4x64xbf16>
    tpu.vector_store %arg18[%c4_680, %c640_681], %650 {strides = array<i32>} : memref<32x1600xbf16, #tpu.memory_space<vmem>>, vector<4x64xbf16>,
    %652 = vector.extract_strided_slice %647 {offsets = [0, 128], sizes = [4, 64], strides = [1, 1]} : vector<4x512xbf16> to vector<4x64xbf16>
    %c8_682 = arith.constant 8 : index
    %c640_683 = arith.constant 640 : index
    %653 = vector.load %arg18[%c8_682, %c640_683] : memref<32x1600xbf16, #tpu.memory_space<vmem>>, vector<4x64xbf16>
    tpu.vector_store %arg18[%c8_682, %c640_683], %652 {strides = array<i32>} : memref<32x1600xbf16, #tpu.memory_space<vmem>>, vector<4x64xbf16>,
    %654 = vector.extract_strided_slice %647 {offsets = [0, 192], sizes = [4, 64], strides = [1, 1]} : vector<4x512xbf16> to vector<4x64xbf16>
    %c12_684 = arith.constant 12 : index
    %c640_685 = arith.constant 640 : index
    %655 = vector.load %arg18[%c12_684, %c640_685] : memref<32x1600xbf16, #tpu.memory_space<vmem>>, vector<4x64xbf16>
    tpu.vector_store %arg18[%c12_684, %c640_685], %654 {strides = array<i32>} : memref<32x1600xbf16, #tpu.memory_space<vmem>>, vector<4x64xbf16>,
    %656 = vector.extract_strided_slice %647 {offsets = [0, 256], sizes = [4, 64], strides = [1, 1]} : vector<4x512xbf16> to vector<4x64xbf16>
    %c16_686 = arith.constant 16 : index
    %c640_687 = arith.constant 640 : index
    %657 = vector.load %arg18[%c16_686, %c640_687] : memref<32x1600xbf16, #tpu.memory_space<vmem>>, vector<4x64xbf16>
    tpu.vector_store %arg18[%c16_686, %c640_687], %656 {strides = array<i32>} : memref<32x1600xbf16, #tpu.memory_space<vmem>>, vector<4x64xbf16>,
    %658 = vector.extract_strided_slice %647 {offsets = [0, 320], sizes = [4, 64], strides = [1, 1]} : vector<4x512xbf16> to vector<4x64xbf16>
    %c20_688 = arith.constant 20 : index
    %c640_689 = arith.constant 640 : index
    %659 = vector.load %arg18[%c20_688, %c640_689] : memref<32x1600xbf16, #tpu.memory_space<vmem>>, vector<4x64xbf16>
    tpu.vector_store %arg18[%c20_688, %c640_689], %658 {strides = array<i32>} : memref<32x1600xbf16, #tpu.memory_space<vmem>>, vector<4x64xbf16>,
    %660 = vector.extract_strided_slice %647 {offsets = [0, 384], sizes = [4, 64], strides = [1, 1]} : vector<4x512xbf16> to vector<4x64xbf16>
    %c24_690 = arith.constant 24 : index
    %c640_691 = arith.constant 640 : index
    %661 = vector.load %arg18[%c24_690, %c640_691] : memref<32x1600xbf16, #tpu.memory_space<vmem>>, vector<4x64xbf16>
    tpu.vector_store %arg18[%c24_690, %c640_691], %660 {strides = array<i32>} : memref<32x1600xbf16, #tpu.memory_space<vmem>>, vector<4x64xbf16>,
    %662 = vector.extract_strided_slice %647 {offsets = [0, 448], sizes = [4, 64], strides = [1, 1]} : vector<4x512xbf16> to vector<4x64xbf16>
    %c28_692 = arith.constant 28 : index
    %c640_693 = arith.constant 640 : index
    %663 = vector.load %arg18[%c28_692, %c640_693] : memref<32x1600xbf16, #tpu.memory_space<vmem>>, vector<4x64xbf16>
    tpu.vector_store %arg18[%c28_692, %c640_693], %662 {strides = array<i32>} : memref<32x1600xbf16, #tpu.memory_space<vmem>>, vector<4x64xbf16>,
    %c44 = arith.constant 44 : index
    %c0_694 = arith.constant 0 : index
    %664 = vector.load %arg17[%c44, %c0_694] : memref<100x512xbf16, #tpu.memory_space<vmem>>, vector<4x512xbf16>
    %665 = vector.extract_strided_slice %664 {offsets = [0, 0], sizes = [4, 64], strides = [1, 1]} : vector<4x512xbf16> to vector<4x64xbf16>
    %c0_695 = arith.constant 0 : index
    %c704_696 = arith.constant 704 : index
    %666 = vector.load %arg18[%c0_695, %c704_696] : memref<32x1600xbf16, #tpu.memory_space<vmem>>, vector<4x64xbf16>
    tpu.vector_store %arg18[%c0_695, %c704_696], %665 {strides = array<i32>} : memref<32x1600xbf16, #tpu.memory_space<vmem>>, vector<4x64xbf16>,
    %667 = vector.extract_strided_slice %664 {offsets = [0, 64], sizes = [4, 64], strides = [1, 1]} : vector<4x512xbf16> to vector<4x64xbf16>
    %c4_697 = arith.constant 4 : index
    %c704_698 = arith.constant 704 : index
    %668 = vector.load %arg18[%c4_697, %c704_698] : memref<32x1600xbf16, #tpu.memory_space<vmem>>, vector<4x64xbf16>
    tpu.vector_store %arg18[%c4_697, %c704_698], %667 {strides = array<i32>} : memref<32x1600xbf16, #tpu.memory_space<vmem>>, vector<4x64xbf16>,
    %669 = vector.extract_strided_slice %664 {offsets = [0, 128], sizes = [4, 64], strides = [1, 1]} : vector<4x512xbf16> to vector<4x64xbf16>
    %c8_699 = arith.constant 8 : index
    %c704_700 = arith.constant 704 : index
    %670 = vector.load %arg18[%c8_699, %c704_700] : memref<32x1600xbf16, #tpu.memory_space<vmem>>, vector<4x64xbf16>
    tpu.vector_store %arg18[%c8_699, %c704_700], %669 {strides = array<i32>} : memref<32x1600xbf16, #tpu.memory_space<vmem>>, vector<4x64xbf16>,
    %671 = vector.extract_strided_slice %664 {offsets = [0, 192], sizes = [4, 64], strides = [1, 1]} : vector<4x512xbf16> to vector<4x64xbf16>
    %c12_701 = arith.constant 12 : index
    %c704_702 = arith.constant 704 : index
    %672 = vector.load %arg18[%c12_701, %c704_702] : memref<32x1600xbf16, #tpu.memory_space<vmem>>, vector<4x64xbf16>
    tpu.vector_store %arg18[%c12_701, %c704_702], %671 {strides = array<i32>} : memref<32x1600xbf16, #tpu.memory_space<vmem>>, vector<4x64xbf16>,
    %673 = vector.extract_strided_slice %664 {offsets = [0, 256], sizes = [4, 64], strides = [1, 1]} : vector<4x512xbf16> to vector<4x64xbf16>
    %c16_703 = arith.constant 16 : index
    %c704_704 = arith.constant 704 : index
    %674 = vector.load %arg18[%c16_703, %c704_704] : memref<32x1600xbf16, #tpu.memory_space<vmem>>, vector<4x64xbf16>
    tpu.vector_store %arg18[%c16_703, %c704_704], %673 {strides = array<i32>} : memref<32x1600xbf16, #tpu.memory_space<vmem>>, vector<4x64xbf16>,
    %675 = vector.extract_strided_slice %664 {offsets = [0, 320], sizes = [4, 64], strides = [1, 1]} : vector<4x512xbf16> to vector<4x64xbf16>
    %c20_705 = arith.constant 20 : index
    %c704_706 = arith.constant 704 : index
    %676 = vector.load %arg18[%c20_705, %c704_706] : memref<32x1600xbf16, #tpu.memory_space<vmem>>, vector<4x64xbf16>
    tpu.vector_store %arg18[%c20_705, %c704_706], %675 {strides = array<i32>} : memref<32x1600xbf16, #tpu.memory_space<vmem>>, vector<4x64xbf16>,
    %677 = vector.extract_strided_slice %664 {offsets = [0, 384], sizes = [4, 64], strides = [1, 1]} : vector<4x512xbf16> to vector<4x64xbf16>
    %c24_707 = arith.constant 24 : index
    %c704_708 = arith.constant 704 : index
    %678 = vector.load %arg18[%c24_707, %c704_708] : memref<32x1600xbf16, #tpu.memory_space<vmem>>, vector<4x64xbf16>
    tpu.vector_store %arg18[%c24_707, %c704_708], %677 {strides = array<i32>} : memref<32x1600xbf16, #tpu.memory_space<vmem>>, vector<4x64xbf16>,
    %679 = vector.extract_strided_slice %664 {offsets = [0, 448], sizes = [4, 64], strides = [1, 1]} : vector<4x512xbf16> to vector<4x64xbf16>
    %c28_709 = arith.constant 28 : index
    %c704_710 = arith.constant 704 : index
    %680 = vector.load %arg18[%c28_709, %c704_710] : memref<32x1600xbf16, #tpu.memory_space<vmem>>, vector<4x64xbf16>
    tpu.vector_store %arg18[%c28_709, %c704_710], %679 {strides = array<i32>} : memref<32x1600xbf16, #tpu.memory_space<vmem>>, vector<4x64xbf16>,
    %c48_711 = arith.constant 48 : index
    %c0_712 = arith.constant 0 : index
    %681 = vector.load %arg17[%c48_711, %c0_712] : memref<100x512xbf16, #tpu.memory_space<vmem>>, vector<4x512xbf16>
    %682 = vector.extract_strided_slice %681 {offsets = [0, 0], sizes = [4, 64], strides = [1, 1]} : vector<4x512xbf16> to vector<4x64xbf16>
    %c0_713 = arith.constant 0 : index
    %c768_714 = arith.constant 768 : index
    %683 = vector.load %arg18[%c0_713, %c768_714] : memref<32x1600xbf16, #tpu.memory_space<vmem>>, vector<4x64xbf16>
    tpu.vector_store %arg18[%c0_713, %c768_714], %682 {strides = array<i32>} : memref<32x1600xbf16, #tpu.memory_space<vmem>>, vector<4x64xbf16>,
    %684 = vector.extract_strided_slice %681 {offsets = [0, 64], sizes = [4, 64], strides = [1, 1]} : vector<4x512xbf16> to vector<4x64xbf16>
    %c4_715 = arith.constant 4 : index
    %c768_716 = arith.constant 768 : index
    %685 = vector.load %arg18[%c4_715, %c768_716] : memref<32x1600xbf16, #tpu.memory_space<vmem>>, vector<4x64xbf16>
    tpu.vector_store %arg18[%c4_715, %c768_716], %684 {strides = array<i32>} : memref<32x1600xbf16, #tpu.memory_space<vmem>>, vector<4x64xbf16>,
    %686 = vector.extract_strided_slice %681 {offsets = [0, 128], sizes = [4, 64], strides = [1, 1]} : vector<4x512xbf16> to vector<4x64xbf16>
    %c8_717 = arith.constant 8 : index
    %c768_718 = arith.constant 768 : index
    %687 = vector.load %arg18[%c8_717, %c768_718] : memref<32x1600xbf16, #tpu.memory_space<vmem>>, vector<4x64xbf16>
    tpu.vector_store %arg18[%c8_717, %c768_718], %686 {strides = array<i32>} : memref<32x1600xbf16, #tpu.memory_space<vmem>>, vector<4x64xbf16>,
    %688 = vector.extract_strided_slice %681 {offsets = [0, 192], sizes = [4, 64], strides = [1, 1]} : vector<4x512xbf16> to vector<4x64xbf16>
    %c12_719 = arith.constant 12 : index
    %c768_720 = arith.constant 768 : index
    %689 = vector.load %arg18[%c12_719, %c768_720] : memref<32x1600xbf16, #tpu.memory_space<vmem>>, vector<4x64xbf16>
    tpu.vector_store %arg18[%c12_719, %c768_720], %688 {strides = array<i32>} : memref<32x1600xbf16, #tpu.memory_space<vmem>>, vector<4x64xbf16>,
    %690 = vector.extract_strided_slice %681 {offsets = [0, 256], sizes = [4, 64], strides = [1, 1]} : vector<4x512xbf16> to vector<4x64xbf16>
    %c16_721 = arith.constant 16 : index
    %c768_722 = arith.constant 768 : index
    %691 = vector.load %arg18[%c16_721, %c768_722] : memref<32x1600xbf16, #tpu.memory_space<vmem>>, vector<4x64xbf16>
    tpu.vector_store %arg18[%c16_721, %c768_722], %690 {strides = array<i32>} : memref<32x1600xbf16, #tpu.memory_space<vmem>>, vector<4x64xbf16>,
    %692 = vector.extract_strided_slice %681 {offsets = [0, 320], sizes = [4, 64], strides = [1, 1]} : vector<4x512xbf16> to vector<4x64xbf16>
    %c20_723 = arith.constant 20 : index
    %c768_724 = arith.constant 768 : index
    %693 = vector.load %arg18[%c20_723, %c768_724] : memref<32x1600xbf16, #tpu.memory_space<vmem>>, vector<4x64xbf16>
    tpu.vector_store %arg18[%c20_723, %c768_724], %692 {strides = array<i32>} : memref<32x1600xbf16, #tpu.memory_space<vmem>>, vector<4x64xbf16>,
    %694 = vector.extract_strided_slice %681 {offsets = [0, 384], sizes = [4, 64], strides = [1, 1]} : vector<4x512xbf16> to vector<4x64xbf16>
    %c24_725 = arith.constant 24 : index
    %c768_726 = arith.constant 768 : index
    %695 = vector.load %arg18[%c24_725, %c768_726] : memref<32x1600xbf16, #tpu.memory_space<vmem>>, vector<4x64xbf16>
    tpu.vector_store %arg18[%c24_725, %c768_726], %694 {strides = array<i32>} : memref<32x1600xbf16, #tpu.memory_space<vmem>>, vector<4x64xbf16>,
    %696 = vector.extract_strided_slice %681 {offsets = [0, 448], sizes = [4, 64], strides = [1, 1]} : vector<4x512xbf16> to vector<4x64xbf16>
    %c28_727 = arith.constant 28 : index
    %c768_728 = arith.constant 768 : index
    %697 = vector.load %arg18[%c28_727, %c768_728] : memref<32x1600xbf16, #tpu.memory_space<vmem>>, vector<4x64xbf16>
    tpu.vector_store %arg18[%c28_727, %c768_728], %696 {strides = array<i32>} : memref<32x1600xbf16, #tpu.memory_space<vmem>>, vector<4x64xbf16>,
    %c52 = arith.constant 52 : index
    %c0_729 = arith.constant 0 : index
    %698 = vector.load %arg17[%c52, %c0_729] : memref<100x512xbf16, #tpu.memory_space<vmem>>, vector<4x512xbf16>
    %699 = vector.extract_strided_slice %698 {offsets = [0, 0], sizes = [4, 64], strides = [1, 1]} : vector<4x512xbf16> to vector<4x64xbf16>
    %c0_730 = arith.constant 0 : index
    %c832 = arith.constant 832 : index
    %700 = vector.load %arg18[%c0_730, %c832] : memref<32x1600xbf16, #tpu.memory_space<vmem>>, vector<4x64xbf16>
    tpu.vector_store %arg18[%c0_730, %c832], %699 {strides = array<i32>} : memref<32x1600xbf16, #tpu.memory_space<vmem>>, vector<4x64xbf16>,
    %701 = vector.extract_strided_slice %698 {offsets = [0, 64], sizes = [4, 64], strides = [1, 1]} : vector<4x512xbf16> to vector<4x64xbf16>
    %c4_731 = arith.constant 4 : index
    %c832_732 = arith.constant 832 : index
    %702 = vector.load %arg18[%c4_731, %c832_732] : memref<32x1600xbf16, #tpu.memory_space<vmem>>, vector<4x64xbf16>
    tpu.vector_store %arg18[%c4_731, %c832_732], %701 {strides = array<i32>} : memref<32x1600xbf16, #tpu.memory_space<vmem>>, vector<4x64xbf16>,
    %703 = vector.extract_strided_slice %698 {offsets = [0, 128], sizes = [4, 64], strides = [1, 1]} : vector<4x512xbf16> to vector<4x64xbf16>
    %c8_733 = arith.constant 8 : index
    %c832_734 = arith.constant 832 : index
    %704 = vector.load %arg18[%c8_733, %c832_734] : memref<32x1600xbf16, #tpu.memory_space<vmem>>, vector<4x64xbf16>
    tpu.vector_store %arg18[%c8_733, %c832_734], %703 {strides = array<i32>} : memref<32x1600xbf16, #tpu.memory_space<vmem>>, vector<4x64xbf16>,
    %705 = vector.extract_strided_slice %698 {offsets = [0, 192], sizes = [4, 64], strides = [1, 1]} : vector<4x512xbf16> to vector<4x64xbf16>
    %c12_735 = arith.constant 12 : index
    %c832_736 = arith.constant 832 : index
    %706 = vector.load %arg18[%c12_735, %c832_736] : memref<32x1600xbf16, #tpu.memory_space<vmem>>, vector<4x64xbf16>
    tpu.vector_store %arg18[%c12_735, %c832_736], %705 {strides = array<i32>} : memref<32x1600xbf16, #tpu.memory_space<vmem>>, vector<4x64xbf16>,
    %707 = vector.extract_strided_slice %698 {offsets = [0, 256], sizes = [4, 64], strides = [1, 1]} : vector<4x512xbf16> to vector<4x64xbf16>
    %c16_737 = arith.constant 16 : index
    %c832_738 = arith.constant 832 : index
    %708 = vector.load %arg18[%c16_737, %c832_738] : memref<32x1600xbf16, #tpu.memory_space<vmem>>, vector<4x64xbf16>
    tpu.vector_store %arg18[%c16_737, %c832_738], %707 {strides = array<i32>} : memref<32x1600xbf16, #tpu.memory_space<vmem>>, vector<4x64xbf16>,
    %709 = vector.extract_strided_slice %698 {offsets = [0, 320], sizes = [4, 64], strides = [1, 1]} : vector<4x512xbf16> to vector<4x64xbf16>
    %c20_739 = arith.constant 20 : index
    %c832_740 = arith.constant 832 : index
    %710 = vector.load %arg18[%c20_739, %c832_740] : memref<32x1600xbf16, #tpu.memory_space<vmem>>, vector<4x64xbf16>
    tpu.vector_store %arg18[%c20_739, %c832_740], %709 {strides = array<i32>} : memref<32x1600xbf16, #tpu.memory_space<vmem>>, vector<4x64xbf16>,
    %711 = vector.extract_strided_slice %698 {offsets = [0, 384], sizes = [4, 64], strides = [1, 1]} : vector<4x512xbf16> to vector<4x64xbf16>
    %c24_741 = arith.constant 24 : index
    %c832_742 = arith.constant 832 : index
    %712 = vector.load %arg18[%c24_741, %c832_742] : memref<32x1600xbf16, #tpu.memory_space<vmem>>, vector<4x64xbf16>
    tpu.vector_store %arg18[%c24_741, %c832_742], %711 {strides = array<i32>} : memref<32x1600xbf16, #tpu.memory_space<vmem>>, vector<4x64xbf16>,
    %713 = vector.extract_strided_slice %698 {offsets = [0, 448], sizes = [4, 64], strides = [1, 1]} : vector<4x512xbf16> to vector<4x64xbf16>
    %c28_743 = arith.constant 28 : index
    %c832_744 = arith.constant 832 : index
    %714 = vector.load %arg18[%c28_743, %c832_744] : memref<32x1600xbf16, #tpu.memory_space<vmem>>, vector<4x64xbf16>
    tpu.vector_store %arg18[%c28_743, %c832_744], %713 {strides = array<i32>} : memref<32x1600xbf16, #tpu.memory_space<vmem>>, vector<4x64xbf16>,
    %c56 = arith.constant 56 : index
    %c0_745 = arith.constant 0 : index
    %715 = vector.load %arg17[%c56, %c0_745] : memref<100x512xbf16, #tpu.memory_space<vmem>>, vector<4x512xbf16>
    %716 = vector.extract_strided_slice %715 {offsets = [0, 0], sizes = [4, 64], strides = [1, 1]} : vector<4x512xbf16> to vector<4x64xbf16>
    %c0_746 = arith.constant 0 : index
    %c896 = arith.constant 896 : index
    %717 = vector.load %arg18[%c0_746, %c896] : memref<32x1600xbf16, #tpu.memory_space<vmem>>, vector<4x64xbf16>
    tpu.vector_store %arg18[%c0_746, %c896], %716 {strides = array<i32>} : memref<32x1600xbf16, #tpu.memory_space<vmem>>, vector<4x64xbf16>,
    %718 = vector.extract_strided_slice %715 {offsets = [0, 64], sizes = [4, 64], strides = [1, 1]} : vector<4x512xbf16> to vector<4x64xbf16>
    %c4_747 = arith.constant 4 : index
    %c896_748 = arith.constant 896 : index
    %719 = vector.load %arg18[%c4_747, %c896_748] : memref<32x1600xbf16, #tpu.memory_space<vmem>>, vector<4x64xbf16>
    tpu.vector_store %arg18[%c4_747, %c896_748], %718 {strides = array<i32>} : memref<32x1600xbf16, #tpu.memory_space<vmem>>, vector<4x64xbf16>,
    %720 = vector.extract_strided_slice %715 {offsets = [0, 128], sizes = [4, 64], strides = [1, 1]} : vector<4x512xbf16> to vector<4x64xbf16>
    %c8_749 = arith.constant 8 : index
    %c896_750 = arith.constant 896 : index
    %721 = vector.load %arg18[%c8_749, %c896_750] : memref<32x1600xbf16, #tpu.memory_space<vmem>>, vector<4x64xbf16>
    tpu.vector_store %arg18[%c8_749, %c896_750], %720 {strides = array<i32>} : memref<32x1600xbf16, #tpu.memory_space<vmem>>, vector<4x64xbf16>,
    %722 = vector.extract_strided_slice %715 {offsets = [0, 192], sizes = [4, 64], strides = [1, 1]} : vector<4x512xbf16> to vector<4x64xbf16>
    %c12_751 = arith.constant 12 : index
    %c896_752 = arith.constant 896 : index
    %723 = vector.load %arg18[%c12_751, %c896_752] : memref<32x1600xbf16, #tpu.memory_space<vmem>>, vector<4x64xbf16>
    tpu.vector_store %arg18[%c12_751, %c896_752], %722 {strides = array<i32>} : memref<32x1600xbf16, #tpu.memory_space<vmem>>, vector<4x64xbf16>,
    %724 = vector.extract_strided_slice %715 {offsets = [0, 256], sizes = [4, 64], strides = [1, 1]} : vector<4x512xbf16> to vector<4x64xbf16>
    %c16_753 = arith.constant 16 : index
    %c896_754 = arith.constant 896 : index
    %725 = vector.load %arg18[%c16_753, %c896_754] : memref<32x1600xbf16, #tpu.memory_space<vmem>>, vector<4x64xbf16>
    tpu.vector_store %arg18[%c16_753, %c896_754], %724 {strides = array<i32>} : memref<32x1600xbf16, #tpu.memory_space<vmem>>, vector<4x64xbf16>,
    %726 = vector.extract_strided_slice %715 {offsets = [0, 320], sizes = [4, 64], strides = [1, 1]} : vector<4x512xbf16> to vector<4x64xbf16>
    %c20_755 = arith.constant 20 : index
    %c896_756 = arith.constant 896 : index
    %727 = vector.load %arg18[%c20_755, %c896_756] : memref<32x1600xbf16, #tpu.memory_space<vmem>>, vector<4x64xbf16>
    tpu.vector_store %arg18[%c20_755, %c896_756], %726 {strides = array<i32>} : memref<32x1600xbf16, #tpu.memory_space<vmem>>, vector<4x64xbf16>,
    %728 = vector.extract_strided_slice %715 {offsets = [0, 384], sizes = [4, 64], strides = [1, 1]} : vector<4x512xbf16> to vector<4x64xbf16>
    %c24_757 = arith.constant 24 : index
    %c896_758 = arith.constant 896 : index
    %729 = vector.load %arg18[%c24_757, %c896_758] : memref<32x1600xbf16, #tpu.memory_space<vmem>>, vector<4x64xbf16>
    tpu.vector_store %arg18[%c24_757, %c896_758], %728 {strides = array<i32>} : memref<32x1600xbf16, #tpu.memory_space<vmem>>, vector<4x64xbf16>,
    %730 = vector.extract_strided_slice %715 {offsets = [0, 448], sizes = [4, 64], strides = [1, 1]} : vector<4x512xbf16> to vector<4x64xbf16>
    %c28_759 = arith.constant 28 : index
    %c896_760 = arith.constant 896 : index
    %731 = vector.load %arg18[%c28_759, %c896_760] : memref<32x1600xbf16, #tpu.memory_space<vmem>>, vector<4x64xbf16>
    tpu.vector_store %arg18[%c28_759, %c896_760], %730 {strides = array<i32>} : memref<32x1600xbf16, #tpu.memory_space<vmem>>, vector<4x64xbf16>,
    %c60 = arith.constant 60 : index
    %c0_761 = arith.constant 0 : index
    %732 = vector.load %arg17[%c60, %c0_761] : memref<100x512xbf16, #tpu.memory_space<vmem>>, vector<4x512xbf16>
    %733 = vector.extract_strided_slice %732 {offsets = [0, 0], sizes = [4, 64], strides = [1, 1]} : vector<4x512xbf16> to vector<4x64xbf16>
    %c0_762 = arith.constant 0 : index
    %c960 = arith.constant 960 : index
    %734 = vector.load %arg18[%c0_762, %c960] : memref<32x1600xbf16, #tpu.memory_space<vmem>>, vector<4x64xbf16>
    tpu.vector_store %arg18[%c0_762, %c960], %733 {strides = array<i32>} : memref<32x1600xbf16, #tpu.memory_space<vmem>>, vector<4x64xbf16>,
    %735 = vector.extract_strided_slice %732 {offsets = [0, 64], sizes = [4, 64], strides = [1, 1]} : vector<4x512xbf16> to vector<4x64xbf16>
    %c4_763 = arith.constant 4 : index
    %c960_764 = arith.constant 960 : index
    %736 = vector.load %arg18[%c4_763, %c960_764] : memref<32x1600xbf16, #tpu.memory_space<vmem>>, vector<4x64xbf16>
    tpu.vector_store %arg18[%c4_763, %c960_764], %735 {strides = array<i32>} : memref<32x1600xbf16, #tpu.memory_space<vmem>>, vector<4x64xbf16>,
    %737 = vector.extract_strided_slice %732 {offsets = [0, 128], sizes = [4, 64], strides = [1, 1]} : vector<4x512xbf16> to vector<4x64xbf16>
    %c8_765 = arith.constant 8 : index
    %c960_766 = arith.constant 960 : index
    %738 = vector.load %arg18[%c8_765, %c960_766] : memref<32x1600xbf16, #tpu.memory_space<vmem>>, vector<4x64xbf16>
    tpu.vector_store %arg18[%c8_765, %c960_766], %737 {strides = array<i32>} : memref<32x1600xbf16, #tpu.memory_space<vmem>>, vector<4x64xbf16>,
    %739 = vector.extract_strided_slice %732 {offsets = [0, 192], sizes = [4, 64], strides = [1, 1]} : vector<4x512xbf16> to vector<4x64xbf16>
    %c12_767 = arith.constant 12 : index
    %c960_768 = arith.constant 960 : index
    %740 = vector.load %arg18[%c12_767, %c960_768] : memref<32x1600xbf16, #tpu.memory_space<vmem>>, vector<4x64xbf16>
    tpu.vector_store %arg18[%c12_767, %c960_768], %739 {strides = array<i32>} : memref<32x1600xbf16, #tpu.memory_space<vmem>>, vector<4x64xbf16>,
    %741 = vector.extract_strided_slice %732 {offsets = [0, 256], sizes = [4, 64], strides = [1, 1]} : vector<4x512xbf16> to vector<4x64xbf16>
    %c16_769 = arith.constant 16 : index
    %c960_770 = arith.constant 960 : index
    %742 = vector.load %arg18[%c16_769, %c960_770] : memref<32x1600xbf16, #tpu.memory_space<vmem>>, vector<4x64xbf16>
    tpu.vector_store %arg18[%c16_769, %c960_770], %741 {strides = array<i32>} : memref<32x1600xbf16, #tpu.memory_space<vmem>>, vector<4x64xbf16>,
    %743 = vector.extract_strided_slice %732 {offsets = [0, 320], sizes = [4, 64], strides = [1, 1]} : vector<4x512xbf16> to vector<4x64xbf16>
    %c20_771 = arith.constant 20 : index
    %c960_772 = arith.constant 960 : index
    %744 = vector.load %arg18[%c20_771, %c960_772] : memref<32x1600xbf16, #tpu.memory_space<vmem>>, vector<4x64xbf16>
    tpu.vector_store %arg18[%c20_771, %c960_772], %743 {strides = array<i32>} : memref<32x1600xbf16, #tpu.memory_space<vmem>>, vector<4x64xbf16>,
    %745 = vector.extract_strided_slice %732 {offsets = [0, 384], sizes = [4, 64], strides = [1, 1]} : vector<4x512xbf16> to vector<4x64xbf16>
    %c24_773 = arith.constant 24 : index
    %c960_774 = arith.constant 960 : index
    %746 = vector.load %arg18[%c24_773, %c960_774] : memref<32x1600xbf16, #tpu.memory_space<vmem>>, vector<4x64xbf16>
    tpu.vector_store %arg18[%c24_773, %c960_774], %745 {strides = array<i32>} : memref<32x1600xbf16, #tpu.memory_space<vmem>>, vector<4x64xbf16>,
    %747 = vector.extract_strided_slice %732 {offsets = [0, 448], sizes = [4, 64], strides = [1, 1]} : vector<4x512xbf16> to vector<4x64xbf16>
    %c28_775 = arith.constant 28 : index
    %c960_776 = arith.constant 960 : index
    %748 = vector.load %arg18[%c28_775, %c960_776] : memref<32x1600xbf16, #tpu.memory_space<vmem>>, vector<4x64xbf16>
    tpu.vector_store %arg18[%c28_775, %c960_776], %747 {strides = array<i32>} : memref<32x1600xbf16, #tpu.memory_space<vmem>>, vector<4x64xbf16>,
    %c64_777 = arith.constant 64 : index
    %c0_778 = arith.constant 0 : index
    %749 = vector.load %arg17[%c64_777, %c0_778] : memref<100x512xbf16, #tpu.memory_space<vmem>>, vector<4x512xbf16>
    %750 = vector.extract_strided_slice %749 {offsets = [0, 0], sizes = [4, 64], strides = [1, 1]} : vector<4x512xbf16> to vector<4x64xbf16>
    %c0_779 = arith.constant 0 : index
    %c1024 = arith.constant 1024 : index
    %751 = vector.load %arg18[%c0_779, %c1024] : memref<32x1600xbf16, #tpu.memory_space<vmem>>, vector<4x64xbf16>
    tpu.vector_store %arg18[%c0_779, %c1024], %750 {strides = array<i32>} : memref<32x1600xbf16, #tpu.memory_space<vmem>>, vector<4x64xbf16>,
    %752 = vector.extract_strided_slice %749 {offsets = [0, 64], sizes = [4, 64], strides = [1, 1]} : vector<4x512xbf16> to vector<4x64xbf16>
    %c4_780 = arith.constant 4 : index
    %c1024_781 = arith.constant 1024 : index
    %753 = vector.load %arg18[%c4_780, %c1024_781] : memref<32x1600xbf16, #tpu.memory_space<vmem>>, vector<4x64xbf16>
    tpu.vector_store %arg18[%c4_780, %c1024_781], %752 {strides = array<i32>} : memref<32x1600xbf16, #tpu.memory_space<vmem>>, vector<4x64xbf16>,
    %754 = vector.extract_strided_slice %749 {offsets = [0, 128], sizes = [4, 64], strides = [1, 1]} : vector<4x512xbf16> to vector<4x64xbf16>
    %c8_782 = arith.constant 8 : index
    %c1024_783 = arith.constant 1024 : index
    %755 = vector.load %arg18[%c8_782, %c1024_783] : memref<32x1600xbf16, #tpu.memory_space<vmem>>, vector<4x64xbf16>
    tpu.vector_store %arg18[%c8_782, %c1024_783], %754 {strides = array<i32>} : memref<32x1600xbf16, #tpu.memory_space<vmem>>, vector<4x64xbf16>,
    %756 = vector.extract_strided_slice %749 {offsets = [0, 192], sizes = [4, 64], strides = [1, 1]} : vector<4x512xbf16> to vector<4x64xbf16>
    %c12_784 = arith.constant 12 : index
    %c1024_785 = arith.constant 1024 : index
    %757 = vector.load %arg18[%c12_784, %c1024_785] : memref<32x1600xbf16, #tpu.memory_space<vmem>>, vector<4x64xbf16>
    tpu.vector_store %arg18[%c12_784, %c1024_785], %756 {strides = array<i32>} : memref<32x1600xbf16, #tpu.memory_space<vmem>>, vector<4x64xbf16>,
    %758 = vector.extract_strided_slice %749 {offsets = [0, 256], sizes = [4, 64], strides = [1, 1]} : vector<4x512xbf16> to vector<4x64xbf16>
    %c16_786 = arith.constant 16 : index
    %c1024_787 = arith.constant 1024 : index
    %759 = vector.load %arg18[%c16_786, %c1024_787] : memref<32x1600xbf16, #tpu.memory_space<vmem>>, vector<4x64xbf16>
    tpu.vector_store %arg18[%c16_786, %c1024_787], %758 {strides = array<i32>} : memref<32x1600xbf16, #tpu.memory_space<vmem>>, vector<4x64xbf16>,
    %760 = vector.extract_strided_slice %749 {offsets = [0, 320], sizes = [4, 64], strides = [1, 1]} : vector<4x512xbf16> to vector<4x64xbf16>
    %c20_788 = arith.constant 20 : index
    %c1024_789 = arith.constant 1024 : index
    %761 = vector.load %arg18[%c20_788, %c1024_789] : memref<32x1600xbf16, #tpu.memory_space<vmem>>, vector<4x64xbf16>
    tpu.vector_store %arg18[%c20_788, %c1024_789], %760 {strides = array<i32>} : memref<32x1600xbf16, #tpu.memory_space<vmem>>, vector<4x64xbf16>,
    %762 = vector.extract_strided_slice %749 {offsets = [0, 384], sizes = [4, 64], strides = [1, 1]} : vector<4x512xbf16> to vector<4x64xbf16>
    %c24_790 = arith.constant 24 : index
    %c1024_791 = arith.constant 1024 : index
    %763 = vector.load %arg18[%c24_790, %c1024_791] : memref<32x1600xbf16, #tpu.memory_space<vmem>>, vector<4x64xbf16>
    tpu.vector_store %arg18[%c24_790, %c1024_791], %762 {strides = array<i32>} : memref<32x1600xbf16, #tpu.memory_space<vmem>>, vector<4x64xbf16>,
    %764 = vector.extract_strided_slice %749 {offsets = [0, 448], sizes = [4, 64], strides = [1, 1]} : vector<4x512xbf16> to vector<4x64xbf16>
    %c28_792 = arith.constant 28 : index
    %c1024_793 = arith.constant 1024 : index
    %765 = vector.load %arg18[%c28_792, %c1024_793] : memref<32x1600xbf16, #tpu.memory_space<vmem>>, vector<4x64xbf16>
    tpu.vector_store %arg18[%c28_792, %c1024_793], %764 {strides = array<i32>} : memref<32x1600xbf16, #tpu.memory_space<vmem>>, vector<4x64xbf16>,
    %c68 = arith.constant 68 : index
    %c0_794 = arith.constant 0 : index
    %766 = vector.load %arg17[%c68, %c0_794] : memref<100x512xbf16, #tpu.memory_space<vmem>>, vector<4x512xbf16>
    %767 = vector.extract_strided_slice %766 {offsets = [0, 0], sizes = [4, 64], strides = [1, 1]} : vector<4x512xbf16> to vector<4x64xbf16>
    %c0_795 = arith.constant 0 : index
    %c1088 = arith.constant 1088 : index
    %768 = vector.load %arg18[%c0_795, %c1088] : memref<32x1600xbf16, #tpu.memory_space<vmem>>, vector<4x64xbf16>
    tpu.vector_store %arg18[%c0_795, %c1088], %767 {strides = array<i32>} : memref<32x1600xbf16, #tpu.memory_space<vmem>>, vector<4x64xbf16>,
    %769 = vector.extract_strided_slice %766 {offsets = [0, 64], sizes = [4, 64], strides = [1, 1]} : vector<4x512xbf16> to vector<4x64xbf16>
    %c4_796 = arith.constant 4 : index
    %c1088_797 = arith.constant 1088 : index
    %770 = vector.load %arg18[%c4_796, %c1088_797] : memref<32x1600xbf16, #tpu.memory_space<vmem>>, vector<4x64xbf16>
    tpu.vector_store %arg18[%c4_796, %c1088_797], %769 {strides = array<i32>} : memref<32x1600xbf16, #tpu.memory_space<vmem>>, vector<4x64xbf16>,
    %771 = vector.extract_strided_slice %766 {offsets = [0, 128], sizes = [4, 64], strides = [1, 1]} : vector<4x512xbf16> to vector<4x64xbf16>
    %c8_798 = arith.constant 8 : index
    %c1088_799 = arith.constant 1088 : index
    %772 = vector.load %arg18[%c8_798, %c1088_799] : memref<32x1600xbf16, #tpu.memory_space<vmem>>, vector<4x64xbf16>
    tpu.vector_store %arg18[%c8_798, %c1088_799], %771 {strides = array<i32>} : memref<32x1600xbf16, #tpu.memory_space<vmem>>, vector<4x64xbf16>,
    %773 = vector.extract_strided_slice %766 {offsets = [0, 192], sizes = [4, 64], strides = [1, 1]} : vector<4x512xbf16> to vector<4x64xbf16>
    %c12_800 = arith.constant 12 : index
    %c1088_801 = arith.constant 1088 : index
    %774 = vector.load %arg18[%c12_800, %c1088_801] : memref<32x1600xbf16, #tpu.memory_space<vmem>>, vector<4x64xbf16>
    tpu.vector_store %arg18[%c12_800, %c1088_801], %773 {strides = array<i32>} : memref<32x1600xbf16, #tpu.memory_space<vmem>>, vector<4x64xbf16>,
    %775 = vector.extract_strided_slice %766 {offsets = [0, 256], sizes = [4, 64], strides = [1, 1]} : vector<4x512xbf16> to vector<4x64xbf16>
    %c16_802 = arith.constant 16 : index
    %c1088_803 = arith.constant 1088 : index
    %776 = vector.load %arg18[%c16_802, %c1088_803] : memref<32x1600xbf16, #tpu.memory_space<vmem>>, vector<4x64xbf16>
    tpu.vector_store %arg18[%c16_802, %c1088_803], %775 {strides = array<i32>} : memref<32x1600xbf16, #tpu.memory_space<vmem>>, vector<4x64xbf16>,
    %777 = vector.extract_strided_slice %766 {offsets = [0, 320], sizes = [4, 64], strides = [1, 1]} : vector<4x512xbf16> to vector<4x64xbf16>
    %c20_804 = arith.constant 20 : index
    %c1088_805 = arith.constant 1088 : index
    %778 = vector.load %arg18[%c20_804, %c1088_805] : memref<32x1600xbf16, #tpu.memory_space<vmem>>, vector<4x64xbf16>
    tpu.vector_store %arg18[%c20_804, %c1088_805], %777 {strides = array<i32>} : memref<32x1600xbf16, #tpu.memory_space<vmem>>, vector<4x64xbf16>,
    %779 = vector.extract_strided_slice %766 {offsets = [0, 384], sizes = [4, 64], strides = [1, 1]} : vector<4x512xbf16> to vector<4x64xbf16>
    %c24_806 = arith.constant 24 : index
    %c1088_807 = arith.constant 1088 : index
    %780 = vector.load %arg18[%c24_806, %c1088_807] : memref<32x1600xbf16, #tpu.memory_space<vmem>>, vector<4x64xbf16>
    tpu.vector_store %arg18[%c24_806, %c1088_807], %779 {strides = array<i32>} : memref<32x1600xbf16, #tpu.memory_space<vmem>>, vector<4x64xbf16>,
    %781 = vector.extract_strided_slice %766 {offsets = [0, 448], sizes = [4, 64], strides = [1, 1]} : vector<4x512xbf16> to vector<4x64xbf16>
    %c28_808 = arith.constant 28 : index
    %c1088_809 = arith.constant 1088 : index
    %782 = vector.load %arg18[%c28_808, %c1088_809] : memref<32x1600xbf16, #tpu.memory_space<vmem>>, vector<4x64xbf16>
    tpu.vector_store %arg18[%c28_808, %c1088_809], %781 {strides = array<i32>} : memref<32x1600xbf16, #tpu.memory_space<vmem>>, vector<4x64xbf16>,
    %c72 = arith.constant 72 : index
    %c0_810 = arith.constant 0 : index
    %783 = vector.load %arg17[%c72, %c0_810] : memref<100x512xbf16, #tpu.memory_space<vmem>>, vector<4x512xbf16>
    %784 = vector.extract_strided_slice %783 {offsets = [0, 0], sizes = [4, 64], strides = [1, 1]} : vector<4x512xbf16> to vector<4x64xbf16>
    %c0_811 = arith.constant 0 : index
    %c1152 = arith.constant 1152 : index
    %785 = vector.load %arg18[%c0_811, %c1152] : memref<32x1600xbf16, #tpu.memory_space<vmem>>, vector<4x64xbf16>
    tpu.vector_store %arg18[%c0_811, %c1152], %784 {strides = array<i32>} : memref<32x1600xbf16, #tpu.memory_space<vmem>>, vector<4x64xbf16>,
    %786 = vector.extract_strided_slice %783 {offsets = [0, 64], sizes = [4, 64], strides = [1, 1]} : vector<4x512xbf16> to vector<4x64xbf16>
    %c4_812 = arith.constant 4 : index
    %c1152_813 = arith.constant 1152 : index
    %787 = vector.load %arg18[%c4_812, %c1152_813] : memref<32x1600xbf16, #tpu.memory_space<vmem>>, vector<4x64xbf16>
    tpu.vector_store %arg18[%c4_812, %c1152_813], %786 {strides = array<i32>} : memref<32x1600xbf16, #tpu.memory_space<vmem>>, vector<4x64xbf16>,
    %788 = vector.extract_strided_slice %783 {offsets = [0, 128], sizes = [4, 64], strides = [1, 1]} : vector<4x512xbf16> to vector<4x64xbf16>
    %c8_814 = arith.constant 8 : index
    %c1152_815 = arith.constant 1152 : index
    %789 = vector.load %arg18[%c8_814, %c1152_815] : memref<32x1600xbf16, #tpu.memory_space<vmem>>, vector<4x64xbf16>
    tpu.vector_store %arg18[%c8_814, %c1152_815], %788 {strides = array<i32>} : memref<32x1600xbf16, #tpu.memory_space<vmem>>, vector<4x64xbf16>,
    %790 = vector.extract_strided_slice %783 {offsets = [0, 192], sizes = [4, 64], strides = [1, 1]} : vector<4x512xbf16> to vector<4x64xbf16>
    %c12_816 = arith.constant 12 : index
    %c1152_817 = arith.constant 1152 : index
    %791 = vector.load %arg18[%c12_816, %c1152_817] : memref<32x1600xbf16, #tpu.memory_space<vmem>>, vector<4x64xbf16>
    tpu.vector_store %arg18[%c12_816, %c1152_817], %790 {strides = array<i32>} : memref<32x1600xbf16, #tpu.memory_space<vmem>>, vector<4x64xbf16>,
    %792 = vector.extract_strided_slice %783 {offsets = [0, 256], sizes = [4, 64], strides = [1, 1]} : vector<4x512xbf16> to vector<4x64xbf16>
    %c16_818 = arith.constant 16 : index
    %c1152_819 = arith.constant 1152 : index
    %793 = vector.load %arg18[%c16_818, %c1152_819] : memref<32x1600xbf16, #tpu.memory_space<vmem>>, vector<4x64xbf16>
    tpu.vector_store %arg18[%c16_818, %c1152_819], %792 {strides = array<i32>} : memref<32x1600xbf16, #tpu.memory_space<vmem>>, vector<4x64xbf16>,
    %794 = vector.extract_strided_slice %783 {offsets = [0, 320], sizes = [4, 64], strides = [1, 1]} : vector<4x512xbf16> to vector<4x64xbf16>
    %c20_820 = arith.constant 20 : index
    %c1152_821 = arith.constant 1152 : index
    %795 = vector.load %arg18[%c20_820, %c1152_821] : memref<32x1600xbf16, #tpu.memory_space<vmem>>, vector<4x64xbf16>
    tpu.vector_store %arg18[%c20_820, %c1152_821], %794 {strides = array<i32>} : memref<32x1600xbf16, #tpu.memory_space<vmem>>, vector<4x64xbf16>,
    %796 = vector.extract_strided_slice %783 {offsets = [0, 384], sizes = [4, 64], strides = [1, 1]} : vector<4x512xbf16> to vector<4x64xbf16>
    %c24_822 = arith.constant 24 : index
    %c1152_823 = arith.constant 1152 : index
    %797 = vector.load %arg18[%c24_822, %c1152_823] : memref<32x1600xbf16, #tpu.memory_space<vmem>>, vector<4x64xbf16>
    tpu.vector_store %arg18[%c24_822, %c1152_823], %796 {strides = array<i32>} : memref<32x1600xbf16, #tpu.memory_space<vmem>>, vector<4x64xbf16>,
    %798 = vector.extract_strided_slice %783 {offsets = [0, 448], sizes = [4, 64], strides = [1, 1]} : vector<4x512xbf16> to vector<4x64xbf16>
    %c28_824 = arith.constant 28 : index
    %c1152_825 = arith.constant 1152 : index
    %799 = vector.load %arg18[%c28_824, %c1152_825] : memref<32x1600xbf16, #tpu.memory_space<vmem>>, vector<4x64xbf16>
    tpu.vector_store %arg18[%c28_824, %c1152_825], %798 {strides = array<i32>} : memref<32x1600xbf16, #tpu.memory_space<vmem>>, vector<4x64xbf16>,
    %c76 = arith.constant 76 : index
    %c0_826 = arith.constant 0 : index
    %800 = vector.load %arg17[%c76, %c0_826] : memref<100x512xbf16, #tpu.memory_space<vmem>>, vector<4x512xbf16>
    %801 = vector.extract_strided_slice %800 {offsets = [0, 0], sizes = [4, 64], strides = [1, 1]} : vector<4x512xbf16> to vector<4x64xbf16>
    %c0_827 = arith.constant 0 : index
    %c1216 = arith.constant 1216 : index
    %802 = vector.load %arg18[%c0_827, %c1216] : memref<32x1600xbf16, #tpu.memory_space<vmem>>, vector<4x64xbf16>
    tpu.vector_store %arg18[%c0_827, %c1216], %801 {strides = array<i32>} : memref<32x1600xbf16, #tpu.memory_space<vmem>>, vector<4x64xbf16>,
    %803 = vector.extract_strided_slice %800 {offsets = [0, 64], sizes = [4, 64], strides = [1, 1]} : vector<4x512xbf16> to vector<4x64xbf16>
    %c4_828 = arith.constant 4 : index
    %c1216_829 = arith.constant 1216 : index
    %804 = vector.load %arg18[%c4_828, %c1216_829] : memref<32x1600xbf16, #tpu.memory_space<vmem>>, vector<4x64xbf16>
    tpu.vector_store %arg18[%c4_828, %c1216_829], %803 {strides = array<i32>} : memref<32x1600xbf16, #tpu.memory_space<vmem>>, vector<4x64xbf16>,
    %805 = vector.extract_strided_slice %800 {offsets = [0, 128], sizes = [4, 64], strides = [1, 1]} : vector<4x512xbf16> to vector<4x64xbf16>
    %c8_830 = arith.constant 8 : index
    %c1216_831 = arith.constant 1216 : index
    %806 = vector.load %arg18[%c8_830, %c1216_831] : memref<32x1600xbf16, #tpu.memory_space<vmem>>, vector<4x64xbf16>
    tpu.vector_store %arg18[%c8_830, %c1216_831], %805 {strides = array<i32>} : memref<32x1600xbf16, #tpu.memory_space<vmem>>, vector<4x64xbf16>,
    %807 = vector.extract_strided_slice %800 {offsets = [0, 192], sizes = [4, 64], strides = [1, 1]} : vector<4x512xbf16> to vector<4x64xbf16>
    %c12_832 = arith.constant 12 : index
    %c1216_833 = arith.constant 1216 : index
    %808 = vector.load %arg18[%c12_832, %c1216_833] : memref<32x1600xbf16, #tpu.memory_space<vmem>>, vector<4x64xbf16>
    tpu.vector_store %arg18[%c12_832, %c1216_833], %807 {strides = array<i32>} : memref<32x1600xbf16, #tpu.memory_space<vmem>>, vector<4x64xbf16>,
    %809 = vector.extract_strided_slice %800 {offsets = [0, 256], sizes = [4, 64], strides = [1, 1]} : vector<4x512xbf16> to vector<4x64xbf16>
    %c16_834 = arith.constant 16 : index
    %c1216_835 = arith.constant 1216 : index
    %810 = vector.load %arg18[%c16_834, %c1216_835] : memref<32x1600xbf16, #tpu.memory_space<vmem>>, vector<4x64xbf16>
    tpu.vector_store %arg18[%c16_834, %c1216_835], %809 {strides = array<i32>} : memref<32x1600xbf16, #tpu.memory_space<vmem>>, vector<4x64xbf16>,
    %811 = vector.extract_strided_slice %800 {offsets = [0, 320], sizes = [4, 64], strides = [1, 1]} : vector<4x512xbf16> to vector<4x64xbf16>
    %c20_836 = arith.constant 20 : index
    %c1216_837 = arith.constant 1216 : index
    %812 = vector.load %arg18[%c20_836, %c1216_837] : memref<32x1600xbf16, #tpu.memory_space<vmem>>, vector<4x64xbf16>
    tpu.vector_store %arg18[%c20_836, %c1216_837], %811 {strides = array<i32>} : memref<32x1600xbf16, #tpu.memory_space<vmem>>, vector<4x64xbf16>,
    %813 = vector.extract_strided_slice %800 {offsets = [0, 384], sizes = [4, 64], strides = [1, 1]} : vector<4x512xbf16> to vector<4x64xbf16>
    %c24_838 = arith.constant 24 : index
    %c1216_839 = arith.constant 1216 : index
    %814 = vector.load %arg18[%c24_838, %c1216_839] : memref<32x1600xbf16, #tpu.memory_space<vmem>>, vector<4x64xbf16>
    tpu.vector_store %arg18[%c24_838, %c1216_839], %813 {strides = array<i32>} : memref<32x1600xbf16, #tpu.memory_space<vmem>>, vector<4x64xbf16>,
    %815 = vector.extract_strided_slice %800 {offsets = [0, 448], sizes = [4, 64], strides = [1, 1]} : vector<4x512xbf16> to vector<4x64xbf16>
    %c28_840 = arith.constant 28 : index
    %c1216_841 = arith.constant 1216 : index
    %816 = vector.load %arg18[%c28_840, %c1216_841] : memref<32x1600xbf16, #tpu.memory_space<vmem>>, vector<4x64xbf16>
    tpu.vector_store %arg18[%c28_840, %c1216_841], %815 {strides = array<i32>} : memref<32x1600xbf16, #tpu.memory_space<vmem>>, vector<4x64xbf16>,
    %c80_842 = arith.constant 80 : index
    %c0_843 = arith.constant 0 : index
    %817 = vector.load %arg17[%c80_842, %c0_843] : memref<100x512xbf16, #tpu.memory_space<vmem>>, vector<4x512xbf16>
    %818 = vector.extract_strided_slice %817 {offsets = [0, 0], sizes = [4, 64], strides = [1, 1]} : vector<4x512xbf16> to vector<4x64xbf16>
    %c0_844 = arith.constant 0 : index
    %c1280 = arith.constant 1280 : index
    %819 = vector.load %arg18[%c0_844, %c1280] : memref<32x1600xbf16, #tpu.memory_space<vmem>>, vector<4x64xbf16>
    tpu.vector_store %arg18[%c0_844, %c1280], %818 {strides = array<i32>} : memref<32x1600xbf16, #tpu.memory_space<vmem>>, vector<4x64xbf16>,
    %820 = vector.extract_strided_slice %817 {offsets = [0, 64], sizes = [4, 64], strides = [1, 1]} : vector<4x512xbf16> to vector<4x64xbf16>
    %c4_845 = arith.constant 4 : index
    %c1280_846 = arith.constant 1280 : index
    %821 = vector.load %arg18[%c4_845, %c1280_846] : memref<32x1600xbf16, #tpu.memory_space<vmem>>, vector<4x64xbf16>
    tpu.vector_store %arg18[%c4_845, %c1280_846], %820 {strides = array<i32>} : memref<32x1600xbf16, #tpu.memory_space<vmem>>, vector<4x64xbf16>,
    %822 = vector.extract_strided_slice %817 {offsets = [0, 128], sizes = [4, 64], strides = [1, 1]} : vector<4x512xbf16> to vector<4x64xbf16>
    %c8_847 = arith.constant 8 : index
    %c1280_848 = arith.constant 1280 : index
    %823 = vector.load %arg18[%c8_847, %c1280_848] : memref<32x1600xbf16, #tpu.memory_space<vmem>>, vector<4x64xbf16>
    tpu.vector_store %arg18[%c8_847, %c1280_848], %822 {strides = array<i32>} : memref<32x1600xbf16, #tpu.memory_space<vmem>>, vector<4x64xbf16>,
    %824 = vector.extract_strided_slice %817 {offsets = [0, 192], sizes = [4, 64], strides = [1, 1]} : vector<4x512xbf16> to vector<4x64xbf16>
    %c12_849 = arith.constant 12 : index
    %c1280_850 = arith.constant 1280 : index
    %825 = vector.load %arg18[%c12_849, %c1280_850] : memref<32x1600xbf16, #tpu.memory_space<vmem>>, vector<4x64xbf16>
    tpu.vector_store %arg18[%c12_849, %c1280_850], %824 {strides = array<i32>} : memref<32x1600xbf16, #tpu.memory_space<vmem>>, vector<4x64xbf16>,
    %826 = vector.extract_strided_slice %817 {offsets = [0, 256], sizes = [4, 64], strides = [1, 1]} : vector<4x512xbf16> to vector<4x64xbf16>
    %c16_851 = arith.constant 16 : index
    %c1280_852 = arith.constant 1280 : index
    %827 = vector.load %arg18[%c16_851, %c1280_852] : memref<32x1600xbf16, #tpu.memory_space<vmem>>, vector<4x64xbf16>
    tpu.vector_store %arg18[%c16_851, %c1280_852], %826 {strides = array<i32>} : memref<32x1600xbf16, #tpu.memory_space<vmem>>, vector<4x64xbf16>,
    %828 = vector.extract_strided_slice %817 {offsets = [0, 320], sizes = [4, 64], strides = [1, 1]} : vector<4x512xbf16> to vector<4x64xbf16>
    %c20_853 = arith.constant 20 : index
    %c1280_854 = arith.constant 1280 : index
    %829 = vector.load %arg18[%c20_853, %c1280_854] : memref<32x1600xbf16, #tpu.memory_space<vmem>>, vector<4x64xbf16>
    tpu.vector_store %arg18[%c20_853, %c1280_854], %828 {strides = array<i32>} : memref<32x1600xbf16, #tpu.memory_space<vmem>>, vector<4x64xbf16>,
    %830 = vector.extract_strided_slice %817 {offsets = [0, 384], sizes = [4, 64], strides = [1, 1]} : vector<4x512xbf16> to vector<4x64xbf16>
    %c24_855 = arith.constant 24 : index
    %c1280_856 = arith.constant 1280 : index
    %831 = vector.load %arg18[%c24_855, %c1280_856] : memref<32x1600xbf16, #tpu.memory_space<vmem>>, vector<4x64xbf16>
    tpu.vector_store %arg18[%c24_855, %c1280_856], %830 {strides = array<i32>} : memref<32x1600xbf16, #tpu.memory_space<vmem>>, vector<4x64xbf16>,
    %832 = vector.extract_strided_slice %817 {offsets = [0, 448], sizes = [4, 64], strides = [1, 1]} : vector<4x512xbf16> to vector<4x64xbf16>
    %c28_857 = arith.constant 28 : index
    %c1280_858 = arith.constant 1280 : index
    %833 = vector.load %arg18[%c28_857, %c1280_858] : memref<32x1600xbf16, #tpu.memory_space<vmem>>, vector<4x64xbf16>
    tpu.vector_store %arg18[%c28_857, %c1280_858], %832 {strides = array<i32>} : memref<32x1600xbf16, #tpu.memory_space<vmem>>, vector<4x64xbf16>,
    %c84 = arith.constant 84 : index
    %c0_859 = arith.constant 0 : index
    %834 = vector.load %arg17[%c84, %c0_859] : memref<100x512xbf16, #tpu.memory_space<vmem>>, vector<4x512xbf16>
    %835 = vector.extract_strided_slice %834 {offsets = [0, 0], sizes = [4, 64], strides = [1, 1]} : vector<4x512xbf16> to vector<4x64xbf16>
    %c0_860 = arith.constant 0 : index
    %c1344 = arith.constant 1344 : index
    %836 = vector.load %arg18[%c0_860, %c1344] : memref<32x1600xbf16, #tpu.memory_space<vmem>>, vector<4x64xbf16>
    tpu.vector_store %arg18[%c0_860, %c1344], %835 {strides = array<i32>} : memref<32x1600xbf16, #tpu.memory_space<vmem>>, vector<4x64xbf16>,
    %837 = vector.extract_strided_slice %834 {offsets = [0, 64], sizes = [4, 64], strides = [1, 1]} : vector<4x512xbf16> to vector<4x64xbf16>
    %c4_861 = arith.constant 4 : index
    %c1344_862 = arith.constant 1344 : index
    %838 = vector.load %arg18[%c4_861, %c1344_862] : memref<32x1600xbf16, #tpu.memory_space<vmem>>, vector<4x64xbf16>
    tpu.vector_store %arg18[%c4_861, %c1344_862], %837 {strides = array<i32>} : memref<32x1600xbf16, #tpu.memory_space<vmem>>, vector<4x64xbf16>,
    %839 = vector.extract_strided_slice %834 {offsets = [0, 128], sizes = [4, 64], strides = [1, 1]} : vector<4x512xbf16> to vector<4x64xbf16>
    %c8_863 = arith.constant 8 : index
    %c1344_864 = arith.constant 1344 : index
    %840 = vector.load %arg18[%c8_863, %c1344_864] : memref<32x1600xbf16, #tpu.memory_space<vmem>>, vector<4x64xbf16>
    tpu.vector_store %arg18[%c8_863, %c1344_864], %839 {strides = array<i32>} : memref<32x1600xbf16, #tpu.memory_space<vmem>>, vector<4x64xbf16>,
    %841 = vector.extract_strided_slice %834 {offsets = [0, 192], sizes = [4, 64], strides = [1, 1]} : vector<4x512xbf16> to vector<4x64xbf16>
    %c12_865 = arith.constant 12 : index
    %c1344_866 = arith.constant 1344 : index
    %842 = vector.load %arg18[%c12_865, %c1344_866] : memref<32x1600xbf16, #tpu.memory_space<vmem>>, vector<4x64xbf16>
    tpu.vector_store %arg18[%c12_865, %c1344_866], %841 {strides = array<i32>} : memref<32x1600xbf16, #tpu.memory_space<vmem>>, vector<4x64xbf16>,
    %843 = vector.extract_strided_slice %834 {offsets = [0, 256], sizes = [4, 64], strides = [1, 1]} : vector<4x512xbf16> to vector<4x64xbf16>
    %c16_867 = arith.constant 16 : index
    %c1344_868 = arith.constant 1344 : index
    %844 = vector.load %arg18[%c16_867, %c1344_868] : memref<32x1600xbf16, #tpu.memory_space<vmem>>, vector<4x64xbf16>
    tpu.vector_store %arg18[%c16_867, %c1344_868], %843 {strides = array<i32>} : memref<32x1600xbf16, #tpu.memory_space<vmem>>, vector<4x64xbf16>,
    %845 = vector.extract_strided_slice %834 {offsets = [0, 320], sizes = [4, 64], strides = [1, 1]} : vector<4x512xbf16> to vector<4x64xbf16>
    %c20_869 = arith.constant 20 : index
    %c1344_870 = arith.constant 1344 : index
    %846 = vector.load %arg18[%c20_869, %c1344_870] : memref<32x1600xbf16, #tpu.memory_space<vmem>>, vector<4x64xbf16>
    tpu.vector_store %arg18[%c20_869, %c1344_870], %845 {strides = array<i32>} : memref<32x1600xbf16, #tpu.memory_space<vmem>>, vector<4x64xbf16>,
    %847 = vector.extract_strided_slice %834 {offsets = [0, 384], sizes = [4, 64], strides = [1, 1]} : vector<4x512xbf16> to vector<4x64xbf16>
    %c24_871 = arith.constant 24 : index
    %c1344_872 = arith.constant 1344 : index
    %848 = vector.load %arg18[%c24_871, %c1344_872] : memref<32x1600xbf16, #tpu.memory_space<vmem>>, vector<4x64xbf16>
    tpu.vector_store %arg18[%c24_871, %c1344_872], %847 {strides = array<i32>} : memref<32x1600xbf16, #tpu.memory_space<vmem>>, vector<4x64xbf16>,
    %849 = vector.extract_strided_slice %834 {offsets = [0, 448], sizes = [4, 64], strides = [1, 1]} : vector<4x512xbf16> to vector<4x64xbf16>
    %c28_873 = arith.constant 28 : index
    %c1344_874 = arith.constant 1344 : index
    %850 = vector.load %arg18[%c28_873, %c1344_874] : memref<32x1600xbf16, #tpu.memory_space<vmem>>, vector<4x64xbf16>
    tpu.vector_store %arg18[%c28_873, %c1344_874], %849 {strides = array<i32>} : memref<32x1600xbf16, #tpu.memory_space<vmem>>, vector<4x64xbf16>,
    %c88 = arith.constant 88 : index
    %c0_875 = arith.constant 0 : index
    %851 = vector.load %arg17[%c88, %c0_875] : memref<100x512xbf16, #tpu.memory_space<vmem>>, vector<4x512xbf16>
    %852 = vector.extract_strided_slice %851 {offsets = [0, 0], sizes = [4, 64], strides = [1, 1]} : vector<4x512xbf16> to vector<4x64xbf16>
    %c0_876 = arith.constant 0 : index
    %c1408 = arith.constant 1408 : index
    %853 = vector.load %arg18[%c0_876, %c1408] : memref<32x1600xbf16, #tpu.memory_space<vmem>>, vector<4x64xbf16>
    tpu.vector_store %arg18[%c0_876, %c1408], %852 {strides = array<i32>} : memref<32x1600xbf16, #tpu.memory_space<vmem>>, vector<4x64xbf16>,
    %854 = vector.extract_strided_slice %851 {offsets = [0, 64], sizes = [4, 64], strides = [1, 1]} : vector<4x512xbf16> to vector<4x64xbf16>
    %c4_877 = arith.constant 4 : index
    %c1408_878 = arith.constant 1408 : index
    %855 = vector.load %arg18[%c4_877, %c1408_878] : memref<32x1600xbf16, #tpu.memory_space<vmem>>, vector<4x64xbf16>
    tpu.vector_store %arg18[%c4_877, %c1408_878], %854 {strides = array<i32>} : memref<32x1600xbf16, #tpu.memory_space<vmem>>, vector<4x64xbf16>,
    %856 = vector.extract_strided_slice %851 {offsets = [0, 128], sizes = [4, 64], strides = [1, 1]} : vector<4x512xbf16> to vector<4x64xbf16>
    %c8_879 = arith.constant 8 : index
    %c1408_880 = arith.constant 1408 : index
    %857 = vector.load %arg18[%c8_879, %c1408_880] : memref<32x1600xbf16, #tpu.memory_space<vmem>>, vector<4x64xbf16>
    tpu.vector_store %arg18[%c8_879, %c1408_880], %856 {strides = array<i32>} : memref<32x1600xbf16, #tpu.memory_space<vmem>>, vector<4x64xbf16>,
    %858 = vector.extract_strided_slice %851 {offsets = [0, 192], sizes = [4, 64], strides = [1, 1]} : vector<4x512xbf16> to vector<4x64xbf16>
    %c12_881 = arith.constant 12 : index
    %c1408_882 = arith.constant 1408 : index
    %859 = vector.load %arg18[%c12_881, %c1408_882] : memref<32x1600xbf16, #tpu.memory_space<vmem>>, vector<4x64xbf16>
    tpu.vector_store %arg18[%c12_881, %c1408_882], %858 {strides = array<i32>} : memref<32x1600xbf16, #tpu.memory_space<vmem>>, vector<4x64xbf16>,
    %860 = vector.extract_strided_slice %851 {offsets = [0, 256], sizes = [4, 64], strides = [1, 1]} : vector<4x512xbf16> to vector<4x64xbf16>
    %c16_883 = arith.constant 16 : index
    %c1408_884 = arith.constant 1408 : index
    %861 = vector.load %arg18[%c16_883, %c1408_884] : memref<32x1600xbf16, #tpu.memory_space<vmem>>, vector<4x64xbf16>
    tpu.vector_store %arg18[%c16_883, %c1408_884], %860 {strides = array<i32>} : memref<32x1600xbf16, #tpu.memory_space<vmem>>, vector<4x64xbf16>,
    %862 = vector.extract_strided_slice %851 {offsets = [0, 320], sizes = [4, 64], strides = [1, 1]} : vector<4x512xbf16> to vector<4x64xbf16>
    %c20_885 = arith.constant 20 : index
    %c1408_886 = arith.constant 1408 : index
    %863 = vector.load %arg18[%c20_885, %c1408_886] : memref<32x1600xbf16, #tpu.memory_space<vmem>>, vector<4x64xbf16>
    tpu.vector_store %arg18[%c20_885, %c1408_886], %862 {strides = array<i32>} : memref<32x1600xbf16, #tpu.memory_space<vmem>>, vector<4x64xbf16>,
    %864 = vector.extract_strided_slice %851 {offsets = [0, 384], sizes = [4, 64], strides = [1, 1]} : vector<4x512xbf16> to vector<4x64xbf16>
    %c24_887 = arith.constant 24 : index
    %c1408_888 = arith.constant 1408 : index
    %865 = vector.load %arg18[%c24_887, %c1408_888] : memref<32x1600xbf16, #tpu.memory_space<vmem>>, vector<4x64xbf16>
    tpu.vector_store %arg18[%c24_887, %c1408_888], %864 {strides = array<i32>} : memref<32x1600xbf16, #tpu.memory_space<vmem>>, vector<4x64xbf16>,
    %866 = vector.extract_strided_slice %851 {offsets = [0, 448], sizes = [4, 64], strides = [1, 1]} : vector<4x512xbf16> to vector<4x64xbf16>
    %c28_889 = arith.constant 28 : index
    %c1408_890 = arith.constant 1408 : index
    %867 = vector.load %arg18[%c28_889, %c1408_890] : memref<32x1600xbf16, #tpu.memory_space<vmem>>, vector<4x64xbf16>
    tpu.vector_store %arg18[%c28_889, %c1408_890], %866 {strides = array<i32>} : memref<32x1600xbf16, #tpu.memory_space<vmem>>, vector<4x64xbf16>,
    %c92 = arith.constant 92 : index
    %c0_891 = arith.constant 0 : index
    %868 = vector.load %arg17[%c92, %c0_891] : memref<100x512xbf16, #tpu.memory_space<vmem>>, vector<4x512xbf16>
    %869 = vector.extract_strided_slice %868 {offsets = [0, 0], sizes = [4, 64], strides = [1, 1]} : vector<4x512xbf16> to vector<4x64xbf16>
    %c0_892 = arith.constant 0 : index
    %c1472 = arith.constant 1472 : index
    %870 = vector.load %arg18[%c0_892, %c1472] : memref<32x1600xbf16, #tpu.memory_space<vmem>>, vector<4x64xbf16>
    tpu.vector_store %arg18[%c0_892, %c1472], %869 {strides = array<i32>} : memref<32x1600xbf16, #tpu.memory_space<vmem>>, vector<4x64xbf16>,
    %871 = vector.extract_strided_slice %868 {offsets = [0, 64], sizes = [4, 64], strides = [1, 1]} : vector<4x512xbf16> to vector<4x64xbf16>
    %c4_893 = arith.constant 4 : index
    %c1472_894 = arith.constant 1472 : index
    %872 = vector.load %arg18[%c4_893, %c1472_894] : memref<32x1600xbf16, #tpu.memory_space<vmem>>, vector<4x64xbf16>
    tpu.vector_store %arg18[%c4_893, %c1472_894], %871 {strides = array<i32>} : memref<32x1600xbf16, #tpu.memory_space<vmem>>, vector<4x64xbf16>,
    %873 = vector.extract_strided_slice %868 {offsets = [0, 128], sizes = [4, 64], strides = [1, 1]} : vector<4x512xbf16> to vector<4x64xbf16>
    %c8_895 = arith.constant 8 : index
    %c1472_896 = arith.constant 1472 : index
    %874 = vector.load %arg18[%c8_895, %c1472_896] : memref<32x1600xbf16, #tpu.memory_space<vmem>>, vector<4x64xbf16>
    tpu.vector_store %arg18[%c8_895, %c1472_896], %873 {strides = array<i32>} : memref<32x1600xbf16, #tpu.memory_space<vmem>>, vector<4x64xbf16>,
    %875 = vector.extract_strided_slice %868 {offsets = [0, 192], sizes = [4, 64], strides = [1, 1]} : vector<4x512xbf16> to vector<4x64xbf16>
    %c12_897 = arith.constant 12 : index
    %c1472_898 = arith.constant 1472 : index
    %876 = vector.load %arg18[%c12_897, %c1472_898] : memref<32x1600xbf16, #tpu.memory_space<vmem>>, vector<4x64xbf16>
    tpu.vector_store %arg18[%c12_897, %c1472_898], %875 {strides = array<i32>} : memref<32x1600xbf16, #tpu.memory_space<vmem>>, vector<4x64xbf16>,
    %877 = vector.extract_strided_slice %868 {offsets = [0, 256], sizes = [4, 64], strides = [1, 1]} : vector<4x512xbf16> to vector<4x64xbf16>
    %c16_899 = arith.constant 16 : index
    %c1472_900 = arith.constant 1472 : index
    %878 = vector.load %arg18[%c16_899, %c1472_900] : memref<32x1600xbf16, #tpu.memory_space<vmem>>, vector<4x64xbf16>
    tpu.vector_store %arg18[%c16_899, %c1472_900], %877 {strides = array<i32>} : memref<32x1600xbf16, #tpu.memory_space<vmem>>, vector<4x64xbf16>,
    %879 = vector.extract_strided_slice %868 {offsets = [0, 320], sizes = [4, 64], strides = [1, 1]} : vector<4x512xbf16> to vector<4x64xbf16>
    %c20_901 = arith.constant 20 : index
    %c1472_902 = arith.constant 1472 : index
    %880 = vector.load %arg18[%c20_901, %c1472_902] : memref<32x1600xbf16, #tpu.memory_space<vmem>>, vector<4x64xbf16>
    tpu.vector_store %arg18[%c20_901, %c1472_902], %879 {strides = array<i32>} : memref<32x1600xbf16, #tpu.memory_space<vmem>>, vector<4x64xbf16>,
    %881 = vector.extract_strided_slice %868 {offsets = [0, 384], sizes = [4, 64], strides = [1, 1]} : vector<4x512xbf16> to vector<4x64xbf16>
    %c24_903 = arith.constant 24 : index
    %c1472_904 = arith.constant 1472 : index
    %882 = vector.load %arg18[%c24_903, %c1472_904] : memref<32x1600xbf16, #tpu.memory_space<vmem>>, vector<4x64xbf16>
    tpu.vector_store %arg18[%c24_903, %c1472_904], %881 {strides = array<i32>} : memref<32x1600xbf16, #tpu.memory_space<vmem>>, vector<4x64xbf16>,
    %883 = vector.extract_strided_slice %868 {offsets = [0, 448], sizes = [4, 64], strides = [1, 1]} : vector<4x512xbf16> to vector<4x64xbf16>
    %c28_905 = arith.constant 28 : index
    %c1472_906 = arith.constant 1472 : index
    %884 = vector.load %arg18[%c28_905, %c1472_906] : memref<32x1600xbf16, #tpu.memory_space<vmem>>, vector<4x64xbf16>
    tpu.vector_store %arg18[%c28_905, %c1472_906], %883 {strides = array<i32>} : memref<32x1600xbf16, #tpu.memory_space<vmem>>, vector<4x64xbf16>,
    %c96_907 = arith.constant 96 : index
    %c0_908 = arith.constant 0 : index
    %885 = vector.load %arg17[%c96_907, %c0_908] : memref<100x512xbf16, #tpu.memory_space<vmem>>, vector<4x512xbf16>
    %886 = vector.extract_strided_slice %885 {offsets = [0, 0], sizes = [4, 64], strides = [1, 1]} : vector<4x512xbf16> to vector<4x64xbf16>
    %c0_909 = arith.constant 0 : index
    %c1536 = arith.constant 1536 : index
    %887 = vector.load %arg18[%c0_909, %c1536] : memref<32x1600xbf16, #tpu.memory_space<vmem>>, vector<4x64xbf16>
    tpu.vector_store %arg18[%c0_909, %c1536], %886 {strides = array<i32>} : memref<32x1600xbf16, #tpu.memory_space<vmem>>, vector<4x64xbf16>,
    %888 = vector.extract_strided_slice %885 {offsets = [0, 64], sizes = [4, 64], strides = [1, 1]} : vector<4x512xbf16> to vector<4x64xbf16>
    %c4_910 = arith.constant 4 : index
    %c1536_911 = arith.constant 1536 : index
    %889 = vector.load %arg18[%c4_910, %c1536_911] : memref<32x1600xbf16, #tpu.memory_space<vmem>>, vector<4x64xbf16>
    tpu.vector_store %arg18[%c4_910, %c1536_911], %888 {strides = array<i32>} : memref<32x1600xbf16, #tpu.memory_space<vmem>>, vector<4x64xbf16>,
    %890 = vector.extract_strided_slice %885 {offsets = [0, 128], sizes = [4, 64], strides = [1, 1]} : vector<4x512xbf16> to vector<4x64xbf16>
    %c8_912 = arith.constant 8 : index
    %c1536_913 = arith.constant 1536 : index
    %891 = vector.load %arg18[%c8_912, %c1536_913] : memref<32x1600xbf16, #tpu.memory_space<vmem>>, vector<4x64xbf16>
    tpu.vector_store %arg18[%c8_912, %c1536_913], %890 {strides = array<i32>} : memref<32x1600xbf16, #tpu.memory_space<vmem>>, vector<4x64xbf16>,
    %892 = vector.extract_strided_slice %885 {offsets = [0, 192], sizes = [4, 64], strides = [1, 1]} : vector<4x512xbf16> to vector<4x64xbf16>
    %c12_914 = arith.constant 12 : index
    %c1536_915 = arith.constant 1536 : index
    %893 = vector.load %arg18[%c12_914, %c1536_915] : memref<32x1600xbf16, #tpu.memory_space<vmem>>, vector<4x64xbf16>
    tpu.vector_store %arg18[%c12_914, %c1536_915], %892 {strides = array<i32>} : memref<32x1600xbf16, #tpu.memory_space<vmem>>, vector<4x64xbf16>,
    %894 = vector.extract_strided_slice %885 {offsets = [0, 256], sizes = [4, 64], strides = [1, 1]} : vector<4x512xbf16> to vector<4x64xbf16>
    %c16_916 = arith.constant 16 : index
    %c1536_917 = arith.constant 1536 : index
    %895 = vector.load %arg18[%c16_916, %c1536_917] : memref<32x1600xbf16, #tpu.memory_space<vmem>>, vector<4x64xbf16>
    tpu.vector_store %arg18[%c16_916, %c1536_917], %894 {strides = array<i32>} : memref<32x1600xbf16, #tpu.memory_space<vmem>>, vector<4x64xbf16>,
    %896 = vector.extract_strided_slice %885 {offsets = [0, 320], sizes = [4, 64], strides = [1, 1]} : vector<4x512xbf16> to vector<4x64xbf16>
    %c20_918 = arith.constant 20 : index
    %c1536_919 = arith.constant 1536 : index
    %897 = vector.load %arg18[%c20_918, %c1536_919] : memref<32x1600xbf16, #tpu.memory_space<vmem>>, vector<4x64xbf16>
    tpu.vector_store %arg18[%c20_918, %c1536_919], %896 {strides = array<i32>} : memref<32x1600xbf16, #tpu.memory_space<vmem>>, vector<4x64xbf16>,
    %898 = vector.extract_strided_slice %885 {offsets = [0, 384], sizes = [4, 64], strides = [1, 1]} : vector<4x512xbf16> to vector<4x64xbf16>
    %c24_920 = arith.constant 24 : index
    %c1536_921 = arith.constant 1536 : index
    %899 = vector.load %arg18[%c24_920, %c1536_921] : memref<32x1600xbf16, #tpu.memory_space<vmem>>, vector<4x64xbf16>
    tpu.vector_store %arg18[%c24_920, %c1536_921], %898 {strides = array<i32>} : memref<32x1600xbf16, #tpu.memory_space<vmem>>, vector<4x64xbf16>,
    %900 = vector.extract_strided_slice %885 {offsets = [0, 448], sizes = [4, 64], strides = [1, 1]} : vector<4x512xbf16> to vector<4x64xbf16>
    %c28_922 = arith.constant 28 : index
    %c1536_923 = arith.constant 1536 : index
    %901 = vector.load %arg18[%c28_922, %c1536_923] : memref<32x1600xbf16, #tpu.memory_space<vmem>>, vector<4x64xbf16>
    tpu.vector_store %arg18[%c28_922, %c1536_923], %900 {strides = array<i32>} : memref<32x1600xbf16, #tpu.memory_space<vmem>>, vector<4x64xbf16>,
    %c0_924 = arith.constant 0 : index
    %c0_925 = arith.constant 0 : index
    %902 = vector.load %arg18[%c0_924, %c0_925] : memref<32x1600xbf16, #tpu.memory_space<vmem>>, vector<32x1600xbf16>
    %c0_926 = arith.constant 0 : index
    %c0_927 = arith.constant 0 : index
    %903 = vector.load %arg6[%c0_926, %c0_927] : memref<1600x128xbf16, #tpu.memory_space<vmem>>, vector<1600x128xbf16>
    %cst_928 = arith.constant dense<0.000000e+00> : vector<32x128xf32>
    %904 = tpu.matmul %902, %903, %cst_928 {dimension_numbers = #tpu.dot_dimension_numbers<[1], [0], [0], [1], [0, 0, 1, 1], [], []>} : vector<32x1600xbf16>, vector<1600x128xbf16>, vector<32x128xf32> -> vector<32x128xf32>
    %c0_929 = arith.constant 0 : index
    %c0_930 = arith.constant 0 : index
    %905 = vector.load %arg7[%c0_929, %c0_930] : memref<32x128xf32, #tpu.memory_space<vmem>>, vector<32x128xf32>
    %906 = arith.mulf %904, %905 : vector<32x128xf32>
    %c0_931 = arith.constant 0 : index
    %c0_932 = arith.constant 0 : index
    %907 = vector.load %arg8[%c0_931, %c0_932] : memref<8x32xf32, #tpu.memory_space<vmem>>, vector<8x32xf32>
    %cst_933 = arith.constant dense<0.000000e+00> : vector<8x128xf32>
    %908 = tpu.matmul %907, %906, %cst_933 {dimension_numbers = #tpu.dot_dimension_numbers<[1], [0], [0], [1], [0, 0, 1, 1], [], []>} : vector<8x32xf32>, vector<32x128xf32>, vector<8x128xf32> -> vector<8x128xf32>
    %cst_934 = arith.constant dense<0.000000e+00> : vector<8xf32>
    %909 = vector.multi_reduction <add>, %908, %cst_934 [1] : vector<8x128xf32> to vector<8xf32>
    %910 = vector.shape_cast %909 : vector<8xf32> to vector<8x1xf32>
    %c0_935 = arith.constant 0 : index
    %c0_936 = arith.constant 0 : index
    %911 = vector.load %arg9[%c0_935, %c0_936] : memref<1x1xf32, #tpu.memory_space<vmem>>, vector<1x1xf32>
    %912 = vector.broadcast %911 : vector<1x1xf32> to vector<8x1xf32>
    %913 = arith.addf %910, %912 : vector<8x1xf32>
    %c0_937 = arith.constant 0 : index
    %c0_938 = arith.constant 0 : index
    %914 = vector.load %arg10[%c0_937, %c0_938] : memref<8x1xf32, #tpu.memory_space<vmem>>, vector<8x1xf32>
    tpu.vector_store %arg10[%c0_937, %c0_938], %913 {strides = array<i32>} : memref<8x1xf32, #tpu.memory_space<vmem>>, vector<8x1xf32>,
    return
  }
  func.func @transform_0(%arg0: i32) -> (i32, i32) {
    %c0_i32 = arith.constant 0 : i32
    %c0_i32_0 = arith.constant 0 : i32
    return %arg0, %c0_i32 : i32, i32
  }
  func.func @transform_1(%arg0: i32) -> (i32, i32) {
    %c0_i32 = arith.constant 0 : i32
    %c0_i32_0 = arith.constant 0 : i32
    %c0_i32_1 = arith.constant 0 : i32
    return %c0_i32, %c0_i32_0 : i32, i32
  }
  func.func @transform_2(%arg0: i32) -> (i32, i32) {
    %c0_i32 = arith.constant 0 : i32
    %c0_i32_0 = arith.constant 0 : i32
    %c0_i32_1 = arith.constant 0 : i32
    return %c0_i32, %c0_i32_0 : i32, i32
  }
  func.func @transform_3(%arg0: i32) -> (i32, i32) {
    %c0_i32 = arith.constant 0 : i32
    %c0_i32_0 = arith.constant 0 : i32
    %c0_i32_1 = arith.constant 0 : i32
    return %c0_i32, %c0_i32_0 : i32, i32
  }
  func.func @transform_4(%arg0: i32) -> (i32, i32) {
    %c0_i32 = arith.constant 0 : i32
    %c0_i32_0 = arith.constant 0 : i32
    %c0_i32_1 = arith.constant 0 : i32
    return %c0_i32, %c0_i32_0 : i32, i32
  }
  func.func @transform_5(%arg0: i32) -> (i32, i32) {
    %c0_i32 = arith.constant 0 : i32
    %c0_i32_0 = arith.constant 0 : i32
    %c0_i32_1 = arith.constant 0 : i32
    return %c0_i32, %c0_i32_0 : i32, i32
  }
  func.func @transform_6(%arg0: i32) -> (i32, i32) {
    %c0_i32 = arith.constant 0 : i32
    %c0_i32_0 = arith.constant 0 : i32
    %c0_i32_1 = arith.constant 0 : i32
    return %c0_i32, %c0_i32_0 : i32, i32
  }
  func.func @transform_7(%arg0: i32) -> (i32, i32) {
    %c0_i32 = arith.constant 0 : i32
    %c0_i32_0 = arith.constant 0 : i32
    %c0_i32_1 = arith.constant 0 : i32
    return %c0_i32, %c0_i32_0 : i32, i32
  }
  func.func @transform_8(%arg0: i32) -> (i32, i32) {
    %c0_i32 = arith.constant 0 : i32
    %c0_i32_0 = arith.constant 0 : i32
    %c0_i32_1 = arith.constant 0 : i32
    return %c0_i32, %c0_i32_0 : i32, i32
  }
  func.func @transform_9(%arg0: i32) -> (i32, i32) {
    %c0_i32 = arith.constant 0 : i32
    %c0_i32_0 = arith.constant 0 : i32
    return %arg0, %c0_i32 : i32, i32
  }
}

</mosaic_0001>

<bundles_post_ra>
// kernel: feature_discriminator_forward.1
= control target key start
LH: loop header
LB: loop body
LE: loop exit
PB: predicated region body
PF: predicated region fallthrough
CT: control target
= control target key end

     0   :  { %s7689_s11 = smov 0   ;;  %s10128_s0 = inlined_call_operand.vmem [shape: bf16[1024,100], index: 0, kind: input, shape index: {}]   ;;  %s10129_s1 = inlined_call_operand.vmem [shape: bf16[100,32], index: 1, kind: input, shape index: {}]   ;;  %s10130_s2 = inlined_call_operand.vmem [shape: bf16[400,64], index: 2, kind: input, shape index: {}]   ;;  %s10131_s3 = inlined_call_operand.vmem [shape: bf16[800,64], index: 3, kind: input, shape index: {}]   ;;  %s10132_s4 = inlined_call_operand.vmem [shape: bf16[100,16], index: 4, kind: input, shape index: {}]   ;;  %s10133_s5 = inlined_call_operand.vmem [shape: bf16[1600,128], index: 5, kind: input, shape index: {}]   ;;  %s10134_s6 = inlined_call_operand.vmem [shape: f32[32,128], index: 6, kind: input, shape index: {}]   ;;  %s10135_s7 = inlined_call_operand.vmem [shape: f32[8,32], index: 7, kind: input, shape index: {}]   ;;  %s10136_s8 = inlined_call_operand.<no memory space> [shape: f32[1,1], index: 8, kind: input, shape index: {}]   ;;  %s10137_s9 = inlined_call_operand.vmem [shape: f32[16,1], index: 9, kind: output, shape index: {}]  }
   0x1   :  { %v14_v0 = vstv %s10136_s8 }
   0x2   :  { %15 = vst [vmem:[#allocation10] sm:$0x1] %v14_v0 }
   0x3 LB: > { %s7695_s12 = sadd.s32 4294967295, %s7627_s11   ;;  %p6283_p0 = scmp.ge.s32.totalorder %s7627_s11, 1  ;;  %s7627_s11 = sphi %s7689_s11, %s21_s11  }
   0x4   : > { %p290_p1 = scmp.lt.s32.totalorder %s7627_s11, 3 }
   0x6   : > { %p291_p2 = pnand %p6283_p0, %p290_p1 }
   0x7   : > { %v7312_v1 = vld [vmem:[%s10129_s1] sm:$0xff] (!%p291_p2)   ;;  %v7313_v2 = vld [vmem:[%s10129_s1 + $0x8] sm:$0xff] (!%p291_p2)   ;;  %s6284_s16 = sshll.u32 (!%p291_p2), %s7695_s12, 6  ;;  %v7314_v3 = vld [vmem:[%s10129_s1 + $0x10] sm:$0xff] (!%p291_p2)   ;;  %vm612_vm0 = vcmask (!%p291_p2), 818176   ;;  %vm709_vm1 = vcmask (!%p291_p2), 1041408  }
   0x8   : > { %294 = sbr.rel (%p291_p2) target bundleno = 2676 (0xa74), region = 56  ;;  %7165 = vmatprep.subr.bf16.mxu0 (!%p291_p2), %v7312_v1  ;;  %p326_p3 = scmp.lt.s32.totalorder (!%p291_p2), %s6284_s16, 127  ;;  %v7315_v4 = vld [vmem:[%s10129_s1 + $0x18] sm:$0xff] (!%p291_p2)   ;;  %v7316_v6 = vld [vmem:[%s10129_s1 + $0x20] sm:$0xff] (!%p291_p2)   ;;  %v7317_v7 = vld [vmem:[%s10129_s1 + $0x28] sm:$0xff] (!%p291_p2)   ;;  %vm1034_vm2 = vcmask (!%p291_p2), 261120  }
   0x9   : > { %7166 = vmatpush3.bf16.msra.mxu0 (!%p291_p2), %v7312_v1  ;;  %v7318_v8 = vld [vmem:[%s10129_s1 + $0x30] ss:$0 sps:$4 sm:$0x33] (!%p291_p2)   ;;  %s7629_s10 = smov (!%p291_p2), 32   ;;  %s7630_s13 = smov (!%p291_p2), 64   ;;  %vm1095_vm3 = vcmask (!%p291_p2), 523520  }
   0xa   : > { %7167 = vmatprep.subr.bf16.mxu0 (!%p291_p2), %v7313_v2  ;;  %v711_v9 = vsel (!%p291_p2), %vm709_vm1, %v7318_v8, 0  ;;  %s7631_s14 = smov (!%p291_p2), 96   ;;  %vm1120_vm4 = vcmask (!%p291_p2), 785920   ;;  %vm1145_vm5 = vcmask (!%p291_p2), 1048320   ;;  %vm1413_vm6 = vcmask (!%p291_p2), 523264   ;;  %p331_p4 = scmp.lt.s32.totalorder (!%p291_p2), %s7695_s12, 1 }
   0xb   : > { %vm3513_vm7 = vcmask (!%p291_p2), 1048064   ;;  %vm3589_vm8 = vcmask (!%p291_p2), 130048   ;;  %vm4001_vm9 = vcmask (!%p291_p2), 517120   ;;  %vm4015_vm10 = vcmask (!%p291_p2), 521220  }
   0xc   : > { %vm4021_vm11 = vcmask (!%p291_p2), 523270   ;;  %vm4010_vm12 = vcmask (!%p291_p2), 519170   ;;  %vm4063_vm13 = vcmask (!%p291_p2), 1048070   ;;  %vm4052_vm14 = vcmask (!%p291_p2), 1043970  }
   0xd   : > { %7168 = vmatpush3.bf16.msra.mxu0 (!%p291_p2), %v7313_v2  ;;  %vm4060_vm15 = vcmask (!%p291_p2), 1046020  }
   0xe   : > { %7169 = vmatprep.subr.bf16.mxu0 (!%p291_p2), %v7314_v3 }
   0xf   : > { %s10139_s16 = smov (!%p326_p3, %s6284_s16), 127  ;;  %s10141_s12 = smov (!%p331_p4, %s7695_s12), 1 }
  0x10   : > { %s6285_s21 = sshll.u32 %s10139_s16, 2  ;;  %s6286_s19 = sshll.u32 %s10141_s12, 3 }
  0x11   : > { %s7715_s24 = scalar_lea.vmem %s10128_s0, %s6285_s21  ;;  %7170 = vmatpush3.bf16.msra.mxu0 %v7314_v3  ;;  %s334_s22 = scalar_lea.vmem %s10137_s9, %s6286_s19 }
  0x12   : > { %v7319_v5 = vld [vmem:[%s7715_s24] sm:$0xff]   ;;  %7171 = vmatprep.subr.bf16.mxu0 %v7315_v4  ;;  %v7320_v10 = vld [vmem:[%s7715_s24 + $0x8] sm:$0xff]   ;;  %v7321_v11 = vld [vmem:[%s7715_s24 + $0x10] sm:$0xff]  }
  0x13   : > { %7179 = vmatprep.mubr.msk.bf16.mxu0 %vm612_vm0, %v7319_v5  ;;  %v7322_v12 = vld [vmem:[%s7715_s24 + $0x18] sm:$0xff]   ;;  %v7323_v13 = vld [vmem:[%s7715_s24 + $0x20] sm:$0xff]   ;;  %v7324_v14 = vld [vmem:[%s7715_s24 + $0x28] sm:$0xff]  }
  0x14   : > { %v7325_v15 = vld [vmem:[%s7715_s24 + $0x30] sm:$0xff]   ;;  %v7326_v16 = vld [vmem:[%s7715_s24 + $0x38] sm:$0xff]   ;;  %v7327_v17 = vld [vmem:[%s7715_s24 + $0x40] sm:$0xff]  }
  0x15   : > { %7172 = vmatpush3.bf16.msra.mxu0 %v7315_v4  ;;  %v7328_v18 = vld [vmem:[%s7715_s24 + $0x48] sm:$0xff]   ;;  %v7329_v19 = vld [vmem:[%s7715_s24 + $0x50] sm:$0xff]   ;;  %v7330_v20 = vld [vmem:[%s7715_s24 + $0x58] sm:$0xff]  }
  0x16   : > { %7173 = vmatprep.subr.bf16.mxu0 %v7316_v6  ;;  %v7331_v21 = vld [vmem:[%s7715_s24 + $0x60] sm:$0xff]   ;;  %v7332_v22 = vld [vmem:[%s7715_s24 + $0x68] sm:$0xff]   ;;  %v7333_v23 = vld [vmem:[%s7715_s24 + $0x70] sm:$0xff]  }
  0x17   : > { %v7334_v24 = vld [vmem:[%s7715_s24 + $0x78] sm:$0xff]   ;;  %v7335_v25 = vld [vmem:[%s7715_s24 + $0x80] sm:$0xff]   ;;  %v7336_v26 = vld [vmem:[%s7715_s24 + $0x88] sm:$0xff]  }
  0x18   : > { %v7337_v27 = vld [vmem:[%s7715_s24 + $0x90] sm:$0xff]   ;;  %v7338_v28 = vld [vmem:[%s7715_s24 + $0x98] sm:$0xff]   ;;  %v7339_v29 = vld [vmem:[%s7715_s24 + $0xa0] sm:$0xff]  }
  0x19   : > { %7174 = vmatpush3.bf16.msra.mxu0 %v7316_v6  ;;  %v7340_v30 = vld [vmem:[%s7715_s24 + $0xa8] sm:$0xff]   ;;  %v7341_v31 = vld [vmem:[%s7715_s24 + $0xb0] sm:$0xff]   ;;  %v7342_v32 = vld [vmem:[%s7715_s24 + $0xb8] sm:$0xff]  }
  0x1a   : > { %7175 = vmatprep.subr.bf16.mxu0 %v7317_v7  ;;  %v7343_v33 = vld [vmem:[%s7715_s24 + $0xc0] sm:$0xff]   ;;  %v7344_v34 = vld [vmem:[%s7715_s24 + $0xc8] sm:$0xff]   ;;  %v7345_v35 = vld [vmem:[%s7715_s24 + $0xd0] sm:$0xff]  }
  0x1b   : > { %v7346_v36 = vld [vmem:[%s7715_s24 + $0xd8] sm:$0xff]   ;;  %v7347_v37 = vld [vmem:[%s7715_s24 + $0xe0] sm:$0xff]   ;;  %v7348_v38 = vld [vmem:[%s7715_s24 + $0xe8] sm:$0xff]  }
  0x1c   : > { %v7349_v39 = vld [vmem:[%s7715_s24 + $0xf0] sm:$0xff]   ;;  %v7350_v40 = vld [vmem:[%s7715_s24 + $0xf8] sm:$0xff]  }
  0x1d   : > { %7176 = vmatpush3.bf16.msra.mxu0 %v7317_v7 }
  0x1e   : > { %7296 = vmatprep.subr.msk.bf16.mxu0 %vm709_vm1, %v7318_v8  ;;  %vm7634_vm1 = vmmov 0  }
  0x21   : > { %7178 = vmatpush3.bf16.msra.mxu0 %v711_v9 }
  0x24   : > { %7180 = vmatmul.mubr.msk.bf16.vlgmr.msra.gmra.mrb[0].mxu0 %vm612_vm0, %v7320_v10 }
  0x25   : > { %7183 = vmatprep.mubr.msk.bf16.mxu0 %vm612_vm0, %v7321_v11 }
  0x2c   : > { %7184 = vmatmul.mubr.msk.bf16.gmra.mrb[4].mxu0 %vm612_vm0, %v7322_v12 }
  0x2d   : > { %7187 = vmatprep.mubr.msk.bf16.mxu0 %vm612_vm0, %v7323_v13 }
  0x34   : > { %7188 = vmatmul.mubr.msk.bf16.gmra.mrb[8].mxu0 %vm612_vm0, %v7324_v14 }
  0x35   : > { %7191 = vmatprep.mubr.msk.bf16.mxu0 %vm612_vm0, %v7325_v15 }
  0x3c   : > { %7192 = vmatmul.mubr.msk.bf16.gmra.mrb[12].mxu0 %vm612_vm0, %v7326_v16 }
  0x3d   : > { %7195 = vmatprep.mubr.msk.bf16.mxu0 %vm612_vm0, %v7327_v17 }
  0x44   : > { %7196 = vmatmul.mubr.msk.bf16.gmra.mrb[16].mxu0 %vm612_vm0, %v7328_v18 }
  0x45   : > { %7199 = vmatprep.mubr.msk.bf16.mxu0 %vm612_vm0, %v7329_v19 }
  0x4c   : > { %7200 = vmatmul.mubr.msk.bf16.gmra.mrb[20].mxu0 %vm612_vm0, %v7330_v20 }
  0x4d   : > { %7203 = vmatprep.mubr.msk.bf16.mxu0 %vm612_vm0, %v7331_v21 }
  0x54   : > { %7204 = vmatmul.mubr.msk.bf16.gmra.mrb[24].mxu0 %vm612_vm0, %v7332_v22 }
  0x55   : > { %7207 = vmatprep.mubr.msk.bf16.mxu0 %vm612_vm0, %v7333_v23 }
  0x5c   : > { %7208 = vmatmul.mubr.msk.bf16.gmra.mrb[28].mxu0 %vm612_vm0, %v7334_v24 }
  0x5d   : > { %7211 = vmatprep.mubr.msk.bf16.mxu0 %vm612_vm0, %v7335_v25 }
  0x64   : > { %7212 = vmatmul.mubr.msk.bf16.gmra.mrb[32].mxu0 %vm612_vm0, %v7336_v26 }
  0x65   : > { %7215 = vmatprep.mubr.msk.bf16.mxu0 %vm612_vm0, %v7337_v27 }
  0x6c   : > { %7216 = vmatmul.mubr.msk.bf16.gmra.mrb[36].mxu0 %vm612_vm0, %v7338_v28 }
  0x6d   : > { %7219 = vmatprep.mubr.msk.bf16.mxu0 %vm612_vm0, %v7339_v29 }
  0x74   : > { %7220 = vmatmul.mubr.msk.bf16.gmra.mrb[40].mxu0 %vm612_vm0, %v7340_v30 }
  0x75   : > { %7223 = vmatprep.mubr.msk.bf16.mxu0 %vm612_vm0, %v7341_v31 }
  0x7c   : > { %7224 = vmatmul.mubr.msk.bf16.gmra.mrb[44].mxu0 %vm612_vm0, %v7342_v32 }
  0x7d   : > { %7227 = vmatprep.mubr.msk.bf16.mxu0 %vm612_vm0, %v7343_v33 }
  0x84   : > { %7228 = vmatmul.mubr.msk.bf16.gmra.mrb[48].mxu0 %vm612_vm0, %v7344_v34 }
  0x85   : > { %7231 = vmatprep.mubr.msk.bf16.mxu0 %vm612_vm0, %v7345_v35 }
  0x8c   : > { %7232 = vmatmul.mubr.msk.bf16.gmra.mrb[52].mxu0 %vm612_vm0, %v7346_v36 }
  0x8d   : > { %7235 = vmatprep.mubr.msk.bf16.mxu0 %vm612_vm0, %v7347_v37 }
  0x94   : > { %7236 = vmatmul.mubr.msk.bf16.gmra.mrb[56].mxu0 %vm612_vm0, %v7348_v38 }
  0x95   : > { %7239 = vmatprep.mubr.msk.bf16.mxu0 %vm612_vm0, %v7349_v39 }
  0x9c   : > { %7240 = vmatmul.mubr.msk.bf16.gmra.mrb[60].mxu0 %vm612_vm0, %v7350_v40  ;;  %vm4050_vm0 = vcmask 1041920  }
  0xf7   : > { %v7181_v41 = vpop.f32.mrb[0].mxu0 }
  0xf8   : > { %v747_v42 = vpop.f32.mrb[1].mxu0 }
  0xf9   : > { %v7182_v43 = vpop.f32.mrb[2].mxu0 }
  0xfa   : > { %v1003_v44 = vpack.c.bf16 %v7182_v43, %v7181_v41  ;;  %v750_v45 = vpop.f32.mrb[3].mxu0 }
  0xfb   : > { %v1002_v46 = vpack.c.bf16 %v750_v45, %v747_v42 }
  0xfc   : > { %1036 = vst.msk [vmem:[#allocation2 + $0x8] sm:$0xff] %vm1034_vm2, %v1003_v44 }
  0xfd   : > { %1035 = vst.msk [vmem:[#allocation2] sm:$0xff] %vm1034_vm2, %v1002_v46 }
  0xff   : > { %v7185_v47 = vpop.f32.mrb[4].mxu0 }
 0x100   : > { %v763_v48 = vpop.f32.mrb[5].mxu0 }
 0x101   : > { %v7186_v49 = vpop.f32.mrb[6].mxu0 }
 0x102   : > { %v1005_v50 = vpack.c.bf16 %v7186_v49, %v7185_v47  ;;  %v766_v51 = vpop.f32.mrb[7].mxu0 }
 0x103   : > { %v1004_v52 = vpack.c.bf16 %v766_v51, %v763_v48  ;;  %v1068_v53 = vld [vmem:[#allocation2 + $0x8] sm:$0xff] }
 0x104   : > { %1038 = vst.msk [vmem:[#allocation2 + $0x18] sm:$0xff] %vm1034_vm2, %v1005_v50  ;;  %1072 = vst.msk [vmem:[#allocation3 + $0x10] sm:$0xff] %vm1034_vm2, %v1068_v53  ;;  %v1067_v54 = vld [vmem:[#allocation2] sm:$0xff] }
 0x105   : > { %1037 = vst.msk [vmem:[#allocation2 + $0x10] sm:$0xff] %vm1034_vm2, %v1004_v52  ;;  %1071 = vst.msk [vmem:[#allocation3] sm:$0xff] %vm1034_vm2, %v1067_v54 }
 0x107   : > { %v7189_v55 = vpop.f32.mrb[8].mxu0 }
 0x108   : > { %v779_v56 = vpop.f32.mrb[9].mxu0 }
 0x109   : > { %v7190_v57 = vpop.f32.mrb[10].mxu0 }
 0x10a   : > { %v1007_v58 = vpack.c.bf16 %v7190_v57, %v7189_v55  ;;  %v782_v59 = vpop.f32.mrb[11].mxu0 }
 0x10b   : > { %v1006_v60 = vpack.c.bf16 %v782_v59, %v779_v56  ;;  %v1070_v61 = vld [vmem:[#allocation2 + $0x18] sm:$0xff] }
 0x10c   : > { %1040 = vst.msk [vmem:[#allocation2 + $0x28] sm:$0xff] %vm1034_vm2, %v1007_v58  ;;  %v1069_v62 = vld [vmem:[#allocation2 + $0x10] sm:$0xff]  ;;  %1074 = vst.msk [vmem:[#allocation3 + $0x30] sm:$0xff] %vm1034_vm2, %v1070_v61 }
 0x10d   : > { %1039 = vst.msk [vmem:[#allocation2 + $0x20] sm:$0xff] %vm1034_vm2, %v1006_v60  ;;  %1073 = vst.msk [vmem:[#allocation3 + $0x20] sm:$0xff] %vm1034_vm2, %v1069_v62 }
 0x10f   : > { %v7193_v63 = vpop.f32.mrb[12].mxu0 }
 0x110   : > { %v795_v0 = vpop.f32.mrb[13].mxu0 }
 0x111   : > { %v7194_v1 = vpop.f32.mrb[14].mxu0 }
 0x112   : > { %v1009_v2 = vpack.c.bf16 %v7194_v1, %v7193_v63  ;;  %v798_v3 = vpop.f32.mrb[15].mxu0 }
 0x113   : > { %v1008_v4 = vpack.c.bf16 %v798_v3, %v795_v0  ;;  %v1076_v5 = vld [vmem:[#allocation2 + $0x28] sm:$0xff] }
 0x114   : > { %1042 = vst.msk [vmem:[#allocation2 + $0x38] sm:$0xff] %vm1034_vm2, %v1009_v2  ;;  %1085 = vrot.lane.b32.xlu1 %v1076_v5, %s7629_s10  ;;  %v1075_v6 = vld [vmem:[#allocation2 + $0x20] sm:$0xff] }
 0x115   : > { %1041 = vst.msk [vmem:[#allocation2 + $0x30] sm:$0xff] %vm1034_vm2, %v1008_v4  ;;  %1083 = vrot.lane.b32.xlu0 %v1075_v6, %s7629_s10 }
 0x117   : > { %v7197_v7 = vpop.f32.mrb[16].mxu0 }
 0x118   : > { %v811_v8 = vpop.f32.mrb[17].mxu0 }
 0x119   : > { %v7198_v9 = vpop.f32.mrb[18].mxu0 }
 0x11a   : > { %v1011_v10 = vpack.c.bf16 %v7198_v9, %v7197_v7  ;;  %v814_v11 = vpop.f32.mrb[19].mxu0 }
 0x11b   : > { %v1010_v12 = vpack.c.bf16 %v814_v11, %v811_v8 }
 0x11c   : > { %1044 = vst.msk [vmem:[#allocation2 + $0x48] sm:$0xff] %vm1034_vm2, %v1011_v10  ;;  %v1077_v13 = vld [vmem:[#allocation2 + $0x30] sm:$0xff] }
 0x11d   : > { %1043 = vst.msk [vmem:[#allocation2 + $0x40] sm:$0xff] %vm1034_vm2, %v1010_v12  ;;  %1087 = vrot.lane.b32.xlu1 %v1077_v13, %s7629_s10 }
 0x11f   : > { %v7201_v14 = vpop.f32.mrb[20].mxu0 }
 0x120   : > { %v827_v15 = vpop.f32.mrb[21].mxu0 }
 0x121   : > { %v7202_v16 = vpop.f32.mrb[22].mxu0 }
 0x122   : > { %v1013_v17 = vpack.c.bf16 %v7202_v16, %v7201_v14  ;;  %v830_v18 = vpop.f32.mrb[23].mxu0 }
 0x123   : > { %v1012_v19 = vpack.c.bf16 %v830_v18, %v827_v15  ;;  %v1101_v20 = vld [vmem:[#allocation2 + $0x48] sm:$0xff] }
 0x124   : > { %1046 = vst.msk [vmem:[#allocation2 + $0x58] sm:$0xff] %vm1034_vm2, %v1013_v17  ;;  %1110 = vrot.lane.b32.xlu1 %v1101_v20, %s7630_s13  ;;  %v1100_v22 = vld [vmem:[#allocation2 + $0x40] sm:$0xff] }
 0x125   : > { %1045 = vst.msk [vmem:[#allocation2 + $0x50] sm:$0xff] %vm1034_vm2, %v1012_v19 }
 0x127   : > { %v7205_v21 = vpop.f32.mrb[24].mxu0 }
 0x128   : > { %1108 = vrot.lane.b32.xlu1 %v1100_v22, %s7630_s13  ;;  %v843_v23 = vpop.f32.mrb[25].mxu0 }
 0x129   : > { %v7206_v24 = vpop.f32.mrb[26].mxu0 }
 0x12a   : > { %v1015_v25 = vpack.c.bf16 %v7206_v24, %v7205_v21  ;;  %v846_v26 = vpop.f32.mrb[27].mxu0 }
 0x12b   : > { %v1014_v27 = vpack.c.bf16 %v846_v26, %v843_v23  ;;  %v1078_v26 = vld [vmem:[#allocation2 + $0x38] sm:$0xff] }
 0x12c   : > { %1048 = vst.msk [vmem:[#allocation2 + $0x68] sm:$0xff] %vm1034_vm2, %v1015_v25  ;;  %v1102_v28 = vld [vmem:[#allocation2 + $0x50] sm:$0xff] }
 0x12d   : > { %1047 = vst.msk [vmem:[#allocation2 + $0x60] sm:$0xff] %vm1034_vm2, %v1014_v27  ;;  %1112 = vrot.lane.b32.xlu1 %v1102_v28, %s7630_s13 }
 0x12f   : > { %v7209_v29 = vpop.f32.mrb[28].mxu0 }
 0x130   : > { %v859_v30 = vpop.f32.mrb[29].mxu0 }
 0x131   : > { %v7210_v31 = vpop.f32.mrb[30].mxu0 }
 0x132   : > { %v1017_v32 = vpack.c.bf16 %v7210_v31, %v7209_v29  ;;  %v862_v33 = vpop.f32.mrb[31].mxu0 }
 0x133   : > { %v1016_v34 = vpack.c.bf16 %v862_v33, %v859_v30  ;;  %v1126_v35 = vld [vmem:[#allocation2 + $0x68] sm:$0xff]  ;;  %v1103_v30 = vld [vmem:[#allocation2 + $0x58] sm:$0xff] }
 0x134   : > { %1050 = vst.msk [vmem:[#allocation2 + $0x78] sm:$0xff] %vm1034_vm2, %v1017_v32  ;;  %1135 = vrot.lane.b32.xlu1 %v1126_v35, %s7631_s14  ;;  %v1125_v37 = vld [vmem:[#allocation2 + $0x60] sm:$0xff] }
 0x135   : > { %1049 = vst.msk [vmem:[#allocation2 + $0x70] sm:$0xff] %vm1034_vm2, %v1016_v34 }
 0x137   : > { %v7213_v36 = vpop.f32.mrb[32].mxu0 }
 0x138   : > { %1133 = vrot.lane.b32.xlu1 %v1125_v37, %s7631_s14  ;;  %v875_v38 = vpop.f32.mrb[33].mxu0 }
 0x139   : > { %v7214_v39 = vpop.f32.mrb[34].mxu0 }
 0x13a   : > { %v1019_v40 = vpack.c.bf16 %v7214_v39, %v7213_v36  ;;  %v878_v41 = vpop.f32.mrb[35].mxu0 }
 0x13b   : > { %v1018_v42 = vpack.c.bf16 %v878_v41, %v875_v38  ;;  %v1128_v36 = vld [vmem:[#allocation2 + $0x78] sm:$0xff] }
 0x13c   : > { %1052 = vst.msk [vmem:[#allocation2 + $0x88] sm:$0xff] %vm1034_vm2, %v1019_v40  ;;  %v1127_v21 = vld [vmem:[#allocation2 + $0x70] sm:$0xff]  ;;  %v7632_v40 = vmov 0  }
 0x13d   : > { %1051 = vst.msk [vmem:[#allocation2 + $0x80] sm:$0xff] %vm1034_vm2, %v1018_v42  ;;  %1521 = vmatprep.mubr.bf16.mxu1 %v7632_v40 }
 0x13f   : > { %v7217_v43 = vpop.f32.mrb[36].mxu0 }
 0x140   : > { %v891_v44 = vpop.f32.mrb[37].mxu0 }
 0x141   : > { %v7218_v45 = vpop.f32.mrb[38].mxu0 }
 0x142   : > { %v1021_v46 = vpack.c.bf16 %v7218_v45, %v7217_v43  ;;  %v894_v47 = vpop.f32.mrb[39].mxu0 }
 0x143   : > { %v1020_v48 = vpack.c.bf16 %v894_v47, %v891_v44  ;;  %v1151_v49 = vld [vmem:[#allocation2 + $0x88] sm:$0xff] }
 0x144   : > { %1054 = vst.msk [vmem:[#allocation2 + $0x98] sm:$0xff] %vm1034_vm2, %v1021_v46  ;;  %1155 = vst.msk [vmem:[#allocation3 + $0x18] sm:$0xff] %vm1034_vm2, %v1151_v49  ;;  %v1150_v50 = vld [vmem:[#allocation2 + $0x80] sm:$0xff] }
 0x145   : > { %1053 = vst.msk [vmem:[#allocation2 + $0x90] sm:$0xff] %vm1034_vm2, %v1020_v48  ;;  %1154 = vst.msk [vmem:[#allocation3 + $0x8] sm:$0xff] %vm1034_vm2, %v1150_v50 }
 0x147   : > { %v7221_v51 = vpop.f32.mrb[40].mxu0 }
 0x148   : > { %v907_v52 = vpop.f32.mrb[41].mxu0 }
 0x149   : > { %v7222_v53 = vpop.f32.mrb[42].mxu0 }
 0x14a   : > { %v1023_v54 = vpack.c.bf16 %v7222_v53, %v7221_v51  ;;  %v910_v55 = vpop.f32.mrb[43].mxu0 }
 0x14b   : > { %v1022_v56 = vpack.c.bf16 %v910_v55, %v907_v52  ;;  %v1153_v57 = vld [vmem:[#allocation2 + $0x98] sm:$0xff] }
 0x14c   : > { %1056 = vst.msk [vmem:[#allocation2 + $0xa8] sm:$0xff] %vm1034_vm2, %v1023_v54  ;;  %v1152_v58 = vld [vmem:[#allocation2 + $0x90] sm:$0xff]  ;;  %1157 = vst.msk [vmem:[#allocation3 + $0x38] sm:$0xff] %vm1034_vm2, %v1153_v57 }
 0x14d   : > { %1055 = vst.msk [vmem:[#allocation2 + $0xa0] sm:$0xff] %vm1034_vm2, %v1022_v56  ;;  %1156 = vst.msk [vmem:[#allocation3 + $0x28] sm:$0xff] %vm1034_vm2, %v1152_v58 }
 0x14f   : > { %v7225_v59 = vpop.f32.mrb[44].mxu0 }
 0x150   : > { %v923_v60 = vpop.f32.mrb[45].mxu0 }
 0x151   : > { %v7226_v61 = vpop.f32.mrb[46].mxu0 }
 0x152   : > { %v1025_v62 = vpack.c.bf16 %v7226_v61, %v7225_v59  ;;  %v926_v63 = vpop.f32.mrb[47].mxu0 }
 0x153   : > { %v1024_v0 = vpack.c.bf16 %v926_v63, %v923_v60  ;;  %v1159_v1 = vld [vmem:[#allocation2 + $0xa8] sm:$0xff] }
 0x154   : > { %1058 = vst.msk [vmem:[#allocation2 + $0xb8] sm:$0xff] %vm1034_vm2, %v1025_v62  ;;  %1168 = vrot.lane.b32.xlu0 %v1159_v1, %s7629_s10  ;;  %v1158_v3 = vld [vmem:[#allocation2 + $0xa0] sm:$0xff] }
 0x155   : > { %1057 = vst.msk [vmem:[#allocation2 + $0xb0] sm:$0xff] %vm1034_vm2, %v1024_v0 }
 0x157   : > { %v7229_v2 = vpop.f32.mrb[48].mxu0 }
 0x158   : > { %1166 = vrot.lane.b32.xlu0 %v1158_v3, %s7629_s10  ;;  %v939_v4 = vpop.f32.mrb[49].mxu0 }
 0x159   : > { %v7230_v5 = vpop.f32.mrb[50].mxu0 }
 0x15a   : > { %v1027_v6 = vpack.c.bf16 %v7230_v5, %v7229_v2  ;;  %v942_v7 = vpop.f32.mrb[51].mxu0 }
 0x15b   : > { %v1026_v8 = vpack.c.bf16 %v942_v7, %v939_v4  ;;  %v1161_v19 = vld [vmem:[#allocation2 + $0xb8] sm:$0xff] }
 0x15c   : > { %1060 = vst.msk [vmem:[#allocation2 + $0xc8] sm:$0xff] %vm1034_vm2, %v1027_v6  ;;  %v1160_v9 = vld [vmem:[#allocation2 + $0xb0] sm:$0xff] }
 0x15d   : > { %1059 = vst.msk [vmem:[#allocation2 + $0xc0] sm:$0xff] %vm1034_vm2, %v1026_v8  ;;  %1170 = vrot.lane.b32.xlu0 %v1160_v9, %s7629_s10 }
 0x15f   : > { %v7233_v10 = vpop.f32.mrb[52].mxu0 }
 0x160   : > { %v955_v11 = vpop.f32.mrb[53].mxu0 }
 0x161   : > { %v7234_v12 = vpop.f32.mrb[54].mxu0 }
 0x162   : > { %v1029_v13 = vpack.c.bf16 %v7234_v12, %v7233_v10  ;;  %v958_v14 = vpop.f32.mrb[55].mxu0  ;;  %v7351_v10 = vld [vmem:[%s10130_s2] sm:$0xff]   ;;  %v7353_v12 = vld [vmem:[%s10130_s2 + $0x10] sm:$0xff]  }
 0x163   : > { %v1028_v15 = vpack.c.bf16 %v958_v14, %v955_v11  ;;  %v1183_v16 = vld [vmem:[#allocation2 + $0xc8] sm:$0xff]  ;;  %v7355_v14 = vld [vmem:[%s10130_s2 + $0x20] sm:$0xff]  }
 0x164   : > { %1062 = vst.msk [vmem:[#allocation2 + $0xd8] sm:$0xff] %vm1034_vm2, %v1029_v13  ;;  %1192 = vrot.lane.b32.xlu0 %v1183_v16, %s7630_s13  ;;  %v1182_v17 = vld [vmem:[#allocation2 + $0xc0] sm:$0xff]  ;;  %v7352_v11 = vld [vmem:[%s10130_s2 + $0x8] sm:$0xff]   ;;  %v7354_v13 = vld [vmem:[%s10130_s2 + $0x18] sm:$0xff]  }
 0x165   : > { %1061 = vst.msk [vmem:[#allocation2 + $0xd0] sm:$0xff] %vm1034_vm2, %v1028_v15  ;;  %1190 = vrot.lane.b32.xlu1 %v1182_v17, %s7630_s13  ;;  %v7356_v15 = vld [vmem:[%s10130_s2 + $0x28] sm:$0xff]   ;;  %v7357_v16 = vld [vmem:[%s10130_s2 + $0x30] sm:$0xff]   ;;  %v7358_v17 = vld [vmem:[%s10130_s2 + $0x38] sm:$0xff]  }
 0x167   : > { %v7237_v18 = vpop.f32.mrb[56].mxu0 }
 0x168   : > { %1172 = vrot.lane.b32.xlu0 %v1161_v19, %s7629_s10  ;;  %v971_v20 = vpop.f32.mrb[57].mxu0  ;;  %v7360_v19 = vld [vmem:[%s10130_s2 + $0x48] sm:$0xff]  }
 0x169   : > { %1137 = vrot.lane.b32.xlu1 %v1127_v21, %s7631_s14  ;;  %v7238_v22 = vpop.f32.mrb[58].mxu0  ;;  %v7362_v21 = vld [vmem:[%s10130_s2 + $0x58] sm:$0xff]  }
 0x16a   : > { %v1031_v23 = vpack.c.bf16 %v7238_v22, %v7237_v18  ;;  %v974_v24 = vpop.f32.mrb[59].mxu0  ;;  %v7359_v18 = vld [vmem:[%s10130_s2 + $0x40] sm:$0xff]  }
 0x16b   : > { %v1030_v25 = vpack.c.bf16 %v974_v24, %v971_v20  ;;  %v1185_v38 = vld [vmem:[#allocation2 + $0xd8] sm:$0xff]  ;;  %v7361_v20 = vld [vmem:[%s10130_s2 + $0x50] sm:$0xff]   ;;  %v7363_v22 = vld [vmem:[%s10130_s2 + $0x60] sm:$0xff]  }
 0x16c   : > { %1064 = vst.msk [vmem:[#allocation2 + $0xe8] sm:$0xff] %vm1034_vm2, %v1031_v23  ;;  %v1184_v27 = vld [vmem:[#allocation2 + $0xd0] sm:$0xff]  ;;  %v7364_v23 = vld [vmem:[%s10130_s2 + $0x68] sm:$0xff]  }
 0x16d   : > { %1063 = vst.msk [vmem:[#allocation2 + $0xe0] sm:$0xff] %vm1034_vm2, %v1030_v25  ;;  %1089 = vrot.lane.b32.xlu1 %v1078_v26, %s7629_s10  ;;  %1194 = vrot.lane.b32.xlu0 %v1184_v27, %s7630_s13  ;;  %v7365_v24 = vld [vmem:[%s10130_s2 + $0x70] sm:$0xff]   ;;  %v7366_v25 = vld [vmem:[%s10130_s2 + $0x78] sm:$0xff]  }
 0x16e   : > { %v7367_v26 = vld [vmem:[%s10130_s2 + $0x80] sm:$0xff]   ;;  %v7368_v27 = vld [vmem:[%s10130_s2 + $0x88] sm:$0xff]  }
 0x16f   : > { %v7241_v28 = vpop.f32.mrb[60].mxu0 }
 0x170   : > { %v987_v29 = vpop.f32.mrb[61].mxu0 }
 0x171   : > { %1114 = vrot.lane.b32.xlu1 %v1103_v30, %s7630_s13  ;;  %v7242_v31 = vpop.f32.mrb[62].mxu0  ;;  %v7371_v30 = vld [vmem:[%s10130_s2 + $0xa0] sm:$0xff]  }
 0x172   : > { %v1033_v32 = vpack.c.bf16 %v7242_v31, %v7241_v28  ;;  %v990_v33 = vpop.f32.mrb[63].mxu0  ;;  %v7369_v28 = vld [vmem:[%s10130_s2 + $0x90] sm:$0xff]   ;;  %v7372_v31 = vld [vmem:[%s10130_s2 + $0xa8] sm:$0xff]  }
 0x173   : > { %v1032_v34 = vpack.c.bf16 %v990_v33, %v987_v29  ;;  %v1207_v35 = vld [vmem:[#allocation2 + $0xe8] sm:$0xff]  ;;  %v7370_v29 = vld [vmem:[%s10130_s2 + $0x98] sm:$0xff]  }
 0x174   : > { %1066 = vst.msk [vmem:[#allocation2 + $0xf8] sm:$0xff] %vm1034_vm2, %v1033_v32  ;;  %1216 = vrot.lane.b32.xlu0 %v1207_v35, %s7631_s14  ;;  %v1206_v37 = vld [vmem:[#allocation2 + $0xe0] sm:$0xff]  ;;  %v7373_v32 = vld [vmem:[%s10130_s2 + $0xb0] sm:$0xff]   ;;  %v7374_v33 = vld [vmem:[%s10130_s2 + $0xb8] sm:$0xff]  }
 0x175   : > { %1065 = vst.msk [vmem:[#allocation2 + $0xf0] sm:$0xff] %vm1034_vm2, %v1032_v34  ;;  %1139 = vrot.lane.b32.xlu1 %v1128_v36, %s7631_s14  ;;  %v7375_v34 = vld [vmem:[%s10130_s2 + $0xc0] sm:$0xff]  }
 0x178   : > { %1214 = vrot.lane.b32.xlu0 %v1206_v37, %s7631_s14 }
 0x17b   : > { %v1209_v41 = vld [vmem:[#allocation2 + $0xf8] sm:$0xff] }
 0x17c   : > { %1196 = vrot.lane.b32.xlu0 %v1185_v38, %s7630_s13  ;;  %v1208_v39 = vld [vmem:[#allocation2 + $0xf0] sm:$0xff] }
 0x180   : > { %1218 = vrot.lane.b32.xlu0 %v1208_v39, %s7631_s14 }
 0x184   : > { %1220 = vrot.lane.b32.xlu0 %v1209_v41, %s7631_s14 }
 0x186   : > { %v1086_v42 = vpop.permute.xlu1 %1085 }
 0x187   : > { %1097 = vst.msk [vmem:[#allocation3 + $0x10] sm:$0xff] %vm1095_vm3, %v1086_v42  ;;  %v1084_v43 = vpop.permute.xlu0 %1083 }
 0x188   : > { %1096 = vst.msk [vmem:[#allocation3] sm:$0xff] %vm1095_vm3, %v1084_v43 }
 0x18f   : > { %v1088_v44 = vpop.permute.xlu1 %1087 }
 0x190   : > { %1098 = vst.msk [vmem:[#allocation3 + $0x20] sm:$0xff] %vm1095_vm3, %v1088_v44 }
 0x196   : > { %v1111_v45 = vpop.permute.xlu1 %1110 }
 0x197   : > { %1122 = vst.msk [vmem:[#allocation3 + $0x10] sm:$0xff] %vm1120_vm4, %v1111_v45 }
 0x19a   : > { %v1109_v46 = vpop.permute.xlu1 %1108 }
 0x19b   : > { %1121 = vst.msk [vmem:[#allocation3] sm:$0xff] %vm1120_vm4, %v1109_v46 }
 0x19f   : > { %v1113_v47 = vpop.permute.xlu1 %1112 }
 0x1a0   : > { %1123 = vst.msk [vmem:[#allocation3 + $0x20] sm:$0xff] %vm1120_vm4, %v1113_v47 }
 0x1a6   : > { %v1136_v48 = vpop.permute.xlu1 %1135 }
 0x1a7   : > { %1147 = vst.msk [vmem:[#allocation3 + $0x10] sm:$0xff] %vm1145_vm5, %v1136_v48 }
 0x1aa   : > { %v1134_v49 = vpop.permute.xlu1 %1133 }
 0x1ab   : > { %1146 = vst.msk [vmem:[#allocation3] sm:$0xff] %vm1145_vm5, %v1134_v49 }
 0x1ae   : > { %v1282_v5 = vld [vmem:[#allocation3 + $0x10] sm:$0xff] }
 0x1b2   : > { %v1280_v2 = vld [vmem:[#allocation3] sm:$0xff] }
 0x1c6   : > { %v1169_v50 = vpop.permute.xlu0 %1168 }
 0x1c7   : > { %1179 = vst.msk [vmem:[#allocation3 + $0x18] sm:$0xff] %vm1095_vm3, %v1169_v50 }
 0x1ca   : > { %v1167_v51 = vpop.permute.xlu0 %1166 }
 0x1cb   : > { %1178 = vst.msk [vmem:[#allocation3 + $0x8] sm:$0xff] %vm1095_vm3, %v1167_v51 }
 0x1cf   : > { %v1171_v52 = vpop.permute.xlu0 %1170 }
 0x1d0   : > { %1180 = vst.msk [vmem:[#allocation3 + $0x28] sm:$0xff] %vm1095_vm3, %v1171_v52 }
 0x1d6   : > { %v1193_v53 = vpop.permute.xlu0 %1192 }
 0x1d7   : > { %1203 = vst.msk [vmem:[#allocation3 + $0x18] sm:$0xff] %vm1120_vm4, %v1193_v53  ;;  %v1191_v54 = vpop.permute.xlu1 %1190 }
 0x1d8   : > { %1202 = vst.msk [vmem:[#allocation3 + $0x8] sm:$0xff] %vm1120_vm4, %v1191_v54 }
 0x1da   : > { %v1173_v55 = vpop.permute.xlu0 %1172 }
 0x1db   : > { %1181 = vst.msk [vmem:[#allocation3 + $0x38] sm:$0xff] %vm1095_vm3, %v1173_v55  ;;  %v1138_v56 = vpop.permute.xlu1 %1137 }
 0x1dc   : > { %1148 = vst.msk [vmem:[#allocation3 + $0x20] sm:$0xff] %vm1145_vm5, %v1138_v56 }
 0x1df   : > { %v1090_v57 = vpop.permute.xlu1 %1089  ;;  %v1195_v58 = vpop.permute.xlu0 %1194 }
 0x1e0   : > { %1099 = vst.msk [vmem:[#allocation3 + $0x30] sm:$0xff] %vm1095_vm3, %v1090_v57 }
 0x1e1   : > { %1204 = vst.msk [vmem:[#allocation3 + $0x28] sm:$0xff] %vm1120_vm4, %v1195_v58 }
 0x1e3   : > { %v1115_v59 = vpop.permute.xlu1 %1114  ;;  %v1284_v7 = vld [vmem:[#allocation3 + $0x20] sm:$0xff] }
 0x1e4   : > { %1124 = vst.msk [vmem:[#allocation3 + $0x30] sm:$0xff] %vm1120_vm4, %v1115_v59 }
 0x1e6   : > { %v1217_v60 = vpop.permute.xlu0 %1216 }
 0x1e7   : > { %1227 = vst.msk [vmem:[#allocation3 + $0x18] sm:$0xff] %vm1145_vm5, %v1217_v60  ;;  %v1140_v61 = vpop.permute.xlu1 %1139 }
 0x1e8   : > { %1149 = vst.msk [vmem:[#allocation3 + $0x30] sm:$0xff] %vm1145_vm5, %v1140_v61 }
 0x1ea   : > { %v1215_v62 = vpop.permute.xlu0 %1214 }
 0x1eb   : > { %1226 = vst.msk [vmem:[#allocation3 + $0x8] sm:$0xff] %vm1145_vm5, %v1215_v62 }
 0x1ee   : > { %v1197_v63 = vpop.permute.xlu0 %1196  ;;  %v1283_v3 = vld [vmem:[#allocation3 + $0x18] sm:$0xff] }
 0x1ef   : > { %1205 = vst.msk [vmem:[#allocation3 + $0x38] sm:$0xff] %vm1120_vm4, %v1197_v63  ;;  %v1286_v9 = vld [vmem:[#allocation3 + $0x30] sm:$0xff] }
 0x1f2   : > { %v1219_v0 = vpop.permute.xlu0 %1218  ;;  %v1281_v1 = vld [vmem:[#allocation3 + $0x8] sm:$0xff] }
 0x1f3   : > { %1228 = vst.msk [vmem:[#allocation3 + $0x28] sm:$0xff] %vm1145_vm5, %v1219_v0  ;;  %1489 = vmatprep.subr.bf16.mxu1 %v1281_v1 }
 0x1f4   : > { %1490 = vmatpush1.bf16.msra.mxu1 %v1280_v2 }
 0x1f5   : > { %1491 = vmatprep.subr.bf16.mxu1 %v1283_v3 }
 0x1f6   : > { %v1221_v4 = vpop.permute.xlu0 %1220 }
 0x1f7   : > { %1229 = vst.msk [vmem:[#allocation3 + $0x38] sm:$0xff] %vm1145_vm5, %v1221_v4 }
 0x1f8   : > { %1492 = vmatpush1.bf16.msra.mxu1 %v1282_v5 }
 0x1fa   : > { %v1285_v6 = vld [vmem:[#allocation3 + $0x28] sm:$0xff] }
 0x1fb   : > { %1493 = vmatprep.subr.bf16.mxu1 %v1285_v6 }
 0x1fc   : > { %1494 = vmatpush1.bf16.msra.mxu1 %v1284_v7 }
 0x1fe   : > { %v1287_v8 = vld [vmem:[#allocation3 + $0x38] sm:$0xff] }
 0x1ff   : > { %1495 = vmatprep.subr.bf16.mxu1 %v1287_v8 }
 0x200   : > { %1496 = vmatpush1.bf16.msra.mxu1 %v1286_v9 }
 0x203   : > { %6383 = vmatmul.mubr.msk.bf16.vlgmr.msra.gmra.mrb[0].mxu1 %vm1413_vm6, %v7351_v10 }
 0x204   : > { %1531 = vmatprep.mubr.bf16.mxu1 %v7632_v40 }
 0x20b   : > { %6384 = vmatmul.mubr.msk.bf16.gmra.mrb[4].mxu1 %vm1413_vm6, %v7352_v11 }
 0x20c   : > { %1541 = vmatprep.mubr.bf16.mxu1 %v7632_v40 }
 0x213   : > { %6385 = vmatmul.mubr.msk.bf16.gmra.mrb[8].mxu1 %vm1413_vm6, %v7353_v12 }
 0x214   : > { %1551 = vmatprep.mubr.bf16.mxu1 %v7632_v40 }
 0x21b   : > { %6386 = vmatmul.mubr.msk.bf16.gmra.mrb[12].mxu1 %vm1413_vm6, %v7354_v13 }
 0x21c   : > { %1561 = vmatprep.mubr.bf16.mxu1 %v7632_v40 }
 0x223   : > { %6387 = vmatmul.mubr.msk.bf16.gmra.mrb[16].mxu1 %vm1413_vm6, %v7355_v14 }
 0x224   : > { %1571 = vmatprep.mubr.bf16.mxu1 %v7632_v40 }
 0x22b   : > { %6388 = vmatmul.mubr.msk.bf16.gmra.mrb[20].mxu1 %vm1413_vm6, %v7356_v15 }
 0x22c   : > { %1581 = vmatprep.mubr.bf16.mxu1 %v7632_v40 }
 0x233   : > { %6389 = vmatmul.mubr.msk.bf16.gmra.mrb[24].mxu1 %vm1413_vm6, %v7357_v16 }
 0x234   : > { %1591 = vmatprep.mubr.bf16.mxu1 %v7632_v40 }
 0x23b   : > { %6390 = vmatmul.mubr.msk.bf16.gmra.mrb[28].mxu1 %vm1413_vm6, %v7358_v17 }
 0x23c   : > { %1601 = vmatprep.mubr.bf16.mxu1 %v7632_v40 }
 0x243   : > { %6391 = vmatmul.mubr.msk.bf16.gmra.mrb[32].mxu1 %vm1413_vm6, %v7359_v18 }
 0x244   : > { %1611 = vmatprep.mubr.bf16.mxu1 %v7632_v40 }
 0x24b   : > { %6392 = vmatmul.mubr.msk.bf16.gmra.mrb[36].mxu1 %vm1413_vm6, %v7360_v19 }
 0x24c   : > { %1621 = vmatprep.mubr.bf16.mxu1 %v7632_v40 }
 0x253   : > { %6393 = vmatmul.mubr.msk.bf16.gmra.mrb[40].mxu1 %vm1413_vm6, %v7361_v20 }
 0x254   : > { %1631 = vmatprep.mubr.bf16.mxu1 %v7632_v40 }
 0x25b   : > { %6394 = vmatmul.mubr.msk.bf16.gmra.mrb[44].mxu1 %vm1413_vm6, %v7362_v21 }
 0x25c   : > { %1641 = vmatprep.mubr.bf16.mxu1 %v7632_v40 }
 0x263   : > { %6395 = vmatmul.mubr.msk.bf16.gmra.mrb[48].mxu1 %vm1413_vm6, %v7363_v22 }
 0x264   : > { %1651 = vmatprep.mubr.bf16.mxu1 %v7632_v40 }
 0x26b   : > { %6396 = vmatmul.mubr.msk.bf16.gmra.mrb[52].mxu1 %vm1413_vm6, %v7364_v23 }
 0x26c   : > { %1661 = vmatprep.mubr.bf16.mxu1 %v7632_v40 }
 0x273   : > { %6397 = vmatmul.mubr.msk.bf16.gmra.mrb[56].mxu1 %vm1413_vm6, %v7365_v24 }
 0x274   : > { %1671 = vmatprep.mubr.bf16.mxu1 %v7632_v40 }
 0x27b   : > { %6398 = vmatmul.mubr.msk.bf16.gmra.mrb[60].mxu1 %vm1413_vm6, %v7366_v25 }
 0x27c   : > { %1681 = vmatprep.mubr.bf16.mxu1 %v7632_v40 }
 0x283   : > { %6399 = vmatmul.mubr.msk.bf16.gmra.mrb[64].mxu1 %vm1413_vm6, %v7367_v26  ;;  %v7376_v26 = vld [vmem:[%s10131_s3 + $0x40] sm:$0xff]  }
 0x284   : > { %1691 = vmatprep.mubr.bf16.mxu1 %v7632_v40  ;;  %6784 = vmatprep.subr.bf16.mxu0 %v7376_v26 }
 0x28b   : > { %6400 = vmatmul.mubr.msk.bf16.gmra.mrb[68].mxu1 %vm1413_vm6, %v7368_v27 }
 0x28c   : > { %1701 = vmatprep.mubr.bf16.mxu1 %v7632_v40 }
 0x293   : > { %6401 = vmatmul.mubr.msk.bf16.gmra.mrb[72].mxu1 %vm1413_vm6, %v7369_v28  ;;  %v7377_v28 = vld [vmem:[%s10131_s3] sm:$0xff]  }
 0x294   : > { %1711 = vmatprep.mubr.bf16.mxu1 %v7632_v40  ;;  %6785 = vmatpush3.bf16.msra.mxu0 %v7377_v28 }
 0x29b   : > { %6402 = vmatmul.mubr.msk.bf16.gmra.mrb[76].mxu1 %vm1413_vm6, %v7370_v29 }
 0x29c   : > { %1721 = vmatprep.mubr.bf16.mxu1 %v7632_v40 }
 0x2a3   : > { %6403 = vmatmul.mubr.msk.bf16.gmra.mrb[80].mxu1 %vm1413_vm6, %v7371_v30 }
 0x2a4   : > { %1731 = vmatprep.mubr.bf16.mxu1 %v7632_v40 }
 0x2ab   : > { %6404 = vmatmul.mubr.msk.bf16.gmra.mrb[84].mxu1 %vm1413_vm6, %v7372_v31 }
 0x2ac   : > { %1741 = vmatprep.mubr.bf16.mxu1 %v7632_v40 }
 0x2b3   : > { %6405 = vmatmul.mubr.msk.bf16.gmra.mrb[88].mxu1 %vm1413_vm6, %v7373_v32 }
 0x2b4   : > { %1751 = vmatprep.mubr.bf16.mxu1 %v7632_v40 }
 0x2bb   : > { %6406 = vmatmul.mubr.msk.bf16.gmra.mrb[92].mxu1 %vm1413_vm6, %v7374_v33  ;;  %v7378_v33 = vld [vmem:[%s10131_s3 + $0x48] sm:$0xff]  }
 0x2bc   : > { %1761 = vmatprep.mubr.bf16.mxu1 %v7632_v40  ;;  %6786 = vmatprep.subr.bf16.mxu0 %v7378_v33 }
 0x2c3   : > { %6407 = vmatmul.mubr.msk.bf16.gmra.mrb[96].mxu1 %vm1413_vm6, %v7375_v34 }
 0x2d6   : > { %v1523_v35 = vpop.f32.mrb[0].mxu1 }
 0x2d7   : > { %v1525_v36 = vpop.f32.mrb[1].mxu1 }
 0x2d8   : > { %v1527_v37 = vpop.f32.mrb[2].mxu1 }
 0x2d9   : > { %v1772_v38 = vpack.c.bf16 %v1527_v37, %v1523_v35  ;;  %v1529_v39 = vpop.f32.mrb[3].mxu1  ;;  %v7379_v35 = vld [vmem:[%s10131_s3 + $0xc0] sm:$0xff]  }
 0x2da   : > { %v1773_v41 = vpack.c.bf16 %v1529_v39, %v1525_v36  ;;  %v7380_v36 = vld [vmem:[%s10131_s3 + $0x8] sm:$0xff]   ;;  %v7381_v37 = vld [vmem:[%s10131_s3 + $0x80] sm:$0xff]   ;;  %6848 = vmatprep.subr.bf16.mxu1 %v7379_v35 }
 0x2db   : > { %1874 = vst.msk [vmem:[#allocation5] sm:$0xff] %vm1034_vm2, %v1772_v38  ;;  %1876 = vrot.lane.b32.xlu1 %v1772_v38, %s7631_s14  ;;  %6787 = vmatpush3.bf16.msra.mxu0 %v7380_v36 }
 0x2dc   : > { %1888 = vst.msk [vmem:[#allocation5 + $0xe0] sm:$0xff] %vm1034_vm2, %v1773_v41  ;;  %6849 = vmatpush3.bf16.msra.mxu1 %v7381_v37 }
 0x2de   : > { %v1533_v42 = vpop.f32.mrb[4].mxu1 }
 0x2df   : > { %1880 = vrot.lane.b32.xlu1 %v1772_v38, %s7630_s13  ;;  %v1535_v43 = vpop.f32.mrb[5].mxu1 }
 0x2e0   : > { %v1537_v44 = vpop.f32.mrb[6].mxu1 }
 0x2e1   : > { %v8007_v45 = vpack.c.bf16 %v1537_v44, %v1533_v42  ;;  %v1539_v46 = vpop.f32.mrb[7].mxu1 }
 0x2e2   : > { %v8009_v47 = vpack.c.bf16 %v1539_v46, %v1535_v43 }
 0x2e3   : > { %1884 = vrot.lane.b32.xlu1 %v1772_v38, %s7629_s10  ;;  %v7382_v38 = vld [vmem:[%s10131_s3 + $0x50] sm:$0xff]  }
 0x2e4   : > { %6788 = vmatprep.subr.bf16.mxu0 %v7382_v38 }
 0x2e6   : > { %v1543_v48 = vpop.f32.mrb[8].mxu1 }
 0x2e7   : > { %1890 = vrot.lane.b32.xlu1 %v1773_v41, %s7631_s14  ;;  %v1545_v49 = vpop.f32.mrb[9].mxu1 }
 0x2e8   : > { %v1547_v50 = vpop.f32.mrb[10].mxu1 }
 0x2e9   : > { %v8013_v51 = vpack.c.bf16 %v1547_v50, %v1543_v48  ;;  %v1549_v52 = vpop.f32.mrb[11].mxu1  ;;  %v7384_v48 = vld [vmem:[%s10131_s3 + $0x58] sm:$0xff]  }
 0x2ea   : > { %v8015_v53 = vpack.c.bf16 %v1549_v52, %v1545_v49  ;;  %v7385_v50 = vld [vmem:[%s10131_s3 + $0x18] sm:$0xff]   ;;  %v7386_v52 = vld [vmem:[%s10131_s3 + $0x60] sm:$0xff]  }
 0x2eb   : > { %1894 = vrot.lane.b32.xlu1 %v1773_v41, %s7630_s13 }
 0x2ee   : > { %v1553_v54 = vpop.f32.mrb[12].mxu1 }
 0x2ef   : > { %1898 = vrot.lane.b32.xlu1 %v1773_v41, %s7629_s10  ;;  %v1555_v55 = vpop.f32.mrb[13].mxu1  ;;  %v7383_v41 = vld [vmem:[%s10131_s3 + $0x10] sm:$0xff]  }
 0x2f0   : > { %v1557_v56 = vpop.f32.mrb[14].mxu1  ;;  %6789 = vmatpush3.bf16.msra.mxu0 %v7383_v41 }
 0x2f1   : > { %v8019_v57 = vpack.c.bf16 %v1557_v56, %v1553_v54  ;;  %v1559_v58 = vpop.f32.mrb[15].mxu1  ;;  %6790 = vmatprep.subr.bf16.mxu0 %v7384_v48  ;;  %v7397_v48 = vld [vmem:[%s10131_s3 + $0x90] sm:$0xff]  }
 0x2f2   : > { %v8021_v59 = vpack.c.bf16 %v1559_v58, %v1555_v55  ;;  %v7387_v55 = vld [vmem:[%s10131_s3 + $0x20] sm:$0xff]  }
 0x2f3   : > { %1905 = vrot.lane.b32.xlu1 %v8007_v45, %s7629_s10 }
 0x2f4   : > { %6791 = vmatpush3.bf16.msra.mxu0 %v7385_v50 }
 0x2f5   : > { %6792 = vmatprep.subr.bf16.mxu0 %v7386_v52 }
 0x2f6   : > { %v1563_v60 = vpop.f32.mrb[16].mxu1 }
 0x2f7   : > { %1910 = vrot.lane.b32.xlu1 %v8007_v45, %s7631_s14  ;;  %v1565_v61 = vpop.f32.mrb[17].mxu1 }
 0x2f8   : > { %v1567_v62 = vpop.f32.mrb[18].mxu1  ;;  %6793 = vmatpush3.bf16.msra.mxu0 %v7387_v55 }
 0x2f9   : > { %v1780_v63 = vpack.c.bf16 %v1567_v62, %v1563_v60  ;;  %v1569_v0 = vpop.f32.mrb[19].mxu1  ;;  %v7388_v62 = vld [vmem:[%s10131_s3 + $0x68] sm:$0xff]  }
 0x2fa   : > { %v1781_v1 = vpack.c.bf16 %v1569_v0, %v1565_v61  ;;  %v7389_v0 = vld [vmem:[%s10131_s3 + $0x28] sm:$0xff]   ;;  %6794 = vmatprep.subr.bf16.mxu0 %v7388_v62 }
 0x2fb   : > { %1994 = vst.msk [vmem:[#allocation5 + $0x8] sm:$0xff] %vm1034_vm2, %v1780_v63  ;;  %1914 = vrot.lane.b32.xlu1 %v8007_v45, %s7630_s13  ;;  %1996 = vrot.lane.b32.xlu0 %v1780_v63, %s7631_s14 }
 0x2fc   : > { %2008 = vst.msk [vmem:[#allocation5 + $0xe8] sm:$0xff] %vm1034_vm2, %v1781_v1  ;;  %6795 = vmatpush3.bf16.msra.mxu0 %v7389_v0 }
 0x2fe   : > { %v1573_v2 = vpop.f32.mrb[20].mxu1 }
 0x2ff   : > { %1919 = vrot.lane.b32.xlu1 %v8009_v47, %s7629_s10  ;;  %2000 = vrot.lane.b32.xlu0 %v1780_v63, %s7630_s13  ;;  %v1575_v3 = vpop.f32.mrb[21].mxu1 }
 0x300   : > { %v1577_v4 = vpop.f32.mrb[22].mxu1 }
 0x301   : > { %v8035_v5 = vpack.c.bf16 %v1577_v4, %v1573_v2  ;;  %v1579_v6 = vpop.f32.mrb[23].mxu1 }
 0x302   : > { %v8037_v7 = vpack.c.bf16 %v1579_v6, %v1575_v3  ;;  %v7391_v3 = vld [vmem:[%s10131_s3 + $0x30] sm:$0xff]  }
 0x303   : > { %1924 = vrot.lane.b32.xlu1 %v8009_v47, %s7631_s14  ;;  %2004 = vrot.lane.b32.xlu0 %v1780_v63, %s7629_s10 }
 0x306   : > { %v1583_v8 = vpop.f32.mrb[24].mxu1 }
 0x307   : > { %1928 = vrot.lane.b32.xlu1 %v8009_v47, %s7630_s13  ;;  %2010 = vrot.lane.b32.xlu0 %v1781_v1, %s7631_s14  ;;  %v1585_v9 = vpop.f32.mrb[25].mxu1 }
 0x308   : > { %v1587_v10 = vpop.f32.mrb[26].mxu1 }
 0x309   : > { %v8045_v11 = vpack.c.bf16 %v1587_v10, %v1583_v8  ;;  %v1589_v12 = vpop.f32.mrb[27].mxu1  ;;  %v7392_v10 = vld [vmem:[%s10131_s3 + $0x78] sm:$0xff]  }
 0x30a   : > { %v8047_v13 = vpack.c.bf16 %v1589_v12, %v1585_v9 }
 0x30b   : > { %1935 = vrot.lane.b32.xlu1 %v8013_v51, %s7630_s13  ;;  %2014 = vrot.lane.b32.xlu0 %v1781_v1, %s7630_s13 }
 0x30e   : > { %v1593_v14 = vpop.f32.mrb[28].mxu1 }
 0x30f   : > { %1939 = vrot.lane.b32.xlu1 %v8013_v51, %s7629_s10  ;;  %2018 = vrot.lane.b32.xlu0 %v1781_v1, %s7629_s10  ;;  %v1595_v15 = vpop.f32.mrb[29].mxu1  ;;  %v7390_v1 = vld [vmem:[%s10131_s3 + $0x70] sm:$0xff]  }
 0x310   : > { %v1597_v16 = vpop.f32.mrb[30].mxu1  ;;  %6796 = vmatprep.subr.bf16.mxu0 %v7390_v1 }
 0x311   : > { %v8055_v17 = vpack.c.bf16 %v1597_v16, %v1593_v14  ;;  %v1599_v18 = vpop.f32.mrb[31].mxu1  ;;  %6797 = vmatpush3.bf16.msra.mxu0 %v7391_v3  ;;  %v7393_v14 = vld [vmem:[%s10131_s3 + $0x38] sm:$0xff]   ;;  %v7395_v16 = vld [vmem:[%s10131_s3 + $0x88] sm:$0xff]  }
 0x312   : > { %v8057_v19 = vpack.c.bf16 %v1599_v18, %v1595_v15  ;;  %v7394_v15 = vld [vmem:[%s10131_s3 + $0xc8] sm:$0xff]   ;;  %6798 = vmatprep.subr.bf16.mxu0 %v7392_v10 }
 0x313   : > { %1944 = vrot.lane.b32.xlu1 %v8013_v51, %s7631_s14  ;;  %2025 = vrot.lane.b32.xlu0 %v8035_v5, %s7629_s10 }
 0x314   : > { %6850 = vmatprep.subr.bf16.mxu1 %v7394_v15 }
 0x315   : > { %6799 = vmatpush3.bf16.msra.mxu0 %v7393_v14  ;;  %6851 = vmatpush3.bf16.msra.mxu1 %v7395_v16 }
 0x316   : > { %v1603_v20 = vpop.f32.mrb[32].mxu1 }
 0x317   : > { %1949 = vrot.lane.b32.xlu1 %v8015_v53, %s7630_s13  ;;  %2030 = vrot.lane.b32.xlu0 %v8035_v5, %s7631_s14  ;;  %v1605_v21 = vpop.f32.mrb[33].mxu1 }
 0x318   : > { %v1607_v22 = vpop.f32.mrb[34].mxu1 }
 0x319   : > { %v8067_v23 = vpack.c.bf16 %v1607_v22, %v1603_v20  ;;  %v1609_v24 = vpop.f32.mrb[35].mxu1 }
 0x31a   : > { %v8069_v25 = vpack.c.bf16 %v1609_v24, %v1605_v21 }
 0x31b   : > { %1953 = vrot.lane.b32.xlu1 %v8015_v53, %s7629_s10  ;;  %2034 = vrot.lane.b32.xlu0 %v8035_v5, %s7630_s13  ;;  %2114 = vst.msk [vmem:[#allocation5 + $0x10] sm:$0xff] %vm1034_vm2, %v8067_v23 }
 0x31c   : > { %2128 = vst.msk [vmem:[#allocation5 + $0xf0] sm:$0xff] %vm1034_vm2, %v8069_v25 }
 0x31e   : > { %v1613_v27 = vpop.f32.mrb[36].mxu1 }
 0x31f   : > { %1958 = vrot.lane.b32.xlu1 %v8015_v53, %s7631_s14  ;;  %2039 = vrot.lane.b32.xlu0 %v8037_v7, %s7629_s10  ;;  %v1615_v29 = vpop.f32.mrb[37].mxu1 }
 0x320   : > { %v1617_v30 = vpop.f32.mrb[38].mxu1 }
 0x321   : > { %v8089_v31 = vpack.c.bf16 %v1617_v30, %v1613_v27  ;;  %v1619_v32 = vpop.f32.mrb[39].mxu1 }
 0x322   : > { %v8094_v34 = vpack.c.bf16 %v1619_v32, %v1615_v29 }
 0x323   : > { %1965 = vrot.lane.b32.xlu1 %v8019_v57, %s7631_s14  ;;  %2044 = vrot.lane.b32.xlu0 %v8037_v7, %s7631_s14 }
 0x326   : > { %v1623_v39 = vpop.f32.mrb[40].mxu1 }
 0x327   : > { %1969 = vrot.lane.b32.xlu1 %v8019_v57, %s7630_s13  ;;  %2048 = vrot.lane.b32.xlu0 %v8037_v7, %s7630_s13  ;;  %v1625_v42 = vpop.f32.mrb[41].mxu1 }
 0x328   : > { %v1627_v43 = vpop.f32.mrb[42].mxu1 }
 0x329   : > { %v8119_v44 = vpack.c.bf16 %v1627_v43, %v1623_v39  ;;  %v1629_v46 = vpop.f32.mrb[43].mxu1 }
 0x32a   : > { %v8124_v49 = vpack.c.bf16 %v1629_v46, %v1625_v42 }
 0x32b   : > { %1973 = vrot.lane.b32.xlu1 %v8019_v57, %s7629_s10  ;;  %2055 = vrot.lane.b32.xlu0 %v8045_v11, %s7630_s13 }
 0x32e   : > { %v1633_v54 = vpop.f32.mrb[44].mxu1 }
 0x32f   : > { %1979 = vrot.lane.b32.xlu1 %v8021_v59, %s7631_s14  ;;  %2059 = vrot.lane.b32.xlu0 %v8045_v11, %s7629_s10  ;;  %v1635_v56 = vpop.f32.mrb[45].mxu1 }
 0x330   : > { %v1637_v58 = vpop.f32.mrb[46].mxu1 }
 0x331   : > { %v8143_v60 = vpack.c.bf16 %v1637_v58, %v1633_v54  ;;  %v1639_v61 = vpop.f32.mrb[47].mxu1 }
 0x332   : > { %v8148_v63 = vpack.c.bf16 %v1639_v61, %v1635_v56 }
 0x333   : > { %1983 = vrot.lane.b32.xlu1 %v8021_v59, %s7630_s13  ;;  %2064 = vrot.lane.b32.xlu0 %v8045_v11, %s7631_s14 }
 0x336   : > { %v1643_v2 = vpop.f32.mrb[48].mxu1 }
 0x337   : > { %1987 = vrot.lane.b32.xlu1 %v8021_v59, %s7629_s10  ;;  %2069 = vrot.lane.b32.xlu0 %v8047_v13, %s7630_s13  ;;  %v1645_v4 = vpop.f32.mrb[49].mxu1 }
 0x338   : > { %v1647_v6 = vpop.f32.mrb[50].mxu1 }
 0x339   : > { %v8167_v8 = vpack.c.bf16 %v1647_v6, %v1643_v2  ;;  %v1649_v9 = vpop.f32.mrb[51].mxu1 }
 0x33a   : > { %v8172_v12 = vpack.c.bf16 %v1649_v9, %v1645_v4 }
 0x33b   : > { %2073 = vrot.lane.b32.xlu0 %v8047_v13, %s7629_s10  ;;  %2116 = vrot.lane.b32.xlu1 %v8067_v23, %s7631_s14  ;;  %2234 = vst.msk [vmem:[#allocation5 + $0x18] sm:$0xff] %vm1034_vm2, %v8167_v8 }
 0x33c   : > { %2248 = vst.msk [vmem:[#allocation5 + $0xf8] sm:$0xff] %vm1034_vm2, %v8172_v12 }
 0x33e   : > { %v1653_v18 = vpop.f32.mrb[52].mxu1 }
 0x33f   : > { %2078 = vrot.lane.b32.xlu0 %v8047_v13, %s7631_s14  ;;  %2120 = vrot.lane.b32.xlu1 %v8067_v23, %s7630_s13  ;;  %v1655_v20 = vpop.f32.mrb[53].mxu1 }
 0x340   : > { %v1657_v21 = vpop.f32.mrb[54].mxu1 }
 0x341   : > { %v8195_v22 = vpack.c.bf16 %v1657_v21, %v1653_v18  ;;  %v1659_v24 = vpop.f32.mrb[55].mxu1 }
 0x342   : > { %v8197_v26 = vpack.c.bf16 %v1659_v24, %v1655_v20 }
 0x343   : > { %2085 = vrot.lane.b32.xlu0 %v8055_v17, %s7631_s14  ;;  %2124 = vrot.lane.b32.xlu1 %v8067_v23, %s7629_s10 }
 0x346   : > { %v1663_v27 = vpop.f32.mrb[56].mxu1 }
 0x347   : > { %2089 = vrot.lane.b32.xlu0 %v8055_v17, %s7630_s13  ;;  %2130 = vrot.lane.b32.xlu1 %v8069_v25, %s7631_s14  ;;  %v1665_v28 = vpop.f32.mrb[57].mxu1 }
 0x348   : > { %v1667_v29 = vpop.f32.mrb[58].mxu1 }
 0x349   : > { %v8207_v30 = vpack.c.bf16 %v1667_v29, %v1663_v27  ;;  %v1669_v32 = vpop.f32.mrb[59].mxu1  ;;  %v7399_v29 = vld [vmem:[%s10131_s3 + $0x98] sm:$0xff]  }
 0x34a   : > { %v8209_v33 = vpack.c.bf16 %v1669_v32, %v1665_v28  ;;  %v7398_v28 = vld [vmem:[%s10131_s3 + $0xd8] sm:$0xff]  }
 0x34b   : > { %2093 = vrot.lane.b32.xlu0 %v8055_v17, %s7629_s10  ;;  %2145 = vrot.lane.b32.xlu1 %v8089_v31, %s7629_s10 }
 0x34d   : > { %v1877_v23 = vpop.permute.xlu1 %1876 }
 0x34e   : > { %1879 = vst.msk [vmem:[#allocation5 + $0x38] sm:$0xff] %vm1034_vm2, %v1877_v23  ;;  %v1673_v35 = vpop.f32.mrb[60].mxu1 }
 0x34f   : > { %1909 = vst.msk [vmem:[#allocation5 + $0x38] sm:$0xff] %vm1095_vm3, %v8007_v45  ;;  %2099 = vrot.lane.b32.xlu0 %v8057_v19, %s7631_s14  ;;  %2159 = vrot.lane.b32.xlu1 %v8094_v34, %s7629_s10  ;;  %v1675_v36 = vpop.f32.mrb[61].mxu1  ;;  %v7396_v45 = vld [vmem:[%s10131_s3 + $0xd0] sm:$0xff]  }
 0x350   : > { %v1677_v37 = vpop.f32.mrb[62].mxu1  ;;  %6852 = vmatprep.subr.bf16.mxu1 %v7396_v45 }
 0x351   : > { %v1881_v38 = vpop.permute.xlu1 %1880  ;;  %v8222_v39 = vpack.c.bf16 %v1677_v37, %v1673_v35  ;;  %v1679_v41 = vpop.f32.mrb[63].mxu1  ;;  %6853 = vmatpush3.bf16.msra.mxu1 %v7397_v48 }
 0x352   : > { %1883 = vst.msk [vmem:[#allocation5 + $0x70] sm:$0xff] %vm1034_vm2, %v1881_v38  ;;  %v8225_v42 = vpack.c.bf16 %v1679_v41, %v1675_v36  ;;  %6854 = vmatprep.subr.bf16.mxu1 %v7398_v28 }
 0x353   : > { %2103 = vrot.lane.b32.xlu0 %v8057_v19, %s7630_s13  ;;  %2179 = vrot.lane.b32.xlu1 %v8119_v44, %s7629_s10 }
 0x355   : > { %v1885_v43 = vpop.permute.xlu1 %1884  ;;  %6855 = vmatpush3.bf16.msra.mxu1 %v7399_v29 }
 0x356   : > { %1887 = vst.msk [vmem:[#allocation5 + $0xa8] sm:$0xff] %vm1034_vm2, %v1885_v43  ;;  %v1683_v46 = vpop.f32.mrb[64].mxu1 }
 0x357   : > { %2107 = vrot.lane.b32.xlu0 %v8057_v19, %s7629_s10  ;;  %2193 = vrot.lane.b32.xlu1 %v8124_v49, %s7629_s10  ;;  %v1685_v50 = vpop.f32.mrb[65].mxu1 }
 0x358   : > { %v1687_v52 = vpop.f32.mrb[66].mxu1 }
 0x359   : > { %v1891_v54 = vpop.permute.xlu1 %1890  ;;  %v8242_v55 = vpack.c.bf16 %v1687_v52, %v1683_v46  ;;  %v1689_v56 = vpop.f32.mrb[67].mxu1 }
 0x35a   : > { %1893 = vst.msk [vmem:[#allocation5 + $0x118] sm:$0xff] %vm1034_vm2, %v1891_v54  ;;  %v8245_v58 = vpack.c.bf16 %v1689_v56, %v1685_v50 }
 0x35b   : > { %1923 = vst.msk [vmem:[#allocation5 + $0x118] sm:$0xff] %vm1095_vm3, %v8009_v47  ;;  %2150 = vrot.lane.b32.xlu0 %v8089_v31, %s7631_s14  ;;  %2213 = vrot.lane.b32.xlu1 %v8143_v60, %s7629_s10 }
 0x35c   : > { %2354 = vst.msk [vmem:[#allocation5 + $0x20] sm:$0xff] %vm1034_vm2, %v8242_v55  ;;  %2368 = vst.msk [vmem:[#allocation5 + $0x100] sm:$0xff] %vm1034_vm2, %v8245_v58 }
 0x35d   : > { %v1895_v61 = vpop.permute.xlu1 %1894 }
 0x35e   : > { %1897 = vst.msk [vmem:[#allocation5 + $0x150] sm:$0xff] %vm1034_vm2, %v1895_v61  ;;  %v1693_v62 = vpop.f32.mrb[68].mxu1 }
 0x35f   : > { %2154 = vrot.lane.b32.xlu0 %v8089_v31, %s7630_s13  ;;  %2299 = vrot.lane.b32.xlu1 %v8207_v30, %s7629_s10  ;;  %v1695_v47 = vpop.f32.mrb[69].mxu1 }
 0x360   : > { %v1697_v0 = vpop.f32.mrb[70].mxu1 }
 0x361   : > { %v1899_v1 = vpop.permute.xlu1 %1898  ;;  %v8262_v2 = vpack.c.bf16 %v1697_v0, %v1693_v62  ;;  %v1699_v3 = vpop.f32.mrb[71].mxu1 }
 0x362   : > { %1901 = vst.msk [vmem:[#allocation5 + $0x188] sm:$0xff] %vm1034_vm2, %v1899_v1  ;;  %v8265_v4 = vpack.c.bf16 %v1699_v3, %v1695_v47 }
 0x363   : > { %2175 = vrot.lane.b32.xlu0 %v8119_v44, %s7630_s13  ;;  %2304 = vrot.lane.b32.xlu1 %v8207_v30, %s7631_s14 }
 0x365   : > { %v1906_v6 = vpop.permute.xlu1 %1905 }
 0x366   : > { %1908 = vst.msk [vmem:[#allocation5] sm:$0xff] %vm1095_vm3, %v1906_v6  ;;  %v1703_v9 = vpop.f32.mrb[72].mxu1 }
 0x367   : > { %2184 = vrot.lane.b32.xlu0 %v8119_v44, %s7631_s14  ;;  %2313 = vrot.lane.b32.xlu1 %v8209_v33, %s7629_s10  ;;  %v1705_v10 = vpop.f32.mrb[73].mxu1 }
 0x368   : > { %v1707_v14 = vpop.f32.mrb[74].mxu1 }
 0x369   : > { %v1911_v15 = vpop.permute.xlu1 %1910  ;;  %v8276_v16 = vpack.c.bf16 %v1707_v14, %v1703_v9  ;;  %v1709_v18 = vpop.f32.mrb[75].mxu1 }
 0x36a   : > { %1913 = vst.msk [vmem:[#allocation5 + $0x70] sm:$0xff] %vm1095_vm3, %v1911_v15  ;;  %v8279_v20 = vpack.c.bf16 %v1709_v18, %v1705_v10  ;;  %v7400_v18 = vld [vmem:[%s10131_s3 + $0xe0] sm:$0xff]  }
 0x36b   : > { %1943 = vst.msk [vmem:[#allocation5 + $0x70] sm:$0xff] %vm1120_vm4, %v8013_v51  ;;  %2189 = vrot.lane.b32.xlu0 %v8124_v49, %s7630_s13  ;;  %2325 = vrot.lane.b32.xlu1 %v8222_v39, %s7631_s14 }
 0x36c   : > { %6856 = vmatprep.subr.bf16.mxu1 %v7400_v18 }
 0x36d   : > { %v1915_v21 = vpop.permute.xlu1 %1914  ;;  %v1997_v24 = vpop.permute.xlu0 %1996 }
 0x36e   : > { %1917 = vst.msk [vmem:[#allocation5 + $0xa8] sm:$0xff] %vm1095_vm3, %v1915_v21  ;;  %v1713_v27 = vpop.f32.mrb[76].mxu1 }
 0x36f   : > { %1999 = vst.msk [vmem:[#allocation5 + $0x40] sm:$0xff] %vm1034_vm2, %v1997_v24  ;;  %2205 = vrot.lane.b32.xlu0 %v8143_v60, %s7631_s14  ;;  %2333 = vrot.lane.b32.xlu1 %v8222_v39, %s7629_s10  ;;  %v1715_v51 = vpop.f32.mrb[77].mxu1  ;;  %v7401_v24 = vld [vmem:[%s10131_s3 + $0xa0] sm:$0xff]  }
 0x370   : > { %2029 = vst.msk [vmem:[#allocation5 + $0x40] sm:$0xff] %vm1095_vm3, %v8035_v5  ;;  %v1717_v32 = vpop.f32.mrb[78].mxu1  ;;  %6857 = vmatpush3.bf16.msra.mxu1 %v7401_v24 }
 0x371   : > { %v1920_v23 = vpop.permute.xlu1 %1919  ;;  %v2001_v35 = vpop.permute.xlu0 %2000  ;;  %v8301_v36 = vpack.c.bf16 %v1717_v32, %v1713_v27 }
 0x372   : > { %1922 = vst.msk [vmem:[#allocation5 + $0xe0] sm:$0xff] %vm1095_vm3, %v1920_v23  ;;  %v1719_v5 = vpop.f32.mrb[79].mxu1 }
 0x373   : > { %2003 = vst.msk [vmem:[#allocation5 + $0x78] sm:$0xff] %vm1034_vm2, %v2001_v35  ;;  %2209 = vrot.lane.b32.xlu0 %v8143_v60, %s7630_s13  ;;  %2339 = vrot.lane.b32.xlu1 %v8225_v42, %s7631_s14  ;;  %v8309_v37 = vpack.c.bf16 %v1719_v5, %v1715_v51 }
 0x375   : > { %v1925_v38 = vpop.permute.xlu1 %1924  ;;  %v2005_v41 = vpop.permute.xlu0 %2004 }
 0x376   : > { %1927 = vst.msk [vmem:[#allocation5 + $0x150] sm:$0xff] %vm1095_vm3, %v1925_v38  ;;  %v1723_v45 = vpop.f32.mrb[80].mxu1 }
 0x377   : > { %2007 = vst.msk [vmem:[#allocation5 + $0xb0] sm:$0xff] %vm1034_vm2, %v2005_v41  ;;  %2219 = vrot.lane.b32.xlu0 %v8148_v63, %s7631_s14  ;;  %2360 = vrot.lane.b32.xlu1 %v8242_v55, %s7630_s13  ;;  %v1725_v43 = vpop.f32.mrb[81].mxu1 }
 0x378   : > { %1957 = vst.msk [vmem:[#allocation5 + $0x150] sm:$0xff] %vm1120_vm4, %v8015_v53  ;;  %v1727_v46 = vpop.f32.mrb[82].mxu1 }
 0x379   : > { %v1929_v48 = vpop.permute.xlu1 %1928  ;;  %v2011_v50 = vpop.permute.xlu0 %2010  ;;  %v8319_v52 = vpack.c.bf16 %v1727_v46, %v1723_v45 }
 0x37a   : > { %1931 = vst.msk [vmem:[#allocation5 + $0x188] sm:$0xff] %vm1095_vm3, %v1929_v48  ;;  %v1729_v54 = vpop.f32.mrb[83].mxu1  ;;  %v7402_v48 = vld [vmem:[%s10131_s3 + $0xe8] sm:$0xff]  }
 0x37b   : > { %2013 = vst.msk [vmem:[#allocation5 + $0x120] sm:$0xff] %vm1034_vm2, %v2011_v50  ;;  %2223 = vrot.lane.b32.xlu0 %v8148_v63, %s7630_s13  ;;  %2394 = vrot.lane.b32.xlu1 %v8262_v2, %s7630_s13  ;;  %2474 = vst.msk [vmem:[#allocation5 + $0x28] sm:$0xff] %vm1034_vm2, %v8319_v52  ;;  %v8331_v53 = vpack.c.bf16 %v1729_v54, %v1725_v43  ;;  %v7403_v50 = vld [vmem:[%s10131_s3 + $0xa8] sm:$0xff]  }
 0x37c   : > { %2043 = vst.msk [vmem:[#allocation5 + $0x120] sm:$0xff] %vm1095_vm3, %v8037_v7  ;;  %6858 = vmatprep.subr.bf16.mxu1 %v7402_v48 }
 0x37d   : > { %v1936_v56 = vpop.permute.xlu1 %1935  ;;  %v2015_v61 = vpop.permute.xlu0 %2014  ;;  %2488 = vst.msk [vmem:[#allocation5 + $0x108] sm:$0xff] %vm1034_vm2, %v8331_v53  ;;  %6859 = vmatpush3.bf16.msra.mxu1 %v7403_v50 }
 0x37e   : > { %1938 = vst.msk [vmem:[#allocation5] sm:$0xff] %vm1120_vm4, %v1936_v56  ;;  %v1733_v7 = vpop.f32.mrb[84].mxu1 }
 0x37f   : > { %2017 = vst.msk [vmem:[#allocation5 + $0x158] sm:$0xff] %vm1034_vm2, %v2015_v61  ;;  %2236 = vrot.lane.b32.xlu0 %v8167_v8, %s7631_s14  ;;  %2415 = vrot.lane.b32.xlu1 %v8276_v16, %s7630_s13  ;;  %v1735_v62 = vpop.f32.mrb[85].mxu1 }
 0x380   : > { %v1737_v47 = vpop.f32.mrb[86].mxu1 }
 0x381   : > { %v1940_v0 = vpop.permute.xlu1 %1939  ;;  %v2019_v1 = vpop.permute.xlu0 %2018  ;;  %v8341_v3 = vpack.c.bf16 %v1737_v47, %v1733_v7  ;;  %v7404_v7 = vld [vmem:[%s10131_s3 + $0xf0] sm:$0xff]  }
 0x382   : > { %1942 = vst.msk [vmem:[#allocation5 + $0x38] sm:$0xff] %vm1120_vm4, %v1940_v0  ;;  %v1739_v6 = vpop.f32.mrb[87].mxu1  ;;  %6860 = vmatprep.subr.bf16.mxu1 %v7404_v7 }
 0x383   : > { %2021 = vst.msk [vmem:[#allocation5 + $0x190] sm:$0xff] %vm1034_vm2, %v2019_v1  ;;  %2240 = vrot.lane.b32.xlu0 %v8167_v8, %s7630_s13  ;;  %2419 = vrot.lane.b32.xlu1 %v8276_v16, %s7629_s10  ;;  %v8349_v9 = vpack.c.bf16 %v1739_v6, %v1735_v62  ;;  %v7405_v62 = vld [vmem:[%s10131_s3 + $0xb0] sm:$0xff]  }
 0x384   : > { %6861 = vmatpush3.bf16.msra.mxu1 %v7405_v62 }
 0x385   : > { %v1945_v10 = vpop.permute.xlu1 %1944  ;;  %v2026_v14 = vpop.permute.xlu0 %2025 }
 0x386   : > { %1947 = vst.msk [vmem:[#allocation5 + $0xa8] sm:$0xff] %vm1120_vm4, %v1945_v10  ;;  %v1743_v15 = vpop.f32.mrb[88].mxu1 }
 0x387   : > { %2028 = vst.msk [vmem:[#allocation5 + $0x8] sm:$0xff] %vm1095_vm3, %v2026_v14  ;;  %2244 = vrot.lane.b32.xlu0 %v8167_v8, %s7629_s10  ;;  %2424 = vrot.lane.b32.xlu1 %v8276_v16, %s7631_s14  ;;  %v1745_v21 = vpop.f32.mrb[89].mxu1  ;;  %v7406_v14 = vld [vmem:[%s10131_s3 + $0xf8] sm:$0xff]  }
 0x388   : > { %1977 = vst.msk [vmem:[#allocation5 + $0xa8] sm:$0xff] %vm1145_vm5, %v8019_v57  ;;  %v1747_v27 = vpop.f32.mrb[90].mxu1  ;;  %6862 = vmatprep.subr.bf16.mxu1 %v7406_v14 }
 0x389   : > { %v1950_v28 = vpop.permute.xlu1 %1949  ;;  %v2031_v51 = vpop.permute.xlu0 %2030  ;;  %v8365_v29 = vpack.c.bf16 %v1747_v27, %v1743_v15  ;;  %v7407_v15 = vld [vmem:[%s10131_s3 + $0xb8] sm:$0xff]  }
 0x38a   : > { %1952 = vst.msk [vmem:[#allocation5 + $0xe0] sm:$0xff] %vm1120_vm4, %v1950_v28  ;;  %v1749_v57 = vpop.f32.mrb[91].mxu1  ;;  %6863 = vmatpush3.bf16.msra.mxu1 %v7407_v15  ;;  %v7414_v15 = vld [vmem:[%s10131_s3 + $0x158] sm:$0xff]  }
 0x38b   : > { %2033 = vst.msk [vmem:[#allocation5 + $0x78] sm:$0xff] %vm1095_vm3, %v2031_v51  ;;  %2250 = vrot.lane.b32.xlu0 %v8172_v12, %s7631_s14  ;;  %2429 = vrot.lane.b32.xlu1 %v8279_v20, %s7630_s13  ;;  %v8375_v8 = vpack.c.bf16 %v1749_v57, %v1745_v21 }
 0x38c   : > { %2063 = vst.msk [vmem:[#allocation5 + $0x78] sm:$0xff] %vm1120_vm4, %v8045_v11 }
 0x38d   : > { %v1954_v32 = vpop.permute.xlu1 %1953  ;;  %v2035_v23 = vpop.permute.xlu0 %2034 }
 0x38e   : > { %1956 = vst.msk [vmem:[#allocation5 + $0x118] sm:$0xff] %vm1120_vm4, %v1954_v32  ;;  %v1753_v35 = vpop.f32.mrb[92].mxu1 }
 0x38f   : > { %2037 = vst.msk [vmem:[#allocation5 + $0xb0] sm:$0xff] %vm1095_vm3, %v2035_v23  ;;  %2254 = vrot.lane.b32.xlu0 %v8172_v12, %s7630_s13  ;;  %2433 = vrot.lane.b32.xlu1 %v8279_v20, %s7629_s10  ;;  %v1755_v11 = vpop.f32.mrb[93].mxu1 }
 0x390   : > { %v1757_v5 = vpop.f32.mrb[94].mxu1 }
 0x391   : > { %v1959_v38 = vpop.permute.xlu1 %1958  ;;  %v2040_v41 = vpop.permute.xlu0 %2039  ;;  %v8383_v45 = vpack.c.bf16 %v1757_v5, %v1753_v35 }
 0x392   : > { %1961 = vst.msk [vmem:[#allocation5 + $0x188] sm:$0xff] %vm1120_vm4, %v1959_v38  ;;  %v1759_v43 = vpop.f32.mrb[95].mxu1 }
 0x393   : > { %2042 = vst.msk [vmem:[#allocation5 + $0xe8] sm:$0xff] %vm1095_vm3, %v2040_v41  ;;  %2265 = vrot.lane.b32.xlu0 %v8195_v22, %s7629_s10  ;;  %2445 = vrot.lane.b32.xlu1 %v8301_v36, %s7631_s14  ;;  %v8393_v46 = vpack.c.bf16 %v1759_v43, %v1755_v11 }
 0x394   : > { %1991 = vst.msk [vmem:[#allocation5 + $0x188] sm:$0xff] %vm1145_vm5, %v8021_v59 }
 0x395   : > { %v1966_v54 = vpop.permute.xlu1 %1965  ;;  %v2045_v56 = vpop.permute.xlu0 %2044 }
 0x396   : > { %1968 = vst.msk [vmem:[#allocation5] sm:$0xff] %vm1145_vm5, %v1966_v54  ;;  %v1763_v59 = vpop.f32.mrb[96].mxu1 }
 0x397   : > { %2047 = vst.msk [vmem:[#allocation5 + $0x158] sm:$0xff] %vm1095_vm3, %v2045_v56  ;;  %2270 = vrot.lane.b32.xlu0 %v8195_v22, %s7631_s14  ;;  %2449 = vrot.lane.b32.xlu1 %v8301_v36, %s7630_s13  ;;  %v1765_v61 = vpop.f32.mrb[97].mxu1  ;;  %v7410_v56 = vld [vmem:[%s10131_s3 + $0x148] sm:$0xff]  }
 0x398   : > { %2077 = vst.msk [vmem:[#allocation5 + $0x158] sm:$0xff] %vm1120_vm4, %v8047_v13  ;;  %v1767_v47 = vpop.f32.mrb[98].mxu1 }
 0x399   : > { %v1970_v0 = vpop.permute.xlu1 %1969  ;;  %v2049_v1 = vpop.permute.xlu0 %2048  ;;  %v8415_v6 = vpack.c.bf16 %v1767_v47, %v1763_v59  ;;  %v7411_v59 = vld [vmem:[%s10131_s3 + $0x108] sm:$0xff]   ;;  %v7412_v47 = vld [vmem:[%s10131_s3 + $0x150] sm:$0xff]  }
 0x39a   : > { %1972 = vst.msk [vmem:[#allocation5 + $0x38] sm:$0xff] %vm1145_vm5, %v1970_v0  ;;  %v1769_v13 = vpop.f32.mrb[99].mxu1 }
 0x39b   : > { %2051 = vst.msk [vmem:[#allocation5 + $0x190] sm:$0xff] %vm1095_vm3, %v2049_v1  ;;  %2274 = vrot.lane.b32.xlu0 %v8195_v22, %s7630_s13  ;;  %2453 = vrot.lane.b32.xlu1 %v8301_v36, %s7629_s10  ;;  %v8425_v10 = vpack.c.bf16 %v1769_v13, %v1765_v61  ;;  %v7413_v13 = vld [vmem:[%s10131_s3 + $0x110] sm:$0xff]  }
 0x39c   : > { %2594 = vst.msk [vmem:[#allocation5 + $0x30] sm:$0xff] %vm1034_vm2, %v8415_v6 }
 0x39d   : > { %v1974_v18 = vpop.permute.xlu1 %1973  ;;  %v2056_v21 = vpop.permute.xlu0 %2055  ;;  %2608 = vst.msk [vmem:[#allocation5 + $0x110] sm:$0xff] %vm1034_vm2, %v8425_v10  ;;  %v2622_v54 = vld [vmem:[#allocation5] sm:$0xff] }
 0x39e   : > { %1976 = vst.msk [vmem:[#allocation5 + $0x70] sm:$0xff] %vm1145_vm5, %v1974_v18 }
 0x39f   : > { %2058 = vst.msk [vmem:[#allocation5 + $0x8] sm:$0xff] %vm1120_vm4, %v2056_v21  ;;  %2279 = vrot.lane.b32.xlu0 %v8197_v26, %s7629_s10  ;;  %2459 = vrot.lane.b32.xlu1 %v8309_v37, %s7631_s14 }
 0x3a1   : > { %v1980_v24 = vpop.permute.xlu1 %1979  ;;  %v2060_v27 = vpop.permute.xlu0 %2059  ;;  %v2629_v14 = vld [vmem:[#allocation5 + $0x38] sm:$0xff] }
 0x3a2   : > { %1982 = vst.msk [vmem:[#allocation5 + $0xe0] sm:$0xff] %vm1145_vm5, %v1980_v24 }
 0x3a3   : > { %2062 = vst.msk [vmem:[#allocation5 + $0x40] sm:$0xff] %vm1120_vm4, %v2060_v27  ;;  %2295 = vrot.lane.b32.xlu0 %v8207_v30, %s7630_s13  ;;  %2463 = vrot.lane.b32.xlu1 %v8309_v37, %s7630_s13  ;;  %v7415_v27 = vld [vmem:[%s10131_s3 + $0x118] sm:$0xff]  }
 0x3a5   : > { %v1984_v28 = vpop.permute.xlu1 %1983  ;;  %v2065_v51 = vpop.permute.xlu0 %2064 }
 0x3a6   : > { %1986 = vst.msk [vmem:[#allocation5 + $0x118] sm:$0xff] %vm1145_vm5, %v1984_v28  ;;  %v7416_v28 = vld [vmem:[%s10131_s3 + $0x160] sm:$0xff]  }
 0x3a7   : > { %2067 = vst.msk [vmem:[#allocation5 + $0xb0] sm:$0xff] %vm1120_vm4, %v2065_v51  ;;  %2309 = vrot.lane.b32.xlu0 %v8209_v33, %s7630_s13  ;;  %2480 = vrot.lane.b32.xlu1 %v8319_v52, %s7630_s13 }
 0x3a8   : > { %2097 = vst.msk [vmem:[#allocation5 + $0xb0] sm:$0xff] %vm1145_vm5, %v8055_v17 }
 0x3a9   : > { %v1988_v57 = vpop.permute.xlu1 %1987  ;;  %v2070_v32 = vpop.permute.xlu0 %2069 }
 0x3aa   : > { %1990 = vst.msk [vmem:[#allocation5 + $0x150] sm:$0xff] %vm1145_vm5, %v1988_v57 }
 0x3ab   : > { %2072 = vst.msk [vmem:[#allocation5 + $0xe8] sm:$0xff] %vm1120_vm4, %v2070_v32  ;;  %2329 = vrot.lane.b32.xlu0 %v8222_v39, %s7630_s13  ;;  %2484 = vrot.lane.b32.xlu1 %v8319_v52, %s7629_s10  ;;  %v7417_v32 = vld [vmem:[%s10131_s3 + $0x120] sm:$0xff]  }
 0x3ad   : > { %v2074_v23 = vpop.permute.xlu0 %2073  ;;  %v2117_v17 = vpop.permute.xlu1 %2116 }
 0x3ae   : > { %2076 = vst.msk [vmem:[#allocation5 + $0x120] sm:$0xff] %vm1120_vm4, %v2074_v23  ;;  %v2636_v23 = vld [vmem:[#allocation5 + $0x70] sm:$0xff] }
 0x3af   : > { %2119 = vst.msk [vmem:[#allocation5 + $0x48] sm:$0xff] %vm1034_vm2, %v2117_v17  ;;  %2343 = vrot.lane.b32.xlu0 %v8225_v42, %s7630_s13  ;;  %2505 = vrot.lane.b32.xlu1 %v8341_v3, %s7629_s10  ;;  %v7418_v17 = vld [vmem:[%s10131_s3 + $0x168] sm:$0xff]  }
 0x3b0   : > { %2149 = vst.msk [vmem:[#allocation5 + $0x48] sm:$0xff] %vm1095_vm3, %v8089_v31 }
 0x3b1   : > { %v2079_v35 = vpop.permute.xlu0 %2078  ;;  %v2121_v11 = vpop.permute.xlu1 %2120 }
 0x3b2   : > { %2081 = vst.msk [vmem:[#allocation5 + $0x190] sm:$0xff] %vm1120_vm4, %v2079_v35 }
 0x3b3   : > { %2123 = vst.msk [vmem:[#allocation5 + $0x80] sm:$0xff] %vm1034_vm2, %v2121_v11  ;;  %2356 = vrot.lane.b32.xlu0 %v8242_v55, %s7631_s14  ;;  %2514 = vrot.lane.b32.xlu1 %v8341_v3, %s7630_s13 }
 0x3b4   : > { %2111 = vst.msk [vmem:[#allocation5 + $0x190] sm:$0xff] %vm1145_vm5, %v8057_v19  ;;  %v7408_v19 = vld [vmem:[%s10131_s3 + $0x140] sm:$0xff]  }
 0x3b5   : > { %v2086_v31 = vpop.permute.xlu0 %2085  ;;  %v2125_v5 = vpop.permute.xlu1 %2124  ;;  %6912 = vmatprep.subr.bf16.mxu0 %v7408_v19 }
 0x3b6   : > { %2088 = vst.msk [vmem:[#allocation5 + $0x8] sm:$0xff] %vm1145_vm5, %v2086_v31  ;;  %v7419_v31 = vld [vmem:[%s10131_s3 + $0x128] sm:$0xff]  }
 0x3b7   : > { %2127 = vst.msk [vmem:[#allocation5 + $0xb8] sm:$0xff] %vm1034_vm2, %v2125_v5  ;;  %2364 = vrot.lane.b32.xlu0 %v8242_v55, %s7629_s10  ;;  %2519 = vrot.lane.b32.xlu1 %v8349_v9, %s7629_s10  ;;  %v7409_v55 = vld [vmem:[%s10131_s3 + $0x100] sm:$0xff]  }
 0x3b9   : > { %v2090_v38 = vpop.permute.xlu0 %2089  ;;  %v2131_v41 = vpop.permute.xlu1 %2130 }
 0x3ba   : > { %2092 = vst.msk [vmem:[#allocation5 + $0x40] sm:$0xff] %vm1145_vm5, %v2090_v38  ;;  %v7421_v38 = vld [vmem:[%s10131_s3 + $0x130] sm:$0xff]  }
 0x3bb   : > { %2133 = vst.msk [vmem:[#allocation5 + $0x128] sm:$0xff] %vm1034_vm2, %v2131_v41  ;;  %2370 = vrot.lane.b32.xlu0 %v8245_v58, %s7631_s14  ;;  %2535 = vrot.lane.b32.xlu1 %v8365_v29, %s7630_s13  ;;  %v2643_v41 = vld [vmem:[#allocation5 + $0xa8] sm:$0xff] }
 0x3bc   : > { %2163 = vst.msk [vmem:[#allocation5 + $0x128] sm:$0xff] %vm1095_vm3, %v8094_v34 }
 0x3bd   : > { %v2094_v43 = vpop.permute.xlu0 %2093  ;;  %v2146_v48 = vpop.permute.xlu1 %2145  ;;  %v2623_v50 = vld [vmem:[#allocation5 + $0x8] sm:$0xff] }
 0x3be   : > { %2096 = vst.msk [vmem:[#allocation5 + $0x78] sm:$0xff] %vm1145_vm5, %v2094_v43  ;;  %3134 = vmatprep.mubr.bf16.mxu0 %v2623_v50 }
 0x3bf   : > { %2148 = vst.msk [vmem:[#allocation5 + $0x10] sm:$0xff] %vm1095_vm3, %v2146_v48  ;;  %3135 = vmatmul.mubr.bf16.vlgmr.msra.gmra.mrb[64].mxu0 %v2622_v54  ;;  %2385 = vrot.lane.b32.xlu0 %v8262_v2, %s7629_s10  ;;  %v7423_v54 = vld [vmem:[%s10131_s3 + $0x138] sm:$0xff]  }
 0x3c0   : > { %2134 = vrot.lane.b32.xlu1 %v8069_v25, %s7630_s13  ;;  %6913 = vmatpush3.bf16.msra.mxu0 %v7409_v55  ;;  %v7422_v55 = vld [vmem:[%s10131_s3 + $0x178] sm:$0xff]  }
 0x3c1   : > { %v2100_v61 = vpop.permute.xlu0 %2099  ;;  %v2160_v7 = vpop.permute.xlu1 %2159  ;;  %v2630_v62 = vld [vmem:[#allocation5 + $0x40] sm:$0xff]  ;;  %6914 = vmatprep.subr.bf16.mxu0 %v7410_v56 }
 0x3c2   : > { %2102 = vst.msk [vmem:[#allocation5 + $0xe8] sm:$0xff] %vm1145_vm5, %v2100_v61  ;;  %3142 = vmatprep.mubr.bf16.mxu0 %v2630_v62  ;;  %v2650_v61 = vld [vmem:[#allocation5 + $0xe0] sm:$0xff] }
 0x3c3   : > { %2162 = vst.msk [vmem:[#allocation5 + $0xf0] sm:$0xff] %vm1095_vm3, %v2160_v7  ;;  %2390 = vrot.lane.b32.xlu0 %v8262_v2, %s7631_s14 }
 0x3c4   : > { %2539 = vrot.lane.b32.xlu1 %v8365_v29, %s7629_s10  ;;  %6915 = vmatpush3.bf16.msra.mxu0 %v7411_v59 }
 0x3c5   : > { %v2104_v0 = vpop.permute.xlu0 %2103  ;;  %v2180_v1 = vpop.permute.xlu1 %2179  ;;  %6916 = vmatprep.subr.bf16.mxu0 %v7412_v47  ;;  %v2637_v18 = vld [vmem:[#allocation5 + $0x78] sm:$0xff] }
 0x3c6   : > { %2106 = vst.msk [vmem:[#allocation5 + $0x120] sm:$0xff] %vm1145_vm5, %v2104_v0 }
 0x3c7   : > { %2182 = vst.msk [vmem:[#allocation5 + $0x48] sm:$0xff] %vm1120_vm4, %v2180_v1  ;;  %3143 = vmatmul.mubr.bf16.gmra.mrb[68].mxu0 %v2629_v14  ;;  %2399 = vrot.lane.b32.xlu0 %v8265_v4, %s7629_s10  ;;  %v2657_v1 = vld [vmem:[#allocation5 + $0x118] sm:$0xff] }
 0x3c8   : > { %2494 = vrot.lane.b32.xlu1 %v8331_v53, %s7630_s13  ;;  %3150 = vmatprep.mubr.bf16.mxu0 %v2637_v18 }
 0x3c9   : > { %v2108_v21 = vpop.permute.xlu0 %2107  ;;  %v2194_v24 = vpop.permute.xlu1 %2193  ;;  %6917 = vmatpush3.bf16.msra.mxu0 %v7413_v13  ;;  %v2651_v43 = vld [vmem:[#allocation5 + $0xe8] sm:$0xff] }
 0x3ca   : > { %2110 = vst.msk [vmem:[#allocation5 + $0x158] sm:$0xff] %vm1145_vm5, %v2108_v21  ;;  %6918 = vmatprep.subr.bf16.mxu0 %v7414_v15  ;;  %v2664_v21 = vld [vmem:[#allocation5 + $0x150] sm:$0xff] }
 0x3cb   : > { %2196 = vst.msk [vmem:[#allocation5 + $0x128] sm:$0xff] %vm1120_vm4, %v2194_v24  ;;  %2476 = vrot.lane.b32.xlu0 %v8319_v52, %s7631_s14  ;;  %v2644_v52 = vld [vmem:[#allocation5 + $0xb0] sm:$0xff] }
 0x3cc   : > { %2549 = vrot.lane.b32.xlu1 %v8375_v8, %s7630_s13  ;;  %v2672_v24 = vld [vmem:[#allocation5 + $0x190] sm:$0xff] }
 0x3cd   : > { %v2151_v51 = vpop.permute.xlu0 %2150  ;;  %v2214_v57 = vpop.permute.xlu1 %2213  ;;  %6919 = vmatpush3.bf16.msra.mxu0 %v7415_v27  ;;  %v2658_v7 = vld [vmem:[#allocation5 + $0x120] sm:$0xff] }
 0x3ce   : > { %2153 = vst.msk [vmem:[#allocation5 + $0x80] sm:$0xff] %vm1095_vm3, %v2151_v51  ;;  %6920 = vmatprep.subr.bf16.mxu0 %v7416_v28 }
 0x3cf   : > { %2183 = vst.msk [vmem:[#allocation5 + $0x80] sm:$0xff] %vm1120_vm4, %v8119_v44  ;;  %3151 = vmatmul.mubr.bf16.gmra.mrb[72].mxu0 %v2636_v23  ;;  %2490 = vrot.lane.b32.xlu0 %v8331_v53, %s7631_s14  ;;  %v7420_v44 = vld [vmem:[%s10131_s3 + $0x170] sm:$0xff]  }
 0x3d0   : > { %2216 = vst.msk [vmem:[#allocation5 + $0x80] sm:$0xff] %vm1145_vm5, %v2214_v57  ;;  %2553 = vrot.lane.b32.xlu1 %v8375_v8, %s7629_s10  ;;  %3158 = vmatprep.mubr.bf16.mxu0 %v2644_v52 }
 0x3d1   : > { %v2155_v35 = vpop.permute.xlu0 %2154  ;;  %v8556_v11 = vpop.permute.xlu1 %2299  ;;  %6921 = vmatpush3.bf16.msra.mxu0 %v7417_v32  ;;  %v2665_v13 = vld [vmem:[#allocation5 + $0x158] sm:$0xff]  ;;  %v2671_v32 = vld [vmem:[#allocation5 + $0x188] sm:$0xff] }
 0x3d2   : > { %2157 = vst.msk [vmem:[#allocation5 + $0xb8] sm:$0xff] %vm1095_vm3, %v2155_v35  ;;  %6922 = vmatprep.subr.bf16.mxu0 %v7418_v17 }
 0x3d3   : > { %2510 = vrot.lane.b32.xlu0 %v8341_v3, %s7631_s14 }
 0x3d4   : > { %2374 = vrot.lane.b32.xlu1 %v8245_v58, %s7630_s13 }
 0x3d5   : > { %v2176_v5 = vpop.permute.xlu0 %2175  ;;  %v8569_v19 = vpop.permute.xlu1 %2304  ;;  %6923 = vmatpush3.bf16.msra.mxu0 %v7419_v31 }
 0x3d6   : > { %2178 = vst.msk [vmem:[#allocation5 + $0x10] sm:$0xff] %vm1120_vm4, %v2176_v5  ;;  %6924 = vmatprep.subr.bf16.mxu0 %v7420_v44 }
 0x3d7   : > { %3159 = vmatmul.mubr.bf16.gmra.mrb[76].mxu0 %v2643_v41  ;;  %2284 = vrot.lane.b32.xlu0 %v8197_v26, %s7631_s14 }
 0x3d8   : > { %2347 = vrot.lane.b32.xlu1 %v8225_v42, %s7629_s10  ;;  %3166 = vmatprep.mubr.bf16.mxu0 %v2651_v43 }
 0x3d9   : > { %v2185_v48 = vpop.permute.xlu0 %2184  ;;  %v8582_v50 = vpop.permute.xlu1 %2313  ;;  %6925 = vmatpush3.bf16.msra.mxu0 %v7421_v38 }
 0x3da   : > { %2187 = vst.msk [vmem:[#allocation5 + $0xb8] sm:$0xff] %vm1120_vm4, %v2185_v48  ;;  %6926 = vmatprep.subr.bf16.mxu0 %v7422_v55 }
 0x3db   : > { %2217 = vst.msk [vmem:[#allocation5 + $0xb8] sm:$0xff] %vm1145_vm5, %v8143_v60  ;;  %2544 = vrot.lane.b32.xlu0 %v8365_v29, %s7631_s14 }
 0x3dc   : > { %2227 = vrot.lane.b32.xlu1 %v8148_v63, %s7629_s10 }
 0x3dd   : > { %v2190_v56 = vpop.permute.xlu0 %2189  ;;  %v8594_v59 = vpop.permute.xlu1 %2325  ;;  %6927 = vmatpush3.bf16.msra.mxu0 %v7423_v54 }
 0x3de   : > { %2192 = vst.msk [vmem:[#allocation5 + $0xf0] sm:$0xff] %vm1120_vm4, %v2190_v56 }
 0x3df   : > { %3167 = vmatmul.mubr.bf16.gmra.mrb[80].mxu0 %v2650_v61  ;;  %2565 = vrot.lane.b32.xlu0 %v8383_v45, %s7631_s14 }
 0x3e0   : > { %2467 = vrot.lane.b32.xlu1 %v8309_v37, %s7629_s10  ;;  %3174 = vmatprep.mubr.bf16.mxu0 %v2658_v7 }
 0x3e1   : > { %v2206_v60 = vpop.permute.xlu0 %2205  ;;  %v8601_v62 = vpop.permute.xlu1 %2333 }
 0x3e2   : > { %2208 = vst.msk [vmem:[#allocation5 + $0x10] sm:$0xff] %vm1145_vm5, %v2206_v60 }
 0x3e3   : > { %2164 = vrot.lane.b32.xlu0 %v8094_v34, %s7631_s14 }
 0x3e4   : > { %2138 = vrot.lane.b32.xlu1 %v8069_v25, %s7629_s10  ;;  %v8622_v25 = vld [vmem:[%s10131_s3 + $0x180] sm:$0xff]  }
 0x3e5   : > { %v2210_v47 = vpop.permute.xlu0 %2209  ;;  %v8608_v0 = vpop.permute.xlu1 %2339  ;;  %7292 = vmatprep.subr.bf16.mxu1 %v8622_v25  ;;  %7243 = vmatprep.subr.bf16.mxu0 %v8622_v25 }
 0x3e6   : > { %2212 = vst.msk [vmem:[#allocation5 + $0x48] sm:$0xff] %vm1145_vm5, %v2210_v47 }
 0x3e7   : > { %3175 = vmatmul.mubr.bf16.gmra.mrb[84].mxu0 %v2657_v1  ;;  %2569 = vrot.lane.b32.xlu0 %v8383_v45, %s7630_s13  ;;  %v2638_v1 = vld [vmem:[#allocation5 + $0x80] sm:$0xff] }
 0x3e8   : > { %2498 = vrot.lane.b32.xlu1 %v8331_v53, %s7629_s10  ;;  %3182 = vmatprep.mubr.bf16.mxu0 %v2665_v13 }
 0x3e9   : > { %v2220_v14 = vpop.permute.xlu0 %2219  ;;  %v2361_v15 = vpop.permute.xlu1 %2360  ;;  %v2624_v54 = vld [vmem:[#allocation5 + $0x10] sm:$0xff] }
 0x3ea   : > { %2222 = vst.msk [vmem:[#allocation5 + $0xf0] sm:$0xff] %vm1145_vm5, %v2220_v14 }
 0x3eb   : > { %2363 = vst.msk [vmem:[#allocation5 + $0x90] sm:$0xff] %vm1034_vm2, %v2361_v15  ;;  %2524 = vrot.lane.b32.xlu0 %v8349_v9, %s7631_s14 }
 0x3ec   : > { %2318 = vrot.lane.b32.xlu1 %v8209_v33, %s7631_s14 }
 0x3ed   : > { %v2224_v18 = vpop.permute.xlu0 %2223  ;;  %v8626_v53 = vpop.permute.xlu1 %2394 }
 0x3ee   : > { %2226 = vst.msk [vmem:[#allocation5 + $0x128] sm:$0xff] %vm1145_vm5, %v2224_v18  ;;  %v2645_v18 = vld [vmem:[#allocation5 + $0xb8] sm:$0xff] }
 0x3ef   : > { %3183 = vmatmul.mubr.bf16.gmra.mrb[88].mxu0 %v2664_v21  ;;  %2573 = vrot.lane.b32.xlu0 %v8383_v45, %s7629_s10 }
 0x3f0   : > { %2528 = vrot.lane.b32.xlu1 %v8349_v9, %s7630_s13  ;;  %3190 = vmatprep.mubr.bf16.mxu0 %v2672_v24 }
 0x3f1   : > { %v2237_v27 = vpop.permute.xlu0 %2236  ;;  %v8635_v28 = vpop.permute.xlu1 %2415 }
 0x3f2   : > { %2239 = vst.msk [vmem:[#allocation5 + $0x50] sm:$0xff] %vm1034_vm2, %v2237_v27 }
 0x3f3   : > { %2269 = vst.msk [vmem:[#allocation5 + $0x50] sm:$0xff] %vm1095_vm3, %v8195_v22  ;;  %2404 = vrot.lane.b32.xlu0 %v8265_v4, %s7631_s14 }
 0x3f4   : > { %2302 = vst.msk [vmem:[#allocation5 + $0x50] sm:$0xff] %vm1120_vm4, %v8556_v11  ;;  %2408 = vrot.lane.b32.xlu1 %v8265_v4, %s7630_s13 }
 0x3f5   : > { %v2241_v51 = vpop.permute.xlu0 %2240  ;;  %v8646_v57 = vpop.permute.xlu1 %2419 }
 0x3f6   : > { %2243 = vst.msk [vmem:[#allocation5 + $0x88] sm:$0xff] %vm1034_vm2, %v2241_v51 }
 0x3f7   : > { %3191 = vmatmul.mubr.bf16.gmra.mrb[92].mxu0 %v2671_v32  ;;  %2258 = vrot.lane.b32.xlu0 %v8172_v12, %s7629_s10 }
 0x3f8   : > { %2438 = vrot.lane.b32.xlu1 %v8279_v20, %s7631_s14 }
 0x3f9   : > { %v2245_v22 = vpop.permute.xlu0 %2244  ;;  %v8653_v23 = vpop.permute.xlu1 %2424 }
 0x3fa   : > { %2247 = vst.msk [vmem:[#allocation5 + $0xc0] sm:$0xff] %vm1034_vm2, %v2245_v22 }
 0x3fb   : > { %2288 = vrot.lane.b32.xlu0 %v8197_v26, %s7630_s13 }
 0x3fc   : > { %2604 = vrot.lane.b32.xlu1 %v8415_v6, %s7629_s10 }
 0x3fd   : > { %v2251_v17 = vpop.permute.xlu0 %2250  ;;  %v8660_v52 = vpop.permute.xlu1 %2429 }
 0x3fe   : > { %2253 = vst.msk [vmem:[#allocation5 + $0x130] sm:$0xff] %vm1034_vm2, %v2251_v17 }
 0x3ff   : > { %2283 = vst.msk [vmem:[#allocation5 + $0x130] sm:$0xff] %vm1095_vm3, %v8197_v26  ;;  %2579 = vrot.lane.b32.xlu0 %v8393_v46, %s7631_s14 }
 0x400   : > { %2316 = vst.msk [vmem:[#allocation5 + $0x130] sm:$0xff] %vm1120_vm4, %v8582_v50  ;;  %2610 = vrot.lane.b32.xlu1 %v8425_v10, %s7631_s14  ;;  %v8720_v50 = vld [vmem:[%s10131_s3 + $0x188] sm:$0xff]  }
 0x401   : > { %v2255_v12 = vpop.permute.xlu0 %2254  ;;  %v8671_v35 = vpop.permute.xlu1 %2433 }
 0x402   : > { %2257 = vst.msk [vmem:[#allocation5 + $0x168] sm:$0xff] %vm1034_vm2, %v2255_v12 }
 0x403   : > { %2168 = vrot.lane.b32.xlu0 %v8094_v34, %s7630_s13 }
 0x404   : > { %2618 = vrot.lane.b32.xlu1 %v8425_v10, %s7629_s10 }
 0x405   : > { %v2266_v26 = vpop.permute.xlu0 %2265  ;;  %v8678_v11 = vpop.permute.xlu1 %2445 }
 0x406   : > { %2268 = vst.msk [vmem:[#allocation5 + $0x18] sm:$0xff] %vm1095_vm3, %v2266_v26 }
 0x407   : > { %2583 = vrot.lane.b32.xlu0 %v8393_v46, %s7630_s13 }
 0x409   : > { %v2271_v31 = vpop.permute.xlu0 %2270  ;;  %v2450_v44 = vpop.permute.xlu1 %2449 }
 0x40a   : > { %2273 = vst.msk [vmem:[#allocation5 + $0x88] sm:$0xff] %vm1095_vm3, %v2271_v31 }
 0x40b   : > { %2303 = vst.msk [vmem:[#allocation5 + $0x88] sm:$0xff] %vm1120_vm4, %v8207_v30  ;;  %2378 = vrot.lane.b32.xlu0 %v8245_v58, %s7629_s10 }
 0x40c   : > { %2336 = vst.msk [vmem:[#allocation5 + $0x88] sm:$0xff] %vm1145_vm5, %v8601_v62 }
 0x40d   : > { %v2275_v34 = vpop.permute.xlu0 %2274  ;;  %v8690_v5 = vpop.permute.xlu1 %2453 }
 0x40e   : > { %2277 = vst.msk [vmem:[#allocation5 + $0xc0] sm:$0xff] %vm1095_vm3, %v2275_v34 }
 0x40f   : > { %2307 = vst.msk [vmem:[#allocation5 + $0xc0] sm:$0xff] %vm1120_vm4, %v8569_v19  ;;  %2587 = vrot.lane.b32.xlu0 %v8393_v46, %s7629_s10 }
 0x410   : > { %2337 = vst.msk [vmem:[#allocation5 + $0xc0] sm:$0xff] %vm1145_vm5, %v8222_v39 }
 0x411   : > { %v2280_v30 = vpop.permute.xlu0 %2279  ;;  %v8699_v38 = vpop.permute.xlu1 %2459 }
 0x412   : > { %2282 = vst.msk [vmem:[#allocation5 + $0xf8] sm:$0xff] %vm1095_vm3, %v2280_v30 }
 0x413   : > { %2198 = vrot.lane.b32.xlu0 %v8124_v49, %s7631_s14  ;;  %v2639_v62 = vld [vmem:[#allocation5 + $0x88] sm:$0xff] }
 0x415   : > { %v2296_v58 = vpop.permute.xlu0 %2295  ;;  %v2464_v41 = vpop.permute.xlu1 %2463 }
 0x416   : > { %2298 = vst.msk [vmem:[#allocation5 + $0x18] sm:$0xff] %vm1120_vm4, %v2296_v58 }
 0x417   : > { %2328 = vst.msk [vmem:[#allocation5 + $0x18] sm:$0xff] %vm1145_vm5, %v8594_v59  ;;  %2558 = vrot.lane.b32.xlu0 %v8375_v8, %s7631_s14  ;;  %v2646_v13 = vld [vmem:[#allocation5 + $0xc0] sm:$0xff] }
 0x419   : > { %v2310_v19 = vpop.permute.xlu0 %2309  ;;  %v2481_v39 = vpop.permute.xlu1 %2480 }
 0x41a   : > { %2312 = vst.msk [vmem:[#allocation5 + $0xf8] sm:$0xff] %vm1120_vm4, %v2310_v19 }
 0x41b   : > { %2483 = vst.msk [vmem:[#allocation5 + $0x98] sm:$0xff] %vm1034_vm2, %v2481_v39  ;;  %2600 = vrot.lane.b32.xlu0 %v8415_v6, %s7630_s13 }
 0x41c   : > { %2342 = vst.msk [vmem:[#allocation5 + $0xf8] sm:$0xff] %vm1145_vm5, %v8608_v0 }
 0x41d   : > { %v2330_v55 = vpop.permute.xlu0 %2329  ;;  %v2485_v43 = vpop.permute.xlu1 %2484 }
 0x41e   : > { %2332 = vst.msk [vmem:[#allocation5 + $0x50] sm:$0xff] %vm1145_vm5, %v2330_v55  ;;  %v2625_v48 = vld [vmem:[#allocation5 + $0x18] sm:$0xff] }
 0x41f   : > { %2487 = vst.msk [vmem:[#allocation5 + $0xd0] sm:$0xff] %vm1034_vm2, %v2485_v43  ;;  %3231 = vmatprep.mubr.bf16.mxu1 %v2625_v48  ;;  %2596 = vrot.lane.b32.xlu0 %v8415_v6, %s7631_s14  ;;  %v2631_v6 = vld [vmem:[#allocation5 + $0x48] sm:$0xff] }
 0x420   : > { %3232 = vmatmul.mubr.bf16.vlgmr.msra.gmra.mrb[100].mxu1 %v2624_v54 }
 0x421   : > { %v2344_v56 = vpop.permute.xlu0 %2343  ;;  %v2506_v59 = vpop.permute.xlu1 %2505  ;;  %7294 = vmatpush3.bf16.msra.mxu1 %v8622_v25 }
 0x422   : > { %2346 = vst.msk [vmem:[#allocation5 + $0x130] sm:$0xff] %vm1145_vm5, %v2344_v56  ;;  %7293 = vmatprep.subr.bf16.mxu1 %v8720_v50 }
 0x423   : > { %2508 = vst.msk [vmem:[#allocation5 + $0x28] sm:$0xff] %vm1095_vm3, %v2506_v59  ;;  %2614 = vrot.lane.b32.xlu0 %v8425_v10, %s7630_s13 }
 0x425   : > { %v2357_v61 = vpop.permute.xlu0 %2356  ;;  %v2515_v7 = vpop.permute.xlu1 %2514  ;;  %v2632_v60 = vld [vmem:[#allocation5 + $0x50] sm:$0xff]  ;;  %7295 = vmatpush3.bf16.msra.mxu1 %v8720_v50 }
 0x426   : > { %2359 = vst.msk [vmem:[#allocation5 + $0x58] sm:$0xff] %vm1034_vm2, %v2357_v61  ;;  %3239 = vmatprep.mubr.bf16.mxu1 %v2632_v60 }
 0x427   : > { %2517 = vst.msk [vmem:[#allocation5 + $0xd0] sm:$0xff] %vm1095_vm3, %v2515_v7  ;;  %2389 = vst.msk [vmem:[#allocation5 + $0x58] sm:$0xff] %vm1095_vm3, %v8262_v2 }
 0x428   : > { %2422 = vst.msk [vmem:[#allocation5 + $0x58] sm:$0xff] %vm1120_vm4, %v8646_v57  ;;  %3240 = vmatmul.mubr.bf16.gmra.mrb[104].mxu1 %v2631_v6 }
 0x429   : > { %2452 = vst.msk [vmem:[#allocation5 + $0x58] sm:$0xff] %vm1145_vm5, %v2450_v44  ;;  %3247 = vmatprep.mubr.bf16.mxu1 %v2639_v62  ;;  %v2365_v10 = vpop.permute.xlu0 %2364  ;;  %v2520_v47 = vpop.permute.xlu1 %2519  ;;  %v2660_v51 = vld [vmem:[#allocation5 + $0x130] sm:$0xff] }
 0x42a   : > { %2367 = vst.msk [vmem:[#allocation5 + $0xc8] sm:$0xff] %vm1034_vm2, %v2365_v10 }
 0x42b   : > { %2522 = vst.msk [vmem:[#allocation5 + $0x108] sm:$0xff] %vm1095_vm3, %v2520_v47  ;;  %2397 = vst.msk [vmem:[#allocation5 + $0xc8] sm:$0xff] %vm1095_vm3, %v8626_v53  ;;  %v2653_v53 = vld [vmem:[#allocation5 + $0xf8] sm:$0xff] }
 0x42c   : > { %2427 = vst.msk [vmem:[#allocation5 + $0xc8] sm:$0xff] %vm1120_vm4, %v8653_v23  ;;  %v2659_v23 = vld [vmem:[#allocation5 + $0x128] sm:$0xff] }
 0x42d   : > { %2457 = vst.msk [vmem:[#allocation5 + $0xc8] sm:$0xff] %vm1145_vm5, %v8301_v36  ;;  %v2371_v2 = vpop.permute.xlu0 %2370  ;;  %v2536_v0 = vpop.permute.xlu1 %2535 }
 0x42e   : > { %2373 = vst.msk [vmem:[#allocation5 + $0x138] sm:$0xff] %vm1034_vm2, %v2371_v2 }
 0x42f   : > { %2538 = vst.msk [vmem:[#allocation5 + $0x28] sm:$0xff] %vm1120_vm4, %v2536_v0 }
 0x430   : > { %2403 = vst.msk [vmem:[#allocation5 + $0x138] sm:$0xff] %vm1095_vm3, %v8265_v4  ;;  %3248 = vmatmul.mubr.bf16.gmra.mrb[108].mxu1 %v2638_v1 }
 0x431   : > { %2436 = vst.msk [vmem:[#allocation5 + $0x138] sm:$0xff] %vm1120_vm4, %v8671_v35  ;;  %3255 = vmatprep.mubr.bf16.mxu1 %v2646_v13  ;;  %v2386_v14 = vpop.permute.xlu0 %2385 }
 0x432   : > { %2466 = vst.msk [vmem:[#allocation5 + $0x138] sm:$0xff] %vm1145_vm5, %v2464_v41  ;;  %v2135_v36 = vpop.permute.xlu1 %2134 }
 0x433   : > { %2388 = vst.msk [vmem:[#allocation5 + $0x20] sm:$0xff] %vm1095_vm3, %v2386_v14 }
 0x434   : > { %2418 = vst.msk [vmem:[#allocation5 + $0x20] sm:$0xff] %vm1120_vm4, %v8635_v28  ;;  %v2652_v28 = vld [vmem:[#allocation5 + $0xf0] sm:$0xff]  ;;  %v2647_v59 = vld [vmem:[#allocation5 + $0xc8] sm:$0xff] }
 0x435   : > { %2137 = vst.msk [vmem:[#allocation5 + $0x160] sm:$0xff] %vm1034_vm2, %v2135_v36  ;;  %v2391_v4 = vpop.permute.xlu0 %2390 }
 0x436   : > { %2448 = vst.msk [vmem:[#allocation5 + $0x20] sm:$0xff] %vm1145_vm5, %v8678_v11  ;;  %v2540_v15 = vpop.permute.xlu1 %2539 }
 0x437   : > { %2393 = vst.msk [vmem:[#allocation5 + $0x90] sm:$0xff] %vm1095_vm3, %v2391_v4 }
 0x438   : > { %2423 = vst.msk [vmem:[#allocation5 + $0x90] sm:$0xff] %vm1120_vm4, %v8276_v16  ;;  %3256 = vmatmul.mubr.bf16.gmra.mrb[112].mxu1 %v2645_v18 }
 0x439   : > { %2456 = vst.msk [vmem:[#allocation5 + $0x90] sm:$0xff] %vm1145_vm5, %v8690_v5  ;;  %3263 = vmatprep.mubr.bf16.mxu1 %v2653_v53  ;;  %v2400_v21 = vpop.permute.xlu0 %2399  ;;  %v2661_v1 = vld [vmem:[#allocation5 + $0x138] sm:$0xff] }
 0x43a   : > { %2402 = vst.msk [vmem:[#allocation5 + $0x100] sm:$0xff] %vm1095_vm3, %v2400_v21  ;;  %v2495_v24 = vpop.permute.xlu1 %2494 }
 0x43b   : > { %2432 = vst.msk [vmem:[#allocation5 + $0x100] sm:$0xff] %vm1120_vm4, %v8660_v52 }
 0x43c   : > { %2497 = vst.msk [vmem:[#allocation5 + $0x178] sm:$0xff] %vm1034_vm2, %v2495_v24 }
 0x43d   : > { %2462 = vst.msk [vmem:[#allocation5 + $0x100] sm:$0xff] %vm1145_vm5, %v8699_v38  ;;  %v2477_v16 = vpop.permute.xlu0 %2476  ;;  %v2626_v34 = vld [vmem:[#allocation5 + $0x20] sm:$0xff] }
 0x43e   : > { %2479 = vst.msk [vmem:[#allocation5 + $0x60] sm:$0xff] %vm1034_vm2, %v2477_v16  ;;  %v2550_v27 = vpop.permute.xlu1 %2549 }
 0x43f   : > { %2509 = vst.msk [vmem:[#allocation5 + $0x60] sm:$0xff] %vm1095_vm3, %v8341_v3 }
 0x440   : > { %2552 = vst.msk [vmem:[#allocation5 + $0x108] sm:$0xff] %vm1120_vm4, %v2550_v27  ;;  %2542 = vst.msk [vmem:[#allocation5 + $0x60] sm:$0xff] %vm1120_vm4, %v2540_v15  ;;  %3264 = vmatmul.mubr.bf16.gmra.mrb[116].mxu1 %v2652_v28  ;;  %v2640_v48 = vld [vmem:[#allocation5 + $0x90] sm:$0xff] }
 0x441   : > { %3271 = vmatprep.mubr.bf16.mxu1 %v2660_v51  ;;  %v2491_v57 = vpop.permute.xlu0 %2490  ;;  %v2628_v28 = vld [vmem:[#allocation5 + $0x30] sm:$0xff] }
 0x442   : > { %2493 = vst.msk [vmem:[#allocation5 + $0x140] sm:$0xff] %vm1034_vm2, %v2491_v57  ;;  %v2554_v32 = vpop.permute.xlu1 %2553 }
 0x443   : > { %2523 = vst.msk [vmem:[#allocation5 + $0x140] sm:$0xff] %vm1095_vm3, %v8349_v9 }
 0x444   : > { %2556 = vst.msk [vmem:[#allocation5 + $0x140] sm:$0xff] %vm1120_vm4, %v2554_v32 }
 0x445   : > { %v2511_v22 = vpop.permute.xlu0 %2510 }
 0x446   : > { %2513 = vst.msk [vmem:[#allocation5 + $0x98] sm:$0xff] %vm1095_vm3, %v2511_v22  ;;  %v2375_v3 = vpop.permute.xlu1 %2374 }
 0x447   : > { %2543 = vst.msk [vmem:[#allocation5 + $0x98] sm:$0xff] %vm1120_vm4, %v8365_v29 }
 0x448   : > { %2377 = vst.msk [vmem:[#allocation5 + $0x170] sm:$0xff] %vm1034_vm2, %v2375_v3  ;;  %3272 = vmatmul.mubr.bf16.gmra.mrb[120].mxu1 %v2659_v23  ;;  %v2656_v3 = vld [vmem:[#allocation5 + $0x110] sm:$0xff] }
 0x449   : > { %v2285_v17 = vpop.permute.xlu0 %2284 }
 0x44a   : > { %2287 = vst.msk [vmem:[#allocation5 + $0x168] sm:$0xff] %vm1095_vm3, %v2285_v17  ;;  %v2348_v52 = vpop.permute.xlu1 %2347 }
 0x44b   : > { %2317 = vst.msk [vmem:[#allocation5 + $0x168] sm:$0xff] %vm1120_vm4, %v8209_v33 }
 0x44c   : > { %2350 = vst.msk [vmem:[#allocation5 + $0x168] sm:$0xff] %vm1145_vm5, %v2348_v52 }
 0x44d   : > { %v2545_v9 = vpop.permute.xlu0 %2544 }
 0x44e   : > { %2547 = vst.msk [vmem:[#allocation5 + $0xd0] sm:$0xff] %vm1120_vm4, %v2545_v9  ;;  %v2228_v12 = vpop.permute.xlu1 %2227 }
 0x44f   : > { %2577 = vst.msk [vmem:[#allocation5 + $0xd0] sm:$0xff] %vm1145_vm5, %v8383_v45 }
 0x451   : > { %v2566_v29 = vpop.permute.xlu0 %2565 }
 0x452   : > { %v2468_v35 = vpop.permute.xlu1 %2467  ;;  %2568 = vst.msk [vmem:[#allocation5 + $0x28] sm:$0xff] %vm1145_vm5, %v2566_v29 }
 0x453   : > { %v2667_v26 = vld [vmem:[#allocation5 + $0x168] sm:$0xff] }
 0x454   : > { %3279 = vmatprep.mubr.bf16.mxu1 %v2667_v26 }
 0x455   : > { %v2165_v11 = vpop.permute.xlu0 %2164 }
 0x456   : > { %v2139_v31 = vpop.permute.xlu1 %2138  ;;  %2167 = vst.msk [vmem:[#allocation5 + $0x160] sm:$0xff] %vm1095_vm3, %v2165_v11 }
 0x457   : > { %2141 = vst.msk [vmem:[#allocation5 + $0x198] sm:$0xff] %vm1034_vm2, %v2139_v31 }
 0x458   : > { %2197 = vst.msk [vmem:[#allocation5 + $0x160] sm:$0xff] %vm1120_vm4, %v8124_v49 }
 0x459   : > { %2230 = vst.msk [vmem:[#allocation5 + $0x160] sm:$0xff] %vm1145_vm5, %v2228_v12  ;;  %v2570_v33 = vpop.permute.xlu0 %2569  ;;  %v2627_v44 = vld [vmem:[#allocation5 + $0x28] sm:$0xff] }
 0x45a   : > { %v2499_v45 = vpop.permute.xlu1 %2498  ;;  %2572 = vst.msk [vmem:[#allocation5 + $0x60] sm:$0xff] %vm1145_vm5, %v2570_v33  ;;  %3328 = vmatprep.mubr.bf16.mxu0 %v2627_v44 }
 0x45b   : > { %2501 = vst.msk [vmem:[#allocation5 + $0x1b0] sm:$0xff] %vm1034_vm2, %v2499_v45  ;;  %3329 = vmatmul.mubr.bf16.vlgmr.msra.gmra.mrb[96].mxu0 %v2626_v34 }
 0x45c   : > { %7244 = vmatpush3.bf16.msra.mxu0 %v8622_v25  ;;  %v2633_v25 = vld [vmem:[#allocation5 + $0x58] sm:$0xff] }
 0x45d   : > { %v2525_v5 = vpop.permute.xlu0 %2524  ;;  %7245 = vmatprep.subr.bf16.mxu0 %v8720_v50 }
 0x45e   : > { %v2319_v30 = vpop.permute.xlu1 %2318  ;;  %2527 = vst.msk [vmem:[#allocation5 + $0x178] sm:$0xff] %vm1095_vm3, %v2525_v5 }
 0x45f   : > { %2557 = vst.msk [vmem:[#allocation5 + $0x178] sm:$0xff] %vm1120_vm4, %v8375_v8 }
 0x460   : > { %v2666_v49 = vld [vmem:[#allocation5 + $0x160] sm:$0xff]  ;;  %7246 = vmatpush3.bf16.msra.mxu0 %v8720_v50  ;;  %v2648_v50 = vld [vmem:[#allocation5 + $0xd0] sm:$0xff] }
 0x461   : > { %3280 = vmatmul.mubr.bf16.gmra.mrb[124].mxu1 %v2666_v49  ;;  %v2574_v38 = vpop.permute.xlu0 %2573  ;;  %v2634_v58 = vld [vmem:[#allocation5 + $0x60] sm:$0xff] }
 0x462   : > { %v2529_v41 = vpop.permute.xlu1 %2528  ;;  %2576 = vst.msk [vmem:[#allocation5 + $0x98] sm:$0xff] %vm1145_vm5, %v2574_v38  ;;  %3336 = vmatprep.mubr.bf16.mxu0 %v2634_v58 }
 0x463   : > { %2531 = vst.msk [vmem:[#allocation5 + $0x1b0] sm:$0xff] %vm1095_vm3, %v2529_v41  ;;  %3337 = vmatmul.mubr.bf16.gmra.mrb[100].mxu0 %v2633_v25 }
 0x465   : > { %v2405_v19 = vpop.permute.xlu0 %2404 }
 0x466   : > { %v2409_v39 = vpop.permute.xlu1 %2408  ;;  %2407 = vst.msk [vmem:[#allocation5 + $0x170] sm:$0xff] %vm1095_vm3, %v2405_v19 }
 0x467   : > { %2437 = vst.msk [vmem:[#allocation5 + $0x170] sm:$0xff] %vm1120_vm4, %v8279_v20 }
 0x468   : > { %2470 = vst.msk [vmem:[#allocation5 + $0x170] sm:$0xff] %vm1145_vm5, %v2468_v35 }
 0x469   : > { %v2259_v8 = vpop.permute.xlu0 %2258  ;;  %v2641_v55 = vld [vmem:[#allocation5 + $0x98] sm:$0xff] }
 0x46a   : > { %v2439_v43 = vpop.permute.xlu1 %2438  ;;  %2261 = vst.msk [vmem:[#allocation5 + $0x1a0] sm:$0xff] %vm1034_vm2, %v2259_v8  ;;  %3344 = vmatprep.mubr.bf16.mxu0 %v2641_v55 }
 0x46b   : > { %3345 = vmatmul.mubr.bf16.gmra.mrb[104].mxu0 %v2640_v48 }
 0x46c   : > { %3352 = vmatprep.mubr.bf16.mxu0 %v2648_v50 }
 0x46d   : > { %v2289_v54 = vpop.permute.xlu0 %2288 }
 0x46e   : > { %2291 = vst.msk [vmem:[#allocation5 + $0x1a0] sm:$0xff] %vm1095_vm3, %v2289_v54  ;;  %v2605_v56 = vpop.permute.xlu1 %2604 }
 0x46f   : > { %2321 = vst.msk [vmem:[#allocation5 + $0x1a0] sm:$0xff] %vm1120_vm4, %v2319_v30  ;;  %v2668_v4 = vld [vmem:[#allocation5 + $0x170] sm:$0xff] }
 0x470   : > { %2607 = vst.msk [vmem:[#allocation5 + $0xd8] sm:$0xff] %vm1034_vm2, %v2605_v56 }
 0x471   : > { %2351 = vst.msk [vmem:[#allocation5 + $0x1a0] sm:$0xff] %vm1145_vm5, %v8225_v42  ;;  %v2580_v20 = vpop.permute.xlu0 %2579  ;;  %v2654_v42 = vld [vmem:[#allocation5 + $0x100] sm:$0xff] }
 0x472   : > { %2582 = vst.msk [vmem:[#allocation5 + $0x108] sm:$0xff] %vm1145_vm5, %v2580_v20  ;;  %v2611_v61 = vpop.permute.xlu1 %2610 }
 0x473   : > { %3353 = vmatmul.mubr.bf16.gmra.mrb[108].mxu0 %v2647_v59  ;;  %2613 = vst.msk [vmem:[#allocation5 + $0x148] sm:$0xff] %vm1034_vm2, %v2611_v61 }
 0x475   : > { %v2169_v7 = vpop.permute.xlu0 %2168 }
 0x476   : > { %2171 = vst.msk [vmem:[#allocation5 + $0x198] sm:$0xff] %vm1095_vm3, %v2169_v7  ;;  %v2619_v60 = vpop.permute.xlu1 %2618 }
 0x477   : > { %2621 = vst.msk [vmem:[#allocation5 + $0x1b8] sm:$0xff] %vm1034_vm2, %v2619_v60  ;;  %v2649_v22 = vld [vmem:[#allocation5 + $0xd8] sm:$0xff] }
 0x478   : > { %v2674_v6 = vld [vmem:[#allocation5 + $0x1a0] sm:$0xff] }
 0x479   : > { %3287 = vmatprep.mubr.bf16.mxu1 %v2674_v6  ;;  %v2584_v62 = vpop.permute.xlu0 %2583  ;;  %v2655_v10 = vld [vmem:[#allocation5 + $0x108] sm:$0xff] }
 0x47a   : > { %2586 = vst.msk [vmem:[#allocation5 + $0x140] sm:$0xff] %vm1145_vm5, %v2584_v62  ;;  %3360 = vmatprep.mubr.bf16.mxu0 %v2655_v10  ;;  %v2663_v26 = vld [vmem:[#allocation5 + $0x148] sm:$0xff] }
 0x47b   : > { %3361 = vmatmul.mubr.bf16.gmra.mrb[112].mxu0 %v2654_v42 }
 0x47d   : > { %v2379_v47 = vpop.permute.xlu0 %2378 }
 0x47e   : > { %2381 = vst.msk [vmem:[#allocation5 + $0x1a8] sm:$0xff] %vm1034_vm2, %v2379_v47  ;;  %v2677_v30 = vld [vmem:[#allocation5 + $0x1b8] sm:$0xff] }
 0x47f   : > { %2411 = vst.msk [vmem:[#allocation5 + $0x1a8] sm:$0xff] %vm1095_vm3, %v2409_v39  ;;  %vm6224_vm3 = vcmask 7168  }
 0x480   : > { %2441 = vst.msk [vmem:[#allocation5 + $0x1a8] sm:$0xff] %vm1120_vm4, %v2439_v43 }
 0x481   : > { %2471 = vst.msk [vmem:[#allocation5 + $0x1a8] sm:$0xff] %vm1145_vm5, %v8309_v37  ;;  %v2588_v2 = vpop.permute.xlu0 %2587  ;;  %v2662_v0 = vld [vmem:[#allocation5 + $0x140] sm:$0xff] }
 0x482   : > { %2590 = vst.msk [vmem:[#allocation5 + $0x178] sm:$0xff] %vm1145_vm5, %v2588_v2  ;;  %3368 = vmatprep.mubr.bf16.mxu0 %v2662_v0 }
 0x483   : > { %3369 = vmatmul.mubr.bf16.gmra.mrb[116].mxu0 %v2661_v1 }
 0x485   : > { %v2199_v13 = vpop.permute.xlu0 %2198 }
 0x486   : > { %2201 = vst.msk [vmem:[#allocation5 + $0x198] sm:$0xff] %vm1120_vm4, %v2199_v13 }
 0x487   : > { %2231 = vst.msk [vmem:[#allocation5 + $0x198] sm:$0xff] %vm1145_vm5, %v8148_v63 }
 0x488   : > { %v2675_v24 = vld [vmem:[#allocation5 + $0x1a8] sm:$0xff] }
 0x489   : > { %v2559_v14 = vpop.permute.xlu0 %2558  ;;  %v2669_v36 = vld [vmem:[#allocation5 + $0x178] sm:$0xff] }
 0x48a   : > { %2561 = vst.msk [vmem:[#allocation5 + $0x1b0] sm:$0xff] %vm1120_vm4, %v2559_v14  ;;  %3376 = vmatprep.mubr.bf16.mxu0 %v2669_v36 }
 0x48b   : > { %2591 = vst.msk [vmem:[#allocation5 + $0x1b0] sm:$0xff] %vm1145_vm5, %v8393_v46  ;;  %3377 = vmatmul.mubr.bf16.gmra.mrb[120].mxu0 %v2668_v4 }
 0x48d   : > { %v2601_v37 = vpop.permute.xlu0 %2600 }
 0x48e   : > { %2603 = vst.msk [vmem:[#allocation5 + $0xa0] sm:$0xff] %vm1034_vm2, %v2601_v37  ;;  %v2673_v15 = vld [vmem:[#allocation5 + $0x198] sm:$0xff] }
 0x48f   : > { %3288 = vmatmul.mubr.bf16.gmra.mrb[128].mxu1 %v2673_v15 }
 0x491   : > { %v2597_v18 = vpop.permute.xlu0 %2596 }
 0x492   : > { %2599 = vst.msk [vmem:[#allocation5 + $0x68] sm:$0xff] %vm1034_vm2, %v2597_v18  ;;  %v6800_v53 = vpop.f32.mrb[64].mxu0  ;;  %v2676_v63 = vld [vmem:[#allocation5 + $0x1b0] sm:$0xff] }
 0x493   : > { %v6801_v21 = vpop.f32.mrb[65].mxu0  ;;  %3384 = vmatprep.mubr.bf16.mxu0 %v2676_v63 }
 0x494   : > { %v8835_v16 = vadd.f32 %v6801_v21, %v6800_v53  ;;  %v6803_v27 = vpop.f32.mrb[66].mxu0  ;;  %3385 = vmatmul.mubr.bf16.gmra.mrb[124].mxu0 %v2675_v24 }
 0x495   : > { %v6804_v46 = vpop.f32.mrb[67].mxu0  ;;  %7247 = vmatprep.mubr.msk.bf16.mxu0 %vm1034_vm2, %v2628_v28  ;;  %v2615_v51 = vpop.permute.xlu0 %2614  ;;  %v2642_v57 = vld [vmem:[#allocation5 + $0xa0] sm:$0xff] }
 0x496   : > { %v8838_v32 = vadd.f32 %v6804_v46, %v6803_v27  ;;  %2617 = vst.msk [vmem:[#allocation5 + $0x180] sm:$0xff] %vm1034_vm2, %v2615_v51  ;;  %7251 = vmatprep.mubr.msk.bf16.mxu1 %vm1034_vm2, %v2642_v57 }
 0x497   : > { %7252 = vmatmul.mubr.msk.bf16.vlgmr.msra.gmra.mrb[132].mxu1 %vm1034_vm2, %v2649_v22 }
 0x498   : > { %7255 = vmatprep.mubr.msk.bf16.mxu1 %vm1034_vm2, %v2656_v3 }
 0x499   : > { %v2635_v52 = vld [vmem:[#allocation5 + $0x68] sm:$0xff] }
 0x49a   : > { %v6806_v23 = vpop.f32.mrb[68].mxu0 }
 0x49b   : > { %v6807_v17 = vpop.f32.mrb[69].mxu0 }
 0x49c   : > { %v6808_v9 = vadd.f32 %v6807_v17, %v6806_v23  ;;  %v6809_v12 = vpop.f32.mrb[70].mxu0  ;;  %7248 = vmatmul.mubr.msk.bf16.vlgmr.msra.gmra.mrb[128].mxu0 %vm1034_vm2, %v2635_v52 }
 0x49d   : > { %v6810_v29 = vpop.f32.mrb[71].mxu0  ;;  %3643 = vmatprep.mubr.bf16.mxu0 %v7632_v40  ;;  %v2670_v11 = vld [vmem:[#allocation5 + $0x180] sm:$0xff] }
 0x49e   : > { %v6811_v35 = vadd.f32 %v6810_v29, %v6809_v12 }
 0x49f   : > { %7256 = vmatmul.mubr.msk.bf16.gmra.mrb[136].mxu1 %vm1034_vm2, %v2663_v26 }
 0x4a0   : > { %7259 = vmatprep.mubr.msk.bf16.mxu1 %vm1034_vm2, %v2670_v11 }
 0x4a2   : > { %v6812_v31 = vpop.f32.mrb[72].mxu0 }
 0x4a3   : > { %v6813_v33 = vpop.f32.mrb[73].mxu0 }
 0x4a4   : > { %v6814_v44 = vadd.f32 %v6813_v33, %v6812_v31  ;;  %v6815_v45 = vpop.f32.mrb[74].mxu0 }
 0x4a5   : > { %v6816_v34 = vpop.f32.mrb[75].mxu0 }
 0x4a6   : > { %v6817_v5 = vadd.f32 %v6816_v34, %v6815_v45 }
 0x4a7   : > { %7260 = vmatmul.mubr.msk.bf16.gmra.mrb[140].mxu1 %vm1034_vm2, %v2677_v30 }
 0x4a8   : > { %3744 = vmatprep.mubr.bf16.mxu1 %v7632_v40 }
 0x4aa   : > { %v6818_v49 = vpop.f32.mrb[76].mxu0 }
 0x4ab   : > { %v6819_v38 = vpop.f32.mrb[77].mxu0 }
 0x4ac   : > { %v6820_v58 = vadd.f32 %v6819_v38, %v6818_v49  ;;  %v6821_v41 = vpop.f32.mrb[78].mxu0 }
 0x4ad   : > { %v6822_v25 = vpop.f32.mrb[79].mxu0 }
 0x4ae   : > { %v6823_v19 = vadd.f32 %v6822_v25, %v6821_v41 }
 0x4b2   : > { %v6824_v39 = vpop.f32.mrb[80].mxu0 }
 0x4b3   : > { %v6825_v8 = vpop.f32.mrb[81].mxu0 }
 0x4b4   : > { %v6826_v55 = vadd.f32 %v6825_v8, %v6824_v39  ;;  %v6827_v43 = vpop.f32.mrb[82].mxu0 }
 0x4b5   : > { %v6828_v48 = vpop.f32.mrb[83].mxu0 }
 0x4b6   : > { %v6829_v50 = vadd.f32 %v6828_v48, %v6827_v43 }
 0x4ba   : > { %v6830_v54 = vpop.f32.mrb[84].mxu0 }
 0x4bb   : > { %v6831_v56 = vpop.f32.mrb[85].mxu0 }
 0x4bc   : > { %v6832_v20 = vadd.f32 %v6831_v56, %v6830_v54  ;;  %v6833_v59 = vpop.f32.mrb[86].mxu0 }
 0x4bd   : > { %v6834_v61 = vpop.f32.mrb[87].mxu0 }
 0x4be   : > { %v6835_v7 = vadd.f32 %v6834_v61, %v6833_v59 }
 0x4c2   : > { %v6836_v60 = vpop.f32.mrb[88].mxu0 }
 0x4c3   : > { %v6837_v6 = vpop.f32.mrb[89].mxu0 }
 0x4c4   : > { %v8850_v62 = vadd.f32 %v6837_v6, %v6836_v60  ;;  %v6839_v10 = vpop.f32.mrb[90].mxu0 }
 0x4c5   : > { %v6840_v42 = vpop.f32.mrb[91].mxu0 }
 0x4c6   : > { %v8852_v47 = vadd.f32 %v6840_v42, %v6839_v10 }
 0x4ca   : > { %v6842_v2 = vpop.f32.mrb[92].mxu0 }
 0x4cb   : > { %v6843_v0 = vpop.f32.mrb[93].mxu0 }
 0x4cc   : > { %v8854_v1 = vadd.f32 %v6843_v0, %v6842_v2  ;;  %v6845_v13 = vpop.f32.mrb[94].mxu0 }
 0x4cd   : > { %v6846_v14 = vpop.f32.mrb[95].mxu0 }
 0x4ce   : > { %v8856_v36 = vadd.f32 %v6846_v14, %v6845_v13 }
 0x4f3   : > { %v6864_v4 = vpop.f32.mrb[100].mxu1 }
 0x4f4   : > { %v6865_v37 = vpop.f32.mrb[101].mxu1 }
 0x4f5   : > { %v6866_v15 = vadd.f32 %v6865_v37, %v6864_v4  ;;  %v6867_v18 = vpop.f32.mrb[102].mxu1 }
 0x4f6   : > { %v6868_v53 = vpop.f32.mrb[103].mxu1 }
 0x4f7   : > { %v3234_v63 = vadd.f32 %v6866_v15, %v8835_v16  ;;  %v6869_v21 = vadd.f32 %v6868_v53, %v6867_v18 }
 0x4f9   : > { %v3237_v24 = vadd.f32 %v6869_v21, %v8838_v32 }
 0x4fb   : > { %v6870_v27 = vpop.f32.mrb[104].mxu1 }
 0x4fc   : > { %v6871_v28 = vpop.f32.mrb[105].mxu1 }
 0x4fd   : > { %v6872_v46 = vadd.f32 %v6871_v28, %v6870_v27  ;;  %v6873_v51 = vpop.f32.mrb[106].mxu1 }
 0x4fe   : > { %v6874_v57 = vpop.f32.mrb[107].mxu1 }
 0x4ff   : > { %v3242_v22 = vadd.f32 %v6872_v46, %v6808_v9  ;;  %v6875_v3 = vadd.f32 %v6874_v57, %v6873_v51 }
 0x501   : > { %v3245_v23 = vadd.f32 %v6875_v3, %v6811_v35 }
 0x503   : > { %v6876_v17 = vpop.f32.mrb[108].mxu1 }
 0x504   : > { %v6877_v52 = vpop.f32.mrb[109].mxu1 }
 0x505   : > { %v6878_v12 = vadd.f32 %v6877_v52, %v6876_v17  ;;  %v6879_v29 = vpop.f32.mrb[110].mxu1 }
 0x506   : > { %v6880_v26 = vpop.f32.mrb[111].mxu1 }
 0x507   : > { %v3250_v11 = vadd.f32 %v6878_v12, %v6814_v44  ;;  %v6881_v31 = vadd.f32 %v6880_v26, %v6879_v29 }
 0x509   : > { %v3253_v33 = vadd.f32 %v6881_v31, %v6817_v5 }
 0x50b   : > { %v6882_v16 = vpop.f32.mrb[112].mxu1 }
 0x50c   : > { %v6883_v45 = vpop.f32.mrb[113].mxu1 }
 0x50d   : > { %v6884_v34 = vadd.f32 %v6883_v45, %v6882_v16  ;;  %v6885_v32 = vpop.f32.mrb[114].mxu1 }
 0x50e   : > { %v6886_v30 = vpop.f32.mrb[115].mxu1 }
 0x50f   : > { %v3258_v49 = vadd.f32 %v6884_v34, %v6820_v58  ;;  %v6887_v38 = vadd.f32 %v6886_v30, %v6885_v32 }
 0x511   : > { %v3261_v41 = vadd.f32 %v6887_v38, %v6823_v19 }
 0x513   : > { %v6888_v25 = vpop.f32.mrb[116].mxu1 }
 0x514   : > { %v6889_v9 = vpop.f32.mrb[117].mxu1 }
 0x515   : > { %v6890_v39 = vadd.f32 %v6889_v9, %v6888_v25  ;;  %v6891_v35 = vpop.f32.mrb[118].mxu1 }
 0x516   : > { %v6892_v8 = vpop.f32.mrb[119].mxu1 }
 0x517   : > { %v3266_v43 = vadd.f32 %v6890_v39, %v6826_v55  ;;  %v6893_v48 = vadd.f32 %v6892_v8, %v6891_v35 }
 0x519   : > { %v3269_v54 = vadd.f32 %v6893_v48, %v6829_v50 }
 0x51b   : > { %v6894_v56 = vpop.f32.mrb[120].mxu1 }
 0x51c   : > { %v6895_v44 = vpop.f32.mrb[121].mxu1 }
 0x51d   : > { %v6896_v59 = vadd.f32 %v6895_v44, %v6894_v56  ;;  %v6897_v5 = vpop.f32.mrb[122].mxu1 }
 0x51e   : > { %v6898_v61 = vpop.f32.mrb[123].mxu1 }
 0x51f   : > { %v3274_v60 = vadd.f32 %v6896_v59, %v6832_v20  ;;  %v6899_v6 = vadd.f32 %v6898_v61, %v6897_v5 }
 0x521   : > { %v3277_v10 = vadd.f32 %v6899_v6, %v6835_v7 }
 0x52e   : > { %v6928_v42 = vpop.f32.mrb[96].mxu0 }
 0x52f   : > { %v6929_v58 = vpop.f32.mrb[97].mxu0 }
 0x530   : > { %v6930_v2 = vadd.f32 %v6929_v58, %v6928_v42  ;;  %v6931_v19 = vpop.f32.mrb[98].mxu0 }
 0x531   : > { %v6932_v0 = vpop.f32.mrb[99].mxu0 }
 0x532   : > { %v6933_v13 = vadd.f32 %v6932_v0, %v6931_v19  ;;  %v8860_v14 = vadd.f32 %v6930_v2, %v3234_v63 }
 0x534   : > { %v6900_v4 = vpop.f32.mrb[124].mxu1  ;;  %v8862_v37 = vadd.f32 %v6933_v13, %v3237_v24 }
 0x535   : > { %v6901_v55 = vpop.f32.mrb[125].mxu1 }
 0x536   : > { %v6902_v50 = vadd.f32 %v6901_v55, %v6900_v4  ;;  %v6903_v15 = vpop.f32.mrb[126].mxu1  ;;  %v6934_v53 = vpop.f32.mrb[100].mxu0 }
 0x537   : > { %v6904_v18 = vpop.f32.mrb[127].mxu1  ;;  %v6935_v7 = vpop.f32.mrb[101].mxu0 }
 0x538   : > { %v3282_v20 = vadd.f32 %v6902_v50, %v8850_v62  ;;  %v6905_v21 = vadd.f32 %v6904_v18, %v6903_v15  ;;  %v6936_v27 = vadd.f32 %v6935_v7, %v6934_v53  ;;  %v6937_v28 = vpop.f32.mrb[102].mxu0 }
 0x539   : > { %v6938_v51 = vpop.f32.mrb[103].mxu0 }
 0x53a   : > { %v3285_v46 = vadd.f32 %v6905_v21, %v8852_v47  ;;  %v6939_v57 = vadd.f32 %v6938_v51, %v6937_v28  ;;  %v8866_v63 = vadd.f32 %v6936_v27, %v3242_v22 }
 0x53c   : > { %v8868_v3 = vadd.f32 %v6939_v57, %v3245_v23 }
 0x53e   : > { %v6940_v24 = vpop.f32.mrb[104].mxu0 }
 0x53f   : > { %v6941_v17 = vpop.f32.mrb[105].mxu0 }
 0x540   : > { %v6942_v52 = vadd.f32 %v6941_v17, %v6940_v24  ;;  %v6943_v12 = vpop.f32.mrb[106].mxu0 }
 0x541   : > { %v6944_v29 = vpop.f32.mrb[107].mxu0 }
 0x542   : > { %v6945_v26 = vadd.f32 %v6944_v29, %v6943_v12  ;;  %v3347_v31 = vadd.f32 %v6942_v52, %v3250_v11 }
 0x544   : > { %v3350_v62 = vadd.f32 %v6945_v26, %v3253_v33 }
 0x546   : > { %v6946_v16 = vpop.f32.mrb[108].mxu0 }
 0x547   : > { %v6947_v45 = vpop.f32.mrb[109].mxu0 }
 0x548   : > { %v6948_v34 = vadd.f32 %v6947_v45, %v6946_v16  ;;  %v6949_v32 = vpop.f32.mrb[110].mxu0 }
 0x549   : > { %v6950_v30 = vpop.f32.mrb[111].mxu0 }
 0x54a   : > { %v6951_v47 = vadd.f32 %v6950_v30, %v6949_v32  ;;  %v3355_v38 = vadd.f32 %v6948_v34, %v3258_v49 }
 0x54c   : > { %v3358_v25 = vadd.f32 %v6951_v47, %v3261_v41 }
 0x54e   : > { %v6952_v22 = vpop.f32.mrb[112].mxu0 }
 0x54f   : > { %v6953_v9 = vpop.f32.mrb[113].mxu0 }
 0x550   : > { %v6954_v23 = vadd.f32 %v6953_v9, %v6952_v22  ;;  %v6955_v39 = vpop.f32.mrb[114].mxu0 }
 0x551   : > { %v6956_v35 = vpop.f32.mrb[115].mxu0 }
 0x552   : > { %v6957_v8 = vadd.f32 %v6956_v35, %v6955_v39  ;;  %v3363_v48 = vadd.f32 %v6954_v23, %v3266_v43 }
 0x554   : > { %v8870_v56 = vadd.f32 %v6957_v8, %v3269_v54 }
 0x556   : > { %v6958_v44 = vpop.f32.mrb[116].mxu0 }
 0x557   : > { %v6959_v11 = vpop.f32.mrb[117].mxu0 }
 0x558   : > { %v6960_v33 = vadd.f32 %v6959_v11, %v6958_v44  ;;  %v6961_v59 = vpop.f32.mrb[118].mxu0 }
 0x559   : > { %v6962_v5 = vpop.f32.mrb[119].mxu0 }
 0x55a   : > { %v6963_v61 = vadd.f32 %v6962_v5, %v6961_v59  ;;  %v3371_v6 = vadd.f32 %v6960_v33, %v3274_v60 }
 0x55c   : > { %v3374_v42 = vadd.f32 %v6963_v61, %v3277_v10 }
 0x55e   : > { %v6964_v58 = vpop.f32.mrb[120].mxu0 }
 0x55f   : > { %v6965_v49 = vpop.f32.mrb[121].mxu0 }
 0x560   : > { %v6966_v41 = vadd.f32 %v6965_v49, %v6964_v58  ;;  %v6967_v2 = vpop.f32.mrb[122].mxu0 }
 0x561   : > { %v6968_v19 = vpop.f32.mrb[123].mxu0 }
 0x562   : > { %v6969_v0 = vadd.f32 %v6968_v19, %v6967_v2  ;;  %v6906_v13 = vpop.f32.mrb[128].mxu1  ;;  %v3379_v4 = vadd.f32 %v6966_v41, %v3282_v20 }
 0x563   : > { %v6907_v55 = vpop.f32.mrb[129].mxu1 }
 0x564   : > { %v6908_v43 = vadd.f32 %v6907_v55, %v6906_v13  ;;  %v6909_v54 = vpop.f32.mrb[130].mxu1  ;;  %v3382_v50 = vadd.f32 %v6969_v0, %v3285_v46 }
 0x565   : > { %v6910_v15 = vpop.f32.mrb[131].mxu1 }
 0x566   : > { %v3290_v18 = vadd.f32 %v6908_v43, %v8854_v1  ;;  %v6911_v53 = vadd.f32 %v6910_v15, %v6909_v54 }
 0x567   : > { %v6970_v21 = vpop.f32.mrb[124].mxu0 }
 0x568   : > { %v3293_v60 = vadd.f32 %v6911_v53, %v8856_v36  ;;  %v6971_v10 = vpop.f32.mrb[125].mxu0  ;;  %v7426_v53 = vld [vmem:[%s10132_s4] sm:$0xff]  }
 0x569   : > { %v6972_v7 = vadd.f32 %v6971_v10, %v6970_v21  ;;  %v6973_v27 = vpop.f32.mrb[126].mxu0 }
 0x56a   : > { %v6974_v28 = vpop.f32.mrb[127].mxu0  ;;  %v7253_v51 = vpop.f32.mrb[132].mxu1 }
 0x56b   : > { %v6975_v57 = vadd.f32 %v6974_v28, %v6973_v27  ;;  %v3452_v24 = vadd.f32 %v7253_v51, %v3355_v38  ;;  %v3443_v17 = vpop.f32.mrb[133].mxu1  ;;  %v3387_v20 = vadd.f32 %v6972_v7, %v3290_v18  ;;  %v7428_v27 = vld [vmem:[%s10132_s4 + $0x10] sm:$0xff]   ;;  %v7429_v28 = vld [vmem:[%s10132_s4 + $0x18] sm:$0xff]   ;;  %v7430_v51 = vld [vmem:[%s10132_s4 + $0x20] sm:$0xff]  }
 0x56c   : > { %v3444_v52 = vadd.f32 %v3443_v17, %v3347_v31  ;;  %v7254_v12 = vpop.f32.mrb[134].mxu1 }
 0x56d   : > { %v3455_v29 = vadd.f32 %v7254_v12, %v3358_v25  ;;  %v3446_v46 = vpop.f32.mrb[135].mxu1  ;;  %v3390_v26 = vadd.f32 %v6975_v57, %v3293_v60  ;;  %v7427_v60 = vld [vmem:[%s10132_s4 + $0x8] sm:$0xff]  }
 0x56e   : > { %v3447_v16 = vadd.f32 %v3446_v46, %v3350_v62  ;;  %v7431_v57 = vld [vmem:[%s10132_s4 + $0x28] sm:$0xff]  }
 0x56f   : > { %v3493_v1 = vpack.c.bf16 %v3455_v29, %v3452_v24  ;;  %v7249_v45 = vpop.f32.mrb[128].mxu0  ;;  %v7432_v24 = vld [vmem:[%s10132_s4 + $0x30] ss:$0 sps:$4 sm:$0x33]  }
 0x570   : > { %v3492_v34 = vpack.c.bf16 %v3447_v16, %v3444_v52  ;;  %v3436_v36 = vadd.f32 %v7249_v45, %v8866_v63  ;;  %v3427_v32 = vpop.f32.mrb[129].mxu0 }
 0x571   : > { %3501 = vst.msk [vmem:[#allocation6 + $0x18] sm:$0xff] %vm1413_vm6, %v3493_v1  ;;  %v3428_v30 = vadd.f32 %v3427_v32, %v8860_v14  ;;  %v7250_v47 = vpop.f32.mrb[130].mxu0 }
 0x572   : > { %3500 = vst.msk [vmem:[#allocation6 + $0x10] sm:$0xff] %vm1413_vm6, %v3492_v34  ;;  %v3439_v31 = vadd.f32 %v7250_v47, %v8868_v3  ;;  %v3430_v38 = vpop.f32.mrb[131].mxu0  ;;  %v7257_v25 = vpop.f32.mrb[136].mxu1 }
 0x573   : > { %v3431_v22 = vadd.f32 %v3430_v38, %v8862_v37  ;;  %v3468_v62 = vadd.f32 %v7257_v25, %v3371_v6  ;;  %v3459_v9 = vpop.f32.mrb[137].mxu1 }
 0x574   : > { %v3491_v23 = vpack.c.bf16 %v3439_v31, %v3436_v36  ;;  %v3460_v39 = vadd.f32 %v3459_v9, %v3363_v48  ;;  %v7258_v35 = vpop.f32.mrb[138].mxu1 }
 0x575   : > { %v3490_v63 = vpack.c.bf16 %v3431_v22, %v3428_v30  ;;  %v3471_v8 = vadd.f32 %v7258_v35, %v3374_v42  ;;  %v3462_v44 = vpop.f32.mrb[139].mxu1 }
 0x576   : > { %3499 = vst.msk [vmem:[#allocation6 + $0x8] sm:$0xff] %vm1413_vm6, %v3491_v23  ;;  %v3463_v14 = vadd.f32 %v3462_v44, %v8870_v56 }
 0x577   : > { %3498 = vst.msk [vmem:[#allocation6] sm:$0xff] %vm1413_vm6, %v3490_v63  ;;  %v3495_v11 = vpack.c.bf16 %v3471_v8, %v3468_v62 }
 0x578   : > { %v3494_v3 = vpack.c.bf16 %v3463_v14, %v3460_v39  ;;  %v3517_v33 = vld [vmem:[#allocation6 + $0x18] sm:$0xff] }
 0x579   : > { %3503 = vst.msk [vmem:[#allocation6 + $0x28] sm:$0xff] %vm1413_vm6, %v3495_v11  ;;  %3519 = vrot.lane.b32.xlu0 %v3517_v33, %s7630_s13  ;;  %v3515_v37 = vld [vmem:[#allocation6 + $0x10] sm:$0xff]  ;;  %v7495_v33 = vld [vmem:[%s10133_s5] sm:$0xff]  }
 0x57a   : > { %3502 = vst.msk [vmem:[#allocation6 + $0x20] sm:$0xff] %vm1413_vm6, %v3494_v3  ;;  %v7261_v48 = vpop.f32.mrb[140].mxu1  ;;  %3516 = vst.msk [vmem:[#allocation7 + $0x8] sm:$0xff] %vm1413_vm6, %v3515_v37  ;;  %v7493_v3 = vld [vmem:[%s10133_s5 + $0x40] sm:$0xff]  }
 0x57b   : > { %v3484_v59 = vadd.f32 %v7261_v48, %v3387_v20  ;;  %v3475_v5 = vpop.f32.mrb[141].mxu1 }
 0x57c   : > { %v3476_v61 = vadd.f32 %v3475_v5, %v3379_v4  ;;  %v7262_v6 = vpop.f32.mrb[142].mxu1 }
 0x57d   : > { %v3487_v56 = vadd.f32 %v7262_v6, %v3390_v26  ;;  %v3478_v42 = vpop.f32.mrb[143].mxu1  ;;  %v3508_v58 = vld [vmem:[#allocation6 + $0x8] sm:$0xff] }
 0x57e   : > { %v3479_v49 = vadd.f32 %v3478_v42, %v3382_v50  ;;  %3510 = vrot.lane.b32.xlu1 %v3508_v58, %s7630_s13  ;;  %v3506_v41 = vld [vmem:[#allocation6] sm:$0xff] }
 0x57f   : > { %v3497_v2 = vpack.c.bf16 %v3487_v56, %v3484_v59  ;;  %3507 = vst.msk [vmem:[#allocation7] sm:$0xff] %vm1413_vm6, %v3506_v41 }
 0x580   : > { %v3496_v19 = vpack.c.bf16 %v3479_v49, %v3476_v61  ;;  %v3525_v0 = vld [vmem:[#allocation6 + $0x28] sm:$0xff] }
 0x581   : > { %3505 = vst.msk [vmem:[#allocation6 + $0x38] sm:$0xff] %vm1413_vm6, %v3497_v2  ;;  %v3523_v13 = vld [vmem:[#allocation6 + $0x20] sm:$0xff] }
 0x582   : > { %3504 = vst.msk [vmem:[#allocation6 + $0x30] sm:$0xff] %vm1413_vm6, %v3496_v19  ;;  %3527 = vrot.lane.b32.xlu1 %v3525_v0, %s7630_s13  ;;  %3524 = vst.msk [vmem:[#allocation7 + $0x10] sm:$0xff] %vm1413_vm6, %v3523_v13  ;;  %v7496_v19 = vld [vmem:[%s10133_s5 + $0x48] sm:$0xff]  }
 0x583   : > { %v7499_v0 = vld [vmem:[%s10133_s5 + $0x8] sm:$0xff]  }
 0x588   : > { %v3533_v4 = vld [vmem:[#allocation6 + $0x38] sm:$0xff] }
 0x589   : > { %3535 = vrot.lane.b32.xlu0 %v3533_v4, %s7630_s13  ;;  %v3531_v55 = vld [vmem:[#allocation6 + $0x30] sm:$0xff] }
 0x58a   : > { %3532 = vst.msk [vmem:[#allocation7 + $0x18] sm:$0xff] %vm1413_vm6, %v3531_v55 }
 0x5eb   : > { %v3520_v43 = vpop.permute.xlu0 %3519 }
 0x5ec   : > { %3522 = vst.msk [vmem:[#allocation7 + $0x8] sm:$0xff] %vm3513_vm7, %v3520_v43 }
 0x5f0   : > { %v3511_v54 = vpop.permute.xlu1 %3510 }
 0x5f1   : > { %3514 = vst.msk [vmem:[#allocation7] sm:$0xff] %vm3513_vm7, %v3511_v54 }
 0x5f3   : > { %v3553_v50 = vld [vmem:[#allocation7 + $0x8] sm:$0xff] }
 0x5f4   : > { %3611 = vmatprep.subr.bf16.mxu0 %v3553_v50  ;;  %v3528_v15 = vpop.permute.xlu1 %3527 }
 0x5f5   : > { %3530 = vst.msk [vmem:[#allocation7 + $0x10] sm:$0xff] %vm3513_vm7, %v3528_v15 }
 0x5f8   : > { %v3552_v18 = vld [vmem:[#allocation7] sm:$0xff] }
 0x5f9   : > { %3612 = vmatpush1.bf16.msra.mxu0 %v3552_v18 }
 0x5fa   : > { %6986 = vmatprep.subr.bf16.mxu0 %v7493_v3 }
 0x5fb   : > { %v3536_v21 = vpop.permute.xlu0 %3535 }
 0x5fc   : > { %3538 = vst.msk [vmem:[#allocation7 + $0x18] sm:$0xff] %vm3513_vm7, %v3536_v21  ;;  %6473 = vmatmul.mubr.msk.bf16.vlgmr.msra.gmra.mrb[132].mxu0 %vm3589_vm8, %v7426_v53  ;;  %v3554_v7 = vld [vmem:[#allocation7 + $0x10] sm:$0xff] }
 0x5fd   : > { %3653 = vmatprep.mubr.bf16.mxu0 %v7632_v40  ;;  %6987 = vmatpush3.bf16.msra.mxu0 %v7495_v33 }
 0x5fe   : > { %6988 = vmatprep.subr.bf16.mxu0 %v7496_v19 }
 0x601   : > { %6989 = vmatpush3.bf16.msra.mxu0 %v7499_v0 }
 0x603   : > { %v3555_v10 = vld [vmem:[#allocation7 + $0x18] sm:$0xff] }
 0x604   : > { %3712 = vmatprep.subr.bf16.mxu1 %v3555_v10  ;;  %6474 = vmatmul.mubr.msk.bf16.gmra.mrb[136].mxu0 %vm3589_vm8, %v7427_v60 }
 0x605   : > { %3713 = vmatpush1.bf16.msra.mxu1 %v3554_v7  ;;  %3663 = vmatprep.mubr.bf16.mxu0 %v7632_v40 }
 0x608   : > { %6480 = vmatmul.mubr.msk.bf16.vlgmr.msra.gmra.mrb[144].mxu1 %vm3589_vm8, %v7426_v53 }
 0x609   : > { %3754 = vmatprep.mubr.bf16.mxu1 %v7632_v40 }
 0x60c   : > { %6475 = vmatmul.mubr.msk.bf16.gmra.mrb[140].mxu0 %vm3589_vm8, %v7428_v27 }
 0x60d   : > { %3673 = vmatprep.mubr.bf16.mxu0 %v7632_v40 }
 0x610   : > { %6481 = vmatmul.mubr.msk.bf16.gmra.mrb[148].mxu1 %vm3589_vm8, %v7427_v60  ;;  %v7500_v60 = vld [vmem:[%s10133_s5 + $0x50] sm:$0xff]  }
 0x611   : > { %3764 = vmatprep.mubr.bf16.mxu1 %v7632_v40  ;;  %6990 = vmatprep.subr.bf16.mxu0 %v7500_v60 }
 0x614   : > { %6476 = vmatmul.mubr.msk.bf16.gmra.mrb[144].mxu0 %vm3589_vm8, %v7429_v28 }
 0x615   : > { %3683 = vmatprep.mubr.bf16.mxu0 %v7632_v40 }
 0x618   : > { %6482 = vmatmul.mubr.msk.bf16.gmra.mrb[152].mxu1 %vm3589_vm8, %v7428_v27 }
 0x619   : > { %3774 = vmatprep.mubr.bf16.mxu1 %v7632_v40 }
 0x61c   : > { %6477 = vmatmul.mubr.msk.bf16.gmra.mrb[148].mxu0 %vm3589_vm8, %v7430_v51 }
 0x61d   : > { %3693 = vmatprep.mubr.bf16.mxu0 %v7632_v40 }
 0x620   : > { %6483 = vmatmul.mubr.msk.bf16.gmra.mrb[156].mxu1 %vm3589_vm8, %v7429_v28 }
 0x621   : > { %3784 = vmatprep.mubr.bf16.mxu1 %v7632_v40 }
 0x624   : > { %6478 = vmatmul.mubr.msk.bf16.gmra.mrb[152].mxu0 %vm3589_vm8, %v7431_v57 }
 0x625   : > { %3703 = vmatprep.mubr.bf16.mxu0 %v7632_v40 }
 0x628   : > { %6484 = vmatmul.mubr.msk.bf16.gmra.mrb[160].mxu1 %vm3589_vm8, %v7430_v51  ;;  %v7502_v51 = vld [vmem:[%s10133_s5 + $0x10] sm:$0xff]  }
 0x629   : > { %3794 = vmatprep.mubr.bf16.mxu1 %v7632_v40  ;;  %6991 = vmatpush3.bf16.msra.mxu0 %v7502_v51 }
 0x62c   : > { %6479 = vmatmul.mubr.msk.bf16.gmra.mrb[156].mxu0 %vm3589_vm8, %v7432_v24 }
 0x630   : > { %6485 = vmatmul.mubr.msk.bf16.gmra.mrb[164].mxu1 %vm3589_vm8, %v7431_v57 }
 0x631   : > { %3804 = vmatprep.mubr.bf16.mxu1 %v7632_v40 }
 0x638   : > { %6486 = vmatmul.mubr.msk.bf16.gmra.mrb[168].mxu1 %vm3589_vm8, %v7432_v24 }
 0x6cf   : > { %v3645_v17 = vpop.f32.mrb[132].mxu0 }
 0x6d0   : > { %v3647_v20 = vpop.f32.mrb[133].mxu0 }
 0x6d1   : > { %v6719_v52 = vpack.c.bf16 %v3647_v20, %v3645_v17  ;;  %v3649_v12 = vpop.f32.mrb[134].mxu0 }
 0x6d2   : > { %v3651_v29 = vpop.f32.mrb[135].mxu0 }
 0x6d3   : > { %3973 = vst [vmem:[#allocation8] sm:$0xff] %v6719_v52  ;;  %v6721_v46 = vpack.c.bf16 %v3651_v29, %v3649_v12 }
 0x6d5   : > { %3975 = vst [vmem:[#allocation8 + $0x10] sm:$0xff] %v6721_v46 }
 0x6d7   : > { %v3655_v26 = vpop.f32.mrb[136].mxu0 }
 0x6d8   : > { %v3657_v16 = vpop.f32.mrb[137].mxu0 }
 0x6d9   : > { %v6723_v1 = vpack.c.bf16 %v3657_v16, %v3655_v26  ;;  %v3659_v45 = vpop.f32.mrb[138].mxu0 }
 0x6da   : > { %v8942_v34 = vld [vmem:[#allocation8] sm:$0x33]  ;;  %v3661_v36 = vpop.f32.mrb[139].mxu0  ;;  %v9038_v57 = vld [vmem:[#allocation8] sm:$0xcc] }
 0x6db   : > { %v3746_v32 = vpop.f32.mrb[144].mxu1  ;;  %v8946_v40 = vcombine.high %v8942_v34, %v8942_v34  ;;  %3977 = vst [vmem:[#allocation8 + $0x20] sm:$0xff] %v6723_v1  ;;  %4002 = vst.msk [vmem:[#allocation9] sm:$0x3] %vm4001_vm9, %v8942_v34  ;;  %v6725_v31 = vpack.c.bf16 %v3661_v36, %v3659_v45  ;;  %v6513_v10 = vcombine.low %v8942_v34, %v8942_v34  ;;  %v7503_v1 = vld [vmem:[%s10133_s5 + $0x58] sm:$0xff]  }
 0x6dc   : > { %v3748_v30 = vpop.f32.mrb[145].mxu1  ;;  %v8950_v47 = vld [vmem:[#allocation8 + $0x10] sm:$0x33]  ;;  %6992 = vmatprep.subr.bf16.mxu0 %v7503_v1 }
 0x6dd   : > { %v6720_v38 = vpack.c.bf16 %v3748_v30, %v3746_v32  ;;  %v3750_v25 = vpop.f32.mrb[146].mxu1  ;;  %4016 = vst.msk [vmem:[#allocation9] sm:$0x30] %vm4015_vm10, %v8946_v40  ;;  %v8958_v62 = vcombine.high %v8950_v47, %v8950_v47  ;;  %3979 = vst [vmem:[#allocation8 + $0x30] sm:$0xff] %v6725_v31  ;;  %v4017_v45 = vrot.slane %v8946_v40, 2  ;;  %v4006_v34 = vrot.slane %v6513_v10, 6 }
 0x6de   : > { %4085 = vst.msk [vmem:[#allocation9 + $0x8] sm:$0x3] %vm4001_vm9, %v8950_v47  ;;  %v3752_v22 = vpop.f32.mrb[147].mxu1  ;;  %v7506_v30 = vld [vmem:[%s10133_s5 + $0x18] sm:$0xff]   ;;  %v9072_v31 = vcombine.high %v9038_v57, %v9038_v57 }
 0x6df   : > { %3974 = vst [vmem:[#allocation8 + $0x8] sm:$0xff] %v6720_v38  ;;  %v6722_v9 = vpack.c.bf16 %v3752_v22, %v3750_v25  ;;  %v3665_v23 = vpop.f32.mrb[140].mxu0  ;;  %4097 = vst.msk [vmem:[#allocation9 + $0x8] sm:$0x30] %vm4015_vm10, %v8958_v62  ;;  %v6517_v25 = vcombine.low %v9038_v57, %v9038_v57  ;;  %6993 = vmatpush3.bf16.msra.mxu0 %v7506_v30 }
 0x6e0   : > { %v3667_v39 = vpop.f32.mrb[141].mxu0  ;;  %v4056_v3 = vrot.slane %v9072_v31, 6 }
 0x6e1   : > { %3976 = vst [vmem:[#allocation8 + $0x18] sm:$0xff] %v6722_v9  ;;  %v6727_v35 = vpack.c.bf16 %v3667_v39, %v3665_v23  ;;  %v3669_v63 = vpop.f32.mrb[142].mxu0  ;;  %v7507_v39 = vld [vmem:[%s10133_s5 + $0x60] sm:$0xff]  }
 0x6e2   : > { %v8962_v8 = vld [vmem:[#allocation8 + $0x20] sm:$0x33]  ;;  %v3671_v44 = vpop.f32.mrb[143].mxu0  ;;  %6994 = vmatprep.subr.bf16.mxu0 %v7507_v39 }
 0x6e3   : > { %v3756_v14 = vpop.f32.mrb[148].mxu1  ;;  %v8966_v11 = vcombine.high %v8962_v8, %v8962_v8  ;;  %3981 = vst [vmem:[#allocation8 + $0x40] sm:$0xff] %v6727_v35  ;;  %4161 = vst.msk [vmem:[#allocation9 + $0x10] sm:$0x3] %vm4001_vm9, %v8962_v8  ;;  %v6729_v48 = vpack.c.bf16 %v3671_v44, %v3669_v63 }
 0x6e4   : > { %v3758_v37 = vpop.f32.mrb[149].mxu1  ;;  %v8976_v61 = vld [vmem:[#allocation8 + $0x30] sm:$0x33] }
 0x6e5   : > { %v6724_v59 = vpack.c.bf16 %v3758_v37, %v3756_v14  ;;  %v3760_v5 = vpop.f32.mrb[150].mxu1  ;;  %4173 = vst.msk [vmem:[#allocation9 + $0x10] sm:$0x30] %vm4015_vm10, %v8966_v11  ;;  %v8984_v58 = vcombine.high %v8976_v61, %v8976_v61  ;;  %3983 = vst [vmem:[#allocation8 + $0x50] sm:$0xff] %v6729_v48  ;;  %v7509_v14 = vld [vmem:[%s10133_s5 + $0x20] sm:$0xff]   ;;  %v4046_v37 = vrot.slane %v6517_v25, 2 }
 0x6e6   : > { %v4000_v6 = vld [vmem:[#allocation8 + $0x8] sm:$0x33]  ;;  %v8980_v56 = vld [vmem:[#allocation8 + $0x8] sm:$0xcc]  ;;  %v3762_v42 = vpop.f32.mrb[151].mxu1  ;;  %6995 = vmatpush3.bf16.msra.mxu0 %v7509_v14  ;;  %v7517_v14 = vld [vmem:[%s10133_s5 + $0x78] sm:$0xff]  }
 0x6e7   : > { %4237 = vst.msk [vmem:[#allocation9 + $0x18] sm:$0x3] %vm4001_vm9, %v8976_v61  ;;  %v6516_v49 = vcombine.high %v4000_v6, %v4000_v6  ;;  %v6515_v41 = vcombine.low %v4000_v6, %v4000_v6  ;;  %3978 = vst [vmem:[#allocation8 + $0x28] sm:$0xff] %v6724_v59  ;;  %v8988_v2 = vpop.f32.mrb[144].mxu0  ;;  %v6726_v4 = vpack.c.bf16 %v3762_v42, %v3760_v5 }
 0x6e8   : > { %4023 = vst.msk [vmem:[#allocation9 + $0x68] sm:$0x3] %vm4001_vm9, %v4000_v6  ;;  %v8997_v13 = vld [vmem:[#allocation8 + $0x18] sm:$0x33]  ;;  %v9003_v54 = vcombine.high %v8980_v56, %v8980_v56  ;;  %v6519_v50 = vcombine.low %v8980_v56, %v8980_v56  ;;  %v9007_v15 = vpop.f32.mrb[145].mxu0 }
 0x6e9   : > { %4249 = vst.msk [vmem:[#allocation9 + $0x18] sm:$0x30] %vm4015_vm10, %v8984_v58  ;;  %v4036_v55 = vrot.slane %v6516_v49, 2  ;;  %v4027_v43 = vrot.slane %v6515_v41, 6  ;;  %4035 = vst.msk [vmem:[#allocation9 + $0x68] sm:$0x30] %vm4015_vm10, %v6516_v49  ;;  %v9014_v18 = vcombine.high %v8997_v13, %v8997_v13  ;;  %v6731_v63 = vpack.c.bf16 %v9007_v15, %v8988_v2 }
 0x6ea   : > { %4103 = vst.msk [vmem:[#allocation9 + $0x70] sm:$0x3] %vm4001_vm9, %v8997_v13  ;;  %3980 = vst [vmem:[#allocation8 + $0x38] sm:$0xff] %v6726_v4  ;;  %v9016_v53 = vld [vmem:[#allocation8 + $0x40] sm:$0x33]  ;;  %v9018_v21 = vpop.f32.mrb[146].mxu0  ;;  %v6523_v48 = vcombine.low %v8997_v13, %v8997_v13 }
 0x6eb   : > { %4037 = vrot.lane.b32.xlu1 %v4036_v55, %s7630_s13  ;;  %4028 = vrot.lane.b32.xlu0 %v4027_v43, %s7630_s13  ;;  %v3766_v7 = vpop.f32.mrb[152].mxu1  ;;  %v9029_v27 = vcombine.high %v9016_v53, %v9016_v53  ;;  %v9031_v28 = vpop.f32.mrb[147].mxu0  ;;  %4313 = vst.msk [vmem:[#allocation9 + $0x20] sm:$0x3] %vm4001_vm9, %v9016_v53  ;;  %v4076_v17 = vrot.slane %v9003_v54, 6  ;;  %v4068_v20 = vrot.slane %v6519_v50, 2 }
 0x6ec   : > { %v3768_v24 = vpop.f32.mrb[153].mxu1  ;;  %4115 = vst.msk [vmem:[#allocation9 + $0x70] sm:$0x30] %vm4015_vm10, %v9014_v18  ;;  %v9043_v29 = vld [vmem:[#allocation8 + $0x50] sm:$0x33]  ;;  %3985 = vst [vmem:[#allocation8 + $0x60] sm:$0xff] %v6731_v63  ;;  %v6733_v6 = vpack.c.bf16 %v9031_v28, %v9018_v21 }
 0x6ed   : > { %v6728_v52 = vpack.c.bf16 %v3768_v24, %v3766_v7  ;;  %v3770_v12 = vpop.f32.mrb[154].mxu1  ;;  %4325 = vst.msk [vmem:[#allocation9 + $0x20] sm:$0x30] %vm4015_vm10, %v9029_v27  ;;  %v9051_v16 = vcombine.high %v9043_v29, %v9043_v29  ;;  %v9105_v42 = vld [vmem:[#allocation8 + $0x18] sm:$0xcc]  ;;  %v7510_v13 = vld [vmem:[%s10133_s5 + $0x68] sm:$0xff]  }
 0x6ee   : > { %v9047_v46 = vld [vmem:[#allocation8 + $0x28] sm:$0x33]  ;;  %v3772_v26 = vpop.f32.mrb[155].mxu1  ;;  %4389 = vst.msk [vmem:[#allocation9 + $0x28] sm:$0x3] %vm4001_vm9, %v9043_v29  ;;  %3987 = vst [vmem:[#allocation8 + $0x70] sm:$0xff] %v6733_v6  ;;  %v9126_v15 = vcombine.high %v9105_v42, %v9105_v42  ;;  %v6527_v21 = vcombine.low %v9105_v42, %v9105_v42  ;;  %6996 = vmatprep.subr.bf16.mxu0 %v7510_v13 }
 0x6ef   : > { %4077 = vrot.lane.b32.xlu1 %v4076_v17, %s7630_s13  ;;  %4069 = vrot.lane.b32.xlu0 %v4068_v20, %s7630_s13  ;;  %v9063_v36 = vcombine.high %v9047_v46, %v9047_v46  ;;  %3982 = vst [vmem:[#allocation8 + $0x48] sm:$0xff] %v6728_v52  ;;  %4179 = vst.msk [vmem:[#allocation9 + $0x78] sm:$0x3] %vm4001_vm9, %v9047_v46  ;;  %v3685_v32 = vpop.f32.mrb[148].mxu0  ;;  %v6730_v38 = vpack.c.bf16 %v3772_v26, %v3770_v12  ;;  %v7513_v4 = vld [vmem:[%s10133_s5 + $0x28] sm:$0xff]   ;;  %v4116_v43 = vrot.slane %v9014_v18, 2 }
 0x6f0   : > { %4401 = vst.msk [vmem:[#allocation9 + $0x28] sm:$0x30] %vm4015_vm10, %v9051_v16  ;;  %v3687_v40 = vpop.f32.mrb[149].mxu0  ;;  %v4107_v50 = vrot.slane %v6523_v48, 6  ;;  %6997 = vmatpush3.bf16.msra.mxu0 %v7513_v4  ;;  %v7514_v18 = vld [vmem:[%s10133_s5 + $0x70] sm:$0xff]   ;;  %v4152_v24 = vrot.slane %v9126_v15, 6  ;;  %v6521_v20 = vcombine.low %v8950_v47, %v8950_v47  ;;  %v6531_v48 = vcombine.low %v9047_v46, %v9047_v46 }
 0x6f1   : > { %v9078_v22 = vld [vmem:[#allocation8 + $0x38] sm:$0x33]  ;;  %4191 = vst.msk [vmem:[#allocation9 + $0x78] sm:$0x30] %vm4015_vm10, %v9063_v36  ;;  %3984 = vst [vmem:[#allocation8 + $0x58] sm:$0xff] %v6730_v38  ;;  %v3689_v23 = vpop.f32.mrb[150].mxu0  ;;  %v6735_v41 = vpack.c.bf16 %v3687_v40, %v3685_v32  ;;  %6998 = vmatprep.subr.bf16.mxu0 %v7514_v18 }
 0x6f2   : > { %v9084_v9 = vcombine.high %v9078_v22, %v9078_v22  ;;  %4255 = vst.msk [vmem:[#allocation9 + $0x80] sm:$0x3] %vm4001_vm9, %v9078_v22  ;;  %v3691_v44 = vpop.f32.mrb[151].mxu0  ;;  %v7516_v28 = vld [vmem:[%s10133_s5 + $0x30] sm:$0xff]   ;;  %v4144_v17 = vrot.slane %v6527_v21, 2  ;;  %v4089_v39 = vrot.slane %v6521_v20, 6 }
 0x6f3   : > { %4018 = vrot.lane.b32.xlu1 %v4017_v45, %s7630_s13  ;;  %4007 = vrot.lane.b32.xlu0 %v4006_v34, %s7630_s13  ;;  %v3776_v35 = vpop.f32.mrb[156].mxu1  ;;  %v6737_v2 = vpack.c.bf16 %v3691_v44, %v3689_v23  ;;  %3989 = vst [vmem:[#allocation8 + $0x80] sm:$0xff] %v6735_v41  ;;  %v9148_v51 = vld [vmem:[#allocation8 + $0x60] sm:$0x33]  ;;  %v9155_v52 = vld [vmem:[#allocation8 + $0x10] sm:$0xcc] }
 0x6f4   : > { %v3778_v33 = vpop.f32.mrb[157].mxu1  ;;  %4267 = vst.msk [vmem:[#allocation9 + $0x80] sm:$0x30] %vm4015_vm10, %v9084_v9  ;;  %v9159_v12 = vcombine.high %v9148_v51, %v9148_v51  ;;  %6999 = vmatpush3.bf16.msra.mxu0 %v7516_v28  ;;  %v9185_v40 = vcombine.high %v9155_v52, %v9155_v52  ;;  %v4098_v23 = vrot.slane %v8958_v62, 2  ;;  %v7523_v6 = vld [vmem:[%s10133_s5 + $0x80] sm:$0xff]   ;;  %v7524_v21 = vld [vmem:[%s10133_s5 + $0xc8] sm:$0xff]  }
 0x6f5   : > { %v6732_v59 = vpack.c.bf16 %v3778_v33, %v3776_v35  ;;  %v3780_v5 = vpop.f32.mrb[158].mxu1  ;;  %3991 = vst [vmem:[#allocation8 + $0x90] sm:$0xff] %v6737_v2  ;;  %4465 = vst.msk [vmem:[#allocation9 + $0x30] sm:$0x3] %vm4001_vm9, %v9148_v51  ;;  %v9167_v32 = vld [vmem:[#allocation8 + $0x70] sm:$0x33]  ;;  %v6525_v35 = vcombine.low %v9155_v52, %v9155_v52  ;;  %7000 = vmatprep.subr.bf16.mxu0 %v7517_v14 }
 0x6f6   : > { %v9107_v49 = vld [vmem:[#allocation8 + $0x48] sm:$0x33]  ;;  %v3782_v0 = vpop.f32.mrb[159].mxu1  ;;  %4477 = vst.msk [vmem:[#allocation9 + $0x30] sm:$0x30] %vm4015_vm10, %v9159_v12  ;;  %v9198_v44 = vcombine.high %v9167_v32, %v9167_v32  ;;  %v7520_v33 = vld [vmem:[%s10133_s5 + $0x38] sm:$0xff]  }
 0x6f7   : > { %4057 = vrot.lane.b32.xlu1 %v4056_v3, %s7630_s13  ;;  %4047 = vrot.lane.b32.xlu0 %v4046_v37, %s7630_s13  ;;  %v9113_v19 = vcombine.high %v9107_v49, %v9107_v49  ;;  %3986 = vst [vmem:[#allocation8 + $0x68] sm:$0xff] %v6732_v59  ;;  %4331 = vst.msk [vmem:[#allocation9 + $0x88] sm:$0x3] %vm4001_vm9, %v9107_v49  ;;  %v6734_v55 = vpack.c.bf16 %v3782_v0, %v3780_v5  ;;  %v9163_v1 = vpop.f32.mrb[152].mxu0  ;;  %v7521_v37 = vld [vmem:[%s10133_s5 + $0xc0] sm:$0xff]   ;;  %v4134_v46 = vrot.slane %v9185_v40, 6 }
 0x6f8   : > { %v9130_v60 = vld [vmem:[#allocation8 + $0x58] sm:$0x33]  ;;  %4541 = vst.msk [vmem:[#allocation9 + $0x38] sm:$0x3] %vm4001_vm9, %v9167_v32  ;;  %v3697_v3 = vpop.f32.mrb[153].mxu0  ;;  %7014 = vmatprep.subr.bf16.mxu1 %v7521_v37  ;;  %v4126_v0 = vrot.slane %v6525_v35, 2  ;;  %7001 = vmatpush3.bf16.msra.mxu0 %v7520_v33 }
 0x6f9   : > { %4343 = vst.msk [vmem:[#allocation9 + $0x88] sm:$0x30] %vm4015_vm10, %v9113_v19  ;;  %v9136_v10 = vcombine.high %v9130_v60, %v9130_v60  ;;  %3988 = vst [vmem:[#allocation8 + $0x78] sm:$0xff] %v6734_v55  ;;  %v3699_v41 = vpop.f32.mrb[154].mxu0  ;;  %7015 = vmatpush3.bf16.msra.mxu1 %v7523_v6  ;;  %v4183_v28 = vrot.slane %v6531_v48, 6  ;;  %v6739_v20 = vpack.c.bf16 %v3697_v3, %v9163_v1  ;;  %v7531_v48 = vld [vmem:[%s10133_s5 + $0xd8] sm:$0xff]  }
 0x6fa   : > { %4407 = vst.msk [vmem:[#allocation9 + $0x90] sm:$0x3] %vm4001_vm9, %v9130_v60  ;;  %v9181_v38 = vld [vmem:[#allocation8 + $0x80] sm:$0x33]  ;;  %v3701_v55 = vpop.f32.mrb[155].mxu0  ;;  %7016 = vmatprep.subr.bf16.mxu1 %v7524_v21 }
 0x6fb   : > { %4117 = vrot.lane.b32.xlu1 %v4116_v43, %s7630_s13  ;;  %4108 = vrot.lane.b32.xlu0 %v4107_v50, %s7630_s13  ;;  %v3786_v7 = vpop.f32.mrb[160].mxu1  ;;  %4419 = vst.msk [vmem:[#allocation9 + $0x90] sm:$0x30] %vm4015_vm10, %v9136_v10  ;;  %4553 = vst.msk [vmem:[#allocation9 + $0x38] sm:$0x30] %vm4015_vm10, %v9198_v44  ;;  %v9235_v50 = vcombine.high %v9181_v38, %v9181_v38  ;;  %v6741_v14 = vpack.c.bf16 %v3701_v55, %v3699_v41  ;;  %v7534_v21 = vld [vmem:[%s10133_s5 + $0xe0] sm:$0xff]  }
 0x6fc   : > { %v3788_v26 = vpop.f32.mrb[161].mxu1  ;;  %4617 = vst.msk [vmem:[#allocation9 + $0x40] sm:$0x3] %vm4001_vm9, %v9181_v38  ;;  %v9221_v5 = vld [vmem:[#allocation8 + $0x90] sm:$0x33]  ;;  %3993 = vst [vmem:[#allocation8 + $0xa0] sm:$0xff] %v6739_v20 }
 0x6fd   : > { %v6736_v34 = vpack.c.bf16 %v3788_v26, %v3786_v7  ;;  %v3790_v30 = vpop.f32.mrb[162].mxu1  ;;  %4693 = vst.msk [vmem:[#allocation9 + $0x48] sm:$0x3] %vm4001_vm9, %v9221_v5  ;;  %v9231_v43 = vld [vmem:[#allocation8 + $0x28] sm:$0xcc]  ;;  %v4192_v7 = vrot.slane %v9063_v36, 2 }
 0x6fe   : > { %v9165_v45 = vld [vmem:[#allocation8 + $0x68] sm:$0x33]  ;;  %v3792_v25 = vpop.f32.mrb[163].mxu1  ;;  %4629 = vst.msk [vmem:[#allocation9 + $0x40] sm:$0x30] %vm4015_vm10, %v9235_v50  ;;  %v9259_v36 = vcombine.high %v9231_v43, %v9231_v43  ;;  %v6535_v1 = vcombine.low %v9231_v43, %v9231_v43  ;;  %3995 = vst [vmem:[#allocation8 + $0xb0] sm:$0xff] %v6741_v14 }
 0x6ff   : > { %4153 = vrot.lane.b32.xlu1 %v4152_v24, %s7630_s13  ;;  %4145 = vrot.lane.b32.xlu0 %v4144_v17, %s7630_s13  ;;  %v9173_v47 = vcombine.high %v9165_v45, %v9165_v45  ;;  %4483 = vst.msk [vmem:[#allocation9 + $0x98] sm:$0x3] %vm4001_vm9, %v9165_v45  ;;  %3990 = vst [vmem:[#allocation8 + $0x88] sm:$0xff] %v6736_v34  ;;  %v6738_v13 = vpack.c.bf16 %v3792_v25, %v3790_v30  ;;  %v7527_v26 = vld [vmem:[%s10133_s5 + $0x88] sm:$0xff]   ;;  %v7528_v30 = vld [vmem:[%s10133_s5 + $0xd0] sm:$0xff]  }
 0x700   : > { %v9192_v63 = vld [vmem:[#allocation8 + $0x78] sm:$0x33]  ;;  %7017 = vmatpush3.bf16.msra.mxu1 %v7527_v26  ;;  %v6529_v25 = vcombine.low %v8962_v8, %v8962_v8  ;;  %v4228_v3 = vrot.slane %v9259_v36, 6  ;;  %v4220_v33 = vrot.slane %v6535_v1, 2  ;;  %v9282_v37 = vld [vmem:[#allocation8 + $0x20] sm:$0xcc] }
 0x701   : > { %4495 = vst.msk [vmem:[#allocation9 + $0x98] sm:$0x30] %vm4015_vm10, %v9173_v47  ;;  %v9205_v62 = vcombine.high %v9192_v63, %v9192_v63  ;;  %3992 = vst [vmem:[#allocation8 + $0x98] sm:$0xff] %v6738_v13  ;;  %7018 = vmatprep.subr.bf16.mxu1 %v7528_v30  ;;  %v6533_v13 = vcombine.low %v9282_v37, %v9282_v37  ;;  %v9342_v26 = vld [vmem:[#allocation8 + $0x38] sm:$0xcc]  ;;  %v7538_v1 = vld [vmem:[%s10133_s5 + $0xe8] sm:$0xff]  }
 0x702   : > { %4559 = vst.msk [vmem:[#allocation9 + $0xa0] sm:$0x3] %vm4001_vm9, %v9192_v63  ;;  %v4165_v6 = vrot.slane %v6529_v25, 6 }
 0x703   : > { %4099 = vrot.lane.b32.xlu1 %v4098_v23, %s7630_s13  ;;  %4090 = vrot.lane.b32.xlu0 %v4089_v39, %s7630_s13  ;;  %v3796_v59 = vpop.f32.mrb[164].mxu1  ;;  %4571 = vst.msk [vmem:[#allocation9 + $0xa0] sm:$0x30] %vm4015_vm10, %v9205_v62  ;;  %v9274_v23 = vcombine.high %v9221_v5, %v9221_v5  ;;  %v7530_v39 = vld [vmem:[%s10133_s5 + $0x90] sm:$0xff]  }
 0x704   : > { %v3798_v2 = vpop.f32.mrb[165].mxu1  ;;  %7019 = vmatpush3.bf16.msra.mxu1 %v7530_v39 }
 0x705   : > { %v3800_v4 = vpop.f32.mrb[166].mxu1  ;;  %v6740_v17 = vpack.c.bf16 %v3798_v2, %v3796_v59  ;;  %4705 = vst.msk [vmem:[#allocation9 + $0x48] sm:$0x30] %vm4015_vm10, %v9274_v23  ;;  %v4174_v59 = vrot.slane %v8966_v11, 2  ;;  %v7533_v2 = vld [vmem:[%s10133_s5 + $0x98] sm:$0xff]   ;;  %7020 = vmatprep.subr.bf16.mxu1 %v7531_v48  ;;  %v9307_v11 = vcombine.high %v9282_v37, %v9282_v37  ;;  %v3705_v48 = vpop.f32.mrb[156].mxu0 }
 0x706   : > { %v3802_v18 = vpop.f32.mrb[167].mxu1  ;;  %v9243_v24 = vld [vmem:[#allocation8 + $0x88] sm:$0x33]  ;;  %v9353_v25 = vld [vmem:[#allocation8 + $0xb0] sm:$0x33] }
 0x707   : > { %4135 = vrot.lane.b32.xlu1 %v4134_v46, %s7630_s13  ;;  %4127 = vrot.lane.b32.xlu0 %v4126_v0, %s7630_s13  ;;  %v9251_v34 = vcombine.high %v9243_v24, %v9243_v24  ;;  %4635 = vst.msk [vmem:[#allocation9 + $0xa8] sm:$0x3] %vm4001_vm9, %v9243_v24  ;;  %3994 = vst [vmem:[#allocation8 + $0xa8] sm:$0xff] %v6740_v17  ;;  %v6742_v35 = vpack.c.bf16 %v3802_v18, %v3800_v4  ;;  %v9303_v0 = vld [vmem:[#allocation8 + $0xa0] sm:$0x33] }
 0x708   : > { %v9284_v8 = vld [vmem:[#allocation8 + $0x98] sm:$0x33]  ;;  %4769 = vst.msk [vmem:[#allocation9 + $0x50] sm:$0x3] %vm4001_vm9, %v9303_v0  ;;  %7021 = vmatpush3.bf16.msra.mxu1 %v7533_v2  ;;  %v9323_v55 = vcombine.high %v9303_v0, %v9303_v0  ;;  %v7537_v18 = vld [vmem:[%s10133_s5 + $0xa0] sm:$0xff]   ;;  %v6539_v17 = vcombine.low %v9078_v22, %v9078_v22  ;;  %v7540_v22 = vld [vmem:[%s10133_s5 + $0xa8] sm:$0xff]   ;;  %v9362_v39 = vcombine.high %v9353_v25, %v9353_v25 }
 0x709   : > { %4647 = vst.msk [vmem:[#allocation9 + $0xa8] sm:$0x30] %vm4015_vm10, %v9251_v34  ;;  %3996 = vst [vmem:[#allocation8 + $0xb8] sm:$0xff] %v6742_v35  ;;  %v9294_v41 = vcombine.high %v9284_v8, %v9284_v8  ;;  %7022 = vmatprep.subr.bf16.mxu1 %v7534_v21  ;;  %v4268_v35 = vrot.slane %v9084_v9, 2  ;;  %v7544_v9 = vld [vmem:[%s10133_s5 + $0xb0] sm:$0xff]  }
 0x70a   : > { %4711 = vst.msk [vmem:[#allocation9 + $0xb0] sm:$0x3] %vm4001_vm9, %v9284_v8  ;;  %4845 = vst.msk [vmem:[#allocation9 + $0x58] sm:$0x3] %vm4001_vm9, %v9353_v25  ;;  %v4259_v14 = vrot.slane %v6539_v17, 6 }
 0x70b   : > { %4193 = vrot.lane.b32.xlu1 %v4192_v7, %s7630_s13  ;;  %4184 = vrot.lane.b32.xlu0 %v4183_v28, %s7630_s13  ;;  %4723 = vst.msk [vmem:[#allocation9 + $0xb0] sm:$0x30] %vm4015_vm10, %v9294_v41  ;;  %4781 = vst.msk [vmem:[#allocation9 + $0x50] sm:$0x30] %vm4015_vm10, %v9323_v55  ;;  %v4210_v7 = vrot.slane %v9307_v11, 6  ;;  %v4202_v28 = vrot.slane %v6533_v13, 2 }
 0x70c   : > { %7023 = vmatpush3.bf16.msra.mxu1 %v7537_v18  ;;  %4857 = vst.msk [vmem:[#allocation9 + $0x58] sm:$0x30] %vm4015_vm10, %v9362_v39  ;;  %v3806_v17 = vpop.f32.mrb[168].mxu1 }
 0x70d   : > { %7024 = vmatprep.subr.bf16.mxu1 %v7538_v1  ;;  %v9388_v1 = vld [vmem:[#allocation8 + $0x30] sm:$0xcc] }
 0x70e   : > { %v9301_v46 = vld [vmem:[#allocation8 + $0xa8] sm:$0x33] }
 0x70f   : > { %4229 = vrot.lane.b32.xlu1 %v4228_v3, %s7630_s13  ;;  %4221 = vrot.lane.b32.xlu0 %v4220_v33, %s7630_s13  ;;  %v9315_v4 = vcombine.high %v9301_v46, %v9301_v46  ;;  %4787 = vst.msk [vmem:[#allocation9 + $0xb8] sm:$0x3] %vm4001_vm9, %v9301_v46  ;;  %v9371_v3 = vcombine.high %v9342_v26, %v9342_v26 }
 0x710   : > { %v9340_v20 = vld [vmem:[#allocation8 + $0xb8] sm:$0x33]  ;;  %v6543_v33 = vcombine.low %v9342_v26, %v9342_v26  ;;  %7025 = vmatpush3.bf16.msra.mxu1 %v7540_v22 }
 0x711   : > { %4799 = vst.msk [vmem:[#allocation9 + $0xb8] sm:$0x30] %vm4015_vm10, %v9315_v4  ;;  %v9349_v30 = vcombine.high %v9340_v20, %v9340_v20  ;;  %v4304_v18 = vrot.slane %v9371_v3, 6  ;;  %v7545_v22 = vld [vmem:[%s10133_s5 + $0xf8] sm:$0xff]  }
 0x712   : > { %4863 = vst.msk [vmem:[#allocation9 + $0xc0] sm:$0x3] %vm4001_vm9, %v9340_v20 }
 0x713   : > { %4175 = vrot.lane.b32.xlu1 %v4174_v59, %s7630_s13  ;;  %4166 = vrot.lane.b32.xlu0 %v4165_v6, %s7630_s13  ;;  %4875 = vst.msk [vmem:[#allocation9 + $0xc0] sm:$0x30] %vm4015_vm10, %v9349_v30  ;;  %v7541_v59 = vld [vmem:[%s10133_s5 + $0xf0] sm:$0xff]   ;;  %v3707_v6 = vpop.f32.mrb[157].mxu0 }
 0x714   : > { %v3709_v2 = vpop.f32.mrb[158].mxu0  ;;  %7026 = vmatprep.subr.bf16.mxu1 %v7541_v59  ;;  %v6743_v13 = vpack.c.bf16 %v3707_v6, %v3705_v48  ;;  %v4250_v59 = vrot.slane %v8984_v58, 2  ;;  %v6547_v58 = vcombine.low %v9107_v49, %v9107_v49 }
 0x715   : > { %v3710_v21 = vpop.f32.mrb[159].mxu0  ;;  %7027 = vmatpush3.bf16.msra.mxu1 %v7544_v9  ;;  %v9401_v9 = vcombine.high %v9388_v1, %v9388_v1  ;;  %v6541_v2 = vcombine.low %v9388_v1, %v9388_v1 }
 0x716   : > { %3997 = vst [vmem:[#allocation8 + $0xc0] sm:$0x33] %v6743_v13  ;;  %7028 = vmatprep.subr.bf16.mxu1 %v7545_v22  ;;  %v7548_v13 = vld [vmem:[%s10133_s5 + $0x140] sm:$0xff]   ;;  %v4335_v22 = vrot.slane %v6547_v58, 6 }
 0x717   : > { %4211 = vrot.lane.b32.xlu1 %v4210_v7, %s7630_s13  ;;  %4203 = vrot.lane.b32.xlu0 %v4202_v28, %s7630_s13  ;;  %v4296_v7 = vrot.slane %v6543_v33, 2  ;;  %v6537_v28 = vcombine.low %v8976_v61, %v8976_v61  ;;  %v4286_v21 = vrot.slane %v9401_v9, 6 }
 0x718   : > { %7042 = vmatprep.subr.bf16.mxu0 %v7548_v13 }
 0x719   : > { %v4241_v6 = vrot.slane %v6537_v28, 6 }
 0x71b   : > { %4269 = vrot.lane.b32.xlu1 %v4268_v35, %s7630_s13  ;;  %4260 = vrot.lane.b32.xlu0 %v4259_v14, %s7630_s13  ;;  %v3808_v35 = vpop.f32.mrb[169].mxu1  ;;  %v7547_v14 = vld [vmem:[%s10133_s5 + $0xb8] sm:$0xff]  }
 0x71c   : > { %v3810_v33 = vpop.f32.mrb[170].mxu1  ;;  %v6744_v61 = vpack.c.bf16 %v3808_v35, %v3806_v17  ;;  %7029 = vmatpush3.bf16.msra.mxu1 %v7547_v14  ;;  %v4344_v17 = vrot.slane %v9113_v19, 2  ;;  %v6545_v19 = vcombine.low %v9016_v53, %v9016_v53  ;;  %v4326_v53 = vrot.slane %v9029_v27, 2 }
 0x71d   : > { %v3811_v48 = vpop.f32.mrb[171].mxu1  ;;  %v9415_v28 = vld [vmem:[#allocation8 + $0xc0] sm:$0x33]  ;;  %v4420_v27 = vrot.slane %v9136_v10, 2  ;;  %v4402_v10 = vrot.slane %v9051_v16, 2 }
 0x71e   : > { %3998 = vst [vmem:[#allocation8 + $0xc8] sm:$0x33] %v6744_v61  ;;  %4921 = vst.msk [vmem:[#allocation9 + $0x60] sm:$0x3] %vm4001_vm9, %v9415_v28  ;;  %v9424_v49 = vcombine.high %v9415_v28, %v9415_v28 }
 0x71f   : > { %4305 = vrot.lane.b32.xlu1 %v4304_v18, %s7630_s13  ;;  %4297 = vrot.lane.b32.xlu0 %v4296_v7, %s7630_s13  ;;  %v4278_v18 = vrot.slane %v6541_v2, 2  ;;  %v9413_v7 = vld [vmem:[#allocation8 + $0x48] sm:$0xcc]  ;;  %v4317_v2 = vrot.slane %v6545_v19, 6 }
 0x720   : > { %v9428_v35 = vcombine.high %v9413_v7, %v9413_v7  ;;  %v6551_v14 = vcombine.low %v9413_v7, %v9413_v7  ;;  %4933 = vst.msk [vmem:[#allocation9 + $0x60] sm:$0x30] %vm4015_vm10, %v9424_v49 }
 0x722   : > { %v4380_v48 = vrot.slane %v9428_v35, 6 }
 0x723   : > { %4251 = vrot.lane.b32.xlu1 %v4250_v59, %s7630_s13  ;;  %4242 = vrot.lane.b32.xlu0 %v4241_v6, %s7630_s13  ;;  %v4372_v59 = vrot.slane %v6551_v14, 2  ;;  %v9449_v6 = vld [vmem:[#allocation8 + $0x40] sm:$0xcc] }
 0x724   : > { %v9456_v13 = vcombine.high %v9449_v6, %v9449_v6  ;;  %v6549_v58 = vcombine.low %v9449_v6, %v9449_v6 }
 0x725   : > { %v9434_v33 = vld [vmem:[#allocation8 + $0xc8] sm:$0x33] }
 0x726   : > { %v9442_v61 = vcombine.high %v9434_v33, %v9434_v33  ;;  %4939 = vst.msk [vmem:[#allocation9 + $0xc8] sm:$0x3] %vm4001_vm9, %v9434_v33 }
 0x727   : > { %4287 = vrot.lane.b32.xlu1 %v4286_v21, %s7630_s13  ;;  %4279 = vrot.lane.b32.xlu0 %v4278_v18, %s7630_s13  ;;  %v4362_v21 = vrot.slane %v9456_v13, 6  ;;  %v4354_v18 = vrot.slane %v6549_v58, 2 }
 0x728   : > { %4951 = vst.msk [vmem:[#allocation9 + $0xc8] sm:$0x30] %vm4015_vm10, %v9442_v61 }
 0x72b   : > { %4345 = vrot.lane.b32.xlu1 %v4344_v17, %s7630_s13  ;;  %4336 = vrot.lane.b32.xlu0 %v4335_v22, %s7630_s13  ;;  %v6555_v17 = vcombine.low %v9130_v60, %v9130_v60  ;;  %v9465_v22 = vld [vmem:[#allocation8 + $0x58] sm:$0xcc] }
 0x72c   : > { %v9472_v19 = vcombine.high %v9465_v22, %v9465_v22 }
 0x72d   : > { %v4411_v14 = vrot.slane %v6555_v17, 6  ;;  %v6563_v17 = vcombine.low %v9165_v45, %v9165_v45 }
 0x72e   : > { %v4456_v60 = vrot.slane %v9472_v19, 6 }
 0x72f   : > { %4381 = vrot.lane.b32.xlu1 %v4380_v48, %s7630_s13  ;;  %4373 = vrot.lane.b32.xlu0 %v4372_v59, %s7630_s13  ;;  %v6559_v48 = vcombine.low %v9465_v22, %v9465_v22 }
 0x731   : > { %v4448_v59 = vrot.slane %v6559_v48, 2  ;;  %v4496_v48 = vrot.slane %v9173_v47, 2  ;;  %v4478_v47 = vrot.slane %v9159_v12, 2  ;;  %v4572_v12 = vrot.slane %v9205_v62, 2 }
 0x733   : > { %4327 = vrot.lane.b32.xlu1 %v4326_v53, %s7630_s13  ;;  %4318 = vrot.lane.b32.xlu0 %v4317_v2, %s7630_s13  ;;  %v6553_v53 = vcombine.low %v9043_v29, %v9043_v29  ;;  %v9481_v2 = vld [vmem:[#allocation8 + $0x50] sm:$0xcc]  ;;  %v7569_v29 = vld [vmem:[%s10133_s5 + $0x1c0] sm:$0xff]  }
 0x734   : > { %7070 = vmatprep.subr.bf16.mxu1 %v7569_v29 }
 0x735   : > { %v4393_v58 = vrot.slane %v6553_v53, 6  ;;  %v6561_v53 = vcombine.low %v9148_v51, %v9148_v51 }
 0x737   : > { %4363 = vrot.lane.b32.xlu1 %v4362_v21, %s7630_s13  ;;  %4355 = vrot.lane.b32.xlu0 %v4354_v18, %s7630_s13  ;;  %v9488_v21 = vcombine.high %v9481_v2, %v9481_v2  ;;  %v6557_v18 = vcombine.low %v9481_v2, %v9481_v2  ;;  %v4469_v29 = vrot.slane %v6561_v53, 6 }
 0x739   : > { %v4438_v16 = vrot.slane %v9488_v21, 6 }
 0x73b   : > { %4421 = vrot.lane.b32.xlu1 %v4420_v27, %s7630_s13  ;;  %4412 = vrot.lane.b32.xlu0 %v4411_v14, %s7630_s13  ;;  %v4430_v27 = vrot.slane %v6557_v18, 2  ;;  %v9500_v14 = vld [vmem:[#allocation8 + $0x68] sm:$0xcc]  ;;  %v9516_v18 = vld [vmem:[#allocation8 + $0x60] sm:$0xcc] }
 0x73c   : > { %v6567_v45 = vcombine.low %v9500_v14, %v9500_v14 }
 0x73f   : > { %4457 = vrot.lane.b32.xlu1 %v4456_v60, %s7630_s13  ;;  %4449 = vrot.lane.b32.xlu0 %v4448_v59, %s7630_s13  ;;  %v4487_v60 = vrot.slane %v6563_v17, 6  ;;  %v9507_v59 = vcombine.high %v9500_v14, %v9500_v14  ;;  %v9523_v17 = vcombine.high %v9516_v18, %v9516_v18 }
 0x741   : > { %v4514_v51 = vrot.slane %v9523_v17, 6 }
 0x743   : > { %4403 = vrot.lane.b32.xlu1 %v4402_v10, %s7630_s13  ;;  %4394 = vrot.lane.b32.xlu0 %v4393_v58, %s7630_s13  ;;  %v4532_v10 = vrot.slane %v9507_v59, 6  ;;  %v4524_v58 = vrot.slane %v6567_v45, 2 }
 0x747   : > { %4439 = vrot.lane.b32.xlu1 %v4438_v16, %s7630_s13  ;;  %4431 = vrot.lane.b32.xlu0 %v4430_v27, %s7630_s13  ;;  %v6565_v16 = vcombine.low %v9516_v18, %v9516_v18 }
 0x749   : > { %v4506_v27 = vrot.slane %v6565_v16, 2  ;;  %v9550_v16 = vld [vmem:[#allocation8 + $0x70] sm:$0xcc] }
 0x74b   : > { %4497 = vrot.lane.b32.xlu1 %v4496_v48, %s7630_s13  ;;  %4488 = vrot.lane.b32.xlu0 %v4487_v60, %s7630_s13  ;;  %v6571_v48 = vcombine.low %v9192_v63, %v9192_v63  ;;  %v9532_v60 = vld [vmem:[#allocation8 + $0x78] sm:$0xcc] }
 0x74c   : > { %v9539_v53 = vcombine.high %v9532_v60, %v9532_v60 }
 0x74d   : > { %v4563_v45 = vrot.slane %v6571_v48, 6 }
 0x74e   : > { %v4608_v62 = vrot.slane %v9539_v53, 6 }
 0x74f   : > { %4533 = vrot.lane.b32.xlu1 %v4532_v10, %s7630_s13  ;;  %4525 = vrot.lane.b32.xlu0 %v4524_v58, %s7630_s13  ;;  %v6575_v10 = vcombine.low %v9532_v60, %v9532_v60 }
 0x753   : > { %4479 = vrot.lane.b32.xlu1 %v4478_v47, %s7630_s13  ;;  %4470 = vrot.lane.b32.xlu0 %v4469_v29, %s7630_s13  ;;  %v4600_v47 = vrot.slane %v6575_v10, 2  ;;  %v6569_v29 = vcombine.low %v9167_v32, %v9167_v32 }
 0x755   : > { %v4545_v48 = vrot.slane %v6569_v29, 6 }
 0x757   : > { %4515 = vrot.lane.b32.xlu1 %v4514_v51, %s7630_s13  ;;  %4507 = vrot.lane.b32.xlu0 %v4506_v27, %s7630_s13  ;;  %v4554_v27 = vrot.slane %v9198_v44, 2 }
 0x75b   : > { %4573 = vrot.lane.b32.xlu1 %v4572_v12, %s7630_s13  ;;  %4564 = vrot.lane.b32.xlu0 %v4563_v45, %s7630_s13  ;;  %v9561_v12 = vcombine.high %v9550_v16, %v9550_v16 }
 0x75d   : > { %v4038_v63 = vpop.permute.xlu1 %4037  ;;  %v4029_v58 = vpop.permute.xlu0 %4028  ;;  %v4590_v10 = vrot.slane %v9561_v12, 6 }
 0x75e   : > { %4040 = vst.msk [vmem:[#allocation9 + $0x68] sm:$0xc0] %vm4021_vm11, %v4038_v63 }
 0x75f   : > { %4031 = vst.msk [vmem:[#allocation9 + $0x68] sm:$0xc] %vm4010_vm12, %v4029_v58  ;;  %4609 = vrot.lane.b32.xlu1 %v4608_v62, %s7630_s13  ;;  %4601 = vrot.lane.b32.xlu0 %v4600_v47, %s7630_s13  ;;  %v9574_v58 = vld [vmem:[#allocation8 + $0x88] sm:$0xcc] }
 0x760   : > { %4082 = vst.msk [vmem:[#allocation9 + $0x68] sm:$0xc0] %vm4063_vm13, %v9003_v54  ;;  %v6573_v54 = vcombine.low %v9550_v16, %v9550_v16 }
 0x761   : > { %4073 = vst.msk [vmem:[#allocation9 + $0x68] sm:$0xc] %vm4052_vm14, %v8980_v56  ;;  %v4078_v51 = vpop.permute.xlu1 %4077  ;;  %v4070_v32 = vpop.permute.xlu0 %4069  ;;  %v6579_v56 = vcombine.low %v9243_v24, %v9243_v24  ;;  %v4648_v24 = vrot.slane %v9251_v34, 2 }
 0x762   : > { %4080 = vst.msk [vmem:[#allocation9 + $0x68] sm:$0x30] %vm4060_vm15, %v4078_v51  ;;  %v4582_v63 = vrot.slane %v6573_v54, 2  ;;  %v9585_v51 = vcombine.high %v9574_v58, %v9574_v58  ;;  %v9598_v54 = vld [vmem:[#allocation8 + $0x80] sm:$0xcc] }
 0x763   : > { %4072 = vst.msk [vmem:[#allocation9 + $0x68] sm:$0x3] %vm4050_vm0, %v4070_v32  ;;  %4555 = vrot.lane.b32.xlu1 %v4554_v27, %s7630_s13  ;;  %4546 = vrot.lane.b32.xlu0 %v4545_v48, %s7630_s13  ;;  %v4639_v62 = vrot.slane %v6579_v56, 6  ;;  %v6583_v32 = vcombine.low %v9574_v58, %v9574_v58 }
 0x764   : > { %v4684_v27 = vrot.slane %v9585_v51, 6 }
 0x765   : > { %v4019_v44 = vpop.permute.xlu1 %4018  ;;  %v4008_v45 = vpop.permute.xlu0 %4007  ;;  %v4676_v48 = vrot.slane %v6583_v32, 2 }
 0x766   : > { %4022 = vst.msk [vmem:[#allocation9] sm:$0xc0] %vm4021_vm11, %v4019_v44 }
 0x767   : > { %4011 = vst.msk [vmem:[#allocation9] sm:$0xc] %vm4010_vm12, %v4008_v45  ;;  %4591 = vrot.lane.b32.xlu1 %v4590_v10, %s7630_s13  ;;  %4583 = vrot.lane.b32.xlu0 %v4582_v63, %s7630_s13  ;;  %v9609_v10 = vcombine.high %v9598_v54, %v9598_v54  ;;  %v6581_v63 = vcombine.low %v9598_v54, %v9598_v54 }
 0x768   : > { %4064 = vst.msk [vmem:[#allocation9] sm:$0xc0] %vm4063_vm13, %v9072_v31 }
 0x769   : > { %4053 = vst.msk [vmem:[#allocation9] sm:$0xc] %vm4052_vm14, %v9038_v57  ;;  %v4058_v47 = vpop.permute.xlu1 %4057  ;;  %v4048_v29 = vpop.permute.xlu0 %4047  ;;  %v6577_v57 = vcombine.low %v9181_v38, %v9181_v38  ;;  %v4630_v38 = vrot.slane %v9235_v50, 2  ;;  %v4666_v50 = vrot.slane %v9609_v10, 6 }
 0x76a   : > { %4061 = vst.msk [vmem:[#allocation9] sm:$0x30] %vm4060_vm15, %v4058_v47  ;;  %v9622_v47 = vld [vmem:[#allocation8 + $0x98] sm:$0xcc] }
 0x76b   : > { %4051 = vst.msk [vmem:[#allocation9] sm:$0x3] %vm4050_vm0, %v4048_v29  ;;  %4649 = vrot.lane.b32.xlu1 %v4648_v24, %s7630_s13  ;;  %4640 = vrot.lane.b32.xlu0 %v4639_v62, %s7630_s13  ;;  %v4621_v56 = vrot.slane %v6577_v57, 6  ;;  %v4658_v24 = vrot.slane %v6581_v63, 2  ;;  %v6587_v62 = vcombine.low %v9284_v8, %v9284_v8  ;;  %v4724_v8 = vrot.slane %v9294_v41, 2 }
 0x76c   : > { %v4706_v63 = vrot.slane %v9274_v23, 2  ;;  %v7552_v23 = vld [vmem:[%s10133_s5 + $0x148] sm:$0xff]  }
 0x76d   : > { %v4118_v31 = vpop.permute.xlu1 %4117  ;;  %v4109_v34 = vpop.permute.xlu0 %4108  ;;  %v4715_v57 = vrot.slane %v6587_v62, 6 }
 0x76e   : > { %4120 = vst.msk [vmem:[#allocation9 + $0x70] sm:$0xc0] %vm4021_vm11, %v4118_v31  ;;  %v9633_v31 = vcombine.high %v9622_v47, %v9622_v47 }
 0x76f   : > { %4111 = vst.msk [vmem:[#allocation9 + $0x70] sm:$0xc] %vm4010_vm12, %v4109_v34  ;;  %4685 = vrot.lane.b32.xlu1 %v4684_v27, %s7630_s13  ;;  %4677 = vrot.lane.b32.xlu0 %v4676_v48, %s7630_s13  ;;  %v6591_v34 = vcombine.low %v9622_v47, %v9622_v47  ;;  %v6585_v48 = vcombine.low %v9221_v5, %v9221_v5 }
 0x770   : > { %4158 = vst.msk [vmem:[#allocation9 + $0x70] sm:$0xc0] %vm4063_vm13, %v9126_v15  ;;  %v4760_v41 = vrot.slane %v9633_v31, 6 }
 0x771   : > { %4149 = vst.msk [vmem:[#allocation9 + $0x70] sm:$0xc] %vm4052_vm14, %v9105_v42  ;;  %v4154_v44 = vpop.permute.xlu1 %4153  ;;  %v4146_v45 = vpop.permute.xlu0 %4145  ;;  %v4752_v27 = vrot.slane %v6591_v34, 2  ;;  %v7556_v34 = vld [vmem:[%s10133_s5 + $0x150] sm:$0xff]  }
 0x772   : > { %4156 = vst.msk [vmem:[#allocation9 + $0x70] sm:$0x30] %vm4060_vm15, %v4154_v44 }
 0x773   : > { %4148 = vst.msk [vmem:[#allocation9 + $0x70] sm:$0x3] %vm4050_vm0, %v4146_v45  ;;  %4631 = vrot.lane.b32.xlu1 %v4630_v38, %s7630_s13  ;;  %4622 = vrot.lane.b32.xlu0 %v4621_v56, %s7630_s13  ;;  %v9646_v38 = vld [vmem:[#allocation8 + $0x90] sm:$0xcc] }
 0x774   : > { %v9657_v5 = vcombine.high %v9646_v38, %v9646_v38 }
 0x775   : > { %v4100_v42 = vpop.permute.xlu1 %4099  ;;  %v4091_v15 = vpop.permute.xlu0 %4090 }
 0x776   : > { %4102 = vst.msk [vmem:[#allocation9 + $0x8] sm:$0xc0] %vm4021_vm11, %v4100_v42  ;;  %v4697_v42 = vrot.slane %v6585_v48, 6  ;;  %v9696_v48 = vld [vmem:[#allocation8 + $0xa0] sm:$0xcc] }
 0x777   : > { %4093 = vst.msk [vmem:[#allocation9 + $0x8] sm:$0xc] %vm4010_vm12, %v4091_v15  ;;  %4667 = vrot.lane.b32.xlu1 %v4666_v50, %s7630_s13  ;;  %4659 = vrot.lane.b32.xlu0 %v4658_v24, %s7630_s13  ;;  %v6589_v15 = vcombine.low %v9646_v38, %v9646_v38  ;;  %v6595_v24 = vcombine.low %v9301_v46, %v9301_v46  ;;  %v4800_v46 = vrot.slane %v9315_v4, 2  ;;  %v7558_v4 = vld [vmem:[%s10133_s5 + $0x158] sm:$0xff]  }
 0x778   : > { %4140 = vst.msk [vmem:[#allocation9 + $0x8] sm:$0xc0] %vm4063_vm13, %v9185_v40 }
 0x779   : > { %4131 = vst.msk [vmem:[#allocation9 + $0x8] sm:$0xc] %vm4052_vm14, %v9155_v52  ;;  %v4136_v29 = vpop.permute.xlu1 %4135  ;;  %v4128_v32 = vpop.permute.xlu0 %4127 }
 0x77a   : > { %4138 = vst.msk [vmem:[#allocation9 + $0x8] sm:$0x30] %vm4060_vm15, %v4136_v29  ;;  %v4971_v50 = vld [vmem:[#allocation9 + $0x70] sm:$0xff] }
 0x77b   : > { %4130 = vst.msk [vmem:[#allocation9 + $0x8] sm:$0x3] %vm4050_vm0, %v4128_v32  ;;  %4725 = vrot.lane.b32.xlu1 %v4724_v8, %s7630_s13  ;;  %4716 = vrot.lane.b32.xlu0 %v4715_v57, %s7630_s13  ;;  %v4742_v32 = vrot.slane %v9657_v5, 6  ;;  %v7555_v8 = vld [vmem:[%s10133_s5 + $0x108] sm:$0xff]   ;;  %v4734_v57 = vrot.slane %v6589_v15, 2 }
 0x77d   : > { %v4194_v52 = vpop.permute.xlu1 %4193  ;;  %v4185_v40 = vpop.permute.xlu0 %4184 }
 0x77e   : > { %4196 = vst.msk [vmem:[#allocation9 + $0x78] sm:$0xc0] %vm4021_vm11, %v4194_v52  ;;  %v4791_v52 = vrot.slane %v6595_v24, 6  ;;  %v9732_v24 = vld [vmem:[#allocation8 + $0xb8] sm:$0xcc] }
 0x77f   : > { %4187 = vst.msk [vmem:[#allocation9 + $0x78] sm:$0xc] %vm4010_vm12, %v4185_v40  ;;  %4761 = vrot.lane.b32.xlu1 %v4760_v41, %s7630_s13  ;;  %4753 = vrot.lane.b32.xlu0 %v4752_v27, %s7630_s13  ;;  %v6593_v40 = vcombine.low %v9303_v0, %v9303_v0  ;;  %v4782_v0 = vrot.slane %v9323_v55, 2  ;;  %v6597_v55 = vcombine.low %v9696_v48, %v9696_v48 }
 0x780   : > { %4234 = vst.msk [vmem:[#allocation9 + $0x78] sm:$0xc0] %vm4063_vm13, %v9259_v36  ;;  %v7551_v36 = vld [vmem:[%s10133_s5 + $0x100] sm:$0xff]  }
 0x781   : > { %4225 = vst.msk [vmem:[#allocation9 + $0x78] sm:$0xc] %vm4052_vm14, %v9231_v43  ;;  %v4230_v56 = vpop.permute.xlu1 %4229  ;;  %v4222_v44 = vpop.permute.xlu0 %4221  ;;  %v4957_v43 = vld [vmem:[#allocation9] sm:$0xff] }
 0x782   : > { %v4958_v45 = vld [vmem:[#allocation9 + $0x8] sm:$0xff]  ;;  %4232 = vst.msk [vmem:[#allocation9 + $0x78] sm:$0x30] %vm4060_vm15, %v4230_v56  ;;  %v4773_v56 = vrot.slane %v6593_v40, 6 }
 0x783   : > { %4224 = vst.msk [vmem:[#allocation9 + $0x78] sm:$0x3] %vm4050_vm0, %v4222_v44  ;;  %5821 = vmatprep.mubr.bf16.mxu0 %v4958_v45  ;;  %4707 = vrot.lane.b32.xlu1 %v4706_v63, %s7630_s13  ;;  %v9706_v63 = vcombine.high %v9696_v48, %v9696_v48 }
 0x784   : > { %5822 = vmatmul.mubr.bf16.vlgmr.msra.gmra.mrb[160].mxu0 %v4957_v43  ;;  %4698 = vrot.lane.b32.xlu0 %v4697_v42, %s7630_s13  ;;  %v7561_v43 = vld [vmem:[%s10133_s5 + $0x160] sm:$0xff]  }
 0x785   : > { %5829 = vmatprep.mubr.bf16.mxu0 %v4971_v50  ;;  %v4176_v62 = vpop.permute.xlu1 %4175  ;;  %v4167_v29 = vpop.permute.xlu0 %4166  ;;  %7043 = vmatpush3.bf16.msra.mxu0 %v7551_v36  ;;  %v7560_v36 = vld [vmem:[%s10133_s5 + $0x118] sm:$0xff]   ;;  %v7562_v50 = vld [vmem:[%s10133_s5 + $0x120] sm:$0xff]  }
 0x786   : > { %4178 = vst.msk [vmem:[#allocation9 + $0x10] sm:$0xc0] %vm4021_vm11, %v4176_v62  ;;  %7044 = vmatprep.subr.bf16.mxu0 %v7552_v23  ;;  %v4818_v23 = vrot.slane %v9706_v63, 6  ;;  %v7563_v62 = vld [vmem:[%s10133_s5 + $0x168] sm:$0xff]  }
 0x787   : > { %4169 = vst.msk [vmem:[#allocation9 + $0x10] sm:$0xc] %vm4010_vm12, %v4167_v29  ;;  %4743 = vrot.lane.b32.xlu1 %v4742_v32, %s7630_s13 }
 0x788   : > { %4216 = vst.msk [vmem:[#allocation9 + $0x10] sm:$0xc0] %vm4063_vm13, %v9307_v11  ;;  %4735 = vrot.lane.b32.xlu0 %v4734_v57, %s7630_s13  ;;  %v7557_v11 = vld [vmem:[%s10133_s5 + $0x110] sm:$0xff]   ;;  %v9742_v57 = vcombine.high %v9732_v24, %v9732_v24 }
 0x789   : > { %4207 = vst.msk [vmem:[#allocation9 + $0x10] sm:$0xc] %vm4052_vm14, %v9282_v37  ;;  %v4212_v41 = vpop.permute.xlu1 %4211  ;;  %v4204_v27 = vpop.permute.xlu0 %4203  ;;  %7045 = vmatpush3.bf16.msra.mxu0 %v7555_v8  ;;  %v4970_v37 = vld [vmem:[#allocation9 + $0x68] sm:$0xff]  ;;  %v4876_v8 = vrot.slane %v9349_v30, 2  ;;  %v7565_v30 = vld [vmem:[%s10133_s5 + $0x170] sm:$0xff]  }
 0x78a   : > { %4214 = vst.msk [vmem:[#allocation9 + $0x10] sm:$0x30] %vm4060_vm15, %v4212_v41  ;;  %7046 = vmatprep.subr.bf16.mxu0 %v7556_v34  ;;  %v4912_v41 = vrot.slane %v9742_v57, 6 }
 0x78b   : > { %4206 = vst.msk [vmem:[#allocation9 + $0x10] sm:$0x3] %vm4050_vm0, %v4204_v27  ;;  %4801 = vrot.lane.b32.xlu1 %v4800_v46, %s7630_s13  ;;  %v6607_v46 = vcombine.low %v9732_v24, %v9732_v24  ;;  %v7566_v27 = vld [vmem:[%s10133_s5 + $0x130] sm:$0xff]  }
 0x78c   : > { %5830 = vmatmul.mubr.bf16.gmra.mrb[164].mxu0 %v4970_v37  ;;  %4792 = vrot.lane.b32.xlu0 %v4791_v52, %s7630_s13  ;;  %v7567_v37 = vld [vmem:[%s10133_s5 + $0x178] sm:$0xff]  }
 0x78d   : > { %v4270_v44 = vpop.permute.xlu1 %4269  ;;  %v4261_v45 = vpop.permute.xlu0 %4260  ;;  %7047 = vmatpush3.bf16.msra.mxu0 %v7557_v11  ;;  %v9768_v11 = vld [vmem:[#allocation8 + $0xb0] sm:$0xcc] }
 0x78e   : > { %4272 = vst.msk [vmem:[#allocation9 + $0x80] sm:$0xc0] %vm4021_vm11, %v4270_v44  ;;  %7048 = vmatprep.subr.bf16.mxu0 %v7558_v4  ;;  %v9778_v44 = vcombine.high %v9768_v11, %v9768_v11 }
 0x78f   : > { %4263 = vst.msk [vmem:[#allocation9 + $0x80] sm:$0xc] %vm4010_vm12, %v4261_v45  ;;  %4783 = vrot.lane.b32.xlu1 %v4782_v0, %s7630_s13 }
 0x790   : > { %4310 = vst.msk [vmem:[#allocation9 + $0x80] sm:$0xc0] %vm4063_vm13, %v9371_v3  ;;  %4774 = vrot.lane.b32.xlu0 %v4773_v56, %s7630_s13  ;;  %v4810_v3 = vrot.slane %v6597_v55, 2  ;;  %v4858_v56 = vrot.slane %v9362_v39, 2  ;;  %v9787_v55 = vld [vmem:[#allocation8 + $0xa8] sm:$0xcc] }
 0x791   : > { %4301 = vst.msk [vmem:[#allocation9 + $0x80] sm:$0xc] %vm4052_vm14, %v9342_v26  ;;  %v4306_v42 = vpop.permute.xlu1 %4305  ;;  %v4298_v15 = vpop.permute.xlu0 %4297  ;;  %7049 = vmatpush3.bf16.msra.mxu0 %v7560_v36  ;;  %v6603_v26 = vcombine.low %v9340_v20, %v9340_v20  ;;  %v7564_v20 = vld [vmem:[%s10133_s5 + $0x128] sm:$0xff]   ;;  %v6605_v36 = vcombine.low %v9768_v11, %v9768_v11  ;;  %v7585_v39 = vld [vmem:[%s10133_s5 + $0x240] sm:$0xff]  }
 0x792   : > { %4308 = vst.msk [vmem:[#allocation9 + $0x80] sm:$0x30] %vm4060_vm15, %v4306_v42  ;;  %7050 = vmatprep.subr.bf16.mxu0 %v7561_v43 }
 0x793   : > { %4300 = vst.msk [vmem:[#allocation9 + $0x80] sm:$0x3] %vm4050_vm0, %v4298_v15  ;;  %4819 = vrot.lane.b32.xlu1 %v4818_v23, %s7630_s13  ;;  %v4867_v34 = vrot.slane %v6603_v26, 6  ;;  %v4894_v23 = vrot.slane %v9778_v44, 6  ;;  %v6599_v26 = vcombine.low %v9787_v55, %v9787_v55 }
 0x794   : > { %4811 = vrot.lane.b32.xlu0 %v4810_v3, %s7630_s13  ;;  %v4886_v3 = vrot.slane %v6605_v36, 2 }
 0x795   : > { %v4252_v29 = vpop.permute.xlu1 %4251  ;;  %v4243_v32 = vpop.permute.xlu0 %4242  ;;  %7051 = vmatpush3.bf16.msra.mxu0 %v7562_v50  ;;  %v9801_v50 = vcombine.high %v9787_v55, %v9787_v55 }
 0x796   : > { %4254 = vst.msk [vmem:[#allocation9 + $0x18] sm:$0xc0] %vm4021_vm11, %v4252_v29  ;;  %7052 = vmatprep.subr.bf16.mxu0 %v7563_v62  ;;  %v7571_v62 = vld [vmem:[%s10133_s5 + $0x1c8] sm:$0xff]  }
 0x797   : > { %4245 = vst.msk [vmem:[#allocation9 + $0x18] sm:$0xc] %vm4010_vm12, %v4243_v32  ;;  %4877 = vrot.lane.b32.xlu1 %v4876_v8, %s7630_s13  ;;  %v6609_v32 = vcombine.low %v9415_v28, %v9415_v28  ;;  %v4934_v28 = vrot.slane %v9424_v49, 2  ;;  %v7575_v49 = vld [vmem:[%s10133_s5 + $0x1d8] sm:$0xff]  }
 0x798   : > { %4292 = vst.msk [vmem:[#allocation9 + $0x18] sm:$0xc0] %vm4063_vm13, %v9401_v9  ;;  %4868 = vrot.lane.b32.xlu0 %v4867_v34, %s7630_s13  ;;  %v4904_v9 = vrot.slane %v6607_v46, 2  ;;  %v4836_v34 = vrot.slane %v9801_v50, 6  ;;  %v7572_v46 = vld [vmem:[%s10133_s5 + $0x188] sm:$0xff]  }
 0x799   : > { %4283 = vst.msk [vmem:[#allocation9 + $0x18] sm:$0xc] %vm4052_vm14, %v9388_v1  ;;  %v4288_v52 = vpop.permute.xlu1 %4287  ;;  %v4280_v40 = vpop.permute.xlu0 %4279  ;;  %7053 = vmatpush3.bf16.msra.mxu0 %v7564_v20  ;;  %v6601_v1 = vcombine.low %v9353_v25, %v9353_v25  ;;  %v7568_v25 = vld [vmem:[%s10133_s5 + $0x138] sm:$0xff]  }
 0x79a   : > { %4290 = vst.msk [vmem:[#allocation9 + $0x18] sm:$0x30] %vm4060_vm15, %v4288_v52  ;;  %7054 = vmatprep.subr.bf16.mxu0 %v7565_v30  ;;  %v4973_v29 = vld [vmem:[#allocation9 + $0x80] sm:$0xff]  ;;  %v4828_v30 = vrot.slane %v6599_v26, 2  ;;  %v7586_v26 = vld [vmem:[%s10133_s5 + $0x200] sm:$0xff]  }
 0x79b   : > { %4282 = vst.msk [vmem:[#allocation9 + $0x18] sm:$0x3] %vm4050_vm0, %v4280_v40  ;;  %4913 = vrot.lane.b32.xlu1 %v4912_v41, %s7630_s13  ;;  %v4849_v45 = vrot.slane %v6601_v1, 6  ;;  %v7573_v52 = vld [vmem:[%s10133_s5 + $0x1d0] sm:$0xff]   ;;  %v4925_v40 = vrot.slane %v6609_v32, 6  ;;  %v6611_v41 = vcombine.low %v9434_v33, %v9434_v33  ;;  %v4952_v33 = vrot.slane %v9442_v61, 2 }
 0x79c   : > { %4905 = vrot.lane.b32.xlu0 %v4904_v9, %s7630_s13 }
 0x79d   : > { %v4346_v4 = vpop.permute.xlu1 %4345  ;;  %v4337_v0 = vpop.permute.xlu0 %4336  ;;  %7055 = vmatpush3.bf16.msra.mxu0 %v7566_v27  ;;  %v4943_v1 = vrot.slane %v6611_v41, 6  ;;  %v7591_v41 = vld [vmem:[%s10133_s5 + $0x258] sm:$0xff]  }
 0x79e   : > { %4348 = vst.msk [vmem:[#allocation9 + $0x88] sm:$0xc0] %vm4021_vm11, %v4346_v4  ;;  %7056 = vmatprep.subr.bf16.mxu0 %v7567_v37 }
 0x79f   : > { %4339 = vst.msk [vmem:[#allocation9 + $0x88] sm:$0xc] %vm4010_vm12, %v4337_v0  ;;  %4859 = vrot.lane.b32.xlu1 %v4858_v56, %s7630_s13  ;;  %v7576_v0 = vld [vmem:[%s10133_s5 + $0x198] sm:$0xff]   ;;  %v7577_v56 = vld [vmem:[%s10133_s5 + $0x1e0] sm:$0xff]  }
 0x7a0   : > { %4386 = vst.msk [vmem:[#allocation9 + $0x88] sm:$0xc0] %vm4063_vm13, %v9428_v35  ;;  %4850 = vrot.lane.b32.xlu0 %v4849_v45, %s7630_s13  ;;  %v7570_v35 = vld [vmem:[%s10133_s5 + $0x180] sm:$0xff]  }
 0x7a1   : > { %4377 = vst.msk [vmem:[#allocation9 + $0x88] sm:$0xc] %vm4052_vm14, %v9413_v7  ;;  %v4382_v43 = vpop.permute.xlu1 %4381  ;;  %v4374_v42 = vpop.permute.xlu0 %4373  ;;  %7057 = vmatpush3.bf16.msra.mxu0 %v7568_v25  ;;  %v4959_v7 = vld [vmem:[#allocation9 + $0x10] sm:$0xff] }
 0x7a2   : > { %v4960_v15 = vld [vmem:[#allocation9 + $0x18] sm:$0xff]  ;;  %4384 = vst.msk [vmem:[#allocation9 + $0x88] sm:$0x30] %vm4060_vm15, %v4382_v43  ;;  %7098 = vmatprep.subr.bf16.mxu0 %v7585_v39  ;;  %v7578_v45 = vld [vmem:[%s10133_s5 + $0x1a0] sm:$0xff]   ;;  %v7581_v43 = vld [vmem:[%s10133_s5 + $0x1f0] sm:$0xff]  }
 0x7a3   : > { %4376 = vst.msk [vmem:[#allocation9 + $0x88] sm:$0x3] %vm4050_vm0, %v4374_v42  ;;  %5870 = vmatprep.mubr.bf16.mxu1 %v4960_v15  ;;  %4895 = vrot.lane.b32.xlu1 %v4894_v23, %s7630_s13  ;;  %v7580_v39 = vld [vmem:[%s10133_s5 + $0x1a8] sm:$0xff]   ;;  %v7582_v23 = vld [vmem:[%s10133_s5 + $0x1b0] sm:$0xff]  }
 0x7a4   : > { %5871 = vmatmul.mubr.bf16.vlgmr.msra.gmra.mrb[172].mxu1 %v4959_v7  ;;  %4887 = vrot.lane.b32.xlu0 %v4886_v3, %s7630_s13  ;;  %v7600_v3 = vld [vmem:[%s10133_s5 + $0x2c0] sm:$0xff]  }
 0x7a5   : > { %5878 = vmatprep.mubr.bf16.mxu1 %v4973_v29  ;;  %v4328_v8 = vpop.permute.xlu1 %4327  ;;  %v4319_v20 = vpop.permute.xlu0 %4318  ;;  %7071 = vmatpush3.bf16.msra.mxu1 %v7570_v35  ;;  %v7583_v35 = vld [vmem:[%s10133_s5 + $0x1f8] sm:$0xff]  }
 0x7a6   : > { %4330 = vst.msk [vmem:[#allocation9 + $0x20] sm:$0xc0] %vm4021_vm11, %v4328_v8  ;;  %7072 = vmatprep.subr.bf16.mxu1 %v7571_v62  ;;  %v7587_v8 = vld [vmem:[%s10133_s5 + $0x248] sm:$0xff]  }
 0x7a7   : > { %4321 = vst.msk [vmem:[#allocation9 + $0x20] sm:$0xc] %vm4010_vm12, %v4319_v20  ;;  %4837 = vrot.lane.b32.xlu1 %v4836_v34, %s7630_s13  ;;  %v7588_v20 = vld [vmem:[%s10133_s5 + $0x208] sm:$0xff]  }
 0x7a8   : > { %4368 = vst.msk [vmem:[#allocation9 + $0x20] sm:$0xc0] %vm4063_vm13, %v9456_v13  ;;  %4829 = vrot.lane.b32.xlu0 %v4828_v30, %s7630_s13  ;;  %v7574_v13 = vld [vmem:[%s10133_s5 + $0x190] sm:$0xff]  }
 0x7a9   : > { %4359 = vst.msk [vmem:[#allocation9 + $0x20] sm:$0xc] %vm4052_vm14, %v9449_v6  ;;  %v4364_v27 = vpop.permute.xlu1 %4363  ;;  %v4356_v9 = vpop.permute.xlu0 %4355  ;;  %7073 = vmatpush3.bf16.msra.mxu1 %v7572_v46  ;;  %v4972_v6 = vld [vmem:[#allocation9 + $0x78] sm:$0xff]  ;;  %v7589_v30 = vld [vmem:[%s10133_s5 + $0x250] sm:$0xff]  }
 0x7aa   : > { %4366 = vst.msk [vmem:[#allocation9 + $0x20] sm:$0x30] %vm4060_vm15, %v4364_v27  ;;  %7074 = vmatprep.subr.bf16.mxu1 %v7573_v52  ;;  %v7590_v52 = vld [vmem:[%s10133_s5 + $0x210] sm:$0xff]  }
 0x7ab   : > { %4358 = vst.msk [vmem:[#allocation9 + $0x20] sm:$0x3] %vm4050_vm0, %v4356_v9  ;;  %4935 = vrot.lane.b32.xlu1 %v4934_v28, %s7630_s13 }
 0x7ac   : > { %5879 = vmatmul.mubr.bf16.gmra.mrb[176].mxu1 %v4972_v6  ;;  %4926 = vrot.lane.b32.xlu0 %v4925_v40, %s7630_s13  ;;  %v7594_v6 = vld [vmem:[%s10133_s5 + $0x220] sm:$0xff]  }
 0x7ad   : > { %v4422_v37 = vpop.permute.xlu1 %4421  ;;  %v4413_v4 = vpop.permute.xlu0 %4412  ;;  %7075 = vmatpush3.bf16.msra.mxu1 %v7574_v13  ;;  %v7593_v13 = vld [vmem:[%s10133_s5 + $0x260] sm:$0xff]  }
 0x7ae   : > { %4424 = vst.msk [vmem:[#allocation9 + $0x90] sm:$0xc0] %vm4021_vm11, %v4422_v37  ;;  %7076 = vmatprep.subr.bf16.mxu1 %v7575_v49 }
 0x7af   : > { %4415 = vst.msk [vmem:[#allocation9 + $0x90] sm:$0xc] %vm4010_vm12, %v4413_v4  ;;  %4953 = vrot.lane.b32.xlu1 %v4952_v33, %s7630_s13  ;;  %v7597_v4 = vld [vmem:[%s10133_s5 + $0x270] sm:$0xff]  }
 0x7b0   : > { %4462 = vst.msk [vmem:[#allocation9 + $0x90] sm:$0xc0] %vm4063_vm13, %v9472_v19  ;;  %4944 = vrot.lane.b32.xlu0 %v4943_v1, %s7630_s13  ;;  %v7595_v1 = vld [vmem:[%s10133_s5 + $0x268] sm:$0xff]  }
 0x7b1   : > { %4453 = vst.msk [vmem:[#allocation9 + $0x90] sm:$0xc] %vm4052_vm14, %v9465_v22  ;;  %v4458_v61 = vpop.permute.xlu1 %4457  ;;  %v4450_v25 = vpop.permute.xlu0 %4449  ;;  %7077 = vmatpush3.bf16.msra.mxu1 %v7576_v0  ;;  %v7579_v22 = vld [vmem:[%s10133_s5 + $0x1e8] sm:$0xff]   ;;  %v7598_v0 = vld [vmem:[%s10133_s5 + $0x230] sm:$0xff]  }
 0x7b2   : > { %4460 = vst.msk [vmem:[#allocation9 + $0x90] sm:$0x30] %vm4060_vm15, %v4458_v61  ;;  %7078 = vmatprep.subr.bf16.mxu1 %v7577_v56 }
 0x7b3   : > { %4452 = vst.msk [vmem:[#allocation9 + $0x90] sm:$0x3] %vm4050_vm0, %v4450_v25  ;;  %v7599_v25 = vld [vmem:[%s10133_s5 + $0x278] sm:$0xff]  }
 0x7b5   : > { %v4404_v19 = vpop.permute.xlu1 %4403  ;;  %v4395_v36 = vpop.permute.xlu0 %4394  ;;  %7079 = vmatpush3.bf16.msra.mxu1 %v7578_v45 }
 0x7b6   : > { %4406 = vst.msk [vmem:[#allocation9 + $0x28] sm:$0xc0] %vm4021_vm11, %v4404_v19  ;;  %7080 = vmatprep.subr.bf16.mxu1 %v7579_v22  ;;  %v9974_v22 = vld [vmem:[%s10133_s5 + $0x300] sm:$0xff]  }
 0x7b7   : > { %4397 = vst.msk [vmem:[#allocation9 + $0x28] sm:$0xc] %vm4010_vm12, %v4395_v36  ;;  %v7602_v19 = vld [vmem:[%s10133_s5 + $0x280] sm:$0xff]  }
 0x7b8   : > { %4444 = vst.msk [vmem:[#allocation9 + $0x28] sm:$0xc0] %vm4063_vm13, %v9488_v21 }
 0x7b9   : > { %4435 = vst.msk [vmem:[#allocation9 + $0x28] sm:$0xc] %vm4052_vm14, %v9481_v2  ;;  %v4440_v42 = vpop.permute.xlu1 %4439  ;;  %v4432_v15 = vpop.permute.xlu0 %4431  ;;  %7081 = vmatpush3.bf16.msra.mxu1 %v7580_v39  ;;  %v7584_v2 = vld [vmem:[%s10133_s5 + $0x1b8] sm:$0xff]  }
 0x7ba   : > { %4442 = vst.msk [vmem:[#allocation9 + $0x28] sm:$0x30] %vm4060_vm15, %v4440_v42  ;;  %7082 = vmatprep.subr.bf16.mxu1 %v7581_v43  ;;  %v7603_v42 = vld [vmem:[%s10133_s5 + $0x2c8] sm:$0xff]  }
 0x7bb   : > { %4434 = vst.msk [vmem:[#allocation9 + $0x28] sm:$0x3] %vm4050_vm0, %v4432_v15  ;;  %v7604_v15 = vld [vmem:[%s10133_s5 + $0x288] sm:$0xff]  }
 0x7bd   : > { %v4498_v21 = vpop.permute.xlu1 %4497  ;;  %v4489_v7 = vpop.permute.xlu0 %4488  ;;  %7083 = vmatpush3.bf16.msra.mxu1 %v7582_v23 }
 0x7be   : > { %4500 = vst.msk [vmem:[#allocation9 + $0x98] sm:$0xc0] %vm4021_vm11, %v4498_v21  ;;  %7084 = vmatprep.subr.bf16.mxu1 %v7583_v35  ;;  %v7605_v21 = vld [vmem:[%s10133_s5 + $0x2d0] sm:$0xff]  }
 0x7bf   : > { %4491 = vst.msk [vmem:[#allocation9 + $0x98] sm:$0xc] %vm4010_vm12, %v4489_v7  ;;  %v7606_v7 = vld [vmem:[%s10133_s5 + $0x290] sm:$0xff]  }
 0x7c0   : > { %4538 = vst.msk [vmem:[#allocation9 + $0x98] sm:$0xc0] %vm4063_vm13, %v9507_v59  ;;  %v4961_v59 = vld [vmem:[#allocation9 + $0x20] sm:$0xff] }
 0x7c1   : > { %4529 = vst.msk [vmem:[#allocation9 + $0x98] sm:$0xc] %vm4052_vm14, %v9500_v14  ;;  %v4534_v62 = vpop.permute.xlu1 %4533  ;;  %v4526_v29 = vpop.permute.xlu0 %4525  ;;  %7085 = vmatpush3.bf16.msra.mxu1 %v7584_v2  ;;  %v4975_v14 = vld [vmem:[#allocation9 + $0x90] sm:$0xff] }
 0x7c2   : > { %v4962_v32 = vld [vmem:[#allocation9 + $0x28] sm:$0xff]  ;;  %4536 = vst.msk [vmem:[#allocation9 + $0x98] sm:$0x30] %vm4060_vm15, %v4534_v62  ;;  %7126 = vmatprep.subr.bf16.mxu1 %v7600_v3 }
 0x7c3   : > { %4528 = vst.msk [vmem:[#allocation9 + $0x98] sm:$0x3] %vm4050_vm0, %v4526_v29  ;;  %5919 = vmatprep.mubr.bf16.mxu0 %v4962_v32  ;;  %v7609_v32 = vld [vmem:[%s10133_s5 + $0x2e0] sm:$0xff]  }
 0x7c4   : > { %5920 = vmatmul.mubr.bf16.vlgmr.msra.gmra.mrb[168].mxu0 %v4961_v59 }
 0x7c5   : > { %5927 = vmatprep.mubr.bf16.mxu0 %v4975_v14  ;;  %7099 = vmatpush3.bf16.msra.mxu0 %v7586_v26  ;;  %v4480_v34 = vpop.permute.xlu1 %4479  ;;  %v4471_v46 = vpop.permute.xlu0 %4470  ;;  %v7607_v26 = vld [vmem:[%s10133_s5 + $0x2d8] sm:$0xff]  }
 0x7c6   : > { %7100 = vmatprep.subr.bf16.mxu0 %v7587_v8  ;;  %4482 = vst.msk [vmem:[#allocation9 + $0x30] sm:$0xc0] %vm4021_vm11, %v4480_v34  ;;  %v7610_v8 = vld [vmem:[%s10133_s5 + $0x2a0] sm:$0xff]   ;;  %v7613_v34 = vld [vmem:[%s10133_s5 + $0x2f0] sm:$0xff]  }
 0x7c7   : > { %4473 = vst.msk [vmem:[#allocation9 + $0x30] sm:$0xc] %vm4010_vm12, %v4471_v46 }
 0x7c8   : > { %4520 = vst.msk [vmem:[#allocation9 + $0x30] sm:$0xc0] %vm4063_vm13, %v9523_v17  ;;  %v4974_v17 = vld [vmem:[#allocation9 + $0x88] sm:$0xff] }
 0x7c9   : > { %4511 = vst.msk [vmem:[#allocation9 + $0x30] sm:$0xc] %vm4052_vm14, %v9516_v18  ;;  %7101 = vmatpush3.bf16.msra.mxu0 %v7588_v20  ;;  %v4516_v28 = vpop.permute.xlu1 %4515  ;;  %v4508_v40 = vpop.permute.xlu0 %4507  ;;  %v7592_v18 = vld [vmem:[%s10133_s5 + $0x218] sm:$0xff]   ;;  %v7611_v20 = vld [vmem:[%s10133_s5 + $0x2e8] sm:$0xff]  }
 0x7ca   : > { %7102 = vmatprep.subr.bf16.mxu0 %v7589_v30  ;;  %4518 = vst.msk [vmem:[#allocation9 + $0x30] sm:$0x30] %vm4060_vm15, %v4516_v28  ;;  %v7614_v30 = vld [vmem:[%s10133_s5 + $0x2b0] sm:$0xff]   ;;  %v7616_v28 = vld [vmem:[%s10133_s5 + $0x2f8] sm:$0xff]  }
 0x7cb   : > { %4510 = vst.msk [vmem:[#allocation9 + $0x30] sm:$0x3] %vm4050_vm0, %v4508_v40 }
 0x7cc   : > { %5928 = vmatmul.mubr.bf16.gmra.mrb[172].mxu0 %v4974_v17 }
 0x7cd   : > { %7103 = vmatpush3.bf16.msra.mxu0 %v7590_v52  ;;  %v4574_v27 = vpop.permute.xlu1 %4573  ;;  %v4565_v9 = vpop.permute.xlu0 %4564 }
 0x7ce   : > { %7104 = vmatprep.subr.bf16.mxu0 %v7591_v41  ;;  %4576 = vst.msk [vmem:[#allocation9 + $0xa0] sm:$0xc0] %vm4021_vm11, %v4574_v27 }
 0x7cf   : > { %4567 = vst.msk [vmem:[#allocation9 + $0xa0] sm:$0xc] %vm4010_vm12, %v4565_v9  ;;  %v7618_v9 = vld [vmem:[%s10133_s5 + $0x308] sm:$0xff]  }
 0x7d0   : > { %4614 = vst.msk [vmem:[#allocation9 + $0xa0] sm:$0xc0] %vm4063_vm13, %v9539_v53 }
 0x7d1   : > { %4605 = vst.msk [vmem:[#allocation9 + $0xa0] sm:$0xc] %vm4052_vm14, %v9532_v60  ;;  %7105 = vmatpush3.bf16.msra.mxu0 %v7592_v18  ;;  %v4610_v49 = vpop.permute.xlu1 %4609  ;;  %v4602_v33 = vpop.permute.xlu0 %4601  ;;  %v7596_v60 = vld [vmem:[%s10133_s5 + $0x228] sm:$0xff]  }
 0x7d2   : > { %7106 = vmatprep.subr.bf16.mxu0 %v7593_v13  ;;  %4612 = vst.msk [vmem:[#allocation9 + $0xa0] sm:$0x30] %vm4060_vm15, %v4610_v49 }
 0x7d3   : > { %4604 = vst.msk [vmem:[#allocation9 + $0xa0] sm:$0x3] %vm4050_vm0, %v4602_v33  ;;  %v7620_v33 = vld [vmem:[%s10133_s5 + $0x318] sm:$0xff]  }
 0x7d5   : > { %7107 = vmatpush3.bf16.msra.mxu0 %v7594_v6  ;;  %v4556_v53 = vpop.permute.xlu1 %4555  ;;  %v4547_v37 = vpop.permute.xlu0 %4546 }
 0x7d6   : > { %7108 = vmatprep.subr.bf16.mxu0 %v7595_v1  ;;  %4558 = vst.msk [vmem:[#allocation9 + $0x38] sm:$0xc0] %vm4021_vm11, %v4556_v53 }
 0x7d7   : > { %4549 = vst.msk [vmem:[#allocation9 + $0x38] sm:$0xc] %vm4010_vm12, %v4547_v37 }
 0x7d8   : > { %4596 = vst.msk [vmem:[#allocation9 + $0x38] sm:$0xc0] %vm4063_vm13, %v9561_v12 }
 0x7d9   : > { %4587 = vst.msk [vmem:[#allocation9 + $0x38] sm:$0xc] %vm4052_vm14, %v9550_v16  ;;  %7109 = vmatpush3.bf16.msra.mxu0 %v7596_v60  ;;  %v4592_v56 = vpop.permute.xlu1 %4591  ;;  %v4584_v61 = vpop.permute.xlu0 %4583  ;;  %v7601_v16 = vld [vmem:[%s10133_s5 + $0x238] sm:$0xff]  }
 0x7da   : > { %7110 = vmatprep.subr.bf16.mxu0 %v7597_v4  ;;  %4594 = vst.msk [vmem:[#allocation9 + $0x38] sm:$0x30] %vm4060_vm15, %v4592_v56 }
 0x7db   : > { %4586 = vst.msk [vmem:[#allocation9 + $0x38] sm:$0x3] %vm4050_vm0, %v4584_v61 }
 0x7dd   : > { %7111 = vmatpush3.bf16.msra.mxu0 %v7598_v0  ;;  %v4650_v12 = vpop.permute.xlu1 %4649  ;;  %v4641_v45 = vpop.permute.xlu0 %4640 }
 0x7de   : > { %7112 = vmatprep.subr.bf16.mxu0 %v7599_v25  ;;  %4652 = vst.msk [vmem:[#allocation9 + $0xa8] sm:$0xc0] %vm4021_vm11, %v4650_v12 }
 0x7df   : > { %4643 = vst.msk [vmem:[#allocation9 + $0xa8] sm:$0xc] %vm4010_vm12, %v4641_v45 }
 0x7e0   : > { %4690 = vst.msk [vmem:[#allocation9 + $0xa8] sm:$0xc0] %vm4063_vm13, %v9585_v51  ;;  %v4977_v51 = vld [vmem:[#allocation9 + $0xa0] sm:$0xff] }
 0x7e1   : > { %4681 = vst.msk [vmem:[#allocation9 + $0xa8] sm:$0xc] %vm4052_vm14, %v9574_v58  ;;  %7113 = vmatpush3.bf16.msra.mxu0 %v7601_v16  ;;  %v4686_v36 = vpop.permute.xlu1 %4685  ;;  %v4678_v39 = vpop.permute.xlu0 %4677  ;;  %v4963_v58 = vld [vmem:[#allocation9 + $0x30] sm:$0xff] }
 0x7e2   : > { %v4964_v43 = vld [vmem:[#allocation9 + $0x38] sm:$0xff]  ;;  %7263 = vmatprep.subr.bf16.mxu0 %v9974_v22  ;;  %4688 = vst.msk [vmem:[#allocation9 + $0xa8] sm:$0x30] %vm4060_vm15, %v4686_v36 }
 0x7e3   : > { %4680 = vst.msk [vmem:[#allocation9 + $0xa8] sm:$0x3] %vm4050_vm0, %v4678_v39  ;;  %5968 = vmatprep.mubr.bf16.mxu1 %v4964_v43 }
 0x7e4   : > { %5969 = vmatmul.mubr.bf16.vlgmr.msra.gmra.mrb[180].mxu1 %v4963_v58 }
 0x7e5   : > { %5976 = vmatprep.mubr.bf16.mxu1 %v4977_v51  ;;  %7127 = vmatpush3.bf16.msra.mxu1 %v7602_v19  ;;  %v4632_v23 = vpop.permute.xlu1 %4631  ;;  %v4623_v35 = vpop.permute.xlu0 %4622 }
 0x7e6   : > { %7128 = vmatprep.subr.bf16.mxu1 %v7603_v42  ;;  %4634 = vst.msk [vmem:[#allocation9 + $0x40] sm:$0xc0] %vm4021_vm11, %v4632_v23 }
 0x7e7   : > { %4625 = vst.msk [vmem:[#allocation9 + $0x40] sm:$0xc] %vm4010_vm12, %v4623_v35 }
 0x7e8   : > { %4672 = vst.msk [vmem:[#allocation9 + $0x40] sm:$0xc0] %vm4063_vm13, %v9609_v10  ;;  %v4976_v10 = vld [vmem:[#allocation9 + $0x98] sm:$0xff] }
 0x7e9   : > { %4663 = vst.msk [vmem:[#allocation9 + $0x40] sm:$0xc] %vm4052_vm14, %v9598_v54  ;;  %7129 = vmatpush3.bf16.msra.mxu1 %v7604_v15  ;;  %v4668_v2 = vpop.permute.xlu1 %4667  ;;  %v4660_v3 = vpop.permute.xlu0 %4659  ;;  %v7608_v54 = vld [vmem:[%s10133_s5 + $0x298] sm:$0xff]  }
 0x7ea   : > { %7130 = vmatprep.subr.bf16.mxu1 %v7605_v21  ;;  %4670 = vst.msk [vmem:[#allocation9 + $0x40] sm:$0x30] %vm4060_vm15, %v4668_v2  ;;  %v4978_v1 = vld [vmem:[#allocation9 + $0xa8] sm:$0xff] }
 0x7eb   : > { %4662 = vst.msk [vmem:[#allocation9 + $0x40] sm:$0x3] %vm4050_vm0, %v4660_v3 }
 0x7ec   : > { %5977 = vmatmul.mubr.bf16.gmra.mrb[184].mxu1 %v4976_v10 }
 0x7ed   : > { %7131 = vmatpush3.bf16.msra.mxu1 %v7606_v7  ;;  %v4726_v62 = vpop.permute.xlu1 %4725  ;;  %v4717_v29 = vpop.permute.xlu0 %4716 }
 0x7ee   : > { %7132 = vmatprep.subr.bf16.mxu1 %v7607_v26  ;;  %4728 = vst.msk [vmem:[#allocation9 + $0xb0] sm:$0xc0] %vm4021_vm11, %v4726_v62 }
 0x7ef   : > { %4719 = vst.msk [vmem:[#allocation9 + $0xb0] sm:$0xc] %vm4010_vm12, %v4717_v29 }
 0x7f0   : > { %4766 = vst.msk [vmem:[#allocation9 + $0xb0] sm:$0xc0] %vm4063_vm13, %v9633_v31 }
 0x7f1   : > { %4757 = vst.msk [vmem:[#allocation9 + $0xb0] sm:$0xc] %vm4052_vm14, %v9622_v47  ;;  %7133 = vmatpush3.bf16.msra.mxu1 %v7608_v54  ;;  %v4762_v59 = vpop.permute.xlu1 %4761  ;;  %v4754_v14 = vpop.permute.xlu0 %4753  ;;  %v7612_v47 = vld [vmem:[%s10133_s5 + $0x2a8] sm:$0xff]  }
 0x7f2   : > { %7134 = vmatprep.subr.bf16.mxu1 %v7609_v32  ;;  %4764 = vst.msk [vmem:[#allocation9 + $0xb0] sm:$0x30] %vm4060_vm15, %v4762_v59 }
 0x7f3   : > { %4756 = vst.msk [vmem:[#allocation9 + $0xb0] sm:$0x3] %vm4050_vm0, %v4754_v14 }
 0x7f5   : > { %7135 = vmatpush3.bf16.msra.mxu1 %v7610_v8  ;;  %v4708_v31 = vpop.permute.xlu1 %4707 }
 0x7f6   : > { %7136 = vmatprep.subr.bf16.mxu1 %v7611_v20  ;;  %4710 = vst.msk [vmem:[#allocation9 + $0x48] sm:$0xc0] %vm4021_vm11, %v4708_v31  ;;  %v4699_v46 = vpop.permute.xlu0 %4698 }
 0x7f7   : > { %4748 = vst.msk [vmem:[#allocation9 + $0x48] sm:$0xc0] %vm4063_vm13, %v9657_v5 }
 0x7f8   : > { %4701 = vst.msk [vmem:[#allocation9 + $0x48] sm:$0xc] %vm4010_vm12, %v4699_v46 }
 0x7f9   : > { %4739 = vst.msk [vmem:[#allocation9 + $0x48] sm:$0xc] %vm4052_vm14, %v9646_v38  ;;  %7137 = vmatpush3.bf16.msra.mxu1 %v7612_v47  ;;  %v4744_v52 = vpop.permute.xlu1 %4743  ;;  %v7617_v38 = vld [vmem:[%s10133_s5 + $0x2b8] sm:$0xff]  }
 0x7fa   : > { %7138 = vmatprep.subr.bf16.mxu1 %v7613_v34  ;;  %4746 = vst.msk [vmem:[#allocation9 + $0x48] sm:$0x30] %vm4060_vm15, %v4744_v52  ;;  %v4736_v40 = vpop.permute.xlu0 %4735 }
 0x7fb   : > { %4738 = vst.msk [vmem:[#allocation9 + $0x48] sm:$0x3] %vm4050_vm0, %v4736_v40  ;;  %v7635_v40 = vmov 0.0  }
 0x7fd   : > { %7139 = vmatpush3.bf16.msra.mxu1 %v7614_v30  ;;  %v4802_v5 = vpop.permute.xlu1 %4801 }
 0x7fe   : > { %7140 = vmatprep.subr.bf16.mxu1 %v7616_v28  ;;  %4804 = vst.msk [vmem:[#allocation9 + $0xb8] sm:$0xc0] %vm4021_vm11, %v4802_v5  ;;  %v4793_v41 = vpop.permute.xlu0 %4792  ;;  %v7633_v28 = vmov 0.0|0.0  }
 0x7ff   : > { %4842 = vst.msk [vmem:[#allocation9 + $0xb8] sm:$0xc0] %vm4063_vm13, %v9801_v50  ;;  %v4965_v50 = vld [vmem:[#allocation9 + $0x40] sm:$0xff] }
 0x800   : > { %4795 = vst.msk [vmem:[#allocation9 + $0xb8] sm:$0xc] %vm4010_vm12, %v4793_v41 }
 0x801   : > { %4833 = vst.msk [vmem:[#allocation9 + $0xb8] sm:$0xc] %vm4052_vm14, %v9787_v55  ;;  %7141 = vmatpush3.bf16.msra.mxu1 %v7617_v38  ;;  %v4784_v17 = vpop.permute.xlu1 %4783  ;;  %v4979_v55 = vld [vmem:[#allocation9 + $0xb0] sm:$0xff] }
 0x802   : > { %4786 = vst.msk [vmem:[#allocation9 + $0x50] sm:$0xc0] %vm4021_vm11, %v4784_v17  ;;  %v4775_v18 = vpop.permute.xlu0 %4774  ;;  %v4966_v27 = vld [vmem:[#allocation9 + $0x48] sm:$0xff] }
 0x803   : > { %4824 = vst.msk [vmem:[#allocation9 + $0x50] sm:$0xc0] %vm4063_vm13, %v9706_v63  ;;  %6017 = vmatprep.mubr.bf16.mxu0 %v4966_v27  ;;  %v7619_v63 = vld [vmem:[%s10133_s5 + $0x310] sm:$0xff]  }
 0x804   : > { %4777 = vst.msk [vmem:[#allocation9 + $0x50] sm:$0xc] %vm4010_vm12, %v4775_v18  ;;  %6018 = vmatmul.mubr.bf16.vlgmr.msra.gmra.mrb[176].mxu0 %v4965_v50 }
 0x805   : > { %4815 = vst.msk [vmem:[#allocation9 + $0x50] sm:$0xc] %vm4052_vm14, %v9696_v48  ;;  %6025 = vmatprep.mubr.bf16.mxu0 %v4979_v55  ;;  %v4820_v13 = vpop.permute.xlu1 %4819  ;;  %7264 = vmatpush3.bf16.msra.mxu0 %v9974_v22 }
 0x806   : > { %4822 = vst.msk [vmem:[#allocation9 + $0x50] sm:$0x30] %vm4060_vm15, %v4820_v13  ;;  %v4812_v6 = vpop.permute.xlu0 %4811  ;;  %7265 = vmatprep.subr.bf16.mxu0 %v7618_v9 }
 0x807   : > { %4814 = vst.msk [vmem:[#allocation9 + $0x50] sm:$0x3] %vm4050_vm0, %v4812_v6 }
 0x809   : > { %v4878_v49 = vpop.permute.xlu1 %4877  ;;  %7266 = vmatpush3.bf16.msra.mxu0 %v7618_v9 }
 0x80a   : > { %4880 = vst.msk [vmem:[#allocation9 + $0xc0] sm:$0xc0] %vm4021_vm11, %v4878_v49  ;;  %v4869_v48 = vpop.permute.xlu0 %4868  ;;  %7267 = vmatprep.subr.bf16.mxu0 %v7619_v63 }
 0x80b   : > { %4918 = vst.msk [vmem:[#allocation9 + $0xc0] sm:$0xc0] %vm4063_vm13, %v9742_v57 }
 0x80c   : > { %4871 = vst.msk [vmem:[#allocation9 + $0xc0] sm:$0xc] %vm4010_vm12, %v4869_v48  ;;  %6026 = vmatmul.mubr.bf16.gmra.mrb[180].mxu0 %v4978_v1 }
 0x80d   : > { %4909 = vst.msk [vmem:[#allocation9 + $0xc0] sm:$0xc] %vm4052_vm14, %v9732_v24  ;;  %v4914_v60 = vpop.permute.xlu1 %4913  ;;  %7268 = vmatpush3.bf16.msra.mxu0 %v7619_v63 }
 0x80e   : > { %4916 = vst.msk [vmem:[#allocation9 + $0xc0] sm:$0x30] %vm4060_vm15, %v4914_v60  ;;  %v4906_v53 = vpop.permute.xlu0 %4905  ;;  %7269 = vmatprep.subr.bf16.mxu0 %v7620_v33 }
 0x80f   : > { %4908 = vst.msk [vmem:[#allocation9 + $0xc0] sm:$0x3] %vm4050_vm0, %v4906_v53 }
 0x811   : > { %v4860_v37 = vpop.permute.xlu1 %4859  ;;  %7270 = vmatpush3.bf16.msra.mxu0 %v7620_v33 }
 0x812   : > { %4862 = vst.msk [vmem:[#allocation9 + $0x58] sm:$0xc0] %vm4021_vm11, %v4860_v37  ;;  %v4851_v57 = vpop.permute.xlu0 %4850  ;;  %7286 = vmatprep.subr.bf16.mxu0 %v7633_v28 }
 0x813   : > { %4900 = vst.msk [vmem:[#allocation9 + $0x58] sm:$0xc0] %vm4063_vm13, %v9778_v44 }
 0x814   : > { %4853 = vst.msk [vmem:[#allocation9 + $0x58] sm:$0xc] %vm4010_vm12, %v4851_v57 }
 0x815   : > { %4891 = vst.msk [vmem:[#allocation9 + $0x58] sm:$0xc] %vm4052_vm14, %v9768_v11  ;;  %v4896_v24 = vpop.permute.xlu1 %4895  ;;  %v4967_v11 = vld [vmem:[#allocation9 + $0x50] sm:$0xff] }
 0x816   : > { %4898 = vst.msk [vmem:[#allocation9 + $0x58] sm:$0x30] %vm4060_vm15, %v4896_v24  ;;  %v4888_v4 = vpop.permute.xlu0 %4887  ;;  %v4981_v16 = vld [vmem:[#allocation9 + $0xc0] sm:$0xff] }
 0x817   : > { %4890 = vst.msk [vmem:[#allocation9 + $0x58] sm:$0x3] %vm4050_vm0, %v4888_v4 }
 0x819   : > { %v4838_v0 = vpop.permute.xlu1 %4837 }
 0x81a   : > { %4840 = vst.msk [vmem:[#allocation9 + $0xb8] sm:$0x30] %vm4060_vm15, %v4838_v0  ;;  %v4830_v56 = vpop.permute.xlu0 %4829 }
 0x81b   : > { %4832 = vst.msk [vmem:[#allocation9 + $0xb8] sm:$0x3] %vm4050_vm0, %v4830_v56 }
 0x81d   : > { %v4936_v61 = vpop.permute.xlu1 %4935 }
 0x81e   : > { %4938 = vst.msk [vmem:[#allocation9 + $0x60] sm:$0xc0] %vm4021_vm11, %v4936_v61  ;;  %v4927_v44 = vpop.permute.xlu0 %4926  ;;  %v4968_v25 = vld [vmem:[#allocation9 + $0x58] sm:$0xff] }
 0x81f   : > { %4929 = vst.msk [vmem:[#allocation9 + $0x60] sm:$0xc] %vm4010_vm12, %v4927_v44  ;;  %6066 = vmatprep.mubr.bf16.mxu1 %v4968_v25 }
 0x820   : > { %6067 = vmatmul.mubr.bf16.vlgmr.msra.gmra.mrb[188].mxu1 %v4967_v11 }
 0x821   : > { %6074 = vmatprep.mubr.bf16.mxu1 %v4981_v16  ;;  %v4954_v12 = vpop.permute.xlu1 %4953 }
 0x822   : > { %4956 = vst.msk [vmem:[#allocation9 + $0xc8] sm:$0xc0] %vm4021_vm11, %v4954_v12  ;;  %v4945_v45 = vpop.permute.xlu0 %4944  ;;  %v4980_v19 = vld [vmem:[#allocation9 + $0xb8] sm:$0xff] }
 0x823   : > { %4947 = vst.msk [vmem:[#allocation9 + $0xc8] sm:$0xc] %vm4010_vm12, %v4945_v45 }
 0x826   : > { %v4969_v22 = vld [vmem:[#allocation9 + $0x60] sm:$0xff] }
 0x827   : > { %7271 = vmatprep.mubr.msk.bf16.mxu0 %vm1413_vm6, %v4969_v22 }
 0x828   : > { %6075 = vmatmul.mubr.bf16.gmra.mrb[192].mxu1 %v4980_v19 }
 0x82a   : > { %v4982_v36 = vld [vmem:[#allocation9 + $0xc8] sm:$0xff] }
 0x82b   : > { %7272 = vmatmul.mubr.msk.bf16.vlgmr.msra.gmra.mrb[184].mxu0 %vm1413_vm6, %v4982_v36 }
 0x82c   : > { %7283 = vmatprep.mubr.msk.f32.mxu0 %vm7634_vm1, %v7635_v40 }
 0x857   : > { %v7002_v39 = vpop.f32.mrb[160].mxu0 }
 0x858   : > { %v7003_v43 = vpop.f32.mrb[161].mxu0 }
 0x859   : > { %v7004_v42 = vadd.f32 %v7003_v43, %v7002_v39  ;;  %v7005_v58 = vpop.f32.mrb[162].mxu0 }
 0x85a   : > { %v7006_v51 = vpop.f32.mrb[163].mxu0 }
 0x85b   : > { %v7007_v15 = vadd.f32 %v7006_v51, %v7005_v58 }
 0x85f   : > { %v7008_v23 = vpop.f32.mrb[164].mxu0 }
 0x860   : > { %v7009_v35 = vpop.f32.mrb[165].mxu0 }
 0x861   : > { %v7010_v21 = vadd.f32 %v7009_v35, %v7008_v23  ;;  %v7011_v7 = vpop.f32.mrb[166].mxu0 }
 0x862   : > { %v7012_v2 = vpop.f32.mrb[167].mxu0 }
 0x863   : > { %v7013_v3 = vadd.f32 %v7012_v2, %v7011_v7 }
 0x877   : > { %v7030_v26 = vpop.f32.mrb[172].mxu1 }
 0x878   : > { %v7031_v10 = vpop.f32.mrb[173].mxu1 }
 0x879   : > { %v7032_v54 = vadd.f32 %v7031_v10, %v7030_v26  ;;  %v7033_v62 = vpop.f32.mrb[174].mxu1 }
 0x87a   : > { %v7034_v29 = vpop.f32.mrb[175].mxu1 }
 0x87b   : > { %v5873_v32 = vadd.f32 %v7032_v54, %v7004_v42  ;;  %v7035_v8 = vadd.f32 %v7034_v29, %v7033_v62 }
 0x87d   : > { %v5876_v59 = vadd.f32 %v7035_v8, %v7007_v15 }
 0x87f   : > { %v7036_v14 = vpop.f32.mrb[176].mxu1 }
 0x880   : > { %v7037_v20 = vpop.f32.mrb[177].mxu1 }
 0x881   : > { %v7038_v47 = vadd.f32 %v7037_v20, %v7036_v14  ;;  %v7039_v31 = vpop.f32.mrb[178].mxu1 }
 0x882   : > { %v7040_v34 = vpop.f32.mrb[179].mxu1 }
 0x883   : > { %v5881_v46 = vadd.f32 %v7038_v47, %v7010_v21  ;;  %v7041_v30 = vadd.f32 %v7040_v34, %v7039_v31 }
 0x885   : > { %v5884_v52 = vadd.f32 %v7041_v30, %v7013_v3 }
 0x897   : > { %v7058_v38 = vpop.f32.mrb[168].mxu0 }
 0x898   : > { %v7059_v5 = vpop.f32.mrb[169].mxu0 }
 0x899   : > { %v7060_v41 = vadd.f32 %v7059_v5, %v7058_v38  ;;  %v7061_v17 = vpop.f32.mrb[170].mxu0 }
 0x89a   : > { %v7062_v18 = vpop.f32.mrb[171].mxu0 }
 0x89b   : > { %v5922_v27 = vadd.f32 %v7060_v41, %v5873_v32  ;;  %v7063_v9 = vadd.f32 %v7062_v18, %v7061_v17 }
 0x89d   : > { %v5925_v50 = vadd.f32 %v7063_v9, %v5876_v59 }
 0x89f   : > { %v7064_v55 = vpop.f32.mrb[172].mxu0 }
 0x8a0   : > { %v7065_v13 = vpop.f32.mrb[173].mxu0 }
 0x8a1   : > { %v7066_v6 = vadd.f32 %v7065_v13, %v7064_v55  ;;  %v7067_v63 = vpop.f32.mrb[174].mxu0  ;;  %v6133_v55 = vld [vmem:[%s10134_s6 + $0x8] sm:$0xff]  ;;  %v6134_v13 = vld [vmem:[%s10134_s6 + $0x10] sm:$0xff] }
 0x8a2   : > { %v7068_v49 = vpop.f32.mrb[175].mxu0 }
 0x8a3   : > { %v5930_v48 = vadd.f32 %v7066_v6, %v5881_v46  ;;  %v7069_v33 = vadd.f32 %v7068_v49, %v7067_v63  ;;  %v6135_v6 = vld [vmem:[%s10134_s6 + $0x18] sm:$0xff] }
 0x8a5   : > { %v5933_v1 = vadd.f32 %v7069_v33, %v5884_v52 }
 0x8b7   : > { %v7086_v60 = vpop.f32.mrb[180].mxu1 }
 0x8b8   : > { %v7087_v53 = vpop.f32.mrb[181].mxu1 }
 0x8b9   : > { %v7088_v37 = vadd.f32 %v7087_v53, %v7086_v60  ;;  %v7089_v57 = vpop.f32.mrb[182].mxu1 }
 0x8ba   : > { %v7090_v24 = vpop.f32.mrb[183].mxu1 }
 0x8bb   : > { %v5971_v4 = vadd.f32 %v7088_v37, %v5922_v27  ;;  %v7091_v0 = vadd.f32 %v7090_v24, %v7089_v57  ;;  %v6132_v27 = vld [vmem:[%s10134_s6] sm:$0xff] }
 0x8bc   : > { %v6140_v57 = vld [vmem:[%s10135_s7] sm:$0xff] }
 0x8bd   : > { %v5974_v56 = vadd.f32 %v7091_v0, %v5925_v50  ;;  %v6716_v0 = vld [vmem:[#allocation10] ss:$0 sm:$0xff] }
 0x8bf   : > { %v7092_v61 = vpop.f32.mrb[184].mxu1 }
 0x8c0   : > { %v7093_v44 = vpop.f32.mrb[185].mxu1 }
 0x8c1   : > { %v7094_v25 = vadd.f32 %v7093_v44, %v7092_v61  ;;  %v7095_v11 = vpop.f32.mrb[186].mxu1 }
 0x8c2   : > { %v7096_v16 = vpop.f32.mrb[187].mxu1 }
 0x8c3   : > { %v5979_v12 = vadd.f32 %v7094_v25, %v5930_v48  ;;  %v7097_v45 = vadd.f32 %v7096_v16, %v7095_v11 }
 0x8c5   : > { %v5982_v22 = vadd.f32 %v7097_v45, %v5933_v1 }
 0x8d7   : > { %v7114_v19 = vpop.f32.mrb[176].mxu0 }
 0x8d8   : > { %v7115_v36 = vpop.f32.mrb[177].mxu0 }
 0x8d9   : > { %v7116_v39 = vadd.f32 %v7115_v36, %v7114_v19  ;;  %v7117_v43 = vpop.f32.mrb[178].mxu0 }
 0x8da   : > { %v7118_v42 = vpop.f32.mrb[179].mxu0 }
 0x8db   : > { %v6020_v58 = vadd.f32 %v7116_v39, %v5971_v4  ;;  %v7119_v51 = vadd.f32 %v7118_v42, %v7117_v43 }
 0x8dd   : > { %v6023_v15 = vadd.f32 %v7119_v51, %v5974_v56 }
 0x8df   : > { %v7120_v23 = vpop.f32.mrb[180].mxu0 }
 0x8e0   : > { %v7121_v35 = vpop.f32.mrb[181].mxu0 }
 0x8e1   : > { %v7122_v21 = vadd.f32 %v7121_v35, %v7120_v23  ;;  %v7123_v7 = vpop.f32.mrb[182].mxu0 }
 0x8e2   : > { %v7124_v2 = vpop.f32.mrb[183].mxu0 }
 0x8e3   : > { %v6028_v3 = vadd.f32 %v7122_v21, %v5979_v12  ;;  %v7125_v26 = vadd.f32 %v7124_v2, %v7123_v7 }
 0x8e5   : > { %v6031_v10 = vadd.f32 %v7125_v26, %v5982_v22 }
 0x8f3   : > { %v7142_v54 = vpop.f32.mrb[188].mxu1 }
 0x8f4   : > { %v7143_v62 = vpop.f32.mrb[189].mxu1 }
 0x8f5   : > { %v7144_v29 = vadd.f32 %v7143_v62, %v7142_v54  ;;  %v7145_v32 = vpop.f32.mrb[190].mxu1 }
 0x8f6   : > { %v7146_v8 = vpop.f32.mrb[191].mxu1 }
 0x8f7   : > { %v7147_v59 = vadd.f32 %v7146_v8, %v7145_v32  ;;  %v6069_v14 = vadd.f32 %v7144_v29, %v6020_v58 }
 0x8f9   : > { %v6072_v20 = vadd.f32 %v7147_v59, %v6023_v15 }
 0x8fb   : > { %v7148_v47 = vpop.f32.mrb[192].mxu1 }
 0x8fc   : > { %v7149_v31 = vpop.f32.mrb[193].mxu1 }
 0x8fd   : > { %v7150_v34 = vadd.f32 %v7149_v31, %v7148_v47  ;;  %v7151_v46 = vpop.f32.mrb[194].mxu1 }
 0x8fe   : > { %v7152_v30 = vpop.f32.mrb[195].mxu1  ;;  %v7273_v52 = vpop.f32.mrb[184].mxu0 }
 0x8ff   : > { %v7153_v40 = vadd.f32 %v7152_v30, %v7151_v46  ;;  %v6077_v38 = vadd.f32 %v7150_v34, %v6028_v3  ;;  %v6117_v5 = vpop.f32.mrb[185].mxu0 }
 0x900   : > { %v6118_v41 = vadd.f32 %v6117_v5, %v6069_v14  ;;  %v7274_v17 = vpop.f32.mrb[186].mxu0 }
 0x901   : > { %v6126_v18 = vadd.f32 %v7273_v52, %v6077_v38  ;;  %v6080_v9 = vadd.f32 %v7153_v40, %v6031_v10  ;;  %v6120_v50 = vpop.f32.mrb[187].mxu0 }
 0x902   : > { %v6121_v63 = vadd.f32 %v6120_v50, %v6072_v20  ;;  %v6136_v48 = vmul.f32 %v6132_v27, %v6118_v41 }
 0x903   : > { %v6129_v49 = vadd.f32 %v7274_v17, %v6080_v9  ;;  %v6138_v1 = vmul.f32 %v6134_v13, %v6126_v18 }
 0x904   : > { %v6137_v33 = vmul.f32 %v6133_v55, %v6121_v63 }
 0x905   : > { %v6139_v60 = vmul.f32 %v6135_v6, %v6129_v49 }
 0x906   : > { %v7287_v53 = vpack.c.bf16 %v6137_v33, %v6136_v48 }
 0x907   : > { %v7290_v37 = vpack.c.bf16 %v6139_v60, %v6138_v1 }
 0x908   : > { %7288 = vmatpush3.bf16.msra.mxu0 %v7287_v53 }
 0x909   : > { %7289 = vmatprep.subr.bf16.mxu0 %v7633_v28 }
 0x90c   : > { %7291 = vmatpush3.bf16.msra.mxu0 %v7290_v37 }
 0x90f   : > { %7284 = vmatmul.mubr.msk.f32.vlgmr.msra.gmra.mrb[188].mxu0 %vm1034_vm2, %v6140_v57 }
 0x9e2   : > { %v6210_v24 = vpop.f32.mrb[188].mxu0 }
 0x9e3   : > { %v7285_v4 = vpop.f32.mrb[189].mxu0  ;;  %6214 = vadd.xlane.f32.xlu0 %v6210_v24 }
 0xa70   : > { %v6215_v28 = vpop.xlane.xlu0 %6214 }
 0xa71   : > { %v6223_v56 = vadd.f32 %v6716_v0, %v6215_v28 }
 0xa73   : > { %6225 = vst.msk [vmem:[%s334_s22] sm:$0xff] %vm6224_vm3, %v6223_v56 }
 0xa74 PF: > { %s21_s11 = sadd.s32 1, %s7627_s11  }
 0xa75   : > { %p18_p5 = scmp.ge.s32.totalorder %s21_s11, 4  }
 0xa77   :  { %20 = sbr.rel (!%p18_p5) target bundleno = 3 (0x3), region = 86 }

</bundles_post_ra>
